<compile_context>
chip_gen: v7x
topology: tpu7x:2x2x1
jax: 0.10.0
libtpu: 0.0.40
codegen_flags: <defaults>
</compile_context>

<pallas_src>
import functools

import jax
import jax.numpy as jnp
from jax.experimental import pallas as pl
from jax.experimental.pallas import tpu as pltpu

LEAKY_SLOPE = 0.1
LANE = 128   # lane (last-dim) alignment
SUB = 16     # sublane alignment (16 => safe for bf16 packing)


def _round_up(x, m):
    return (x + m - 1) // m * m


# ----------------------------------------------------------------------------
# Pallas kernel: tiled, tap-accumulated  out = act( A @ W[tap] + bias )
# ----------------------------------------------------------------------------
def _tap_matmul_kernel(a_ref, w_ref, b_ref, o_ref, acc_ref, *, num_taps, leaky):
    t = pl.program_id(1)

    @pl.when(t == 0)
    def _init():
        acc_ref[...] = jnp.zeros_like(acc_ref)

    # bf16 x bf16 -> f32 accumulate on the MXU
    acc_ref[...] += jnp.dot(a_ref[...], w_ref[0],
                            preferred_element_type=jnp.float32)

    @pl.when(t == num_taps - 1)
    def _finalize():
        r = acc_ref[...] + b_ref[...]
        if leaky:
            r = jnp.where(r >= 0.0, r, LEAKY_SLOPE * r)
        o_ref[...] = r.astype(o_ref.dtype)


def _tap_matmul(a, w, bias, *, tm, num_taps, leaky, out_dtype):
    """a: ((num_m + num_taps - 1) * tm, Kp) bf16   (tap t reads blocks m + t)
       w: (num_taps, Kp, Np) bf16,  bias: (1, Np) f32.
       Returns (num_m * tm, Np) in out_dtype."""
    m_a, kp = a.shape
    _, _, np_ = w.shape
    num_m = m_a // tm - (num_taps - 1)

    flops = 2 * num_m * tm * kp * np_ * num_taps
    bytes_accessed = (a.size * a.dtype.itemsize
                      + w.size * w.dtype.itemsize
                      + num_m * tm * np_ * jnp.dtype(out_dtype).itemsize)

    kernel = functools.partial(_tap_matmul_kernel, num_taps=num_taps, leaky=leaky)
    return pl.pallas_call(
        kernel,
        out_shape=jax.ShapeDtypeStruct((num_m * tm, np_), out_dtype),
        grid_spec=pltpu.PrefetchScalarGridSpec(
            num_scalar_prefetch=0,
            grid=(num_m, num_taps),                      # taps (reduction) innermost
            in_specs=[
                pl.BlockSpec((tm, kp), lambda m, t: (m + t, 0)),     # activations
                pl.BlockSpec((1, kp, np_), lambda m, t: (t, 0, 0)),  # per-tap weights
                pl.BlockSpec((1, np_), lambda m, t: (0, 0)),         # bias
            ],
            out_specs=pl.BlockSpec((tm, np_), lambda m, t: (m, 0)),
            scratch_shapes=[pltpu.VMEM((tm, np_), jnp.float32)],
        ),
        compiler_params=pltpu.CompilerParams(
            # spatial tiles across TensorCores (v7x), taps accumulated serially
            dimension_semantics=("parallel", "arbitrary"),
            # budgeted for v7x's 64 MiB physical VMEM (tiles here are far smaller)
            vmem_limit_bytes=48 * 1024 * 1024,
        ),
        cost_estimate=pl.CostEstimate(flops=flops, transcendentals=0,
                                      bytes_accessed=bytes_accessed),
    )(a, w, bias)


# ----------------------------------------------------------------------------
# Generic conv (matches nn.Conv2d(k, stride, pad) [+ LeakyReLU]) via the kernel
# ----------------------------------------------------------------------------
def conv2d(x_nhwc, w_oihw, bias, *, stride, pad, leaky, out_dtype=jnp.bfloat16):
    n, h, w_in, cin = x_nhwc.shape
    cout, _, kh, kw = w_oihw.shape

    xp = jnp.pad(x_nhwc, ((0, 0), (pad, pad), (pad, pad), (0, 0))) if pad else x_nhwc
    hp, wp = h + 2 * pad, w_in + 2 * pad
    ho = (hp - kh) // stride + 1
    wo = (wp - kw) // stride + 1

    lazy = (stride == 1)  # KH taps handled by the grid, no im2col over KH

    if lazy:
        # pack only the KW taps along channels (KW-x duplication, bf16)
        cols = [xp[:, :, j:j + wo, :] for j in range(kw)]
        c = jnp.concatenate(cols, axis=-1) if kw > 1 else cols[0]   # (N, Hp, Wo, KW*Cin)
        num_taps = kh
        rows = hp            # we compute Hp output rows per image; last KH-1 are garbage
        w_mat = jnp.transpose(w_oihw, (2, 3, 1, 0)).reshape(kh, kw * cin, cout)
    else:
        # stride >= 2: full im2col (bf16).
        # TODO(synk): replace with a space-to-depth phase decomposition to drop the
        # KH*KW channel duplication for the strided encoder convs as well.
        cols = []
        for i in range(kh):
            for j in range(kw):
                cols.append(xp[:, i:i + stride * (ho - 1) + 1:stride,
                               j:j + stride * (wo - 1) + 1:stride, :])
        c = jnp.concatenate(cols, axis=-1)                          # (N, Ho, Wo, KH*KW*Cin)
        num_taps = 1
        rows = ho
        w_mat = jnp.transpose(w_oihw, (2, 3, 1, 0)).reshape(1, kh * kw * cin, cout)

    k = c.shape[-1]
    kp = _round_up(k, LANE)
    np_ = _round_up(cout, LANE)        # lane-dense output (avoid masked vst for Cout<128)
    wo_pad = _round_up(wo, SUB)

    c = jnp.pad(c, ((0, 0), (0, 0), (0, wo_pad - wo), (0, kp - k)))
    w_mat = jnp.pad(w_mat, ((0, 0), (0, kp - k), (0, np_ - cout))).astype(jnp.bfloat16)
    b_mat = jnp.pad(bias.astype(jnp.float32).reshape(1, cout), ((0, 0), (0, np_ - cout)))

    a = c.astype(jnp.bfloat16).reshape(n * rows * wo_pad, kp)

    if lazy:
        tm = wo_pad                      # tap offsets (kh rows) are exact block multiples
        if num_taps > 1:
            a = jnp.pad(a, ((0, (num_taps - 1) * tm), (0, 0)))
    else:
        m = a.shape[0]
        tm = min(256, m)                 # m is a multiple of SUB
        m_padded = _round_up(m, tm)
        if m_padded != m:
            a = jnp.pad(a, ((0, m_padded - m), (0, 0)))

    out = _tap_matmul(a, w_mat, b_mat, tm=tm, num_taps=num_taps,
                      leaky=leaky, out_dtype=out_dtype)

    out = out[: n * rows * wo_pad]
    out = out.reshape(n, rows, wo_pad, np_)[:, :ho, :wo, :cout]
    return out


# ----------------------------------------------------------------------------
# Deconv (ConvTranspose2d k=3, s=2, p=1, no bias) + LeakyReLU via 4 sub-pixel phases
# ----------------------------------------------------------------------------
def deconv2d(x_nhwc, w_iohw, *, out_dtype=jnp.bfloat16):
    n, h, w_sp, _ = x_nhwc.shape
    cout = w_iohw.shape[1]
    zero_b = jnp.zeros((cout,), jnp.float32)
    wt = w_iohw  # (Cin, Cout, 3, 3)

    # out[2m,2n]     = x[m,n]·w[1,1]
    w_ee = jnp.transpose(wt[:, :, 1:2, 1:2], (1, 0, 2, 3))                       # (Co,Ci,1,1)
    # out[2m,2n+1]   = x[m,n]·w[1,2] + x[m,n+1]·w[1,0]
    w_eo = jnp.transpose(jnp.stack([wt[:, :, 1, 2], wt[:, :, 1, 0]], -1)[:, :, None, :],
                         (1, 0, 2, 3))                                           # (Co,Ci,1,2)
    # out[2m+1,2n]   = x[m,n]·w[2,1] + x[m+1,n]·w[0,1]
    w_oe = jnp.transpose(jnp.stack([wt[:, :, 2, 1], wt[:, :, 0, 1]], -1)[:, :, :, None],
                         (1, 0, 2, 3))                                           # (Co,Ci,2,1)
    # out[2m+1,2n+1] = x[m,n]·w[2,2] + x[m,n+1]·w[2,0] + x[m+1,n]·w[0,2] + x[m+1,n+1]·w[0,0]
    r0 = jnp.stack([wt[:, :, 2, 2], wt[:, :, 2, 0]], -1)
    r1 = jnp.stack([wt[:, :, 0, 2], wt[:, :, 0, 0]], -1)
    w_oo = jnp.transpose(jnp.stack([r0, r1], -2), (1, 0, 2, 3))                  # (Co,Ci,2,2)

    ee = conv2d(x_nhwc, w_ee, zero_b, stride=1, pad=0, leaky=True, out_dtype=out_dtype)
    eo = conv2d(x_nhwc, w_eo, zero_b, stride=1, pad=0, leaky=True, out_dtype=out_dtype)
    oe = conv2d(x_nhwc, w_oe, zero_b, stride=1, pad=0, leaky=True, out_dtype=out_dtype)
    oo = conv2d(x_nhwc, w_oo, zero_b, stride=1, pad=0, leaky=True, out_dtype=out_dtype)

    out = jnp.zeros((n, 2 * h - 1, 2 * w_sp - 1, cout), out_dtype)
    out = out.at[:, 0::2, 0::2].set(ee).at[:, 0::2, 1::2].set(eo)
    out = out.at[:, 1::2, 0::2].set(oe).at[:, 1::2, 1::2].set(oo)
    return out


def concatenate_as(tensors, ref):
    """concatenate_as(tensors, ref, dim=1): resize to ref HxW, concat channels."""
    _, h, w_sp, _ = ref.shape
    out = []
    for t in tensors:
        if t.shape[1:3] != (h, w_sp):
            # TODO(synk): bilinear resize kept in plain JAX (half-pixel centers ==
            # F.interpolate(align_corners=False)); verify against the repo's helper.
            t = jax.image.resize(t, (t.shape[0], h, w_sp, t.shape[3]), method="bilinear")
        out.append(t)
    # TODO(synk): this concat could be fused into the following deconv by splitting its
    # weight over the two halves (two accumulating matmuls) to skip the HBM round-trip.
    return jnp.concatenate(out, axis=-1)


# ----------------------------------------------------------------------------
# Parameters (deterministic MSRA-style init)
# ----------------------------------------------------------------------------
def init_params(key, num_pred=2):
    params = {}

    def kaiming(k, shape, fan_in):
        return jax.random.normal(k, shape, jnp.float32) * jnp.sqrt(2.0 / fan_in)

    keys = iter(jax.random.split(key, 16))

    def add_conv(name, cin, cout, k=3, bias=True):
        params[name + "_w"] = kaiming(next(keys), (cout, cin, k, k), cin * k * k)
        if bias:
            params[name + "_b"] = jnp.zeros((cout,), jnp.float32)

    def add_deconv(name, cin, cout, k=3):
        # PyTorch ConvTranspose2d weight layout: (Cin, Cout, KH, KW)
        params[name + "_w"] = kaiming(next(keys), (cin, cout, k, k), cin * k * k)

    add_conv("conv1", 6, 64)
    add_conv("conv2", 64, 128)
    add_conv("conv2_1", 128, 128)
    add_conv("conv3", 128, 256)
    add_conv("conv3_1", 256, 256)
    add_deconv("deconv3", 256, 128)
    add_deconv("deconv2", 256, 64)
    add_deconv("deconv1", 128, 32)
    add_conv("predict_flow1", 32, num_pred)
    return params


# ----------------------------------------------------------------------------
# Forward pass (mirrors TinyFlowNetS.forward)
# ----------------------------------------------------------------------------
def tiny_flownet_s(params, inputs_nchw):
    x = jnp.transpose(inputs_nchw, (0, 2, 3, 1)).astype(jnp.float32)  # NCHW -> NHWC

    conv1 = conv2d(x, params["conv1_w"], params["conv1_b"], stride=2, pad=1, leaky=True)
    conv2 = conv2d(conv1, params["conv2_w"], params["conv2_b"], stride=2, pad=1, leaky=True)
    conv2_1 = conv2d(conv2, params["conv2_1_w"], params["conv2_1_b"],
                     stride=1, pad=1, leaky=True)
    conv3 = conv2d(conv2_1, params["conv3_w"], params["conv3_b"], stride=2, pad=1, leaky=True)
    conv3_1 = conv2d(conv3, params["conv3_1_w"], params["conv3_1_b"],
                     stride=1, pad=1, leaky=True)

    deconv3 = deconv2d(conv3_1, params["deconv3_w"])
    concat3 = concatenate_as([conv2_1, deconv3], conv2_1)

    deconv2 = deconv2d(concat3, params["deconv2_w"])
    concat2 = concatenate_as([conv1, deconv2], conv1)

    deconv1 = deconv2d(concat2, params["deconv1_w"])
    flow = conv2d(deconv1, params["predict_flow1_w"], params["predict_flow1_b"],
                  stride=1, pad=1, leaky=False, out_dtype=jnp.float32)

    return jnp.transpose(flow, (0, 3, 1, 2))  # back to NCHW


if __name__ == "__main__":
    key = jax.random.PRNGKey(0)
    pkey, xkey = jax.random.split(key)

    params = init_params(pkey, num_pred=2)
    # two stacked RGB frames -> 6 input channels
    x = jax.random.normal(xkey, (2, 6, 16, 16), jnp.float32)

    fwd = jax.jit(tiny_flownet_s)
    out = jax.block_until_ready(fwd(params, x))

    # conv1: 8x8, conv2/2_1: 4x4, conv3/3_1: 2x2, deconv1: 15x15 -> flow (2, 2, 15, 15)
    assert out.shape == (2, 2, 15, 15), out.shape
    assert out.dtype == jnp.float32
    print("KERNEL_OK")
</pallas_src>

<mosaic_0001>
module attributes {stable_mosaic.version = 11 : i64} {
  func.func @_tap_matmul_kernel(%arg0: i32, %arg1: i32, %arg2: memref<256x128xbf16, #tpu.memory_space<vmem>>, %arg3: memref<1x128x128xbf16, #tpu.memory_space<vmem>>, %arg4: memref<1x128xf32, #tpu.memory_space<vmem>>, %arg5: memref<256x128xbf16, #tpu.memory_space<vmem>>, %arg6: memref<256x128xf32, #tpu.memory_space<vmem>>) attributes {dimension_semantics = [#tpu.dimension_semantics<parallel>, #tpu.dimension_semantics<arbitrary>], iteration_bounds = array<i64: 1, 1>, scalar_prefetch = 0 : i64, scratch_operands = 1 : i64, tpu.core_type = #tpu.core_type<tc>, window_params = [{transform_indices = @transform_0, window_bounds = array<i64: 256, 128>}, {transform_indices = @transform_1, window_bounds = array<i64: 1, 128, 128>}, {pipeline_mode = #tpu.pipeline_mode<synchronous>, transform_indices = @transform_2, window_bounds = array<i64: 1, 128>}, {transform_indices = @transform_3, window_bounds = array<i64: 256, 128>}]} {
    %c0_i32 = arith.constant 0 : i32
    %0 = arith.cmpi eq, %arg1, %c0_i32 : i32
    %1 = arith.extui %0 : i1 to i32
    %c0_i32_0 = arith.constant 0 : i32
    %2 = arith.cmpi ne, %1, %c0_i32_0 : i32
    scf.if %2 {
      %cst_11 = arith.constant 0.000000e+00 : f32
      %13 = vector.broadcast %cst_11 : f32 to vector<256x128xf32>
      %c0_12 = arith.constant 0 : index
      %c0_13 = arith.constant 0 : index
      %14 = vector.load %arg6[%c0_12, %c0_13] : memref<256x128xf32, #tpu.memory_space<vmem>>, vector<256x128xf32>
      tpu.vector_store %arg6[%c0_12, %c0_13], %13 {strides = array<i32>} : memref<256x128xf32, #tpu.memory_space<vmem>>, vector<256x128xf32>,
    } else {
    }
    %c0 = arith.constant 0 : index
    %c0_1 = arith.constant 0 : index
    %3 = vector.load %arg6[%c0, %c0_1] : memref<256x128xf32, #tpu.memory_space<vmem>>, vector<256x128xf32>
    %c0_2 = arith.constant 0 : index
    %c0_3 = arith.constant 0 : index
    %4 = vector.load %arg2[%c0_2, %c0_3] : memref<256x128xbf16, #tpu.memory_space<vmem>>, vector<256x128xbf16>
    %c0_4 = arith.constant 0 : index
    %c0_5 = arith.constant 0 : index
    %c0_6 = arith.constant 0 : index
    %5 = vector.load %arg3[%c0_4, %c0_5, %c0_6] : memref<1x128x128xbf16, #tpu.memory_space<vmem>>, vector<1x128x128xbf16>
    %6 = vector.shape_cast %5 : vector<1x128x128xbf16> to vector<128x128xbf16>
    %cst = arith.constant dense<0.000000e+00> : vector<256x128xf32>
    %7 = tpu.matmul %4, %6, %cst {dimension_numbers = #tpu.dot_dimension_numbers<[1], [0], [0], [1], [0, 0, 1, 1], [], []>} : vector<256x128xbf16>, vector<128x128xbf16>, vector<256x128xf32> -> vector<256x128xf32>
    %8 = arith.addf %3, %7 : vector<256x128xf32>
    %c0_7 = arith.constant 0 : index
    %c0_8 = arith.constant 0 : index
    %9 = vector.load %arg6[%c0_7, %c0_8] : memref<256x128xf32, #tpu.memory_space<vmem>>, vector<256x128xf32>
    tpu.vector_store %arg6[%c0_7, %c0_8], %8 {strides = array<i32>} : memref<256x128xf32, #tpu.memory_space<vmem>>, vector<256x128xf32>,
    %c0_i32_9 = arith.constant 0 : i32
    %10 = arith.cmpi eq, %arg1, %c0_i32_9 : i32
    %11 = arith.extui %10 : i1 to i32
    %c0_i32_10 = arith.constant 0 : i32
    %12 = arith.cmpi ne, %11, %c0_i32_10 : i32
    scf.if %12 {
      %c0_11 = arith.constant 0 : index
      %c0_12 = arith.constant 0 : index
      %13 = vector.load %arg6[%c0_11, %c0_12] : memref<256x128xf32, #tpu.memory_space<vmem>>, vector<256x128xf32>
      %c0_13 = arith.constant 0 : index
      %c0_14 = arith.constant 0 : index
      %14 = vector.load %arg4[%c0_13, %c0_14] : memref<1x128xf32, #tpu.memory_space<vmem>>, vector<1x128xf32>
      %15 = vector.broadcast %14 : vector<1x128xf32> to vector<256x128xf32>
      %16 = arith.addf %13, %15 : vector<256x128xf32>
      %cst_15 = arith.constant 0.000000e+00 : f32
      %17 = vector.broadcast %cst_15 : f32 to vector<256x128xf32>
      %18 = arith.cmpf oge, %16, %17 : vector<256x128xf32>
      %cst_16 = arith.constant 1.000000e-01 : f32
      %19 = vector.broadcast %cst_16 : f32 to vector<256x128xf32>
      %20 = arith.mulf %19, %16 : vector<256x128xf32>
      %21 = arith.select %18, %16, %20 : vector<256x128xi1>, vector<256x128xf32>
      %22 = arith.truncf %21 : vector<256x128xf32> to vector<256x128xbf16>
      %c0_17 = arith.constant 0 : index
      %c0_18 = arith.constant 0 : index
      %23 = vector.load %arg5[%c0_17, %c0_18] : memref<256x128xbf16, #tpu.memory_space<vmem>>, vector<256x128xbf16>
      tpu.vector_store %arg5[%c0_17, %c0_18], %22 {strides = array<i32>} : memref<256x128xbf16, #tpu.memory_space<vmem>>, vector<256x128xbf16>,
    } else {
    }
    return
  }
  func.func @transform_0(%arg0: i32, %arg1: i32) -> (i32, i32) {
    %0 = arith.addi %arg0, %arg1 : i32
    %c0_i32 = arith.constant 0 : i32
    %c0_i32_0 = arith.constant 0 : i32
    return %0, %c0_i32 : i32, i32
  }
  func.func @transform_1(%arg0: i32, %arg1: i32) -> (i32, i32, i32) {
    %c0_i32 = arith.constant 0 : i32
    %c0_i32_0 = arith.constant 0 : i32
    %c0_i32_1 = arith.constant 0 : i32
    return %arg1, %c0_i32, %c0_i32_0 : i32, i32, i32
  }
  func.func @transform_2(%arg0: i32, %arg1: i32) -> (i32, i32) {
    %c0_i32 = arith.constant 0 : i32
    %c0_i32_0 = arith.constant 0 : i32
    %c0_i32_1 = arith.constant 0 : i32
    return %c0_i32, %c0_i32_0 : i32, i32
  }
  func.func @transform_3(%arg0: i32, %arg1: i32) -> (i32, i32) {
    %c0_i32 = arith.constant 0 : i32
    %c0_i32_0 = arith.constant 0 : i32
    return %arg0, %c0_i32 : i32, i32
  }
}

module attributes {stable_mosaic.version = 11 : i64} {
  func.func @_tap_matmul_kernel(%arg0: i32, %arg1: i32, %arg2: memref<128x640xbf16, #tpu.memory_space<vmem>>, %arg3: memref<1x640x128xbf16, #tpu.memory_space<vmem>>, %arg4: memref<1x128xf32, #tpu.memory_space<vmem>>, %arg5: memref<128x128xbf16, #tpu.memory_space<vmem>>, %arg6: memref<128x128xf32, #tpu.memory_space<vmem>>) attributes {dimension_semantics = [#tpu.dimension_semantics<parallel>, #tpu.dimension_semantics<arbitrary>], iteration_bounds = array<i64: 1, 1>, scalar_prefetch = 0 : i64, scratch_operands = 1 : i64, tpu.core_type = #tpu.core_type<tc>, window_params = [{transform_indices = @transform_0, window_bounds = array<i64: 128, 640>}, {transform_indices = @transform_1, window_bounds = array<i64: 1, 640, 128>}, {pipeline_mode = #tpu.pipeline_mode<synchronous>, transform_indices = @transform_2, window_bounds = array<i64: 1, 128>}, {transform_indices = @transform_3, window_bounds = array<i64: 128, 128>}]} {
    %c0_i32 = arith.constant 0 : i32
    %0 = arith.cmpi eq, %arg1, %c0_i32 : i32
    %1 = arith.extui %0 : i1 to i32
    %c0_i32_0 = arith.constant 0 : i32
    %2 = arith.cmpi ne, %1, %c0_i32_0 : i32
    scf.if %2 {
      %cst_11 = arith.constant 0.000000e+00 : f32
      %13 = vector.broadcast %cst_11 : f32 to vector<128x128xf32>
      %c0_12 = arith.constant 0 : index
      %c0_13 = arith.constant 0 : index
      %14 = vector.load %arg6[%c0_12, %c0_13] : memref<128x128xf32, #tpu.memory_space<vmem>>, vector<128x128xf32>
      tpu.vector_store %arg6[%c0_12, %c0_13], %13 {strides = array<i32>} : memref<128x128xf32, #tpu.memory_space<vmem>>, vector<128x128xf32>,
    } else {
    }
    %c0 = arith.constant 0 : index
    %c0_1 = arith.constant 0 : index
    %3 = vector.load %arg6[%c0, %c0_1] : memref<128x128xf32, #tpu.memory_space<vmem>>, vector<128x128xf32>
    %c0_2 = arith.constant 0 : index
    %c0_3 = arith.constant 0 : index
    %4 = vector.load %arg2[%c0_2, %c0_3] : memref<128x640xbf16, #tpu.memory_space<vmem>>, vector<128x640xbf16>
    %c0_4 = arith.constant 0 : index
    %c0_5 = arith.constant 0 : index
    %c0_6 = arith.constant 0 : index
    %5 = vector.load %arg3[%c0_4, %c0_5, %c0_6] : memref<1x640x128xbf16, #tpu.memory_space<vmem>>, vector<1x640x128xbf16>
    %6 = vector.shape_cast %5 : vector<1x640x128xbf16> to vector<640x128xbf16>
    %cst = arith.constant dense<0.000000e+00> : vector<128x128xf32>
    %7 = tpu.matmul %4, %6, %cst {dimension_numbers = #tpu.dot_dimension_numbers<[1], [0], [0], [1], [0, 0, 1, 1], [], []>} : vector<128x640xbf16>, vector<640x128xbf16>, vector<128x128xf32> -> vector<128x128xf32>
    %8 = arith.addf %3, %7 : vector<128x128xf32>
    %c0_7 = arith.constant 0 : index
    %c0_8 = arith.constant 0 : index
    %9 = vector.load %arg6[%c0_7, %c0_8] : memref<128x128xf32, #tpu.memory_space<vmem>>, vector<128x128xf32>
    tpu.vector_store %arg6[%c0_7, %c0_8], %8 {strides = array<i32>} : memref<128x128xf32, #tpu.memory_space<vmem>>, vector<128x128xf32>,
    %c0_i32_9 = arith.constant 0 : i32
    %10 = arith.cmpi eq, %arg1, %c0_i32_9 : i32
    %11 = arith.extui %10 : i1 to i32
    %c0_i32_10 = arith.constant 0 : i32
    %12 = arith.cmpi ne, %11, %c0_i32_10 : i32
    scf.if %12 {
      %c0_11 = arith.constant 0 : index
      %c0_12 = arith.constant 0 : index
      %13 = vector.load %arg6[%c0_11, %c0_12] : memref<128x128xf32, #tpu.memory_space<vmem>>, vector<128x128xf32>
      %c0_13 = arith.constant 0 : index
      %c0_14 = arith.constant 0 : index
      %14 = vector.load %arg4[%c0_13, %c0_14] : memref<1x128xf32, #tpu.memory_space<vmem>>, vector<1x128xf32>
      %15 = vector.broadcast %14 : vector<1x128xf32> to vector<128x128xf32>
      %16 = arith.addf %13, %15 : vector<128x128xf32>
      %cst_15 = arith.constant 0.000000e+00 : f32
      %17 = vector.broadcast %cst_15 : f32 to vector<128x128xf32>
      %18 = arith.cmpf oge, %16, %17 : vector<128x128xf32>
      %cst_16 = arith.constant 1.000000e-01 : f32
      %19 = vector.broadcast %cst_16 : f32 to vector<128x128xf32>
      %20 = arith.mulf %19, %16 : vector<128x128xf32>
      %21 = arith.select %18, %16, %20 : vector<128x128xi1>, vector<128x128xf32>
      %22 = arith.truncf %21 : vector<128x128xf32> to vector<128x128xbf16>
      %c0_17 = arith.constant 0 : index
      %c0_18 = arith.constant 0 : index
      %23 = vector.load %arg5[%c0_17, %c0_18] : memref<128x128xbf16, #tpu.memory_space<vmem>>, vector<128x128xbf16>
      tpu.vector_store %arg5[%c0_17, %c0_18], %22 {strides = array<i32>} : memref<128x128xbf16, #tpu.memory_space<vmem>>, vector<128x128xbf16>,
    } else {
    }
    return
  }
  func.func @transform_0(%arg0: i32, %arg1: i32) -> (i32, i32) {
    %0 = arith.addi %arg0, %arg1 : i32
    %c0_i32 = arith.constant 0 : i32
    %c0_i32_0 = arith.constant 0 : i32
    return %0, %c0_i32 : i32, i32
  }
  func.func @transform_1(%arg0: i32, %arg1: i32) -> (i32, i32, i32) {
    %c0_i32 = arith.constant 0 : i32
    %c0_i32_0 = arith.constant 0 : i32
    %c0_i32_1 = arith.constant 0 : i32
    return %arg1, %c0_i32, %c0_i32_0 : i32, i32, i32
  }
  func.func @transform_2(%arg0: i32, %arg1: i32) -> (i32, i32) {
    %c0_i32 = arith.constant 0 : i32
    %c0_i32_0 = arith.constant 0 : i32
    %c0_i32_1 = arith.constant 0 : i32
    return %c0_i32, %c0_i32_0 : i32, i32
  }
  func.func @transform_3(%arg0: i32, %arg1: i32) -> (i32, i32) {
    %c0_i32 = arith.constant 0 : i32
    %c0_i32_0 = arith.constant 0 : i32
    return %arg0, %c0_i32 : i32, i32
  }
}

module attributes {stable_mosaic.version = 11 : i64} {
  func.func @_tap_matmul_kernel(%arg0: i32, %arg1: i32, %arg2: memref<16x384xbf16, #tpu.memory_space<vmem>>, %arg3: memref<1x384x128xbf16, #tpu.memory_space<vmem>>, %arg4: memref<1x128xf32, #tpu.memory_space<vmem>>, %arg5: memref<16x128xbf16, #tpu.memory_space<vmem>>, %arg6: memref<16x128xf32, #tpu.memory_space<vmem>>) attributes {dimension_semantics = [#tpu.dimension_semantics<parallel>, #tpu.dimension_semantics<arbitrary>], iteration_bounds = array<i64: 12, 3>, scalar_prefetch = 0 : i64, scratch_operands = 1 : i64, tpu.core_type = #tpu.core_type<tc>, window_params = [{transform_indices = @transform_0, window_bounds = array<i64: 16, 384>}, {transform_indices = @transform_1, window_bounds = array<i64: 1, 384, 128>}, {pipeline_mode = #tpu.pipeline_mode<synchronous>, transform_indices = @transform_2, window_bounds = array<i64: 1, 128>}, {transform_indices = @transform_3, window_bounds = array<i64: 16, 128>}]} {
    %c0_i32 = arith.constant 0 : i32
    %0 = arith.cmpi eq, %arg1, %c0_i32 : i32
    %1 = arith.extui %0 : i1 to i32
    %c0_i32_0 = arith.constant 0 : i32
    %2 = arith.cmpi ne, %1, %c0_i32_0 : i32
    scf.if %2 {
      %cst_10 = arith.constant 0.000000e+00 : f32
      %13 = vector.broadcast %cst_10 : f32 to vector<16x128xf32>
      %c0_11 = arith.constant 0 : index
      %c0_12 = arith.constant 0 : index
      %14 = vector.load %arg6[%c0_11, %c0_12] : memref<16x128xf32, #tpu.memory_space<vmem>>, vector<16x128xf32>
      tpu.vector_store %arg6[%c0_11, %c0_12], %13 {strides = array<i32>} : memref<16x128xf32, #tpu.memory_space<vmem>>, vector<16x128xf32>,
    } else {
    }
    %c0 = arith.constant 0 : index
    %c0_1 = arith.constant 0 : index
    %3 = vector.load %arg6[%c0, %c0_1] : memref<16x128xf32, #tpu.memory_space<vmem>>, vector<16x128xf32>
    %c0_2 = arith.constant 0 : index
    %c0_3 = arith.constant 0 : index
    %4 = vector.load %arg2[%c0_2, %c0_3] : memref<16x384xbf16, #tpu.memory_space<vmem>>, vector<16x384xbf16>
    %c0_4 = arith.constant 0 : index
    %c0_5 = arith.constant 0 : index
    %c0_6 = arith.constant 0 : index
    %5 = vector.load %arg3[%c0_4, %c0_5, %c0_6] : memref<1x384x128xbf16, #tpu.memory_space<vmem>>, vector<1x384x128xbf16>
    %6 = vector.shape_cast %5 : vector<1x384x128xbf16> to vector<384x128xbf16>
    %cst = arith.constant dense<0.000000e+00> : vector<16x128xf32>
    %7 = tpu.matmul %4, %6, %cst {dimension_numbers = #tpu.dot_dimension_numbers<[1], [0], [0], [1], [0, 0, 1, 1], [], []>} : vector<16x384xbf16>, vector<384x128xbf16>, vector<16x128xf32> -> vector<16x128xf32>
    %8 = arith.addf %3, %7 : vector<16x128xf32>
    %c0_7 = arith.constant 0 : index
    %c0_8 = arith.constant 0 : index
    %9 = vector.load %arg6[%c0_7, %c0_8] : memref<16x128xf32, #tpu.memory_space<vmem>>, vector<16x128xf32>
    tpu.vector_store %arg6[%c0_7, %c0_8], %8 {strides = array<i32>} : memref<16x128xf32, #tpu.memory_space<vmem>>, vector<16x128xf32>,
    %c2_i32 = arith.constant 2 : i32
    %10 = arith.cmpi eq, %arg1, %c2_i32 : i32
    %11 = arith.extui %10 : i1 to i32
    %c0_i32_9 = arith.constant 0 : i32
    %12 = arith.cmpi ne, %11, %c0_i32_9 : i32
    scf.if %12 {
      %c0_10 = arith.constant 0 : index
      %c0_11 = arith.constant 0 : index
      %13 = vector.load %arg6[%c0_10, %c0_11] : memref<16x128xf32, #tpu.memory_space<vmem>>, vector<16x128xf32>
      %c0_12 = arith.constant 0 : index
      %c0_13 = arith.constant 0 : index
      %14 = vector.load %arg4[%c0_12, %c0_13] : memref<1x128xf32, #tpu.memory_space<vmem>>, vector<1x128xf32>
      %15 = vector.broadcast %14 : vector<1x128xf32> to vector<16x128xf32>
      %16 = arith.addf %13, %15 : vector<16x128xf32>
      %cst_14 = arith.constant 0.000000e+00 : f32
      %17 = vector.broadcast %cst_14 : f32 to vector<16x128xf32>
      %18 = arith.cmpf oge, %16, %17 : vector<16x128xf32>
      %cst_15 = arith.constant 1.000000e-01 : f32
      %19 = vector.broadcast %cst_15 : f32 to vector<16x128xf32>
      %20 = arith.mulf %19, %16 : vector<16x128xf32>
      %21 = arith.select %18, %16, %20 : vector<16x128xi1>, vector<16x128xf32>
      %22 = arith.truncf %21 : vector<16x128xf32> to vector<16x128xbf16>
      %c0_16 = arith.constant 0 : index
      %c0_17 = arith.constant 0 : index
      %23 = vector.load %arg5[%c0_16, %c0_17] : memref<16x128xbf16, #tpu.memory_space<vmem>>, vector<16x128xbf16>
      tpu.vector_store %arg5[%c0_16, %c0_17], %22 {strides = array<i32>} : memref<16x128xbf16, #tpu.memory_space<vmem>>, vector<16x128xbf16>,
    } else {
    }
    return
  }
  func.func @transform_0(%arg0: i32, %arg1: i32) -> (i32, i32) {
    %0 = arith.addi %arg0, %arg1 : i32
    %c0_i32 = arith.constant 0 : i32
    %c0_i32_0 = arith.constant 0 : i32
    return %0, %c0_i32 : i32, i32
  }
  func.func @transform_1(%arg0: i32, %arg1: i32) -> (i32, i32, i32) {
    %c0_i32 = arith.constant 0 : i32
    %c0_i32_0 = arith.constant 0 : i32
    %c0_i32_1 = arith.constant 0 : i32
    return %arg1, %c0_i32, %c0_i32_0 : i32, i32, i32
  }
  func.func @transform_2(%arg0: i32, %arg1: i32) -> (i32, i32) {
    %c0_i32 = arith.constant 0 : i32
    %c0_i32_0 = arith.constant 0 : i32
    %c0_i32_1 = arith.constant 0 : i32
    return %c0_i32, %c0_i32_0 : i32, i32
  }
  func.func @transform_3(%arg0: i32, %arg1: i32) -> (i32, i32) {
    %c0_i32 = arith.constant 0 : i32
    %c0_i32_0 = arith.constant 0 : i32
    return %arg0, %c0_i32 : i32, i32
  }
}

module attributes {stable_mosaic.version = 11 : i64} {
  func.func @_tap_matmul_kernel(%arg0: i32, %arg1: i32, %arg2: memref<64x1152xbf16, #tpu.memory_space<vmem>>, %arg3: memref<1x1152x256xbf16, #tpu.memory_space<vmem>>, %arg4: memref<1x256xf32, #tpu.memory_space<vmem>>, %arg5: memref<64x256xbf16, #tpu.memory_space<vmem>>, %arg6: memref<64x256xf32, #tpu.memory_space<vmem>>) attributes {dimension_semantics = [#tpu.dimension_semantics<parallel>, #tpu.dimension_semantics<arbitrary>], iteration_bounds = array<i64: 1, 1>, scalar_prefetch = 0 : i64, scratch_operands = 1 : i64, tpu.core_type = #tpu.core_type<tc>, window_params = [{transform_indices = @transform_0, window_bounds = array<i64: 64, 1152>}, {transform_indices = @transform_1, window_bounds = array<i64: 1, 1152, 256>}, {pipeline_mode = #tpu.pipeline_mode<synchronous>, transform_indices = @transform_2, window_bounds = array<i64: 1, 256>}, {transform_indices = @transform_3, window_bounds = array<i64: 64, 256>}]} {
    %c0_i32 = arith.constant 0 : i32
    %0 = arith.cmpi eq, %arg1, %c0_i32 : i32
    %1 = arith.extui %0 : i1 to i32
    %c0_i32_0 = arith.constant 0 : i32
    %2 = arith.cmpi ne, %1, %c0_i32_0 : i32
    scf.if %2 {
      %cst_11 = arith.constant 0.000000e+00 : f32
      %13 = vector.broadcast %cst_11 : f32 to vector<64x256xf32>
      %c0_12 = arith.constant 0 : index
      %c0_13 = arith.constant 0 : index
      %14 = vector.load %arg6[%c0_12, %c0_13] : memref<64x256xf32, #tpu.memory_space<vmem>>, vector<64x256xf32>
      tpu.vector_store %arg6[%c0_12, %c0_13], %13 {strides = array<i32>} : memref<64x256xf32, #tpu.memory_space<vmem>>, vector<64x256xf32>,
    } else {
    }
    %c0 = arith.constant 0 : index
    %c0_1 = arith.constant 0 : index
    %3 = vector.load %arg6[%c0, %c0_1] : memref<64x256xf32, #tpu.memory_space<vmem>>, vector<64x256xf32>
    %c0_2 = arith.constant 0 : index
    %c0_3 = arith.constant 0 : index
    %4 = vector.load %arg2[%c0_2, %c0_3] : memref<64x1152xbf16, #tpu.memory_space<vmem>>, vector<64x1152xbf16>
    %c0_4 = arith.constant 0 : index
    %c0_5 = arith.constant 0 : index
    %c0_6 = arith.constant 0 : index
    %5 = vector.load %arg3[%c0_4, %c0_5, %c0_6] : memref<1x1152x256xbf16, #tpu.memory_space<vmem>>, vector<1x1152x256xbf16>
    %6 = vector.shape_cast %5 : vector<1x1152x256xbf16> to vector<1152x256xbf16>
    %cst = arith.constant dense<0.000000e+00> : vector<64x256xf32>
    %7 = tpu.matmul %4, %6, %cst {dimension_numbers = #tpu.dot_dimension_numbers<[1], [0], [0], [1], [0, 0, 1, 1], [], []>} : vector<64x1152xbf16>, vector<1152x256xbf16>, vector<64x256xf32> -> vector<64x256xf32>
    %8 = arith.addf %3, %7 : vector<64x256xf32>
    %c0_7 = arith.constant 0 : index
    %c0_8 = arith.constant 0 : index
    %9 = vector.load %arg6[%c0_7, %c0_8] : memref<64x256xf32, #tpu.memory_space<vmem>>, vector<64x256xf32>
    tpu.vector_store %arg6[%c0_7, %c0_8], %8 {strides = array<i32>} : memref<64x256xf32, #tpu.memory_space<vmem>>, vector<64x256xf32>,
    %c0_i32_9 = arith.constant 0 : i32
    %10 = arith.cmpi eq, %arg1, %c0_i32_9 : i32
    %11 = arith.extui %10 : i1 to i32
    %c0_i32_10 = arith.constant 0 : i32
    %12 = arith.cmpi ne, %11, %c0_i32_10 : i32
    scf.if %12 {
      %c0_11 = arith.constant 0 : index
      %c0_12 = arith.constant 0 : index
      %13 = vector.load %arg6[%c0_11, %c0_12] : memref<64x256xf32, #tpu.memory_space<vmem>>, vector<64x256xf32>
      %c0_13 = arith.constant 0 : index
      %c0_14 = arith.constant 0 : index
      %14 = vector.load %arg4[%c0_13, %c0_14] : memref<1x256xf32, #tpu.memory_space<vmem>>, vector<1x256xf32>
      %15 = vector.broadcast %14 : vector<1x256xf32> to vector<64x256xf32>
      %16 = arith.addf %13, %15 : vector<64x256xf32>
      %cst_15 = arith.constant 0.000000e+00 : f32
      %17 = vector.broadcast %cst_15 : f32 to vector<64x256xf32>
      %18 = arith.cmpf oge, %16, %17 : vector<64x256xf32>
      %cst_16 = arith.constant 1.000000e-01 : f32
      %19 = vector.broadcast %cst_16 : f32 to vector<64x256xf32>
      %20 = arith.mulf %19, %16 : vector<64x256xf32>
      %21 = arith.select %18, %16, %20 : vector<64x256xi1>, vector<64x256xf32>
      %22 = arith.truncf %21 : vector<64x256xf32> to vector<64x256xbf16>
      %c0_17 = arith.constant 0 : index
      %c0_18 = arith.constant 0 : index
      %23 = vector.load %arg5[%c0_17, %c0_18] : memref<64x256xbf16, #tpu.memory_space<vmem>>, vector<64x256xbf16>
      tpu.vector_store %arg5[%c0_17, %c0_18], %22 {strides = array<i32>} : memref<64x256xbf16, #tpu.memory_space<vmem>>, vector<64x256xbf16>,
    } else {
    }
    return
  }
  func.func @transform_0(%arg0: i32, %arg1: i32) -> (i32, i32) {
    %0 = arith.addi %arg0, %arg1 : i32
    %c0_i32 = arith.constant 0 : i32
    %c0_i32_0 = arith.constant 0 : i32
    return %0, %c0_i32 : i32, i32
  }
  func.func @transform_1(%arg0: i32, %arg1: i32) -> (i32, i32, i32) {
    %c0_i32 = arith.constant 0 : i32
    %c0_i32_0 = arith.constant 0 : i32
    %c0_i32_1 = arith.constant 0 : i32
    return %arg1, %c0_i32, %c0_i32_0 : i32, i32, i32
  }
  func.func @transform_2(%arg0: i32, %arg1: i32) -> (i32, i32) {
    %c0_i32 = arith.constant 0 : i32
    %c0_i32_0 = arith.constant 0 : i32
    %c0_i32_1 = arith.constant 0 : i32
    return %c0_i32, %c0_i32_0 : i32, i32
  }
  func.func @transform_3(%arg0: i32, %arg1: i32) -> (i32, i32) {
    %c0_i32 = arith.constant 0 : i32
    %c0_i32_0 = arith.constant 0 : i32
    return %arg0, %c0_i32 : i32, i32
  }
}

module attributes {stable_mosaic.version = 11 : i64} {
  func.func @_tap_matmul_kernel(%arg0: i32, %arg1: i32, %arg2: memref<16x768xbf16, #tpu.memory_space<vmem>>, %arg3: memref<1x768x256xbf16, #tpu.memory_space<vmem>>, %arg4: memref<1x256xf32, #tpu.memory_space<vmem>>, %arg5: memref<16x256xbf16, #tpu.memory_space<vmem>>, %arg6: memref<16x256xf32, #tpu.memory_space<vmem>>) attributes {dimension_semantics = [#tpu.dimension_semantics<parallel>, #tpu.dimension_semantics<arbitrary>], iteration_bounds = array<i64: 8, 3>, scalar_prefetch = 0 : i64, scratch_operands = 1 : i64, tpu.core_type = #tpu.core_type<tc>, window_params = [{transform_indices = @transform_0, window_bounds = array<i64: 16, 768>}, {transform_indices = @transform_1, window_bounds = array<i64: 1, 768, 256>}, {pipeline_mode = #tpu.pipeline_mode<synchronous>, transform_indices = @transform_2, window_bounds = array<i64: 1, 256>}, {transform_indices = @transform_3, window_bounds = array<i64: 16, 256>}]} {
    %c0_i32 = arith.constant 0 : i32
    %0 = arith.cmpi eq, %arg1, %c0_i32 : i32
    %1 = arith.extui %0 : i1 to i32
    %c0_i32_0 = arith.constant 0 : i32
    %2 = arith.cmpi ne, %1, %c0_i32_0 : i32
    scf.if %2 {
      %cst_10 = arith.constant 0.000000e+00 : f32
      %13 = vector.broadcast %cst_10 : f32 to vector<16x256xf32>
      %c0_11 = arith.constant 0 : index
      %c0_12 = arith.constant 0 : index
      %14 = vector.load %arg6[%c0_11, %c0_12] : memref<16x256xf32, #tpu.memory_space<vmem>>, vector<16x256xf32>
      tpu.vector_store %arg6[%c0_11, %c0_12], %13 {strides = array<i32>} : memref<16x256xf32, #tpu.memory_space<vmem>>, vector<16x256xf32>,
    } else {
    }
    %c0 = arith.constant 0 : index
    %c0_1 = arith.constant 0 : index
    %3 = vector.load %arg6[%c0, %c0_1] : memref<16x256xf32, #tpu.memory_space<vmem>>, vector<16x256xf32>
    %c0_2 = arith.constant 0 : index
    %c0_3 = arith.constant 0 : index
    %4 = vector.load %arg2[%c0_2, %c0_3] : memref<16x768xbf16, #tpu.memory_space<vmem>>, vector<16x768xbf16>
    %c0_4 = arith.constant 0 : index
    %c0_5 = arith.constant 0 : index
    %c0_6 = arith.constant 0 : index
    %5 = vector.load %arg3[%c0_4, %c0_5, %c0_6] : memref<1x768x256xbf16, #tpu.memory_space<vmem>>, vector<1x768x256xbf16>
    %6 = vector.shape_cast %5 : vector<1x768x256xbf16> to vector<768x256xbf16>
    %cst = arith.constant dense<0.000000e+00> : vector<16x256xf32>
    %7 = tpu.matmul %4, %6, %cst {dimension_numbers = #tpu.dot_dimension_numbers<[1], [0], [0], [1], [0, 0, 1, 1], [], []>} : vector<16x768xbf16>, vector<768x256xbf16>, vector<16x256xf32> -> vector<16x256xf32>
    %8 = arith.addf %3, %7 : vector<16x256xf32>
    %c0_7 = arith.constant 0 : index
    %c0_8 = arith.constant 0 : index
    %9 = vector.load %arg6[%c0_7, %c0_8] : memref<16x256xf32, #tpu.memory_space<vmem>>, vector<16x256xf32>
    tpu.vector_store %arg6[%c0_7, %c0_8], %8 {strides = array<i32>} : memref<16x256xf32, #tpu.memory_space<vmem>>, vector<16x256xf32>,
    %c2_i32 = arith.constant 2 : i32
    %10 = arith.cmpi eq, %arg1, %c2_i32 : i32
    %11 = arith.extui %10 : i1 to i32
    %c0_i32_9 = arith.constant 0 : i32
    %12 = arith.cmpi ne, %11, %c0_i32_9 : i32
    scf.if %12 {
      %c0_10 = arith.constant 0 : index
      %c0_11 = arith.constant 0 : index
      %13 = vector.load %arg6[%c0_10, %c0_11] : memref<16x256xf32, #tpu.memory_space<vmem>>, vector<16x256xf32>
      %c0_12 = arith.constant 0 : index
      %c0_13 = arith.constant 0 : index
      %14 = vector.load %arg4[%c0_12, %c0_13] : memref<1x256xf32, #tpu.memory_space<vmem>>, vector<1x256xf32>
      %15 = vector.broadcast %14 : vector<1x256xf32> to vector<16x256xf32>
      %16 = arith.addf %13, %15 : vector<16x256xf32>
      %cst_14 = arith.constant 0.000000e+00 : f32
      %17 = vector.broadcast %cst_14 : f32 to vector<16x256xf32>
      %18 = arith.cmpf oge, %16, %17 : vector<16x256xf32>
      %cst_15 = arith.constant 1.000000e-01 : f32
      %19 = vector.broadcast %cst_15 : f32 to vector<16x256xf32>
      %20 = arith.mulf %19, %16 : vector<16x256xf32>
      %21 = arith.select %18, %16, %20 : vector<16x256xi1>, vector<16x256xf32>
      %22 = arith.truncf %21 : vector<16x256xf32> to vector<16x256xbf16>
      %c0_16 = arith.constant 0 : index
      %c0_17 = arith.constant 0 : index
      %23 = vector.load %arg5[%c0_16, %c0_17] : memref<16x256xbf16, #tpu.memory_space<vmem>>, vector<16x256xbf16>
      tpu.vector_store %arg5[%c0_16, %c0_17], %22 {strides = array<i32>} : memref<16x256xbf16, #tpu.memory_space<vmem>>, vector<16x256xbf16>,
    } else {
    }
    return
  }
  func.func @transform_0(%arg0: i32, %arg1: i32) -> (i32, i32) {
    %0 = arith.addi %arg0, %arg1 : i32
    %c0_i32 = arith.constant 0 : i32
    %c0_i32_0 = arith.constant 0 : i32
    return %0, %c0_i32 : i32, i32
  }
  func.func @transform_1(%arg0: i32, %arg1: i32) -> (i32, i32, i32) {
    %c0_i32 = arith.constant 0 : i32
    %c0_i32_0 = arith.constant 0 : i32
    %c0_i32_1 = arith.constant 0 : i32
    return %arg1, %c0_i32, %c0_i32_0 : i32, i32, i32
  }
  func.func @transform_2(%arg0: i32, %arg1: i32) -> (i32, i32) {
    %c0_i32 = arith.constant 0 : i32
    %c0_i32_0 = arith.constant 0 : i32
    %c0_i32_1 = arith.constant 0 : i32
    return %c0_i32, %c0_i32_0 : i32, i32
  }
  func.func @transform_3(%arg0: i32, %arg1: i32) -> (i32, i32) {
    %c0_i32 = arith.constant 0 : i32
    %c0_i32_0 = arith.constant 0 : i32
    return %arg0, %c0_i32 : i32, i32
  }
}

module attributes {stable_mosaic.version = 11 : i64} {
  func.func @_tap_matmul_kernel(%arg0: i32, %arg1: i32, %arg2: memref<16x256xbf16, #tpu.memory_space<vmem>>, %arg3: memref<1x256x128xbf16, #tpu.memory_space<vmem>>, %arg4: memref<1x128xf32, #tpu.memory_space<vmem>>, %arg5: memref<16x128xbf16, #tpu.memory_space<vmem>>, %arg6: memref<16x128xf32, #tpu.memory_space<vmem>>) attributes {dimension_semantics = [#tpu.dimension_semantics<parallel>, #tpu.dimension_semantics<arbitrary>], iteration_bounds = array<i64: 4, 2>, scalar_prefetch = 0 : i64, scratch_operands = 1 : i64, tpu.core_type = #tpu.core_type<tc>, window_params = [{transform_indices = @transform_0, window_bounds = array<i64: 16, 256>}, {transform_indices = @transform_1, window_bounds = array<i64: 1, 256, 128>}, {pipeline_mode = #tpu.pipeline_mode<synchronous>, transform_indices = @transform_2, window_bounds = array<i64: 1, 128>}, {transform_indices = @transform_3, window_bounds = array<i64: 16, 128>}]} {
    %c0_i32 = arith.constant 0 : i32
    %0 = arith.cmpi eq, %arg1, %c0_i32 : i32
    %1 = arith.extui %0 : i1 to i32
    %c0_i32_0 = arith.constant 0 : i32
    %2 = arith.cmpi ne, %1, %c0_i32_0 : i32
    scf.if %2 {
      %cst_10 = arith.constant 0.000000e+00 : f32
      %13 = vector.broadcast %cst_10 : f32 to vector<16x128xf32>
      %c0_11 = arith.constant 0 : index
      %c0_12 = arith.constant 0 : index
      %14 = vector.load %arg6[%c0_11, %c0_12] : memref<16x128xf32, #tpu.memory_space<vmem>>, vector<16x128xf32>
      tpu.vector_store %arg6[%c0_11, %c0_12], %13 {strides = array<i32>} : memref<16x128xf32, #tpu.memory_space<vmem>>, vector<16x128xf32>,
    } else {
    }
    %c0 = arith.constant 0 : index
    %c0_1 = arith.constant 0 : index
    %3 = vector.load %arg6[%c0, %c0_1] : memref<16x128xf32, #tpu.memory_space<vmem>>, vector<16x128xf32>
    %c0_2 = arith.constant 0 : index
    %c0_3 = arith.constant 0 : index
    %4 = vector.load %arg2[%c0_2, %c0_3] : memref<16x256xbf16, #tpu.memory_space<vmem>>, vector<16x256xbf16>
    %c0_4 = arith.constant 0 : index
    %c0_5 = arith.constant 0 : index
    %c0_6 = arith.constant 0 : index
    %5 = vector.load %arg3[%c0_4, %c0_5, %c0_6] : memref<1x256x128xbf16, #tpu.memory_space<vmem>>, vector<1x256x128xbf16>
    %6 = vector.shape_cast %5 : vector<1x256x128xbf16> to vector<256x128xbf16>
    %cst = arith.constant dense<0.000000e+00> : vector<16x128xf32>
    %7 = tpu.matmul %4, %6, %cst {dimension_numbers = #tpu.dot_dimension_numbers<[1], [0], [0], [1], [0, 0, 1, 1], [], []>} : vector<16x256xbf16>, vector<256x128xbf16>, vector<16x128xf32> -> vector<16x128xf32>
    %8 = arith.addf %3, %7 : vector<16x128xf32>
    %c0_7 = arith.constant 0 : index
    %c0_8 = arith.constant 0 : index
    %9 = vector.load %arg6[%c0_7, %c0_8] : memref<16x128xf32, #tpu.memory_space<vmem>>, vector<16x128xf32>
    tpu.vector_store %arg6[%c0_7, %c0_8], %8 {strides = array<i32>} : memref<16x128xf32, #tpu.memory_space<vmem>>, vector<16x128xf32>,
    %c1_i32 = arith.constant 1 : i32
    %10 = arith.cmpi eq, %arg1, %c1_i32 : i32
    %11 = arith.extui %10 : i1 to i32
    %c0_i32_9 = arith.constant 0 : i32
    %12 = arith.cmpi ne, %11, %c0_i32_9 : i32
    scf.if %12 {
      %c0_10 = arith.constant 0 : index
      %c0_11 = arith.constant 0 : index
      %13 = vector.load %arg6[%c0_10, %c0_11] : memref<16x128xf32, #tpu.memory_space<vmem>>, vector<16x128xf32>
      %c0_12 = arith.constant 0 : index
      %c0_13 = arith.constant 0 : index
      %14 = vector.load %arg4[%c0_12, %c0_13] : memref<1x128xf32, #tpu.memory_space<vmem>>, vector<1x128xf32>
      %15 = vector.broadcast %14 : vector<1x128xf32> to vector<16x128xf32>
      %16 = arith.addf %13, %15 : vector<16x128xf32>
      %cst_14 = arith.constant 0.000000e+00 : f32
      %17 = vector.broadcast %cst_14 : f32 to vector<16x128xf32>
      %18 = arith.cmpf oge, %16, %17 : vector<16x128xf32>
      %cst_15 = arith.constant 1.000000e-01 : f32
      %19 = vector.broadcast %cst_15 : f32 to vector<16x128xf32>
      %20 = arith.mulf %19, %16 : vector<16x128xf32>
      %21 = arith.select %18, %16, %20 : vector<16x128xi1>, vector<16x128xf32>
      %22 = arith.truncf %21 : vector<16x128xf32> to vector<16x128xbf16>
      %c0_16 = arith.constant 0 : index
      %c0_17 = arith.constant 0 : index
      %23 = vector.load %arg5[%c0_16, %c0_17] : memref<16x128xbf16, #tpu.memory_space<vmem>>, vector<16x128xbf16>
      tpu.vector_store %arg5[%c0_16, %c0_17], %22 {strides = array<i32>} : memref<16x128xbf16, #tpu.memory_space<vmem>>, vector<16x128xbf16>,
    } else {
    }
    return
  }
  func.func @transform_0(%arg0: i32, %arg1: i32) -> (i32, i32) {
    %0 = arith.addi %arg0, %arg1 : i32
    %c0_i32 = arith.constant 0 : i32
    %c0_i32_0 = arith.constant 0 : i32
    return %0, %c0_i32 : i32, i32
  }
  func.func @transform_1(%arg0: i32, %arg1: i32) -> (i32, i32, i32) {
    %c0_i32 = arith.constant 0 : i32
    %c0_i32_0 = arith.constant 0 : i32
    %c0_i32_1 = arith.constant 0 : i32
    return %arg1, %c0_i32, %c0_i32_0 : i32, i32, i32
  }
  func.func @transform_2(%arg0: i32, %arg1: i32) -> (i32, i32) {
    %c0_i32 = arith.constant 0 : i32
    %c0_i32_0 = arith.constant 0 : i32
    %c0_i32_1 = arith.constant 0 : i32
    return %c0_i32, %c0_i32_0 : i32, i32
  }
  func.func @transform_3(%arg0: i32, %arg1: i32) -> (i32, i32) {
    %c0_i32 = arith.constant 0 : i32
    %c0_i32_0 = arith.constant 0 : i32
    return %arg0, %c0_i32 : i32, i32
  }
}

module attributes {stable_mosaic.version = 11 : i64} {
  func.func @_tap_matmul_kernel(%arg0: i32, %arg1: i32, %arg2: memref<16x512xbf16, #tpu.memory_space<vmem>>, %arg3: memref<1x512x128xbf16, #tpu.memory_space<vmem>>, %arg4: memref<1x128xf32, #tpu.memory_space<vmem>>, %arg5: memref<16x128xbf16, #tpu.memory_space<vmem>>, %arg6: memref<16x128xf32, #tpu.memory_space<vmem>>) attributes {dimension_semantics = [#tpu.dimension_semantics<parallel>, #tpu.dimension_semantics<arbitrary>], iteration_bounds = array<i64: 4, 2>, scalar_prefetch = 0 : i64, scratch_operands = 1 : i64, tpu.core_type = #tpu.core_type<tc>, window_params = [{transform_indices = @transform_0, window_bounds = array<i64: 16, 512>}, {transform_indices = @transform_1, window_bounds = array<i64: 1, 512, 128>}, {pipeline_mode = #tpu.pipeline_mode<synchronous>, transform_indices = @transform_2, window_bounds = array<i64: 1, 128>}, {transform_indices = @transform_3, window_bounds = array<i64: 16, 128>}]} {
    %c0_i32 = arith.constant 0 : i32
    %0 = arith.cmpi eq, %arg1, %c0_i32 : i32
    %1 = arith.extui %0 : i1 to i32
    %c0_i32_0 = arith.constant 0 : i32
    %2 = arith.cmpi ne, %1, %c0_i32_0 : i32
    scf.if %2 {
      %cst_10 = arith.constant 0.000000e+00 : f32
      %13 = vector.broadcast %cst_10 : f32 to vector<16x128xf32>
      %c0_11 = arith.constant 0 : index
      %c0_12 = arith.constant 0 : index
      %14 = vector.load %arg6[%c0_11, %c0_12] : memref<16x128xf32, #tpu.memory_space<vmem>>, vector<16x128xf32>
      tpu.vector_store %arg6[%c0_11, %c0_12], %13 {strides = array<i32>} : memref<16x128xf32, #tpu.memory_space<vmem>>, vector<16x128xf32>,
    } else {
    }
    %c0 = arith.constant 0 : index
    %c0_1 = arith.constant 0 : index
    %3 = vector.load %arg6[%c0, %c0_1] : memref<16x128xf32, #tpu.memory_space<vmem>>, vector<16x128xf32>
    %c0_2 = arith.constant 0 : index
    %c0_3 = arith.constant 0 : index
    %4 = vector.load %arg2[%c0_2, %c0_3] : memref<16x512xbf16, #tpu.memory_space<vmem>>, vector<16x512xbf16>
    %c0_4 = arith.constant 0 : index
    %c0_5 = arith.constant 0 : index
    %c0_6 = arith.constant 0 : index
    %5 = vector.load %arg3[%c0_4, %c0_5, %c0_6] : memref<1x512x128xbf16, #tpu.memory_space<vmem>>, vector<1x512x128xbf16>
    %6 = vector.shape_cast %5 : vector<1x512x128xbf16> to vector<512x128xbf16>
    %cst = arith.constant dense<0.000000e+00> : vector<16x128xf32>
    %7 = tpu.matmul %4, %6, %cst {dimension_numbers = #tpu.dot_dimension_numbers<[1], [0], [0], [1], [0, 0, 1, 1], [], []>} : vector<16x512xbf16>, vector<512x128xbf16>, vector<16x128xf32> -> vector<16x128xf32>
    %8 = arith.addf %3, %7 : vector<16x128xf32>
    %c0_7 = arith.constant 0 : index
    %c0_8 = arith.constant 0 : index
    %9 = vector.load %arg6[%c0_7, %c0_8] : memref<16x128xf32, #tpu.memory_space<vmem>>, vector<16x128xf32>
    tpu.vector_store %arg6[%c0_7, %c0_8], %8 {strides = array<i32>} : memref<16x128xf32, #tpu.memory_space<vmem>>, vector<16x128xf32>,
    %c1_i32 = arith.constant 1 : i32
    %10 = arith.cmpi eq, %arg1, %c1_i32 : i32
    %11 = arith.extui %10 : i1 to i32
    %c0_i32_9 = arith.constant 0 : i32
    %12 = arith.cmpi ne, %11, %c0_i32_9 : i32
    scf.if %12 {
      %c0_10 = arith.constant 0 : index
      %c0_11 = arith.constant 0 : index
      %13 = vector.load %arg6[%c0_10, %c0_11] : memref<16x128xf32, #tpu.memory_space<vmem>>, vector<16x128xf32>
      %c0_12 = arith.constant 0 : index
      %c0_13 = arith.constant 0 : index
      %14 = vector.load %arg4[%c0_12, %c0_13] : memref<1x128xf32, #tpu.memory_space<vmem>>, vector<1x128xf32>
      %15 = vector.broadcast %14 : vector<1x128xf32> to vector<16x128xf32>
      %16 = arith.addf %13, %15 : vector<16x128xf32>
      %cst_14 = arith.constant 0.000000e+00 : f32
      %17 = vector.broadcast %cst_14 : f32 to vector<16x128xf32>
      %18 = arith.cmpf oge, %16, %17 : vector<16x128xf32>
      %cst_15 = arith.constant 1.000000e-01 : f32
      %19 = vector.broadcast %cst_15 : f32 to vector<16x128xf32>
      %20 = arith.mulf %19, %16 : vector<16x128xf32>
      %21 = arith.select %18, %16, %20 : vector<16x128xi1>, vector<16x128xf32>
      %22 = arith.truncf %21 : vector<16x128xf32> to vector<16x128xbf16>
      %c0_16 = arith.constant 0 : index
      %c0_17 = arith.constant 0 : index
      %23 = vector.load %arg5[%c0_16, %c0_17] : memref<16x128xbf16, #tpu.memory_space<vmem>>, vector<16x128xbf16>
      tpu.vector_store %arg5[%c0_16, %c0_17], %22 {strides = array<i32>} : memref<16x128xbf16, #tpu.memory_space<vmem>>, vector<16x128xbf16>,
    } else {
    }
    return
  }
  func.func @transform_0(%arg0: i32, %arg1: i32) -> (i32, i32) {
    %0 = arith.addi %arg0, %arg1 : i32
    %c0_i32 = arith.constant 0 : i32
    %c0_i32_0 = arith.constant 0 : i32
    return %0, %c0_i32 : i32, i32
  }
  func.func @transform_1(%arg0: i32, %arg1: i32) -> (i32, i32, i32) {
    %c0_i32 = arith.constant 0 : i32
    %c0_i32_0 = arith.constant 0 : i32
    %c0_i32_1 = arith.constant 0 : i32
    return %arg1, %c0_i32, %c0_i32_0 : i32, i32, i32
  }
  func.func @transform_2(%arg0: i32, %arg1: i32) -> (i32, i32) {
    %c0_i32 = arith.constant 0 : i32
    %c0_i32_0 = arith.constant 0 : i32
    %c0_i32_1 = arith.constant 0 : i32
    return %c0_i32, %c0_i32_0 : i32, i32
  }
  func.func @transform_3(%arg0: i32, %arg1: i32) -> (i32, i32) {
    %c0_i32 = arith.constant 0 : i32
    %c0_i32_0 = arith.constant 0 : i32
    return %arg0, %c0_i32 : i32, i32
  }
}

module attributes {stable_mosaic.version = 11 : i64} {
  func.func @_tap_matmul_kernel(%arg0: i32, %arg1: i32, %arg2: memref<16x512xbf16, #tpu.memory_space<vmem>>, %arg3: memref<1x512x128xbf16, #tpu.memory_space<vmem>>, %arg4: memref<1x128xf32, #tpu.memory_space<vmem>>, %arg5: memref<16x128xbf16, #tpu.memory_space<vmem>>, %arg6: memref<16x128xf32, #tpu.memory_space<vmem>>) attributes {dimension_semantics = [#tpu.dimension_semantics<parallel>, #tpu.dimension_semantics<arbitrary>], iteration_bounds = array<i64: 4, 1>, scalar_prefetch = 0 : i64, scratch_operands = 1 : i64, tpu.core_type = #tpu.core_type<tc>, window_params = [{transform_indices = @transform_0, window_bounds = array<i64: 16, 512>}, {transform_indices = @transform_1, window_bounds = array<i64: 1, 512, 128>}, {pipeline_mode = #tpu.pipeline_mode<synchronous>, transform_indices = @transform_2, window_bounds = array<i64: 1, 128>}, {transform_indices = @transform_3, window_bounds = array<i64: 16, 128>}]} {
    %c0_i32 = arith.constant 0 : i32
    %0 = arith.cmpi eq, %arg1, %c0_i32 : i32
    %1 = arith.extui %0 : i1 to i32
    %c0_i32_0 = arith.constant 0 : i32
    %2 = arith.cmpi ne, %1, %c0_i32_0 : i32
    scf.if %2 {
      %cst_11 = arith.constant 0.000000e+00 : f32
      %13 = vector.broadcast %cst_11 : f32 to vector<16x128xf32>
      %c0_12 = arith.constant 0 : index
      %c0_13 = arith.constant 0 : index
      %14 = vector.load %arg6[%c0_12, %c0_13] : memref<16x128xf32, #tpu.memory_space<vmem>>, vector<16x128xf32>
      tpu.vector_store %arg6[%c0_12, %c0_13], %13 {strides = array<i32>} : memref<16x128xf32, #tpu.memory_space<vmem>>, vector<16x128xf32>,
    } else {
    }
    %c0 = arith.constant 0 : index
    %c0_1 = arith.constant 0 : index
    %3 = vector.load %arg6[%c0, %c0_1] : memref<16x128xf32, #tpu.memory_space<vmem>>, vector<16x128xf32>
    %c0_2 = arith.constant 0 : index
    %c0_3 = arith.constant 0 : index
    %4 = vector.load %arg2[%c0_2, %c0_3] : memref<16x512xbf16, #tpu.memory_space<vmem>>, vector<16x512xbf16>
    %c0_4 = arith.constant 0 : index
    %c0_5 = arith.constant 0 : index
    %c0_6 = arith.constant 0 : index
    %5 = vector.load %arg3[%c0_4, %c0_5, %c0_6] : memref<1x512x128xbf16, #tpu.memory_space<vmem>>, vector<1x512x128xbf16>
    %6 = vector.shape_cast %5 : vector<1x512x128xbf16> to vector<512x128xbf16>
    %cst = arith.constant dense<0.000000e+00> : vector<16x128xf32>
    %7 = tpu.matmul %4, %6, %cst {dimension_numbers = #tpu.dot_dimension_numbers<[1], [0], [0], [1], [0, 0, 1, 1], [], []>} : vector<16x512xbf16>, vector<512x128xbf16>, vector<16x128xf32> -> vector<16x128xf32>
    %8 = arith.addf %3, %7 : vector<16x128xf32>
    %c0_7 = arith.constant 0 : index
    %c0_8 = arith.constant 0 : index
    %9 = vector.load %arg6[%c0_7, %c0_8] : memref<16x128xf32, #tpu.memory_space<vmem>>, vector<16x128xf32>
    tpu.vector_store %arg6[%c0_7, %c0_8], %8 {strides = array<i32>} : memref<16x128xf32, #tpu.memory_space<vmem>>, vector<16x128xf32>,
    %c0_i32_9 = arith.constant 0 : i32
    %10 = arith.cmpi eq, %arg1, %c0_i32_9 : i32
    %11 = arith.extui %10 : i1 to i32
    %c0_i32_10 = arith.constant 0 : i32
    %12 = arith.cmpi ne, %11, %c0_i32_10 : i32
    scf.if %12 {
      %c0_11 = arith.constant 0 : index
      %c0_12 = arith.constant 0 : index
      %13 = vector.load %arg6[%c0_11, %c0_12] : memref<16x128xf32, #tpu.memory_space<vmem>>, vector<16x128xf32>
      %c0_13 = arith.constant 0 : index
      %c0_14 = arith.constant 0 : index
      %14 = vector.load %arg4[%c0_13, %c0_14] : memref<1x128xf32, #tpu.memory_space<vmem>>, vector<1x128xf32>
      %15 = vector.broadcast %14 : vector<1x128xf32> to vector<16x128xf32>
      %16 = arith.addf %13, %15 : vector<16x128xf32>
      %cst_15 = arith.constant 0.000000e+00 : f32
      %17 = vector.broadcast %cst_15 : f32 to vector<16x128xf32>
      %18 = arith.cmpf oge, %16, %17 : vector<16x128xf32>
      %cst_16 = arith.constant 1.000000e-01 : f32
      %19 = vector.broadcast %cst_16 : f32 to vector<16x128xf32>
      %20 = arith.mulf %19, %16 : vector<16x128xf32>
      %21 = arith.select %18, %16, %20 : vector<16x128xi1>, vector<16x128xf32>
      %22 = arith.truncf %21 : vector<16x128xf32> to vector<16x128xbf16>
      %c0_17 = arith.constant 0 : index
      %c0_18 = arith.constant 0 : index
      %23 = vector.load %arg5[%c0_17, %c0_18] : memref<16x128xbf16, #tpu.memory_space<vmem>>, vector<16x128xbf16>
      tpu.vector_store %arg5[%c0_17, %c0_18], %22 {strides = array<i32>} : memref<16x128xbf16, #tpu.memory_space<vmem>>, vector<16x128xbf16>,
    } else {
    }
    return
  }
  func.func @transform_0(%arg0: i32, %arg1: i32) -> (i32, i32) {
    %0 = arith.addi %arg0, %arg1 : i32
    %c0_i32 = arith.constant 0 : i32
    %c0_i32_0 = arith.constant 0 : i32
    return %0, %c0_i32 : i32, i32
  }
  func.func @transform_1(%arg0: i32, %arg1: i32) -> (i32, i32, i32) {
    %c0_i32 = arith.constant 0 : i32
    %c0_i32_0 = arith.constant 0 : i32
    %c0_i32_1 = arith.constant 0 : i32
    return %arg1, %c0_i32, %c0_i32_0 : i32, i32, i32
  }
  func.func @transform_2(%arg0: i32, %arg1: i32) -> (i32, i32) {
    %c0_i32 = arith.constant 0 : i32
    %c0_i32_0 = arith.constant 0 : i32
    %c0_i32_1 = arith.constant 0 : i32
    return %c0_i32, %c0_i32_0 : i32, i32
  }
  func.func @transform_3(%arg0: i32, %arg1: i32) -> (i32, i32) {
    %c0_i32 = arith.constant 0 : i32
    %c0_i32_0 = arith.constant 0 : i32
    return %arg0, %c0_i32 : i32, i32
  }
}

module attributes {stable_mosaic.version = 11 : i64} {
  func.func @_tap_matmul_kernel(%arg0: i32, %arg1: i32, %arg2: memref<16x256xbf16, #tpu.memory_space<vmem>>, %arg3: memref<1x256x128xbf16, #tpu.memory_space<vmem>>, %arg4: memref<1x128xf32, #tpu.memory_space<vmem>>, %arg5: memref<16x128xbf16, #tpu.memory_space<vmem>>, %arg6: memref<16x128xf32, #tpu.memory_space<vmem>>) attributes {dimension_semantics = [#tpu.dimension_semantics<parallel>, #tpu.dimension_semantics<arbitrary>], iteration_bounds = array<i64: 4, 1>, scalar_prefetch = 0 : i64, scratch_operands = 1 : i64, tpu.core_type = #tpu.core_type<tc>, window_params = [{transform_indices = @transform_0, window_bounds = array<i64: 16, 256>}, {transform_indices = @transform_1, window_bounds = array<i64: 1, 256, 128>}, {pipeline_mode = #tpu.pipeline_mode<synchronous>, transform_indices = @transform_2, window_bounds = array<i64: 1, 128>}, {transform_indices = @transform_3, window_bounds = array<i64: 16, 128>}]} {
    %c0_i32 = arith.constant 0 : i32
    %0 = arith.cmpi eq, %arg1, %c0_i32 : i32
    %1 = arith.extui %0 : i1 to i32
    %c0_i32_0 = arith.constant 0 : i32
    %2 = arith.cmpi ne, %1, %c0_i32_0 : i32
    scf.if %2 {
      %cst_11 = arith.constant 0.000000e+00 : f32
      %13 = vector.broadcast %cst_11 : f32 to vector<16x128xf32>
      %c0_12 = arith.constant 0 : index
      %c0_13 = arith.constant 0 : index
      %14 = vector.load %arg6[%c0_12, %c0_13] : memref<16x128xf32, #tpu.memory_space<vmem>>, vector<16x128xf32>
      tpu.vector_store %arg6[%c0_12, %c0_13], %13 {strides = array<i32>} : memref<16x128xf32, #tpu.memory_space<vmem>>, vector<16x128xf32>,
    } else {
    }
    %c0 = arith.constant 0 : index
    %c0_1 = arith.constant 0 : index
    %3 = vector.load %arg6[%c0, %c0_1] : memref<16x128xf32, #tpu.memory_space<vmem>>, vector<16x128xf32>
    %c0_2 = arith.constant 0 : index
    %c0_3 = arith.constant 0 : index
    %4 = vector.load %arg2[%c0_2, %c0_3] : memref<16x256xbf16, #tpu.memory_space<vmem>>, vector<16x256xbf16>
    %c0_4 = arith.constant 0 : index
    %c0_5 = arith.constant 0 : index
    %c0_6 = arith.constant 0 : index
    %5 = vector.load %arg3[%c0_4, %c0_5, %c0_6] : memref<1x256x128xbf16, #tpu.memory_space<vmem>>, vector<1x256x128xbf16>
    %6 = vector.shape_cast %5 : vector<1x256x128xbf16> to vector<256x128xbf16>
    %cst = arith.constant dense<0.000000e+00> : vector<16x128xf32>
    %7 = tpu.matmul %4, %6, %cst {dimension_numbers = #tpu.dot_dimension_numbers<[1], [0], [0], [1], [0, 0, 1, 1], [], []>} : vector<16x256xbf16>, vector<256x128xbf16>, vector<16x128xf32> -> vector<16x128xf32>
    %8 = arith.addf %3, %7 : vector<16x128xf32>
    %c0_7 = arith.constant 0 : index
    %c0_8 = arith.constant 0 : index
    %9 = vector.load %arg6[%c0_7, %c0_8] : memref<16x128xf32, #tpu.memory_space<vmem>>, vector<16x128xf32>
    tpu.vector_store %arg6[%c0_7, %c0_8], %8 {strides = array<i32>} : memref<16x128xf32, #tpu.memory_space<vmem>>, vector<16x128xf32>,
    %c0_i32_9 = arith.constant 0 : i32
    %10 = arith.cmpi eq, %arg1, %c0_i32_9 : i32
    %11 = arith.extui %10 : i1 to i32
    %c0_i32_10 = arith.constant 0 : i32
    %12 = arith.cmpi ne, %11, %c0_i32_10 : i32
    scf.if %12 {
      %c0_11 = arith.constant 0 : index
      %c0_12 = arith.constant 0 : index
      %13 = vector.load %arg6[%c0_11, %c0_12] : memref<16x128xf32, #tpu.memory_space<vmem>>, vector<16x128xf32>
      %c0_13 = arith.constant 0 : index
      %c0_14 = arith.constant 0 : index
      %14 = vector.load %arg4[%c0_13, %c0_14] : memref<1x128xf32, #tpu.memory_space<vmem>>, vector<1x128xf32>
      %15 = vector.broadcast %14 : vector<1x128xf32> to vector<16x128xf32>
      %16 = arith.addf %13, %15 : vector<16x128xf32>
      %cst_15 = arith.constant 0.000000e+00 : f32
      %17 = vector.broadcast %cst_15 : f32 to vector<16x128xf32>
      %18 = arith.cmpf oge, %16, %17 : vector<16x128xf32>
      %cst_16 = arith.constant 1.000000e-01 : f32
      %19 = vector.broadcast %cst_16 : f32 to vector<16x128xf32>
      %20 = arith.mulf %19, %16 : vector<16x128xf32>
      %21 = arith.select %18, %16, %20 : vector<16x128xi1>, vector<16x128xf32>
      %22 = arith.truncf %21 : vector<16x128xf32> to vector<16x128xbf16>
      %c0_17 = arith.constant 0 : index
      %c0_18 = arith.constant 0 : index
      %23 = vector.load %arg5[%c0_17, %c0_18] : memref<16x128xbf16, #tpu.memory_space<vmem>>, vector<16x128xbf16>
      tpu.vector_store %arg5[%c0_17, %c0_18], %22 {strides = array<i32>} : memref<16x128xbf16, #tpu.memory_space<vmem>>, vector<16x128xbf16>,
    } else {
    }
    return
  }
  func.func @transform_0(%arg0: i32, %arg1: i32) -> (i32, i32) {
    %0 = arith.addi %arg0, %arg1 : i32
    %c0_i32 = arith.constant 0 : i32
    %c0_i32_0 = arith.constant 0 : i32
    return %0, %c0_i32 : i32, i32
  }
  func.func @transform_1(%arg0: i32, %arg1: i32) -> (i32, i32, i32) {
    %c0_i32 = arith.constant 0 : i32
    %c0_i32_0 = arith.constant 0 : i32
    %c0_i32_1 = arith.constant 0 : i32
    return %arg1, %c0_i32, %c0_i32_0 : i32, i32, i32
  }
  func.func @transform_2(%arg0: i32, %arg1: i32) -> (i32, i32) {
    %c0_i32 = arith.constant 0 : i32
    %c0_i32_0 = arith.constant 0 : i32
    %c0_i32_1 = arith.constant 0 : i32
    return %c0_i32, %c0_i32_0 : i32, i32
  }
  func.func @transform_3(%arg0: i32, %arg1: i32) -> (i32, i32) {
    %c0_i32 = arith.constant 0 : i32
    %c0_i32_0 = arith.constant 0 : i32
    return %arg0, %c0_i32 : i32, i32
  }
}

module attributes {stable_mosaic.version = 11 : i64} {
  func.func @_tap_matmul_kernel(%arg0: i32, %arg1: i32, %arg2: memref<16x512xbf16, #tpu.memory_space<vmem>>, %arg3: memref<1x512x128xbf16, #tpu.memory_space<vmem>>, %arg4: memref<1x128xf32, #tpu.memory_space<vmem>>, %arg5: memref<16x128xbf16, #tpu.memory_space<vmem>>, %arg6: memref<16x128xf32, #tpu.memory_space<vmem>>) attributes {dimension_semantics = [#tpu.dimension_semantics<parallel>, #tpu.dimension_semantics<arbitrary>], iteration_bounds = array<i64: 8, 2>, scalar_prefetch = 0 : i64, scratch_operands = 1 : i64, tpu.core_type = #tpu.core_type<tc>, window_params = [{transform_indices = @transform_0, window_bounds = array<i64: 16, 512>}, {transform_indices = @transform_1, window_bounds = array<i64: 1, 512, 128>}, {pipeline_mode = #tpu.pipeline_mode<synchronous>, transform_indices = @transform_2, window_bounds = array<i64: 1, 128>}, {transform_indices = @transform_3, window_bounds = array<i64: 16, 128>}]} {
    %c0_i32 = arith.constant 0 : i32
    %0 = arith.cmpi eq, %arg1, %c0_i32 : i32
    %1 = arith.extui %0 : i1 to i32
    %c0_i32_0 = arith.constant 0 : i32
    %2 = arith.cmpi ne, %1, %c0_i32_0 : i32
    scf.if %2 {
      %cst_10 = arith.constant 0.000000e+00 : f32
      %13 = vector.broadcast %cst_10 : f32 to vector<16x128xf32>
      %c0_11 = arith.constant 0 : index
      %c0_12 = arith.constant 0 : index
      %14 = vector.load %arg6[%c0_11, %c0_12] : memref<16x128xf32, #tpu.memory_space<vmem>>, vector<16x128xf32>
      tpu.vector_store %arg6[%c0_11, %c0_12], %13 {strides = array<i32>} : memref<16x128xf32, #tpu.memory_space<vmem>>, vector<16x128xf32>,
    } else {
    }
    %c0 = arith.constant 0 : index
    %c0_1 = arith.constant 0 : index
    %3 = vector.load %arg6[%c0, %c0_1] : memref<16x128xf32, #tpu.memory_space<vmem>>, vector<16x128xf32>
    %c0_2 = arith.constant 0 : index
    %c0_3 = arith.constant 0 : index
    %4 = vector.load %arg2[%c0_2, %c0_3] : memref<16x512xbf16, #tpu.memory_space<vmem>>, vector<16x512xbf16>
    %c0_4 = arith.constant 0 : index
    %c0_5 = arith.constant 0 : index
    %c0_6 = arith.constant 0 : index
    %5 = vector.load %arg3[%c0_4, %c0_5, %c0_6] : memref<1x512x128xbf16, #tpu.memory_space<vmem>>, vector<1x512x128xbf16>
    %6 = vector.shape_cast %5 : vector<1x512x128xbf16> to vector<512x128xbf16>
    %cst = arith.constant dense<0.000000e+00> : vector<16x128xf32>
    %7 = tpu.matmul %4, %6, %cst {dimension_numbers = #tpu.dot_dimension_numbers<[1], [0], [0], [1], [0, 0, 1, 1], [], []>} : vector<16x512xbf16>, vector<512x128xbf16>, vector<16x128xf32> -> vector<16x128xf32>
    %8 = arith.addf %3, %7 : vector<16x128xf32>
    %c0_7 = arith.constant 0 : index
    %c0_8 = arith.constant 0 : index
    %9 = vector.load %arg6[%c0_7, %c0_8] : memref<16x128xf32, #tpu.memory_space<vmem>>, vector<16x128xf32>
    tpu.vector_store %arg6[%c0_7, %c0_8], %8 {strides = array<i32>} : memref<16x128xf32, #tpu.memory_space<vmem>>, vector<16x128xf32>,
    %c1_i32 = arith.constant 1 : i32
    %10 = arith.cmpi eq, %arg1, %c1_i32 : i32
    %11 = arith.extui %10 : i1 to i32
    %c0_i32_9 = arith.constant 0 : i32
    %12 = arith.cmpi ne, %11, %c0_i32_9 : i32
    scf.if %12 {
      %c0_10 = arith.constant 0 : index
      %c0_11 = arith.constant 0 : index
      %13 = vector.load %arg6[%c0_10, %c0_11] : memref<16x128xf32, #tpu.memory_space<vmem>>, vector<16x128xf32>
      %c0_12 = arith.constant 0 : index
      %c0_13 = arith.constant 0 : index
      %14 = vector.load %arg4[%c0_12, %c0_13] : memref<1x128xf32, #tpu.memory_space<vmem>>, vector<1x128xf32>
      %15 = vector.broadcast %14 : vector<1x128xf32> to vector<16x128xf32>
      %16 = arith.addf %13, %15 : vector<16x128xf32>
      %cst_14 = arith.constant 0.000000e+00 : f32
      %17 = vector.broadcast %cst_14 : f32 to vector<16x128xf32>
      %18 = arith.cmpf oge, %16, %17 : vector<16x128xf32>
      %cst_15 = arith.constant 1.000000e-01 : f32
      %19 = vector.broadcast %cst_15 : f32 to vector<16x128xf32>
      %20 = arith.mulf %19, %16 : vector<16x128xf32>
      %21 = arith.select %18, %16, %20 : vector<16x128xi1>, vector<16x128xf32>
      %22 = arith.truncf %21 : vector<16x128xf32> to vector<16x128xbf16>
      %c0_16 = arith.constant 0 : index
      %c0_17 = arith.constant 0 : index
      %23 = vector.load %arg5[%c0_16, %c0_17] : memref<16x128xbf16, #tpu.memory_space<vmem>>, vector<16x128xbf16>
      tpu.vector_store %arg5[%c0_16, %c0_17], %22 {strides = array<i32>} : memref<16x128xbf16, #tpu.memory_space<vmem>>, vector<16x128xbf16>,
    } else {
    }
    return
  }
  func.func @transform_0(%arg0: i32, %arg1: i32) -> (i32, i32) {
    %0 = arith.addi %arg0, %arg1 : i32
    %c0_i32 = arith.constant 0 : i32
    %c0_i32_0 = arith.constant 0 : i32
    return %0, %c0_i32 : i32, i32
  }
  func.func @transform_1(%arg0: i32, %arg1: i32) -> (i32, i32, i32) {
    %c0_i32 = arith.constant 0 : i32
    %c0_i32_0 = arith.constant 0 : i32
    %c0_i32_1 = arith.constant 0 : i32
    return %arg1, %c0_i32, %c0_i32_0 : i32, i32, i32
  }
  func.func @transform_2(%arg0: i32, %arg1: i32) -> (i32, i32) {
    %c0_i32 = arith.constant 0 : i32
    %c0_i32_0 = arith.constant 0 : i32
    %c0_i32_1 = arith.constant 0 : i32
    return %c0_i32, %c0_i32_0 : i32, i32
  }
  func.func @transform_3(%arg0: i32, %arg1: i32) -> (i32, i32) {
    %c0_i32 = arith.constant 0 : i32
    %c0_i32_0 = arith.constant 0 : i32
    return %arg0, %c0_i32 : i32, i32
  }
}

module attributes {stable_mosaic.version = 11 : i64} {
  func.func @_tap_matmul_kernel(%arg0: i32, %arg1: i32, %arg2: memref<16x512xbf16, #tpu.memory_space<vmem>>, %arg3: memref<1x512x128xbf16, #tpu.memory_space<vmem>>, %arg4: memref<1x128xf32, #tpu.memory_space<vmem>>, %arg5: memref<16x128xbf16, #tpu.memory_space<vmem>>, %arg6: memref<16x128xf32, #tpu.memory_space<vmem>>) attributes {dimension_semantics = [#tpu.dimension_semantics<parallel>, #tpu.dimension_semantics<arbitrary>], iteration_bounds = array<i64: 8, 1>, scalar_prefetch = 0 : i64, scratch_operands = 1 : i64, tpu.core_type = #tpu.core_type<tc>, window_params = [{transform_indices = @transform_0, window_bounds = array<i64: 16, 512>}, {transform_indices = @transform_1, window_bounds = array<i64: 1, 512, 128>}, {pipeline_mode = #tpu.pipeline_mode<synchronous>, transform_indices = @transform_2, window_bounds = array<i64: 1, 128>}, {transform_indices = @transform_3, window_bounds = array<i64: 16, 128>}]} {
    %c0_i32 = arith.constant 0 : i32
    %0 = arith.cmpi eq, %arg1, %c0_i32 : i32
    %1 = arith.extui %0 : i1 to i32
    %c0_i32_0 = arith.constant 0 : i32
    %2 = arith.cmpi ne, %1, %c0_i32_0 : i32
    scf.if %2 {
      %cst_11 = arith.constant 0.000000e+00 : f32
      %13 = vector.broadcast %cst_11 : f32 to vector<16x128xf32>
      %c0_12 = arith.constant 0 : index
      %c0_13 = arith.constant 0 : index
      %14 = vector.load %arg6[%c0_12, %c0_13] : memref<16x128xf32, #tpu.memory_space<vmem>>, vector<16x128xf32>
      tpu.vector_store %arg6[%c0_12, %c0_13], %13 {strides = array<i32>} : memref<16x128xf32, #tpu.memory_space<vmem>>, vector<16x128xf32>,
    } else {
    }
    %c0 = arith.constant 0 : index
    %c0_1 = arith.constant 0 : index
    %3 = vector.load %arg6[%c0, %c0_1] : memref<16x128xf32, #tpu.memory_space<vmem>>, vector<16x128xf32>
    %c0_2 = arith.constant 0 : index
    %c0_3 = arith.constant 0 : index
    %4 = vector.load %arg2[%c0_2, %c0_3] : memref<16x512xbf16, #tpu.memory_space<vmem>>, vector<16x512xbf16>
    %c0_4 = arith.constant 0 : index
    %c0_5 = arith.constant 0 : index
    %c0_6 = arith.constant 0 : index
    %5 = vector.load %arg3[%c0_4, %c0_5, %c0_6] : memref<1x512x128xbf16, #tpu.memory_space<vmem>>, vector<1x512x128xbf16>
    %6 = vector.shape_cast %5 : vector<1x512x128xbf16> to vector<512x128xbf16>
    %cst = arith.constant dense<0.000000e+00> : vector<16x128xf32>
    %7 = tpu.matmul %4, %6, %cst {dimension_numbers = #tpu.dot_dimension_numbers<[1], [0], [0], [1], [0, 0, 1, 1], [], []>} : vector<16x512xbf16>, vector<512x128xbf16>, vector<16x128xf32> -> vector<16x128xf32>
    %8 = arith.addf %3, %7 : vector<16x128xf32>
    %c0_7 = arith.constant 0 : index
    %c0_8 = arith.constant 0 : index
    %9 = vector.load %arg6[%c0_7, %c0_8] : memref<16x128xf32, #tpu.memory_space<vmem>>, vector<16x128xf32>
    tpu.vector_store %arg6[%c0_7, %c0_8], %8 {strides = array<i32>} : memref<16x128xf32, #tpu.memory_space<vmem>>, vector<16x128xf32>,
    %c0_i32_9 = arith.constant 0 : i32
    %10 = arith.cmpi eq, %arg1, %c0_i32_9 : i32
    %11 = arith.extui %10 : i1 to i32
    %c0_i32_10 = arith.constant 0 : i32
    %12 = arith.cmpi ne, %11, %c0_i32_10 : i32
    scf.if %12 {
      %c0_11 = arith.constant 0 : index
      %c0_12 = arith.constant 0 : index
      %13 = vector.load %arg6[%c0_11, %c0_12] : memref<16x128xf32, #tpu.memory_space<vmem>>, vector<16x128xf32>
      %c0_13 = arith.constant 0 : index
      %c0_14 = arith.constant 0 : index
      %14 = vector.load %arg4[%c0_13, %c0_14] : memref<1x128xf32, #tpu.memory_space<vmem>>, vector<1x128xf32>
      %15 = vector.broadcast %14 : vector<1x128xf32> to vector<16x128xf32>
      %16 = arith.addf %13, %15 : vector<16x128xf32>
      %cst_15 = arith.constant 0.000000e+00 : f32
      %17 = vector.broadcast %cst_15 : f32 to vector<16x128xf32>
      %18 = arith.cmpf oge, %16, %17 : vector<16x128xf32>
      %cst_16 = arith.constant 1.000000e-01 : f32
      %19 = vector.broadcast %cst_16 : f32 to vector<16x128xf32>
      %20 = arith.mulf %19, %16 : vector<16x128xf32>
      %21 = arith.select %18, %16, %20 : vector<16x128xi1>, vector<16x128xf32>
      %22 = arith.truncf %21 : vector<16x128xf32> to vector<16x128xbf16>
      %c0_17 = arith.constant 0 : index
      %c0_18 = arith.constant 0 : index
      %23 = vector.load %arg5[%c0_17, %c0_18] : memref<16x128xbf16, #tpu.memory_space<vmem>>, vector<16x128xbf16>
      tpu.vector_store %arg5[%c0_17, %c0_18], %22 {strides = array<i32>} : memref<16x128xbf16, #tpu.memory_space<vmem>>, vector<16x128xbf16>,
    } else {
    }
    return
  }
  func.func @transform_0(%arg0: i32, %arg1: i32) -> (i32, i32) {
    %0 = arith.addi %arg0, %arg1 : i32
    %c0_i32 = arith.constant 0 : i32
    %c0_i32_0 = arith.constant 0 : i32
    return %0, %c0_i32 : i32, i32
  }
  func.func @transform_1(%arg0: i32, %arg1: i32) -> (i32, i32, i32) {
    %c0_i32 = arith.constant 0 : i32
    %c0_i32_0 = arith.constant 0 : i32
    %c0_i32_1 = arith.constant 0 : i32
    return %arg1, %c0_i32, %c0_i32_0 : i32, i32, i32
  }
  func.func @transform_2(%arg0: i32, %arg1: i32) -> (i32, i32) {
    %c0_i32 = arith.constant 0 : i32
    %c0_i32_0 = arith.constant 0 : i32
    %c0_i32_1 = arith.constant 0 : i32
    return %c0_i32, %c0_i32_0 : i32, i32
  }
  func.func @transform_3(%arg0: i32, %arg1: i32) -> (i32, i32) {
    %c0_i32 = arith.constant 0 : i32
    %c0_i32_0 = arith.constant 0 : i32
    return %arg0, %c0_i32 : i32, i32
  }
}

module attributes {stable_mosaic.version = 11 : i64} {
  func.func @_tap_matmul_kernel(%arg0: i32, %arg1: i32, %arg2: memref<16x256xbf16, #tpu.memory_space<vmem>>, %arg3: memref<1x256x128xbf16, #tpu.memory_space<vmem>>, %arg4: memref<1x128xf32, #tpu.memory_space<vmem>>, %arg5: memref<16x128xbf16, #tpu.memory_space<vmem>>, %arg6: memref<16x128xf32, #tpu.memory_space<vmem>>) attributes {dimension_semantics = [#tpu.dimension_semantics<parallel>, #tpu.dimension_semantics<arbitrary>], iteration_bounds = array<i64: 8, 2>, scalar_prefetch = 0 : i64, scratch_operands = 1 : i64, tpu.core_type = #tpu.core_type<tc>, window_params = [{transform_indices = @transform_0, window_bounds = array<i64: 16, 256>}, {transform_indices = @transform_1, window_bounds = array<i64: 1, 256, 128>}, {pipeline_mode = #tpu.pipeline_mode<synchronous>, transform_indices = @transform_2, window_bounds = array<i64: 1, 128>}, {transform_indices = @transform_3, window_bounds = array<i64: 16, 128>}]} {
    %c0_i32 = arith.constant 0 : i32
    %0 = arith.cmpi eq, %arg1, %c0_i32 : i32
    %1 = arith.extui %0 : i1 to i32
    %c0_i32_0 = arith.constant 0 : i32
    %2 = arith.cmpi ne, %1, %c0_i32_0 : i32
    scf.if %2 {
      %cst_10 = arith.constant 0.000000e+00 : f32
      %13 = vector.broadcast %cst_10 : f32 to vector<16x128xf32>
      %c0_11 = arith.constant 0 : index
      %c0_12 = arith.constant 0 : index
      %14 = vector.load %arg6[%c0_11, %c0_12] : memref<16x128xf32, #tpu.memory_space<vmem>>, vector<16x128xf32>
      tpu.vector_store %arg6[%c0_11, %c0_12], %13 {strides = array<i32>} : memref<16x128xf32, #tpu.memory_space<vmem>>, vector<16x128xf32>,
    } else {
    }
    %c0 = arith.constant 0 : index
    %c0_1 = arith.constant 0 : index
    %3 = vector.load %arg6[%c0, %c0_1] : memref<16x128xf32, #tpu.memory_space<vmem>>, vector<16x128xf32>
    %c0_2 = arith.constant 0 : index
    %c0_3 = arith.constant 0 : index
    %4 = vector.load %arg2[%c0_2, %c0_3] : memref<16x256xbf16, #tpu.memory_space<vmem>>, vector<16x256xbf16>
    %c0_4 = arith.constant 0 : index
    %c0_5 = arith.constant 0 : index
    %c0_6 = arith.constant 0 : index
    %5 = vector.load %arg3[%c0_4, %c0_5, %c0_6] : memref<1x256x128xbf16, #tpu.memory_space<vmem>>, vector<1x256x128xbf16>
    %6 = vector.shape_cast %5 : vector<1x256x128xbf16> to vector<256x128xbf16>
    %cst = arith.constant dense<0.000000e+00> : vector<16x128xf32>
    %7 = tpu.matmul %4, %6, %cst {dimension_numbers = #tpu.dot_dimension_numbers<[1], [0], [0], [1], [0, 0, 1, 1], [], []>} : vector<16x256xbf16>, vector<256x128xbf16>, vector<16x128xf32> -> vector<16x128xf32>
    %8 = arith.addf %3, %7 : vector<16x128xf32>
    %c0_7 = arith.constant 0 : index
    %c0_8 = arith.constant 0 : index
    %9 = vector.load %arg6[%c0_7, %c0_8] : memref<16x128xf32, #tpu.memory_space<vmem>>, vector<16x128xf32>
    tpu.vector_store %arg6[%c0_7, %c0_8], %8 {strides = array<i32>} : memref<16x128xf32, #tpu.memory_space<vmem>>, vector<16x128xf32>,
    %c1_i32 = arith.constant 1 : i32
    %10 = arith.cmpi eq, %arg1, %c1_i32 : i32
    %11 = arith.extui %10 : i1 to i32
    %c0_i32_9 = arith.constant 0 : i32
    %12 = arith.cmpi ne, %11, %c0_i32_9 : i32
    scf.if %12 {
      %c0_10 = arith.constant 0 : index
      %c0_11 = arith.constant 0 : index
      %13 = vector.load %arg6[%c0_10, %c0_11] : memref<16x128xf32, #tpu.memory_space<vmem>>, vector<16x128xf32>
      %c0_12 = arith.constant 0 : index
      %c0_13 = arith.constant 0 : index
      %14 = vector.load %arg4[%c0_12, %c0_13] : memref<1x128xf32, #tpu.memory_space<vmem>>, vector<1x128xf32>
      %15 = vector.broadcast %14 : vector<1x128xf32> to vector<16x128xf32>
      %16 = arith.addf %13, %15 : vector<16x128xf32>
      %cst_14 = arith.constant 0.000000e+00 : f32
      %17 = vector.broadcast %cst_14 : f32 to vector<16x128xf32>
      %18 = arith.cmpf oge, %16, %17 : vector<16x128xf32>
      %cst_15 = arith.constant 1.000000e-01 : f32
      %19 = vector.broadcast %cst_15 : f32 to vector<16x128xf32>
      %20 = arith.mulf %19, %16 : vector<16x128xf32>
      %21 = arith.select %18, %16, %20 : vector<16x128xi1>, vector<16x128xf32>
      %22 = arith.truncf %21 : vector<16x128xf32> to vector<16x128xbf16>
      %c0_16 = arith.constant 0 : index
      %c0_17 = arith.constant 0 : index
      %23 = vector.load %arg5[%c0_16, %c0_17] : memref<16x128xbf16, #tpu.memory_space<vmem>>, vector<16x128xbf16>
      tpu.vector_store %arg5[%c0_16, %c0_17], %22 {strides = array<i32>} : memref<16x128xbf16, #tpu.memory_space<vmem>>, vector<16x128xbf16>,
    } else {
    }
    return
  }
  func.func @transform_0(%arg0: i32, %arg1: i32) -> (i32, i32) {
    %0 = arith.addi %arg0, %arg1 : i32
    %c0_i32 = arith.constant 0 : i32
    %c0_i32_0 = arith.constant 0 : i32
    return %0, %c0_i32 : i32, i32
  }
  func.func @transform_1(%arg0: i32, %arg1: i32) -> (i32, i32, i32) {
    %c0_i32 = arith.constant 0 : i32
    %c0_i32_0 = arith.constant 0 : i32
    %c0_i32_1 = arith.constant 0 : i32
    return %arg1, %c0_i32, %c0_i32_0 : i32, i32, i32
  }
  func.func @transform_2(%arg0: i32, %arg1: i32) -> (i32, i32) {
    %c0_i32 = arith.constant 0 : i32
    %c0_i32_0 = arith.constant 0 : i32
    %c0_i32_1 = arith.constant 0 : i32
    return %c0_i32, %c0_i32_0 : i32, i32
  }
  func.func @transform_3(%arg0: i32, %arg1: i32) -> (i32, i32) {
    %c0_i32 = arith.constant 0 : i32
    %c0_i32_0 = arith.constant 0 : i32
    return %arg0, %c0_i32 : i32, i32
  }
}

module attributes {stable_mosaic.version = 11 : i64} {
  func.func @_tap_matmul_kernel(%arg0: i32, %arg1: i32, %arg2: memref<16x256xbf16, #tpu.memory_space<vmem>>, %arg3: memref<1x256x128xbf16, #tpu.memory_space<vmem>>, %arg4: memref<1x128xf32, #tpu.memory_space<vmem>>, %arg5: memref<16x128xbf16, #tpu.memory_space<vmem>>, %arg6: memref<16x128xf32, #tpu.memory_space<vmem>>) attributes {dimension_semantics = [#tpu.dimension_semantics<parallel>, #tpu.dimension_semantics<arbitrary>], iteration_bounds = array<i64: 8, 1>, scalar_prefetch = 0 : i64, scratch_operands = 1 : i64, tpu.core_type = #tpu.core_type<tc>, window_params = [{transform_indices = @transform_0, window_bounds = array<i64: 16, 256>}, {transform_indices = @transform_1, window_bounds = array<i64: 1, 256, 128>}, {pipeline_mode = #tpu.pipeline_mode<synchronous>, transform_indices = @transform_2, window_bounds = array<i64: 1, 128>}, {transform_indices = @transform_3, window_bounds = array<i64: 16, 128>}]} {
    %c0_i32 = arith.constant 0 : i32
    %0 = arith.cmpi eq, %arg1, %c0_i32 : i32
    %1 = arith.extui %0 : i1 to i32
    %c0_i32_0 = arith.constant 0 : i32
    %2 = arith.cmpi ne, %1, %c0_i32_0 : i32
    scf.if %2 {
      %cst_11 = arith.constant 0.000000e+00 : f32
      %13 = vector.broadcast %cst_11 : f32 to vector<16x128xf32>
      %c0_12 = arith.constant 0 : index
      %c0_13 = arith.constant 0 : index
      %14 = vector.load %arg6[%c0_12, %c0_13] : memref<16x128xf32, #tpu.memory_space<vmem>>, vector<16x128xf32>
      tpu.vector_store %arg6[%c0_12, %c0_13], %13 {strides = array<i32>} : memref<16x128xf32, #tpu.memory_space<vmem>>, vector<16x128xf32>,
    } else {
    }
    %c0 = arith.constant 0 : index
    %c0_1 = arith.constant 0 : index
    %3 = vector.load %arg6[%c0, %c0_1] : memref<16x128xf32, #tpu.memory_space<vmem>>, vector<16x128xf32>
    %c0_2 = arith.constant 0 : index
    %c0_3 = arith.constant 0 : index
    %4 = vector.load %arg2[%c0_2, %c0_3] : memref<16x256xbf16, #tpu.memory_space<vmem>>, vector<16x256xbf16>
    %c0_4 = arith.constant 0 : index
    %c0_5 = arith.constant 0 : index
    %c0_6 = arith.constant 0 : index
    %5 = vector.load %arg3[%c0_4, %c0_5, %c0_6] : memref<1x256x128xbf16, #tpu.memory_space<vmem>>, vector<1x256x128xbf16>
    %6 = vector.shape_cast %5 : vector<1x256x128xbf16> to vector<256x128xbf16>
    %cst = arith.constant dense<0.000000e+00> : vector<16x128xf32>
    %7 = tpu.matmul %4, %6, %cst {dimension_numbers = #tpu.dot_dimension_numbers<[1], [0], [0], [1], [0, 0, 1, 1], [], []>} : vector<16x256xbf16>, vector<256x128xbf16>, vector<16x128xf32> -> vector<16x128xf32>
    %8 = arith.addf %3, %7 : vector<16x128xf32>
    %c0_7 = arith.constant 0 : index
    %c0_8 = arith.constant 0 : index
    %9 = vector.load %arg6[%c0_7, %c0_8] : memref<16x128xf32, #tpu.memory_space<vmem>>, vector<16x128xf32>
    tpu.vector_store %arg6[%c0_7, %c0_8], %8 {strides = array<i32>} : memref<16x128xf32, #tpu.memory_space<vmem>>, vector<16x128xf32>,
    %c0_i32_9 = arith.constant 0 : i32
    %10 = arith.cmpi eq, %arg1, %c0_i32_9 : i32
    %11 = arith.extui %10 : i1 to i32
    %c0_i32_10 = arith.constant 0 : i32
    %12 = arith.cmpi ne, %11, %c0_i32_10 : i32
    scf.if %12 {
      %c0_11 = arith.constant 0 : index
      %c0_12 = arith.constant 0 : index
      %13 = vector.load %arg6[%c0_11, %c0_12] : memref<16x128xf32, #tpu.memory_space<vmem>>, vector<16x128xf32>
      %c0_13 = arith.constant 0 : index
      %c0_14 = arith.constant 0 : index
      %14 = vector.load %arg4[%c0_13, %c0_14] : memref<1x128xf32, #tpu.memory_space<vmem>>, vector<1x128xf32>
      %15 = vector.broadcast %14 : vector<1x128xf32> to vector<16x128xf32>
      %16 = arith.addf %13, %15 : vector<16x128xf32>
      %cst_15 = arith.constant 0.000000e+00 : f32
      %17 = vector.broadcast %cst_15 : f32 to vector<16x128xf32>
      %18 = arith.cmpf oge, %16, %17 : vector<16x128xf32>
      %cst_16 = arith.constant 1.000000e-01 : f32
      %19 = vector.broadcast %cst_16 : f32 to vector<16x128xf32>
      %20 = arith.mulf %19, %16 : vector<16x128xf32>
      %21 = arith.select %18, %16, %20 : vector<16x128xi1>, vector<16x128xf32>
      %22 = arith.truncf %21 : vector<16x128xf32> to vector<16x128xbf16>
      %c0_17 = arith.constant 0 : index
      %c0_18 = arith.constant 0 : index
      %23 = vector.load %arg5[%c0_17, %c0_18] : memref<16x128xbf16, #tpu.memory_space<vmem>>, vector<16x128xbf16>
      tpu.vector_store %arg5[%c0_17, %c0_18], %22 {strides = array<i32>} : memref<16x128xbf16, #tpu.memory_space<vmem>>, vector<16x128xbf16>,
    } else {
    }
    return
  }
  func.func @transform_0(%arg0: i32, %arg1: i32) -> (i32, i32) {
    %0 = arith.addi %arg0, %arg1 : i32
    %c0_i32 = arith.constant 0 : i32
    %c0_i32_0 = arith.constant 0 : i32
    return %0, %c0_i32 : i32, i32
  }
  func.func @transform_1(%arg0: i32, %arg1: i32) -> (i32, i32, i32) {
    %c0_i32 = arith.constant 0 : i32
    %c0_i32_0 = arith.constant 0 : i32
    %c0_i32_1 = arith.constant 0 : i32
    return %arg1, %c0_i32, %c0_i32_0 : i32, i32, i32
  }
  func.func @transform_2(%arg0: i32, %arg1: i32) -> (i32, i32) {
    %c0_i32 = arith.constant 0 : i32
    %c0_i32_0 = arith.constant 0 : i32
    %c0_i32_1 = arith.constant 0 : i32
    return %c0_i32, %c0_i32_0 : i32, i32
  }
  func.func @transform_3(%arg0: i32, %arg1: i32) -> (i32, i32) {
    %c0_i32 = arith.constant 0 : i32
    %c0_i32_0 = arith.constant 0 : i32
    return %arg0, %c0_i32 : i32, i32
  }
}

module attributes {stable_mosaic.version = 11 : i64} {
  func.func @_tap_matmul_kernel(%arg0: i32, %arg1: i32, %arg2: memref<16x256xbf16, #tpu.memory_space<vmem>>, %arg3: memref<1x256x128xbf16, #tpu.memory_space<vmem>>, %arg4: memref<1x128xf32, #tpu.memory_space<vmem>>, %arg5: memref<16x128xbf16, #tpu.memory_space<vmem>>, %arg6: memref<16x128xf32, #tpu.memory_space<vmem>>) attributes {dimension_semantics = [#tpu.dimension_semantics<parallel>, #tpu.dimension_semantics<arbitrary>], iteration_bounds = array<i64: 16, 2>, scalar_prefetch = 0 : i64, scratch_operands = 1 : i64, tpu.core_type = #tpu.core_type<tc>, window_params = [{transform_indices = @transform_0, window_bounds = array<i64: 16, 256>}, {transform_indices = @transform_1, window_bounds = array<i64: 1, 256, 128>}, {pipeline_mode = #tpu.pipeline_mode<synchronous>, transform_indices = @transform_2, window_bounds = array<i64: 1, 128>}, {transform_indices = @transform_3, window_bounds = array<i64: 16, 128>}]} {
    %c0_i32 = arith.constant 0 : i32
    %0 = arith.cmpi eq, %arg1, %c0_i32 : i32
    %1 = arith.extui %0 : i1 to i32
    %c0_i32_0 = arith.constant 0 : i32
    %2 = arith.cmpi ne, %1, %c0_i32_0 : i32
    scf.if %2 {
      %cst_10 = arith.constant 0.000000e+00 : f32
      %13 = vector.broadcast %cst_10 : f32 to vector<16x128xf32>
      %c0_11 = arith.constant 0 : index
      %c0_12 = arith.constant 0 : index
      %14 = vector.load %arg6[%c0_11, %c0_12] : memref<16x128xf32, #tpu.memory_space<vmem>>, vector<16x128xf32>
      tpu.vector_store %arg6[%c0_11, %c0_12], %13 {strides = array<i32>} : memref<16x128xf32, #tpu.memory_space<vmem>>, vector<16x128xf32>,
    } else {
    }
    %c0 = arith.constant 0 : index
    %c0_1 = arith.constant 0 : index
    %3 = vector.load %arg6[%c0, %c0_1] : memref<16x128xf32, #tpu.memory_space<vmem>>, vector<16x128xf32>
    %c0_2 = arith.constant 0 : index
    %c0_3 = arith.constant 0 : index
    %4 = vector.load %arg2[%c0_2, %c0_3] : memref<16x256xbf16, #tpu.memory_space<vmem>>, vector<16x256xbf16>
    %c0_4 = arith.constant 0 : index
    %c0_5 = arith.constant 0 : index
    %c0_6 = arith.constant 0 : index
    %5 = vector.load %arg3[%c0_4, %c0_5, %c0_6] : memref<1x256x128xbf16, #tpu.memory_space<vmem>>, vector<1x256x128xbf16>
    %6 = vector.shape_cast %5 : vector<1x256x128xbf16> to vector<256x128xbf16>
    %cst = arith.constant dense<0.000000e+00> : vector<16x128xf32>
    %7 = tpu.matmul %4, %6, %cst {dimension_numbers = #tpu.dot_dimension_numbers<[1], [0], [0], [1], [0, 0, 1, 1], [], []>} : vector<16x256xbf16>, vector<256x128xbf16>, vector<16x128xf32> -> vector<16x128xf32>
    %8 = arith.addf %3, %7 : vector<16x128xf32>
    %c0_7 = arith.constant 0 : index
    %c0_8 = arith.constant 0 : index
    %9 = vector.load %arg6[%c0_7, %c0_8] : memref<16x128xf32, #tpu.memory_space<vmem>>, vector<16x128xf32>
    tpu.vector_store %arg6[%c0_7, %c0_8], %8 {strides = array<i32>} : memref<16x128xf32, #tpu.memory_space<vmem>>, vector<16x128xf32>,
    %c1_i32 = arith.constant 1 : i32
    %10 = arith.cmpi eq, %arg1, %c1_i32 : i32
    %11 = arith.extui %10 : i1 to i32
    %c0_i32_9 = arith.constant 0 : i32
    %12 = arith.cmpi ne, %11, %c0_i32_9 : i32
    scf.if %12 {
      %c0_10 = arith.constant 0 : index
      %c0_11 = arith.constant 0 : index
      %13 = vector.load %arg6[%c0_10, %c0_11] : memref<16x128xf32, #tpu.memory_space<vmem>>, vector<16x128xf32>
      %c0_12 = arith.constant 0 : index
      %c0_13 = arith.constant 0 : index
      %14 = vector.load %arg4[%c0_12, %c0_13] : memref<1x128xf32, #tpu.memory_space<vmem>>, vector<1x128xf32>
      %15 = vector.broadcast %14 : vector<1x128xf32> to vector<16x128xf32>
      %16 = arith.addf %13, %15 : vector<16x128xf32>
      %cst_14 = arith.constant 0.000000e+00 : f32
      %17 = vector.broadcast %cst_14 : f32 to vector<16x128xf32>
      %18 = arith.cmpf oge, %16, %17 : vector<16x128xf32>
      %cst_15 = arith.constant 1.000000e-01 : f32
      %19 = vector.broadcast %cst_15 : f32 to vector<16x128xf32>
      %20 = arith.mulf %19, %16 : vector<16x128xf32>
      %21 = arith.select %18, %16, %20 : vector<16x128xi1>, vector<16x128xf32>
      %22 = arith.truncf %21 : vector<16x128xf32> to vector<16x128xbf16>
      %c0_16 = arith.constant 0 : index
      %c0_17 = arith.constant 0 : index
      %23 = vector.load %arg5[%c0_16, %c0_17] : memref<16x128xbf16, #tpu.memory_space<vmem>>, vector<16x128xbf16>
      tpu.vector_store %arg5[%c0_16, %c0_17], %22 {strides = array<i32>} : memref<16x128xbf16, #tpu.memory_space<vmem>>, vector<16x128xbf16>,
    } else {
    }
    return
  }
  func.func @transform_0(%arg0: i32, %arg1: i32) -> (i32, i32) {
    %0 = arith.addi %arg0, %arg1 : i32
    %c0_i32 = arith.constant 0 : i32
    %c0_i32_0 = arith.constant 0 : i32
    return %0, %c0_i32 : i32, i32
  }
  func.func @transform_1(%arg0: i32, %arg1: i32) -> (i32, i32, i32) {
    %c0_i32 = arith.constant 0 : i32
    %c0_i32_0 = arith.constant 0 : i32
    %c0_i32_1 = arith.constant 0 : i32
    return %arg1, %c0_i32, %c0_i32_0 : i32, i32, i32
  }
  func.func @transform_2(%arg0: i32, %arg1: i32) -> (i32, i32) {
    %c0_i32 = arith.constant 0 : i32
    %c0_i32_0 = arith.constant 0 : i32
    %c0_i32_1 = arith.constant 0 : i32
    return %c0_i32, %c0_i32_0 : i32, i32
  }
  func.func @transform_3(%arg0: i32, %arg1: i32) -> (i32, i32) {
    %c0_i32 = arith.constant 0 : i32
    %c0_i32_0 = arith.constant 0 : i32
    return %arg0, %c0_i32 : i32, i32
  }
}

module attributes {stable_mosaic.version = 11 : i64} {
  func.func @_tap_matmul_kernel(%arg0: i32, %arg1: i32, %arg2: memref<16x128xbf16, #tpu.memory_space<vmem>>, %arg3: memref<1x128x128xbf16, #tpu.memory_space<vmem>>, %arg4: memref<1x128xf32, #tpu.memory_space<vmem>>, %arg5: memref<16x128xbf16, #tpu.memory_space<vmem>>, %arg6: memref<16x128xf32, #tpu.memory_space<vmem>>) attributes {dimension_semantics = [#tpu.dimension_semantics<parallel>, #tpu.dimension_semantics<arbitrary>], iteration_bounds = array<i64: 16, 1>, scalar_prefetch = 0 : i64, scratch_operands = 1 : i64, tpu.core_type = #tpu.core_type<tc>, window_params = [{transform_indices = @transform_0, window_bounds = array<i64: 16, 128>}, {transform_indices = @transform_1, window_bounds = array<i64: 1, 128, 128>}, {pipeline_mode = #tpu.pipeline_mode<synchronous>, transform_indices = @transform_2, window_bounds = array<i64: 1, 128>}, {transform_indices = @transform_3, window_bounds = array<i64: 16, 128>}]} {
    %c0_i32 = arith.constant 0 : i32
    %0 = arith.cmpi eq, %arg1, %c0_i32 : i32
    %1 = arith.extui %0 : i1 to i32
    %c0_i32_0 = arith.constant 0 : i32
    %2 = arith.cmpi ne, %1, %c0_i32_0 : i32
    scf.if %2 {
      %cst_11 = arith.constant 0.000000e+00 : f32
      %13 = vector.broadcast %cst_11 : f32 to vector<16x128xf32>
      %c0_12 = arith.constant 0 : index
      %c0_13 = arith.constant 0 : index
      %14 = vector.load %arg6[%c0_12, %c0_13] : memref<16x128xf32, #tpu.memory_space<vmem>>, vector<16x128xf32>
      tpu.vector_store %arg6[%c0_12, %c0_13], %13 {strides = array<i32>} : memref<16x128xf32, #tpu.memory_space<vmem>>, vector<16x128xf32>,
    } else {
    }
    %c0 = arith.constant 0 : index
    %c0_1 = arith.constant 0 : index
    %3 = vector.load %arg6[%c0, %c0_1] : memref<16x128xf32, #tpu.memory_space<vmem>>, vector<16x128xf32>
    %c0_2 = arith.constant 0 : index
    %c0_3 = arith.constant 0 : index
    %4 = vector.load %arg2[%c0_2, %c0_3] : memref<16x128xbf16, #tpu.memory_space<vmem>>, vector<16x128xbf16>
    %c0_4 = arith.constant 0 : index
    %c0_5 = arith.constant 0 : index
    %c0_6 = arith.constant 0 : index
    %5 = vector.load %arg3[%c0_4, %c0_5, %c0_6] : memref<1x128x128xbf16, #tpu.memory_space<vmem>>, vector<1x128x128xbf16>
    %6 = vector.shape_cast %5 : vector<1x128x128xbf16> to vector<128x128xbf16>
    %cst = arith.constant dense<0.000000e+00> : vector<16x128xf32>
    %7 = tpu.matmul %4, %6, %cst {dimension_numbers = #tpu.dot_dimension_numbers<[1], [0], [0], [1], [0, 0, 1, 1], [], []>} : vector<16x128xbf16>, vector<128x128xbf16>, vector<16x128xf32> -> vector<16x128xf32>
    %8 = arith.addf %3, %7 : vector<16x128xf32>
    %c0_7 = arith.constant 0 : index
    %c0_8 = arith.constant 0 : index
    %9 = vector.load %arg6[%c0_7, %c0_8] : memref<16x128xf32, #tpu.memory_space<vmem>>, vector<16x128xf32>
    tpu.vector_store %arg6[%c0_7, %c0_8], %8 {strides = array<i32>} : memref<16x128xf32, #tpu.memory_space<vmem>>, vector<16x128xf32>,
    %c0_i32_9 = arith.constant 0 : i32
    %10 = arith.cmpi eq, %arg1, %c0_i32_9 : i32
    %11 = arith.extui %10 : i1 to i32
    %c0_i32_10 = arith.constant 0 : i32
    %12 = arith.cmpi ne, %11, %c0_i32_10 : i32
    scf.if %12 {
      %c0_11 = arith.constant 0 : index
      %c0_12 = arith.constant 0 : index
      %13 = vector.load %arg6[%c0_11, %c0_12] : memref<16x128xf32, #tpu.memory_space<vmem>>, vector<16x128xf32>
      %c0_13 = arith.constant 0 : index
      %c0_14 = arith.constant 0 : index
      %14 = vector.load %arg4[%c0_13, %c0_14] : memref<1x128xf32, #tpu.memory_space<vmem>>, vector<1x128xf32>
      %15 = vector.broadcast %14 : vector<1x128xf32> to vector<16x128xf32>
      %16 = arith.addf %13, %15 : vector<16x128xf32>
      %cst_15 = arith.constant 0.000000e+00 : f32
      %17 = vector.broadcast %cst_15 : f32 to vector<16x128xf32>
      %18 = arith.cmpf oge, %16, %17 : vector<16x128xf32>
      %cst_16 = arith.constant 1.000000e-01 : f32
      %19 = vector.broadcast %cst_16 : f32 to vector<16x128xf32>
      %20 = arith.mulf %19, %16 : vector<16x128xf32>
      %21 = arith.select %18, %16, %20 : vector<16x128xi1>, vector<16x128xf32>
      %22 = arith.truncf %21 : vector<16x128xf32> to vector<16x128xbf16>
      %c0_17 = arith.constant 0 : index
      %c0_18 = arith.constant 0 : index
      %23 = vector.load %arg5[%c0_17, %c0_18] : memref<16x128xbf16, #tpu.memory_space<vmem>>, vector<16x128xbf16>
      tpu.vector_store %arg5[%c0_17, %c0_18], %22 {strides = array<i32>} : memref<16x128xbf16, #tpu.memory_space<vmem>>, vector<16x128xbf16>,
    } else {
    }
    return
  }
  func.func @transform_0(%arg0: i32, %arg1: i32) -> (i32, i32) {
    %0 = arith.addi %arg0, %arg1 : i32
    %c0_i32 = arith.constant 0 : i32
    %c0_i32_0 = arith.constant 0 : i32
    return %0, %c0_i32 : i32, i32
  }
  func.func @transform_1(%arg0: i32, %arg1: i32) -> (i32, i32, i32) {
    %c0_i32 = arith.constant 0 : i32
    %c0_i32_0 = arith.constant 0 : i32
    %c0_i32_1 = arith.constant 0 : i32
    return %arg1, %c0_i32, %c0_i32_0 : i32, i32, i32
  }
  func.func @transform_2(%arg0: i32, %arg1: i32) -> (i32, i32) {
    %c0_i32 = arith.constant 0 : i32
    %c0_i32_0 = arith.constant 0 : i32
    %c0_i32_1 = arith.constant 0 : i32
    return %c0_i32, %c0_i32_0 : i32, i32
  }
  func.func @transform_3(%arg0: i32, %arg1: i32) -> (i32, i32) {
    %c0_i32 = arith.constant 0 : i32
    %c0_i32_0 = arith.constant 0 : i32
    return %arg0, %c0_i32 : i32, i32
  }
}

module attributes {stable_mosaic.version = 11 : i64} {
  func.func @_tap_matmul_kernel(%arg0: i32, %arg1: i32, %arg2: memref<16x256xbf16, #tpu.memory_space<vmem>>, %arg3: memref<1x256x128xbf16, #tpu.memory_space<vmem>>, %arg4: memref<1x128xf32, #tpu.memory_space<vmem>>, %arg5: memref<16x128xbf16, #tpu.memory_space<vmem>>, %arg6: memref<16x128xf32, #tpu.memory_space<vmem>>) attributes {dimension_semantics = [#tpu.dimension_semantics<parallel>, #tpu.dimension_semantics<arbitrary>], iteration_bounds = array<i64: 16, 1>, scalar_prefetch = 0 : i64, scratch_operands = 1 : i64, tpu.core_type = #tpu.core_type<tc>, window_params = [{transform_indices = @transform_0, window_bounds = array<i64: 16, 256>}, {transform_indices = @transform_1, window_bounds = array<i64: 1, 256, 128>}, {pipeline_mode = #tpu.pipeline_mode<synchronous>, transform_indices = @transform_2, window_bounds = array<i64: 1, 128>}, {transform_indices = @transform_3, window_bounds = array<i64: 16, 128>}]} {
    %c0_i32 = arith.constant 0 : i32
    %0 = arith.cmpi eq, %arg1, %c0_i32 : i32
    %1 = arith.extui %0 : i1 to i32
    %c0_i32_0 = arith.constant 0 : i32
    %2 = arith.cmpi ne, %1, %c0_i32_0 : i32
    scf.if %2 {
      %cst_11 = arith.constant 0.000000e+00 : f32
      %13 = vector.broadcast %cst_11 : f32 to vector<16x128xf32>
      %c0_12 = arith.constant 0 : index
      %c0_13 = arith.constant 0 : index
      %14 = vector.load %arg6[%c0_12, %c0_13] : memref<16x128xf32, #tpu.memory_space<vmem>>, vector<16x128xf32>
      tpu.vector_store %arg6[%c0_12, %c0_13], %13 {strides = array<i32>} : memref<16x128xf32, #tpu.memory_space<vmem>>, vector<16x128xf32>,
    } else {
    }
    %c0 = arith.constant 0 : index
    %c0_1 = arith.constant 0 : index
    %3 = vector.load %arg6[%c0, %c0_1] : memref<16x128xf32, #tpu.memory_space<vmem>>, vector<16x128xf32>
    %c0_2 = arith.constant 0 : index
    %c0_3 = arith.constant 0 : index
    %4 = vector.load %arg2[%c0_2, %c0_3] : memref<16x256xbf16, #tpu.memory_space<vmem>>, vector<16x256xbf16>
    %c0_4 = arith.constant 0 : index
    %c0_5 = arith.constant 0 : index
    %c0_6 = arith.constant 0 : index
    %5 = vector.load %arg3[%c0_4, %c0_5, %c0_6] : memref<1x256x128xbf16, #tpu.memory_space<vmem>>, vector<1x256x128xbf16>
    %6 = vector.shape_cast %5 : vector<1x256x128xbf16> to vector<256x128xbf16>
    %cst = arith.constant dense<0.000000e+00> : vector<16x128xf32>
    %7 = tpu.matmul %4, %6, %cst {dimension_numbers = #tpu.dot_dimension_numbers<[1], [0], [0], [1], [0, 0, 1, 1], [], []>} : vector<16x256xbf16>, vector<256x128xbf16>, vector<16x128xf32> -> vector<16x128xf32>
    %8 = arith.addf %3, %7 : vector<16x128xf32>
    %c0_7 = arith.constant 0 : index
    %c0_8 = arith.constant 0 : index
    %9 = vector.load %arg6[%c0_7, %c0_8] : memref<16x128xf32, #tpu.memory_space<vmem>>, vector<16x128xf32>
    tpu.vector_store %arg6[%c0_7, %c0_8], %8 {strides = array<i32>} : memref<16x128xf32, #tpu.memory_space<vmem>>, vector<16x128xf32>,
    %c0_i32_9 = arith.constant 0 : i32
    %10 = arith.cmpi eq, %arg1, %c0_i32_9 : i32
    %11 = arith.extui %10 : i1 to i32
    %c0_i32_10 = arith.constant 0 : i32
    %12 = arith.cmpi ne, %11, %c0_i32_10 : i32
    scf.if %12 {
      %c0_11 = arith.constant 0 : index
      %c0_12 = arith.constant 0 : index
      %13 = vector.load %arg6[%c0_11, %c0_12] : memref<16x128xf32, #tpu.memory_space<vmem>>, vector<16x128xf32>
      %c0_13 = arith.constant 0 : index
      %c0_14 = arith.constant 0 : index
      %14 = vector.load %arg4[%c0_13, %c0_14] : memref<1x128xf32, #tpu.memory_space<vmem>>, vector<1x128xf32>
      %15 = vector.broadcast %14 : vector<1x128xf32> to vector<16x128xf32>
      %16 = arith.addf %13, %15 : vector<16x128xf32>
      %cst_15 = arith.constant 0.000000e+00 : f32
      %17 = vector.broadcast %cst_15 : f32 to vector<16x128xf32>
      %18 = arith.cmpf oge, %16, %17 : vector<16x128xf32>
      %cst_16 = arith.constant 1.000000e-01 : f32
      %19 = vector.broadcast %cst_16 : f32 to vector<16x128xf32>
      %20 = arith.mulf %19, %16 : vector<16x128xf32>
      %21 = arith.select %18, %16, %20 : vector<16x128xi1>, vector<16x128xf32>
      %22 = arith.truncf %21 : vector<16x128xf32> to vector<16x128xbf16>
      %c0_17 = arith.constant 0 : index
      %c0_18 = arith.constant 0 : index
      %23 = vector.load %arg5[%c0_17, %c0_18] : memref<16x128xbf16, #tpu.memory_space<vmem>>, vector<16x128xbf16>
      tpu.vector_store %arg5[%c0_17, %c0_18], %22 {strides = array<i32>} : memref<16x128xbf16, #tpu.memory_space<vmem>>, vector<16x128xbf16>,
    } else {
    }
    return
  }
  func.func @transform_0(%arg0: i32, %arg1: i32) -> (i32, i32) {
    %0 = arith.addi %arg0, %arg1 : i32
    %c0_i32 = arith.constant 0 : i32
    %c0_i32_0 = arith.constant 0 : i32
    return %0, %c0_i32 : i32, i32
  }
  func.func @transform_1(%arg0: i32, %arg1: i32) -> (i32, i32, i32) {
    %c0_i32 = arith.constant 0 : i32
    %c0_i32_0 = arith.constant 0 : i32
    %c0_i32_1 = arith.constant 0 : i32
    return %arg1, %c0_i32, %c0_i32_0 : i32, i32, i32
  }
  func.func @transform_2(%arg0: i32, %arg1: i32) -> (i32, i32) {
    %c0_i32 = arith.constant 0 : i32
    %c0_i32_0 = arith.constant 0 : i32
    %c0_i32_1 = arith.constant 0 : i32
    return %c0_i32, %c0_i32_0 : i32, i32
  }
  func.func @transform_3(%arg0: i32, %arg1: i32) -> (i32, i32) {
    %c0_i32 = arith.constant 0 : i32
    %c0_i32_0 = arith.constant 0 : i32
    return %arg0, %c0_i32 : i32, i32
  }
}

module attributes {stable_mosaic.version = 11 : i64} {
  func.func @_tap_matmul_kernel(%arg0: i32, %arg1: i32, %arg2: memref<16x128xbf16, #tpu.memory_space<vmem>>, %arg3: memref<1x128x128xbf16, #tpu.memory_space<vmem>>, %arg4: memref<1x128xf32, #tpu.memory_space<vmem>>, %arg5: memref<16x128xbf16, #tpu.memory_space<vmem>>, %arg6: memref<16x128xf32, #tpu.memory_space<vmem>>) attributes {dimension_semantics = [#tpu.dimension_semantics<parallel>, #tpu.dimension_semantics<arbitrary>], iteration_bounds = array<i64: 16, 2>, scalar_prefetch = 0 : i64, scratch_operands = 1 : i64, tpu.core_type = #tpu.core_type<tc>, window_params = [{transform_indices = @transform_0, window_bounds = array<i64: 16, 128>}, {transform_indices = @transform_1, window_bounds = array<i64: 1, 128, 128>}, {pipeline_mode = #tpu.pipeline_mode<synchronous>, transform_indices = @transform_2, window_bounds = array<i64: 1, 128>}, {transform_indices = @transform_3, window_bounds = array<i64: 16, 128>}]} {
    %c0_i32 = arith.constant 0 : i32
    %0 = arith.cmpi eq, %arg1, %c0_i32 : i32
    %1 = arith.extui %0 : i1 to i32
    %c0_i32_0 = arith.constant 0 : i32
    %2 = arith.cmpi ne, %1, %c0_i32_0 : i32
    scf.if %2 {
      %cst_10 = arith.constant 0.000000e+00 : f32
      %13 = vector.broadcast %cst_10 : f32 to vector<16x128xf32>
      %c0_11 = arith.constant 0 : index
      %c0_12 = arith.constant 0 : index
      %14 = vector.load %arg6[%c0_11, %c0_12] : memref<16x128xf32, #tpu.memory_space<vmem>>, vector<16x128xf32>
      tpu.vector_store %arg6[%c0_11, %c0_12], %13 {strides = array<i32>} : memref<16x128xf32, #tpu.memory_space<vmem>>, vector<16x128xf32>,
    } else {
    }
    %c0 = arith.constant 0 : index
    %c0_1 = arith.constant 0 : index
    %3 = vector.load %arg6[%c0, %c0_1] : memref<16x128xf32, #tpu.memory_space<vmem>>, vector<16x128xf32>
    %c0_2 = arith.constant 0 : index
    %c0_3 = arith.constant 0 : index
    %4 = vector.load %arg2[%c0_2, %c0_3] : memref<16x128xbf16, #tpu.memory_space<vmem>>, vector<16x128xbf16>
    %c0_4 = arith.constant 0 : index
    %c0_5 = arith.constant 0 : index
    %c0_6 = arith.constant 0 : index
    %5 = vector.load %arg3[%c0_4, %c0_5, %c0_6] : memref<1x128x128xbf16, #tpu.memory_space<vmem>>, vector<1x128x128xbf16>
    %6 = vector.shape_cast %5 : vector<1x128x128xbf16> to vector<128x128xbf16>
    %cst = arith.constant dense<0.000000e+00> : vector<16x128xf32>
    %7 = tpu.matmul %4, %6, %cst {dimension_numbers = #tpu.dot_dimension_numbers<[1], [0], [0], [1], [0, 0, 1, 1], [], []>} : vector<16x128xbf16>, vector<128x128xbf16>, vector<16x128xf32> -> vector<16x128xf32>
    %8 = arith.addf %3, %7 : vector<16x128xf32>
    %c0_7 = arith.constant 0 : index
    %c0_8 = arith.constant 0 : index
    %9 = vector.load %arg6[%c0_7, %c0_8] : memref<16x128xf32, #tpu.memory_space<vmem>>, vector<16x128xf32>
    tpu.vector_store %arg6[%c0_7, %c0_8], %8 {strides = array<i32>} : memref<16x128xf32, #tpu.memory_space<vmem>>, vector<16x128xf32>,
    %c1_i32 = arith.constant 1 : i32
    %10 = arith.cmpi eq, %arg1, %c1_i32 : i32
    %11 = arith.extui %10 : i1 to i32
    %c0_i32_9 = arith.constant 0 : i32
    %12 = arith.cmpi ne, %11, %c0_i32_9 : i32
    scf.if %12 {
      %c0_10 = arith.constant 0 : index
      %c0_11 = arith.constant 0 : index
      %13 = vector.load %arg6[%c0_10, %c0_11] : memref<16x128xf32, #tpu.memory_space<vmem>>, vector<16x128xf32>
      %c0_12 = arith.constant 0 : index
      %c0_13 = arith.constant 0 : index
      %14 = vector.load %arg4[%c0_12, %c0_13] : memref<1x128xf32, #tpu.memory_space<vmem>>, vector<1x128xf32>
      %15 = vector.broadcast %14 : vector<1x128xf32> to vector<16x128xf32>
      %16 = arith.addf %13, %15 : vector<16x128xf32>
      %cst_14 = arith.constant 0.000000e+00 : f32
      %17 = vector.broadcast %cst_14 : f32 to vector<16x128xf32>
      %18 = arith.cmpf oge, %16, %17 : vector<16x128xf32>
      %cst_15 = arith.constant 1.000000e-01 : f32
      %19 = vector.broadcast %cst_15 : f32 to vector<16x128xf32>
      %20 = arith.mulf %19, %16 : vector<16x128xf32>
      %21 = arith.select %18, %16, %20 : vector<16x128xi1>, vector<16x128xf32>
      %22 = arith.truncf %21 : vector<16x128xf32> to vector<16x128xbf16>
      %c0_16 = arith.constant 0 : index
      %c0_17 = arith.constant 0 : index
      %23 = vector.load %arg5[%c0_16, %c0_17] : memref<16x128xbf16, #tpu.memory_space<vmem>>, vector<16x128xbf16>
      tpu.vector_store %arg5[%c0_16, %c0_17], %22 {strides = array<i32>} : memref<16x128xbf16, #tpu.memory_space<vmem>>, vector<16x128xbf16>,
    } else {
    }
    return
  }
  func.func @transform_0(%arg0: i32, %arg1: i32) -> (i32, i32) {
    %0 = arith.addi %arg0, %arg1 : i32
    %c0_i32 = arith.constant 0 : i32
    %c0_i32_0 = arith.constant 0 : i32
    return %0, %c0_i32 : i32, i32
  }
  func.func @transform_1(%arg0: i32, %arg1: i32) -> (i32, i32, i32) {
    %c0_i32 = arith.constant 0 : i32
    %c0_i32_0 = arith.constant 0 : i32
    %c0_i32_1 = arith.constant 0 : i32
    return %arg1, %c0_i32, %c0_i32_0 : i32, i32, i32
  }
  func.func @transform_2(%arg0: i32, %arg1: i32) -> (i32, i32) {
    %c0_i32 = arith.constant 0 : i32
    %c0_i32_0 = arith.constant 0 : i32
    %c0_i32_1 = arith.constant 0 : i32
    return %c0_i32, %c0_i32_0 : i32, i32
  }
  func.func @transform_3(%arg0: i32, %arg1: i32) -> (i32, i32) {
    %c0_i32 = arith.constant 0 : i32
    %c0_i32_0 = arith.constant 0 : i32
    return %arg0, %c0_i32 : i32, i32
  }
}

module attributes {stable_mosaic.version = 11 : i64} {
  func.func @_tap_matmul_kernel(%arg0: i32, %arg1: i32, %arg2: memref<16x128xbf16, #tpu.memory_space<vmem>>, %arg3: memref<1x128x128xbf16, #tpu.memory_space<vmem>>, %arg4: memref<1x128xf32, #tpu.memory_space<vmem>>, %arg5: memref<16x128xf32, #tpu.memory_space<vmem>>, %arg6: memref<16x128xf32, #tpu.memory_space<vmem>>) attributes {dimension_semantics = [#tpu.dimension_semantics<parallel>, #tpu.dimension_semantics<arbitrary>], iteration_bounds = array<i64: 34, 3>, scalar_prefetch = 0 : i64, scratch_operands = 1 : i64, tpu.core_type = #tpu.core_type<tc>, window_params = [{transform_indices = @transform_0, window_bounds = array<i64: 16, 128>}, {transform_indices = @transform_1, window_bounds = array<i64: 1, 128, 128>}, {pipeline_mode = #tpu.pipeline_mode<synchronous>, transform_indices = @transform_2, window_bounds = array<i64: 1, 128>}, {transform_indices = @transform_3, window_bounds = array<i64: 16, 128>}]} {
    %c0_i32 = arith.constant 0 : i32
    %0 = arith.cmpi eq, %arg1, %c0_i32 : i32
    %1 = arith.extui %0 : i1 to i32
    %c0_i32_0 = arith.constant 0 : i32
    %2 = arith.cmpi ne, %1, %c0_i32_0 : i32
    scf.if %2 {
      %cst_10 = arith.constant 0.000000e+00 : f32
      %13 = vector.broadcast %cst_10 : f32 to vector<16x128xf32>
      %c0_11 = arith.constant 0 : index
      %c0_12 = arith.constant 0 : index
      %14 = vector.load %arg6[%c0_11, %c0_12] : memref<16x128xf32, #tpu.memory_space<vmem>>, vector<16x128xf32>
      tpu.vector_store %arg6[%c0_11, %c0_12], %13 {strides = array<i32>} : memref<16x128xf32, #tpu.memory_space<vmem>>, vector<16x128xf32>,
    } else {
    }
    %c0 = arith.constant 0 : index
    %c0_1 = arith.constant 0 : index
    %3 = vector.load %arg6[%c0, %c0_1] : memref<16x128xf32, #tpu.memory_space<vmem>>, vector<16x128xf32>
    %c0_2 = arith.constant 0 : index
    %c0_3 = arith.constant 0 : index
    %4 = vector.load %arg2[%c0_2, %c0_3] : memref<16x128xbf16, #tpu.memory_space<vmem>>, vector<16x128xbf16>
    %c0_4 = arith.constant 0 : index
    %c0_5 = arith.constant 0 : index
    %c0_6 = arith.constant 0 : index
    %5 = vector.load %arg3[%c0_4, %c0_5, %c0_6] : memref<1x128x128xbf16, #tpu.memory_space<vmem>>, vector<1x128x128xbf16>
    %6 = vector.shape_cast %5 : vector<1x128x128xbf16> to vector<128x128xbf16>
    %cst = arith.constant dense<0.000000e+00> : vector<16x128xf32>
    %7 = tpu.matmul %4, %6, %cst {dimension_numbers = #tpu.dot_dimension_numbers<[1], [0], [0], [1], [0, 0, 1, 1], [], []>} : vector<16x128xbf16>, vector<128x128xbf16>, vector<16x128xf32> -> vector<16x128xf32>
    %8 = arith.addf %3, %7 : vector<16x128xf32>
    %c0_7 = arith.constant 0 : index
    %c0_8 = arith.constant 0 : index
    %9 = vector.load %arg6[%c0_7, %c0_8] : memref<16x128xf32, #tpu.memory_space<vmem>>, vector<16x128xf32>
    tpu.vector_store %arg6[%c0_7, %c0_8], %8 {strides = array<i32>} : memref<16x128xf32, #tpu.memory_space<vmem>>, vector<16x128xf32>,
    %c2_i32 = arith.constant 2 : i32
    %10 = arith.cmpi eq, %arg1, %c2_i32 : i32
    %11 = arith.extui %10 : i1 to i32
    %c0_i32_9 = arith.constant 0 : i32
    %12 = arith.cmpi ne, %11, %c0_i32_9 : i32
    scf.if %12 {
      %c0_10 = arith.constant 0 : index
      %c0_11 = arith.constant 0 : index
      %13 = vector.load %arg6[%c0_10, %c0_11] : memref<16x128xf32, #tpu.memory_space<vmem>>, vector<16x128xf32>
      %c0_12 = arith.constant 0 : index
      %c0_13 = arith.constant 0 : index
      %14 = vector.load %arg4[%c0_12, %c0_13] : memref<1x128xf32, #tpu.memory_space<vmem>>, vector<1x128xf32>
      %15 = vector.broadcast %14 : vector<1x128xf32> to vector<16x128xf32>
      %16 = arith.addf %13, %15 : vector<16x128xf32>
      %c0_14 = arith.constant 0 : index
      %c0_15 = arith.constant 0 : index
      %17 = vector.load %arg5[%c0_14, %c0_15] : memref<16x128xf32, #tpu.memory_space<vmem>>, vector<16x128xf32>
      tpu.vector_store %arg5[%c0_14, %c0_15], %16 {strides = array<i32>} : memref<16x128xf32, #tpu.memory_space<vmem>>, vector<16x128xf32>,
    } else {
    }
    return
  }
  func.func @transform_0(%arg0: i32, %arg1: i32) -> (i32, i32) {
    %0 = arith.addi %arg0, %arg1 : i32
    %c0_i32 = arith.constant 0 : i32
    %c0_i32_0 = arith.constant 0 : i32
    return %0, %c0_i32 : i32, i32
  }
  func.func @transform_1(%arg0: i32, %arg1: i32) -> (i32, i32, i32) {
    %c0_i32 = arith.constant 0 : i32
    %c0_i32_0 = arith.constant 0 : i32
    %c0_i32_1 = arith.constant 0 : i32
    return %arg1, %c0_i32, %c0_i32_0 : i32, i32, i32
  }
  func.func @transform_2(%arg0: i32, %arg1: i32) -> (i32, i32) {
    %c0_i32 = arith.constant 0 : i32
    %c0_i32_0 = arith.constant 0 : i32
    %c0_i32_1 = arith.constant 0 : i32
    return %c0_i32, %c0_i32_0 : i32, i32
  }
  func.func @transform_3(%arg0: i32, %arg1: i32) -> (i32, i32) {
    %c0_i32 = arith.constant 0 : i32
    %c0_i32_0 = arith.constant 0 : i32
    return %arg0, %c0_i32 : i32, i32
  }
}

</mosaic_0001>

<bundles_post_ra>
// kernel: tiny_flownet_s.18
= control target key start
LH: loop header
LB: loop body
LE: loop exit
PB: predicated region body
PF: predicated region fallthrough
CT: control target
= control target key end

     0   :  { %s1341_s1 = inlined_call_operand.vmem [shape: bf16[1,128,128], index: 1, kind: input, shape index: {}]   ;;  %s1342_s0 = inlined_call_operand.vmem [shape: bf16[256,128], index: 0, kind: input, shape index: {}]   ;;  %s1343_s2 = inlined_call_operand.vmem [shape: f32[1,128], index: 2, kind: input, shape index: {}]   ;;  %s1344_s3 = inlined_call_operand.vmem [shape: bf16[256,128], index: 3, kind: output, shape index: {}]  }
   0x1   :  { %v1134_v0 = vld [vmem:[%s1341_s1] sm:$0xff]   ;;  %v1135_v1 = vld [vmem:[%s1341_s1 + $0x8] sm:$0xff]   ;;  %v1136_v2 = vld [vmem:[%s1341_s1 + $0x10] sm:$0xff]  }
   0x2   :  { %1070 = vmatprep.subr.bf16.mxu0 %v1134_v0  ;;  %1118 = vmatprep.subr.bf16.mxu1 %v1134_v0  ;;  %v1137_v3 = vld [vmem:[%s1341_s1 + $0x18] sm:$0xff]   ;;  %v1142_v4 = vld [vmem:[%s1342_s0] sm:$0xff]   ;;  %v1139_v7 = vld [vmem:[%s1341_s1 + $0x28] sm:$0xff]  }
   0x3   :  { %1071 = vmatpush3.bf16.msra.mxu0 %v1134_v0  ;;  %1126 = vmatpush3.bf16.msra.mxu1 %v1134_v0  ;;  %v1143_v5 = vld [vmem:[%s1342_s0 + $0x40] sm:$0xff]   ;;  %v1140_v8 = vld [vmem:[%s1341_s1 + $0x30] sm:$0xff]   ;;  %v1141_v9 = vld [vmem:[%s1341_s1 + $0x38] sm:$0xff]  }
   0x4   :  { %1072 = vmatprep.subr.bf16.mxu0 %v1135_v1  ;;  %1119 = vmatprep.subr.bf16.mxu1 %v1135_v1  ;;  %v1138_v6 = vld [vmem:[%s1341_s1 + $0x20] sm:$0xff]   ;;  %v1144_v10 = vld [vmem:[%s1342_s0 + $0x8] sm:$0xff]   ;;  %v1146_v12 = vld [vmem:[%s1342_s0 + $0x10] sm:$0xff]  }
   0x5   :  { %1086 = vmatprep.mubr.bf16.mxu0 %v1142_v4  ;;  %1102 = vmatprep.mubr.bf16.mxu1 %v1143_v5  ;;  %v1145_v11 = vld [vmem:[%s1342_s0 + $0x48] sm:$0xff]   ;;  %v1147_v13 = vld [vmem:[%s1342_s0 + $0x50] sm:$0xff]   ;;  %v1148_v14 = vld [vmem:[%s1342_s0 + $0x18] sm:$0xff]  }
   0x6   :  { %v1149_v15 = vld [vmem:[%s1342_s0 + $0x58] sm:$0xff]   ;;  %v1150_v16 = vld [vmem:[%s1342_s0 + $0x20] sm:$0xff]   ;;  %v1152_v18 = vld [vmem:[%s1342_s0 + $0x28] sm:$0xff]  }
   0x7   :  { %1073 = vmatpush3.bf16.msra.mxu0 %v1135_v1  ;;  %1127 = vmatpush3.bf16.msra.mxu1 %v1135_v1  ;;  %v1151_v17 = vld [vmem:[%s1342_s0 + $0x60] sm:$0xff]   ;;  %v1153_v19 = vld [vmem:[%s1342_s0 + $0x68] sm:$0xff]   ;;  %v1154_v20 = vld [vmem:[%s1342_s0 + $0x30] sm:$0xff]  }
   0x8   :  { %1074 = vmatprep.subr.bf16.mxu0 %v1136_v2  ;;  %1120 = vmatprep.subr.bf16.mxu1 %v1136_v2  ;;  %v1155_v21 = vld [vmem:[%s1342_s0 + $0x70] sm:$0xff]   ;;  %v1156_v22 = vld [vmem:[%s1342_s0 + $0x38] sm:$0xff]   ;;  %v1253_v24 = vld [vmem:[%s1343_s2] ss:$0 sm:$0xff] }
   0x9   :  { %v1157_v23 = vld [vmem:[%s1342_s0 + $0x78] sm:$0xff]  }
   0xb   :  { %1075 = vmatpush3.bf16.msra.mxu0 %v1136_v2  ;;  %1128 = vmatpush3.bf16.msra.mxu1 %v1136_v2 }
   0xc   :  { %1076 = vmatprep.subr.bf16.mxu0 %v1137_v3  ;;  %1121 = vmatprep.subr.bf16.mxu1 %v1137_v3 }
   0xf   :  { %1077 = vmatpush3.bf16.msra.mxu0 %v1137_v3  ;;  %1129 = vmatpush3.bf16.msra.mxu1 %v1137_v3 }
  0x10   :  { %1078 = vmatprep.subr.bf16.mxu0 %v1138_v6  ;;  %1122 = vmatprep.subr.bf16.mxu1 %v1138_v6 }
  0x13   :  { %1079 = vmatpush3.bf16.msra.mxu0 %v1138_v6  ;;  %1130 = vmatpush3.bf16.msra.mxu1 %v1138_v6 }
  0x14   :  { %1080 = vmatprep.subr.bf16.mxu0 %v1139_v7  ;;  %1123 = vmatprep.subr.bf16.mxu1 %v1139_v7 }
  0x17   :  { %1081 = vmatpush3.bf16.msra.mxu0 %v1139_v7  ;;  %1131 = vmatpush3.bf16.msra.mxu1 %v1139_v7 }
  0x18   :  { %1082 = vmatprep.subr.bf16.mxu0 %v1140_v8  ;;  %1124 = vmatprep.subr.bf16.mxu1 %v1140_v8 }
  0x1b   :  { %1083 = vmatpush3.bf16.msra.mxu0 %v1140_v8  ;;  %1132 = vmatpush3.bf16.msra.mxu1 %v1140_v8 }
  0x1c   :  { %1084 = vmatprep.subr.bf16.mxu0 %v1141_v9  ;;  %1125 = vmatprep.subr.bf16.mxu1 %v1141_v9 }
  0x1f   :  { %1085 = vmatpush3.bf16.msra.mxu0 %v1141_v9  ;;  %1133 = vmatpush3.bf16.msra.mxu1 %v1141_v9 }
  0x22   :  { %1087 = vmatmul.mubr.bf16.vlgmr.msra.gmra.mrb[0].mxu0 %v1144_v10  ;;  %1103 = vmatmul.mubr.bf16.vlgmr.msra.gmra.mrb[0].mxu1 %v1145_v11 }
  0x23   :  { %1090 = vmatprep.mubr.bf16.mxu0 %v1146_v12  ;;  %1106 = vmatprep.mubr.bf16.mxu1 %v1147_v13 }
  0x2a   :  { %1091 = vmatmul.mubr.bf16.gmra.mrb[4].mxu0 %v1148_v14  ;;  %1107 = vmatmul.mubr.bf16.gmra.mrb[4].mxu1 %v1149_v15 }
  0x2b   :  { %1094 = vmatprep.mubr.bf16.mxu0 %v1150_v16  ;;  %1110 = vmatprep.mubr.bf16.mxu1 %v1151_v17 }
  0x32   :  { %1095 = vmatmul.mubr.bf16.gmra.mrb[8].mxu0 %v1152_v18  ;;  %1111 = vmatmul.mubr.bf16.gmra.mrb[8].mxu1 %v1153_v19 }
  0x33   :  { %1098 = vmatprep.mubr.bf16.mxu0 %v1154_v20  ;;  %1114 = vmatprep.mubr.bf16.mxu1 %v1155_v21 }
  0x3a   :  { %1099 = vmatmul.mubr.bf16.gmra.mrb[12].mxu0 %v1156_v22  ;;  %1115 = vmatmul.mubr.bf16.gmra.mrb[12].mxu1 %v1157_v23 }
  0xf5   :  { %v1088_v25 = vpop.f32.mrb[0].mxu0  ;;  %v1104_v26 = vpop.f32.mrb[0].mxu1 }
  0xf6   :  { %v566_v27 = vadd.f32 %v1088_v25, %v1253_v24  ;;  %v582_v28 = vadd.f32 %v1104_v26, %v1253_v24  ;;  %v331_v29 = vpop.f32.mrb[1].mxu0  ;;  %v395_v30 = vpop.f32.mrb[1].mxu1 }
  0xf7   :  { %v564_v31 = vadd.f32 %v1253_v24, %v331_v29  ;;  %v580_v32 = vadd.f32 %v1253_v24, %v395_v30  ;;  %v1089_v33 = vpop.f32.mrb[2].mxu0  ;;  %v1105_v34 = vpop.f32.mrb[2].mxu1 }
  0xf8   :  { %vm598_vm0 = vcmp.ge.f32.partialorder %v566_v27, 0.0  ;;  %v630_v35 = vmul.f32 0.1, %v566_v27  ;;  %vm614_vm1 = vcmp.ge.f32.partialorder %v582_v28, 0.0  ;;  %v646_v36 = vmul.f32 0.1, %v582_v28 }
  0xf9   :  { %vm596_vm2 = vcmp.ge.f32.partialorder %v564_v31, 0.0  ;;  %v628_v37 = vmul.f32 0.1, %v564_v31  ;;  %vm612_vm3 = vcmp.ge.f32.partialorder %v580_v32, 0.0  ;;  %v644_v38 = vmul.f32 0.1, %v580_v32 }
  0xfa   :  { %v567_v39 = vadd.f32 %v1089_v33, %v1253_v24  ;;  %v583_v40 = vadd.f32 %v1105_v34, %v1253_v24  ;;  %v334_v41 = vpop.f32.mrb[3].mxu0  ;;  %v398_v42 = vpop.f32.mrb[3].mxu1  ;;  %v662_v43 = vsel %vm598_vm0, %v566_v27, %v630_v35  ;;  %v678_v44 = vsel %vm614_vm1, %v582_v28, %v646_v36 }
  0xfb   :  { %v565_v45 = vadd.f32 %v1253_v24, %v334_v41  ;;  %v581_v46 = vadd.f32 %v1253_v24, %v398_v42  ;;  %v660_v51 = vsel %vm596_vm2, %v564_v31, %v628_v37  ;;  %v676_v52 = vsel %vm612_vm3, %v580_v32, %v644_v38 }
  0xfc   :  { %vm599_vm4 = vcmp.ge.f32.partialorder %v567_v39, 0.0  ;;  %v631_v47 = vmul.f32 0.1, %v567_v39  ;;  %vm615_vm5 = vcmp.ge.f32.partialorder %v583_v40, 0.0  ;;  %v647_v48 = vmul.f32 0.1, %v583_v40 }
  0xfd   :  { %vm597_vm6 = vcmp.ge.f32.partialorder %v565_v45, 0.0  ;;  %v629_v49 = vmul.f32 0.1, %v565_v45  ;;  %vm613_vm7 = vcmp.ge.f32.partialorder %v581_v46, 0.0  ;;  %v645_v50 = vmul.f32 0.1, %v581_v46 }
  0xfe   :  { %v663_v53 = vsel %vm599_vm4, %v567_v39, %v631_v47  ;;  %v679_v54 = vsel %vm615_vm5, %v583_v40, %v647_v48  ;;  %v1092_v55 = vpop.f32.mrb[4].mxu0  ;;  %v1108_v56 = vpop.f32.mrb[4].mxu1 }
  0xff   :  { %v959_v57 = vpack.c.bf16 %v663_v53, %v662_v43  ;;  %v999_v58 = vpack.c.bf16 %v679_v54, %v678_v44  ;;  %v661_v59 = vsel %vm597_vm6, %v565_v45, %v629_v49  ;;  %v677_v60 = vsel %vm613_vm7, %v581_v46, %v645_v50  ;;  %v347_v61 = vpop.f32.mrb[5].mxu0  ;;  %v411_v62 = vpop.f32.mrb[5].mxu1 }
 0x100   :  { %v954_v63 = vpack.c.bf16 %v661_v59, %v660_v51  ;;  %v994_v0 = vpack.c.bf16 %v677_v60, %v676_v52  ;;  %v570_v1 = vadd.f32 %v1092_v55, %v1253_v24  ;;  %v586_v2 = vadd.f32 %v1108_v56, %v1253_v24  ;;  %v1093_v3 = vpop.f32.mrb[6].mxu0  ;;  %v1109_v4 = vpop.f32.mrb[6].mxu1 }
 0x101   :  { %1031 = vst [vmem:[%s1344_s3 + $0x8] sm:$0xff] %v959_v57   ;;  %1039 = vst [vmem:[%s1344_s3 + $0x48] sm:$0xff] %v999_v58   ;;  %v568_v5 = vadd.f32 %v1253_v24, %v347_v61  ;;  %v584_v6 = vadd.f32 %v1253_v24, %v411_v62  ;;  %v571_v7 = vadd.f32 %v1093_v3, %v1253_v24  ;;  %v350_v9 = vpop.f32.mrb[7].mxu0  ;;  %v414_v10 = vpop.f32.mrb[7].mxu1 }
 0x102   :  { %v587_v8 = vadd.f32 %v1109_v4, %v1253_v24  ;;  %955 = vst [vmem:[%s1344_s3] sm:$0xff] %v954_v63   ;;  %1038 = vst [vmem:[%s1344_s3 + $0x40] sm:$0xff] %v994_v0   ;;  %vm602_vm8 = vcmp.ge.f32.partialorder %v570_v1, 0.0  ;;  %v634_v11 = vmul.f32 0.1, %v570_v1  ;;  %vm618_vm9 = vcmp.ge.f32.partialorder %v586_v2, 0.0 }
 0x103   :  { %v650_v12 = vmul.f32 0.1, %v586_v2  ;;  %vm600_vm10 = vcmp.ge.f32.partialorder %v568_v5, 0.0  ;;  %v632_v13 = vmul.f32 0.1, %v568_v5  ;;  %vm616_vm11 = vcmp.ge.f32.partialorder %v584_v6, 0.0 }
 0x104   :  { %v666_v14 = vsel %vm602_vm8, %v570_v1, %v634_v11  ;;  %v648_v15 = vmul.f32 0.1, %v584_v6  ;;  %vm603_vm12 = vcmp.ge.f32.partialorder %v571_v7, 0.0  ;;  %v635_v16 = vmul.f32 0.1, %v571_v7 }
 0x105   :  { %v682_v17 = vsel %vm618_vm9, %v586_v2, %v650_v12  ;;  %v664_v18 = vsel %vm600_vm10, %v568_v5, %v632_v13  ;;  %vm619_vm13 = vcmp.ge.f32.partialorder %v587_v8, 0.0  ;;  %v651_v19 = vmul.f32 0.1, %v587_v8  ;;  %v1096_v20 = vpop.f32.mrb[8].mxu0  ;;  %v1112_v21 = vpop.f32.mrb[8].mxu1 }
 0x106   :  { %v667_v22 = vsel %vm603_vm12, %v571_v7, %v635_v16  ;;  %v569_v23 = vadd.f32 %v1253_v24, %v350_v9  ;;  %v585_v25 = vadd.f32 %v1253_v24, %v414_v10  ;;  %v574_v26 = vadd.f32 %v1096_v20, %v1253_v24  ;;  %v363_v27 = vpop.f32.mrb[9].mxu0  ;;  %v427_v28 = vpop.f32.mrb[9].mxu1 }
 0x107   :  { %v969_v29 = vpack.c.bf16 %v667_v22, %v666_v14  ;;  %v683_v30 = vsel %vm619_vm13, %v587_v8, %v651_v19  ;;  %v590_v31 = vadd.f32 %v1112_v21, %v1253_v24  ;;  %v572_v32 = vadd.f32 %v1253_v24, %v363_v27  ;;  %v1097_v33 = vpop.f32.mrb[10].mxu0  ;;  %v1113_v34 = vpop.f32.mrb[10].mxu1 }
 0x108   :  { %v1009_v35 = vpack.c.bf16 %v683_v30, %v682_v17  ;;  %vm601_vm14 = vcmp.ge.f32.partialorder %v569_v23, 0.0  ;;  %v633_v36 = vmul.f32 0.1, %v569_v23  ;;  %vm617_vm15 = vcmp.ge.f32.partialorder %v585_v25, 0.0  ;;  %v366_v37 = vpop.f32.mrb[11].mxu0  ;;  %v430_v38 = vpop.f32.mrb[11].mxu1 }
 0x109   :  { %1033 = vst [vmem:[%s1344_s3 + $0x18] sm:$0xff] %v969_v29   ;;  %v649_v39 = vmul.f32 0.1, %v585_v25  ;;  %vm606_vm0 = vcmp.ge.f32.partialorder %v574_v26, 0.0  ;;  %v638_v40 = vmul.f32 0.1, %v574_v26  ;;  %v680_v41 = vsel %vm616_vm11, %v584_v6, %v648_v15 }
 0x10a   :  { %vm622_vm1 = vcmp.ge.f32.partialorder %v590_v31, 0.0  ;;  %1041 = vst [vmem:[%s1344_s3 + $0x58] sm:$0xff] %v1009_v35   ;;  %v665_v42 = vsel %vm601_vm14, %v569_v23, %v633_v36  ;;  %v654_v43 = vmul.f32 0.1, %v590_v31  ;;  %vm604_vm2 = vcmp.ge.f32.partialorder %v572_v32, 0.0 }
 0x10b   :  { %v964_v44 = vpack.c.bf16 %v665_v42, %v664_v18  ;;  %v681_v45 = vsel %vm617_vm15, %v585_v25, %v649_v39  ;;  %v636_v46 = vmul.f32 0.1, %v572_v32  ;;  %v588_v47 = vadd.f32 %v1253_v24, %v427_v28 }
 0x10c   :  { %v1004_v48 = vpack.c.bf16 %v681_v45, %v680_v41  ;;  %v670_v49 = vsel %vm606_vm0, %v574_v26, %v638_v40  ;;  %v686_v50 = vsel %vm622_vm1, %v590_v31, %v654_v43  ;;  %v575_v51 = vadd.f32 %v1097_v33, %v1253_v24 }
 0x10d   :  { %1032 = vst [vmem:[%s1344_s3 + $0x10] sm:$0xff] %v964_v44   ;;  %vm620_vm3 = vcmp.ge.f32.partialorder %v588_v47, 0.0  ;;  %v652_v52 = vmul.f32 0.1, %v588_v47  ;;  %v591_v53 = vadd.f32 %v1113_v34, %v1253_v24  ;;  %v573_v54 = vadd.f32 %v1253_v24, %v366_v37  ;;  %v1100_v55 = vpop.f32.mrb[12].mxu0  ;;  %v1116_v56 = vpop.f32.mrb[12].mxu1 }
 0x10e   :  { %1040 = vst [vmem:[%s1344_s3 + $0x50] sm:$0xff] %v1004_v48   ;;  %vm607_vm4 = vcmp.ge.f32.partialorder %v575_v51, 0.0  ;;  %v639_v57 = vmul.f32 0.1, %v575_v51  ;;  %v589_v58 = vadd.f32 %v1253_v24, %v430_v38  ;;  %v578_v59 = vadd.f32 %v1100_v55, %v1253_v24  ;;  %v379_v60 = vpop.f32.mrb[13].mxu0  ;;  %v443_v61 = vpop.f32.mrb[13].mxu1 }
 0x10f   :  { %v668_v62 = vsel %vm604_vm2, %v572_v32, %v636_v46  ;;  %vm623_vm5 = vcmp.ge.f32.partialorder %v591_v53, 0.0  ;;  %v655_v63 = vmul.f32 0.1, %v591_v53  ;;  %vm605_vm6 = vcmp.ge.f32.partialorder %v573_v54, 0.0  ;;  %v1101_v0 = vpop.f32.mrb[14].mxu0  ;;  %v1117_v1 = vpop.f32.mrb[14].mxu1 }
 0x110   :  { %v671_v2 = vsel %vm607_vm4, %v575_v51, %v639_v57  ;;  %v637_v3 = vmul.f32 0.1, %v573_v54  ;;  %vm621_vm7 = vcmp.ge.f32.partialorder %v589_v58, 0.0  ;;  %v653_v4 = vmul.f32 0.1, %v589_v58  ;;  %v382_v5 = vpop.f32.mrb[15].mxu0 }
 0x111   :  { %v684_v6 = vsel %vm620_vm3, %v588_v47, %v652_v52  ;;  %v979_v7 = vpack.c.bf16 %v671_v2, %v670_v49  ;;  %v687_v8 = vsel %vm623_vm5, %v591_v53, %v655_v63  ;;  %v642_v9 = vmul.f32 0.1, %v578_v59  ;;  %v446_v10 = vpop.f32.mrb[15].mxu1 }
 0x112   :  { %v1019_v11 = vpack.c.bf16 %v687_v8, %v686_v50  ;;  %v669_v12 = vsel %vm605_vm6, %v573_v54, %v637_v3  ;;  %v685_v13 = vsel %vm621_vm7, %v589_v58, %v653_v4  ;;  %v594_v14 = vadd.f32 %v1116_v56, %v1253_v24 }
 0x113   :  { %1035 = vst [vmem:[%s1344_s3 + $0x28] sm:$0xff] %v979_v7   ;;  %v974_v15 = vpack.c.bf16 %v669_v12, %v668_v62  ;;  %v1014_v16 = vpack.c.bf16 %v685_v13, %v684_v6  ;;  %vm610_vm8 = vcmp.ge.f32.partialorder %v578_v59, 0.0  ;;  %v576_v17 = vadd.f32 %v1253_v24, %v379_v60 }
 0x114   :  { %1043 = vst [vmem:[%s1344_s3 + $0x68] sm:$0xff] %v1019_v11   ;;  %vm626_vm9 = vcmp.ge.f32.partialorder %v594_v14, 0.0  ;;  %v658_v18 = vmul.f32 0.1, %v594_v14  ;;  %v592_v19 = vadd.f32 %v1253_v24, %v443_v61  ;;  %v579_v20 = vadd.f32 %v1101_v0, %v1253_v24 }
 0x115   :  { %1034 = vst [vmem:[%s1344_s3 + $0x20] sm:$0xff] %v974_v15   ;;  %1042 = vst [vmem:[%s1344_s3 + $0x60] sm:$0xff] %v1014_v16   ;;  %v640_v21 = vmul.f32 0.1, %v576_v17  ;;  %v595_v22 = vadd.f32 %v1117_v1, %v1253_v24  ;;  %v577_v23 = vadd.f32 %v1253_v24, %v382_v5  ;;  %v674_v25 = vsel %vm610_vm8, %v578_v59, %v642_v9 }
 0x116   :  { %vm608_vm10 = vcmp.ge.f32.partialorder %v576_v17, 0.0  ;;  %vm611_vm11 = vcmp.ge.f32.partialorder %v579_v20, 0.0  ;;  %v690_v26 = vsel %vm626_vm9, %v594_v14, %v658_v18  ;;  %v643_v27 = vmul.f32 0.1, %v579_v20 }
 0x117   :  { %vm627_vm12 = vcmp.ge.f32.partialorder %v595_v22, 0.0  ;;  %v659_v28 = vmul.f32 0.1, %v595_v22  ;;  %vm624_vm13 = vcmp.ge.f32.partialorder %v592_v19, 0.0  ;;  %vm609_vm14 = vcmp.ge.f32.partialorder %v577_v23, 0.0 }
 0x118   :  { %v641_v29 = vmul.f32 0.1, %v577_v23  ;;  %v593_v30 = vadd.f32 %v1253_v24, %v446_v10  ;;  %v672_v31 = vsel %vm608_vm10, %v576_v17, %v640_v21  ;;  %v656_v32 = vmul.f32 0.1, %v592_v19 }
 0x119   :  { %v675_v33 = vsel %vm611_vm11, %v579_v20, %v643_v27  ;;  %v691_v34 = vsel %vm627_vm12, %v595_v22, %v659_v28 }
 0x11a   :  { %v989_v35 = vpack.c.bf16 %v675_v33, %v674_v25  ;;  %v1029_v36 = vpack.c.bf16 %v691_v34, %v690_v26  ;;  %v673_v37 = vsel %vm609_vm14, %v577_v23, %v641_v29  ;;  %vm625_vm15 = vcmp.ge.f32.partialorder %v593_v30, 0.0 }
 0x11b   :  { %v984_v38 = vpack.c.bf16 %v673_v37, %v672_v31  ;;  %v657_v39 = vmul.f32 0.1, %v593_v30  ;;  %v688_v24 = vsel %vm624_vm13, %v592_v19, %v656_v32 }
 0x11c   :  { %1037 = vst [vmem:[%s1344_s3 + $0x38] sm:$0xff] %v989_v35   ;;  %1045 = vst [vmem:[%s1344_s3 + $0x78] sm:$0xff] %v1029_v36  }
 0x11d   :  { %1036 = vst [vmem:[%s1344_s3 + $0x30] sm:$0xff] %v984_v38   ;;  %v689_v40 = vsel %vm625_vm15, %v593_v30, %v657_v39 }
 0x11e   :  { %v1024_v41 = vpack.c.bf16 %v689_v40, %v688_v24 }
 0x120   :  { %1044 = vst [vmem:[%s1344_s3 + $0x70] sm:$0xff] %v1024_v41  }

// kernel: tiny_flownet_s.19
= control target key start
LH: loop header
LB: loop body
LE: loop exit
PB: predicated region body
PF: predicated region fallthrough
CT: control target
= control target key end

     0   :  { %s1946_s1 = inlined_call_operand.vmem [shape: bf16[1,640,128], index: 1, kind: input, shape index: {}]   ;;  %s1947_s0 = inlined_call_operand.vmem [shape: bf16[128,640], index: 0, kind: input, shape index: {}]   ;;  %s1948_s2 = inlined_call_operand.vmem [shape: f32[1,128], index: 2, kind: input, shape index: {}]   ;;  %s1949_s3 = inlined_call_operand.vmem [shape: bf16[128,128], index: 3, kind: output, shape index: {}]  }
   0x1   :  { %v1507_v0 = vld [vmem:[%s1946_s1 + $0x40] sm:$0xff]   ;;  %v1511_v4 = vld [vmem:[%s1946_s1 + $0x48] sm:$0xff]   ;;  %v1515_v8 = vld [vmem:[%s1946_s1 + $0x50] sm:$0xff]  }
   0x2   :  { %v1508_v1 = vld [vmem:[%s1946_s1 + $0xc0] sm:$0xff]   ;;  %1315 = vmatprep.subr.bf16.mxu0 %v1507_v0  ;;  %v1512_v5 = vld [vmem:[%s1946_s1 + $0xc8] sm:$0xff]   ;;  %v1516_v9 = vld [vmem:[%s1946_s1 + $0xd0] sm:$0xff]  }
   0x3   :  { %v1509_v2 = vld [vmem:[%s1946_s1] sm:$0xff]   ;;  %1379 = vmatprep.subr.bf16.mxu1 %v1508_v1  ;;  %v1513_v6 = vld [vmem:[%s1946_s1 + $0x8] sm:$0xff]   ;;  %v1517_v10 = vld [vmem:[%s1946_s1 + $0x10] sm:$0xff]  }
   0x4   :  { %v1510_v3 = vld [vmem:[%s1946_s1 + $0x80] sm:$0xff]   ;;  %1316 = vmatpush3.bf16.msra.mxu0 %v1509_v2  ;;  %v1514_v7 = vld [vmem:[%s1946_s1 + $0x88] sm:$0xff]   ;;  %v1518_v11 = vld [vmem:[%s1946_s1 + $0x90] sm:$0xff]  }
   0x5   :  { %1380 = vmatpush3.bf16.msra.mxu1 %v1510_v3  ;;  %1317 = vmatprep.subr.bf16.mxu0 %v1511_v4  ;;  %v1519_v12 = vld [vmem:[%s1946_s1 + $0x58] sm:$0xff]   ;;  %v1523_v16 = vld [vmem:[%s1946_s1 + $0x60] sm:$0xff]   ;;  %v1527_v20 = vld [vmem:[%s1946_s1 + $0x68] sm:$0xff]  }
   0x6   :  { %1381 = vmatprep.subr.bf16.mxu1 %v1512_v5  ;;  %v1520_v13 = vld [vmem:[%s1946_s1 + $0xd8] sm:$0xff]   ;;  %v1524_v17 = vld [vmem:[%s1946_s1 + $0xe0] sm:$0xff]   ;;  %v1528_v21 = vld [vmem:[%s1946_s1 + $0xe8] sm:$0xff]  }
   0x7   :  { %v1521_v14 = vld [vmem:[%s1946_s1 + $0x18] sm:$0xff]   ;;  %v1525_v18 = vld [vmem:[%s1946_s1 + $0x20] sm:$0xff]   ;;  %v1529_v22 = vld [vmem:[%s1946_s1 + $0x28] sm:$0xff]  }
   0x8   :  { %1318 = vmatpush3.bf16.msra.mxu0 %v1513_v6  ;;  %v1522_v15 = vld [vmem:[%s1946_s1 + $0x98] sm:$0xff]   ;;  %v1526_v19 = vld [vmem:[%s1946_s1 + $0xa0] sm:$0xff]   ;;  %v1530_v23 = vld [vmem:[%s1946_s1 + $0xa8] sm:$0xff]  }
   0x9   :  { %1382 = vmatpush3.bf16.msra.mxu1 %v1514_v7  ;;  %1319 = vmatprep.subr.bf16.mxu0 %v1515_v8  ;;  %v1531_v24 = vld [vmem:[%s1946_s1 + $0x70] sm:$0xff]   ;;  %v1535_v28 = vld [vmem:[%s1946_s1 + $0x78] sm:$0xff]   ;;  %v1544_v35 = vld [vmem:[%s1947_s0 + $0xc] ss:$20 sps:$4 sm:$0xff]  }
   0xa   :  { %1383 = vmatprep.subr.bf16.mxu1 %v1516_v9  ;;  %v1532_v25 = vld [vmem:[%s1946_s1 + $0xf0] sm:$0xff]   ;;  %v1536_v29 = vld [vmem:[%s1946_s1 + $0xf8] sm:$0xff]   ;;  %v1545_v36 = vld [vmem:[%s1946_s1 + $0x100] sm:$0xff]   ;;  %781 = vmatprep.mubr.bf16.mxu1 %v1544_v35 }
   0xb   :  { %v1533_v26 = vld [vmem:[%s1946_s1 + $0x30] sm:$0xff]   ;;  %v1537_v30 = vld [vmem:[%s1946_s1 + $0x38] sm:$0xff]   ;;  %v1546_v37 = vld [vmem:[%s1947_s0 + $0x2c] ss:$20 sps:$4 sm:$0xff]  }
   0xc   :  { %1320 = vmatpush3.bf16.msra.mxu0 %v1517_v10  ;;  %v1534_v27 = vld [vmem:[%s1946_s1 + $0xb0] sm:$0xff]   ;;  %v1538_v31 = vld [vmem:[%s1946_s1 + $0xb8] sm:$0xff]   ;;  %v1552_v39 = vld [vmem:[%s1946_s1 + $0x108] sm:$0xff]  }
   0xd   :  { %1384 = vmatpush3.bf16.msra.mxu1 %v1518_v11  ;;  %1321 = vmatprep.subr.bf16.mxu0 %v1519_v12  ;;  %v1539_v32 = vld [vmem:[%s1947_s0] ss:$20 sps:$4 sm:$0xff]   ;;  %v1541_v33 = vld [vmem:[%s1947_s0 + $0x4] ss:$20 sps:$4 sm:$0xff]   ;;  %v1542_v34 = vld [vmem:[%s1947_s0 + $0x8] ss:$20 sps:$4 sm:$0xff]  }
   0xe   :  { %1385 = vmatprep.subr.bf16.mxu1 %v1520_v13  ;;  %684 = vmatprep.mubr.bf16.mxu0 %v1541_v33  ;;  %v1548_v38 = vld [vmem:[%s1947_s0 + $0x34] ss:$20 sps:$4 sm:$0xff]   ;;  %v1551_v41 = vld [vmem:[%s1947_s0 + $0x30] ss:$20 sps:$4 sm:$0xff]   ;;  %v1566_v45 = vld [vmem:[%s1946_s1 + $0x118] sm:$0xff]  }
   0xf   :  { %v1550_v40 = vld [vmem:[%s1947_s0 + $0x28] ss:$20 sps:$4 sm:$0xff]   ;;  %v1559_v44 = vld [vmem:[%s1946_s1 + $0x110] sm:$0xff]   ;;  %v1558_v47 = vld [vmem:[%s1947_s0 + $0x58] ss:$20 sps:$4 sm:$0xff]  }
  0x10   :  { %1322 = vmatpush3.bf16.msra.mxu0 %v1521_v14  ;;  %v1553_v42 = vld [vmem:[%s1947_s0 + $0x54] ss:$20 sps:$4 sm:$0xff]   ;;  %v1555_v43 = vld [vmem:[%s1947_s0 + $0x5c] ss:$20 sps:$4 sm:$0xff]   ;;  %v1562_v49 = vld [vmem:[%s1947_s0 + $0x84] ss:$20 sps:$4 sm:$0xff]  }
  0x11   :  { %1386 = vmatpush3.bf16.msra.mxu1 %v1522_v15  ;;  %1323 = vmatprep.subr.bf16.mxu0 %v1523_v16  ;;  %v1557_v46 = vld [vmem:[%s1947_s0 + $0x50] ss:$20 sps:$4 sm:$0xff]   ;;  %v1580_v51 = vld [vmem:[%s1946_s1 + $0x128] sm:$0xff]   ;;  %v1565_v53 = vld [vmem:[%s1947_s0 + $0x80] ss:$20 sps:$4 sm:$0xff]  }
  0x12   :  { %1387 = vmatprep.subr.bf16.mxu1 %v1524_v17  ;;  %v1560_v48 = vld [vmem:[%s1947_s0 + $0x7c] ss:$20 sps:$4 sm:$0xff]   ;;  %v1573_v50 = vld [vmem:[%s1946_s1 + $0x120] sm:$0xff]   ;;  %v1564_v52 = vld [vmem:[%s1947_s0 + $0x78] ss:$20 sps:$4 sm:$0xff]  }
  0x13   :  { %v1567_v54 = vld [vmem:[%s1947_s0 + $0xa4] ss:$20 sps:$4 sm:$0xff]   ;;  %v1587_v55 = vld [vmem:[%s1946_s1 + $0x130] sm:$0xff]   ;;  %v1569_v56 = vld [vmem:[%s1947_s0 + $0xac] ss:$20 sps:$4 sm:$0xff]  }
  0x14   :  { %1324 = vmatpush3.bf16.msra.mxu0 %v1525_v18  ;;  %v1594_v57 = vld [vmem:[%s1946_s1 + $0x138] sm:$0xff]   ;;  %v1571_v58 = vld [vmem:[%s1947_s0 + $0xa0] ss:$20 sps:$4 sm:$0xff]   ;;  %v1579_v63 = vld [vmem:[%s1947_s0 + $0xd0] ss:$20 sps:$4 sm:$0xff]  }
  0x15   :  { %1388 = vmatpush3.bf16.msra.mxu1 %v1526_v19  ;;  %1325 = vmatprep.subr.bf16.mxu0 %v1527_v20  ;;  %v1572_v59 = vld [vmem:[%s1947_s0 + $0xa8] ss:$20 sps:$4 sm:$0xff]   ;;  %v1574_v60 = vld [vmem:[%s1947_s0 + $0xcc] ss:$20 sps:$4 sm:$0xff]   ;;  %v1585_v2 = vld [vmem:[%s1947_s0 + $0xf0] ss:$20 sps:$4 sm:$0xff]  }
  0x16   :  { %1389 = vmatprep.subr.bf16.mxu1 %v1528_v21  ;;  %v1576_v61 = vld [vmem:[%s1947_s0 + $0xd4] ss:$20 sps:$4 sm:$0xff]   ;;  %v1583_v1 = vld [vmem:[%s1947_s0 + $0xfc] ss:$20 sps:$4 sm:$0xff]   ;;  %v1586_v3 = vld [vmem:[%s1947_s0 + $0xf8] ss:$20 sps:$4 sm:$0xff]  }
  0x17   :  { %v1578_v62 = vld [vmem:[%s1947_s0 + $0xc8] ss:$20 sps:$4 sm:$0xff]   ;;  %v1590_v5 = vld [vmem:[%s1947_s0 + $0x124] ss:$20 sps:$4 sm:$0xff]   ;;  %v1593_v7 = vld [vmem:[%s1947_s0 + $0x120] ss:$20 sps:$4 sm:$0xff]  }
  0x18   :  { %1326 = vmatpush3.bf16.msra.mxu0 %v1529_v22  ;;  %v1581_v0 = vld [vmem:[%s1947_s0 + $0xf4] ss:$20 sps:$4 sm:$0xff]   ;;  %v1588_v4 = vld [vmem:[%s1947_s0 + $0x11c] ss:$20 sps:$4 sm:$0xff]   ;;  %v1592_v6 = vld [vmem:[%s1947_s0 + $0x118] ss:$20 sps:$4 sm:$0xff]  }
  0x19   :  { %1390 = vmatpush3.bf16.msra.mxu1 %v1530_v23  ;;  %1327 = vmatprep.subr.bf16.mxu0 %v1531_v24  ;;  %v1595_v8 = vld [vmem:[%s1947_s0 + $0x10] ss:$20 sps:$4 sm:$0xff]   ;;  %v1597_v10 = vld [vmem:[%s1947_s0 + $0x38] ss:$20 sps:$4 sm:$0xff]   ;;  %v1599_v12 = vld [vmem:[%s1947_s0 + $0x60] ss:$20 sps:$4 sm:$0xff]  }
  0x1a   :  { %1391 = vmatprep.subr.bf16.mxu1 %v1532_v25  ;;  %v1596_v9 = vld [vmem:[%s1947_s0 + $0xb0] ss:$20 sps:$4 sm:$0xff]   ;;  %v1598_v11 = vld [vmem:[%s1947_s0 + $0xd8] ss:$20 sps:$4 sm:$0xff]   ;;  %v1600_v13 = vld [vmem:[%s1947_s0 + $0x100] ss:$20 sps:$4 sm:$0xff]  }
  0x1b   :  { %v1601_v14 = vld [vmem:[%s1947_s0 + $0x88] ss:$20 sps:$4 sm:$0xff]  }
  0x1c   :  { %1328 = vmatpush3.bf16.msra.mxu0 %v1533_v26  ;;  %v1602_v15 = vld [vmem:[%s1947_s0 + $0x128] ss:$20 sps:$4 sm:$0xff]  }
  0x1d   :  { %1392 = vmatpush3.bf16.msra.mxu1 %v1534_v27  ;;  %1329 = vmatprep.subr.bf16.mxu0 %v1535_v28 }
  0x1e   :  { %1393 = vmatprep.subr.bf16.mxu1 %v1536_v29 }
  0x20   :  { %1330 = vmatpush3.bf16.msra.mxu0 %v1537_v30 }
  0x21   :  { %1394 = vmatpush3.bf16.msra.mxu1 %v1538_v31  ;;  %1459 = vmatprep.subr.bf16.mxu0 %v1545_v36 }
  0x22   :  { %1491 = vmatprep.subr.bf16.mxu1 %v1545_v36 }
  0x23   :  { %685 = vmatmul.mubr.bf16.vlgmr.msra.gmra.mrb[0].mxu0 %v1539_v32 }
  0x24   :  { %782 = vmatmul.mubr.bf16.vlgmr.msra.gmra.mrb[0].mxu1 %v1542_v34  ;;  %1460 = vmatpush3.bf16.msra.mxu0 %v1545_v36 }
  0x25   :  { %1499 = vmatpush3.bf16.msra.mxu1 %v1545_v36  ;;  %692 = vmatprep.mubr.bf16.mxu0 %v1546_v37 }
  0x26   :  { %789 = vmatprep.mubr.bf16.mxu1 %v1548_v38  ;;  %1461 = vmatprep.subr.bf16.mxu0 %v1552_v39 }
  0x27   :  { %1492 = vmatprep.subr.bf16.mxu1 %v1552_v39 }
  0x28   :  { %1462 = vmatpush3.bf16.msra.mxu0 %v1552_v39 }
  0x29   :  { %1500 = vmatpush3.bf16.msra.mxu1 %v1552_v39  ;;  %1463 = vmatprep.subr.bf16.mxu0 %v1559_v44 }
  0x2a   :  { %1493 = vmatprep.subr.bf16.mxu1 %v1559_v44 }
  0x2b   :  { %693 = vmatmul.mubr.bf16.gmra.mrb[4].mxu0 %v1550_v40 }
  0x2c   :  { %790 = vmatmul.mubr.bf16.gmra.mrb[4].mxu1 %v1551_v41  ;;  %700 = vmatprep.mubr.bf16.mxu0 %v1553_v42 }
  0x2d   :  { %797 = vmatprep.mubr.bf16.mxu1 %v1555_v43  ;;  %1464 = vmatpush3.bf16.msra.mxu0 %v1559_v44 }
  0x2e   :  { %1501 = vmatpush3.bf16.msra.mxu1 %v1559_v44  ;;  %1465 = vmatprep.subr.bf16.mxu0 %v1566_v45 }
  0x2f   :  { %1494 = vmatprep.subr.bf16.mxu1 %v1566_v45 }
  0x31   :  { %1466 = vmatpush3.bf16.msra.mxu0 %v1566_v45 }
  0x32   :  { %1502 = vmatpush3.bf16.msra.mxu1 %v1566_v45  ;;  %1467 = vmatprep.subr.bf16.mxu0 %v1573_v50 }
  0x33   :  { %701 = vmatmul.mubr.bf16.gmra.mrb[8].mxu0 %v1557_v46  ;;  %1495 = vmatprep.subr.bf16.mxu1 %v1573_v50 }
  0x34   :  { %798 = vmatmul.mubr.bf16.gmra.mrb[8].mxu1 %v1558_v47  ;;  %708 = vmatprep.mubr.bf16.mxu0 %v1560_v48 }
  0x35   :  { %805 = vmatprep.mubr.bf16.mxu1 %v1562_v49  ;;  %1468 = vmatpush3.bf16.msra.mxu0 %v1573_v50 }
  0x36   :  { %1503 = vmatpush3.bf16.msra.mxu1 %v1573_v50  ;;  %1469 = vmatprep.subr.bf16.mxu0 %v1580_v51 }
  0x37   :  { %1496 = vmatprep.subr.bf16.mxu1 %v1580_v51 }
  0x39   :  { %1470 = vmatpush3.bf16.msra.mxu0 %v1580_v51 }
  0x3a   :  { %1504 = vmatpush3.bf16.msra.mxu1 %v1580_v51  ;;  %1471 = vmatprep.subr.bf16.mxu0 %v1587_v55 }
  0x3b   :  { %709 = vmatmul.mubr.bf16.gmra.mrb[12].mxu0 %v1564_v52  ;;  %1497 = vmatprep.subr.bf16.mxu1 %v1587_v55 }
  0x3c   :  { %806 = vmatmul.mubr.bf16.gmra.mrb[12].mxu1 %v1565_v53  ;;  %716 = vmatprep.mubr.bf16.mxu0 %v1567_v54 }
  0x3d   :  { %813 = vmatprep.mubr.bf16.mxu1 %v1569_v56  ;;  %1472 = vmatpush3.bf16.msra.mxu0 %v1587_v55 }
  0x3e   :  { %1505 = vmatpush3.bf16.msra.mxu1 %v1587_v55  ;;  %1473 = vmatprep.subr.bf16.mxu0 %v1594_v57 }
  0x3f   :  { %1498 = vmatprep.subr.bf16.mxu1 %v1594_v57 }
  0x41   :  { %1474 = vmatpush3.bf16.msra.mxu0 %v1594_v57 }
  0x42   :  { %1506 = vmatpush3.bf16.msra.mxu1 %v1594_v57 }
  0x43   :  { %717 = vmatmul.mubr.bf16.gmra.mrb[16].mxu0 %v1571_v58 }
  0x44   :  { %814 = vmatmul.mubr.bf16.gmra.mrb[16].mxu1 %v1572_v59  ;;  %724 = vmatprep.mubr.bf16.mxu0 %v1574_v60 }
  0x45   :  { %821 = vmatprep.mubr.bf16.mxu1 %v1576_v61 }
  0x4b   :  { %725 = vmatmul.mubr.bf16.gmra.mrb[20].mxu0 %v1578_v62 }
  0x4c   :  { %822 = vmatmul.mubr.bf16.gmra.mrb[20].mxu1 %v1579_v63  ;;  %732 = vmatprep.mubr.bf16.mxu0 %v1581_v0 }
  0x4d   :  { %829 = vmatprep.mubr.bf16.mxu1 %v1583_v1 }
  0x53   :  { %733 = vmatmul.mubr.bf16.gmra.mrb[24].mxu0 %v1585_v2 }
  0x54   :  { %830 = vmatmul.mubr.bf16.gmra.mrb[24].mxu1 %v1586_v3  ;;  %740 = vmatprep.mubr.bf16.mxu0 %v1588_v4 }
  0x55   :  { %837 = vmatprep.mubr.bf16.mxu1 %v1590_v5 }
  0x5b   :  { %741 = vmatmul.mubr.bf16.gmra.mrb[28].mxu0 %v1592_v6 }
  0x5c   :  { %838 = vmatmul.mubr.bf16.gmra.mrb[28].mxu1 %v1593_v7  ;;  %1475 = vmatprep.mubr.bf16.mxu0 %v1595_v8 }
  0x5d   :  { %1483 = vmatprep.mubr.bf16.mxu1 %v1596_v9 }
  0x63   :  { %1476 = vmatmul.mubr.bf16.vlgmr.msra.gmra.mrb[32].mxu0 %v1597_v10 }
  0x64   :  { %1484 = vmatmul.mubr.bf16.vlgmr.msra.gmra.mrb[32].mxu1 %v1598_v11  ;;  %1479 = vmatprep.mubr.bf16.mxu0 %v1599_v12 }
  0x65   :  { %1487 = vmatprep.mubr.bf16.mxu1 %v1600_v13 }
  0x6b   :  { %1480 = vmatmul.mubr.bf16.gmra.mrb[36].mxu0 %v1601_v14 }
  0x6c   :  { %1488 = vmatmul.mubr.bf16.gmra.mrb[36].mxu1 %v1602_v15 }
  0xf6   :  { %v1331_v16 = vpop.f32.mrb[0].mxu0 }
  0xf7   :  { %v1395_v17 = vpop.f32.mrb[0].mxu1  ;;  %v1332_v18 = vpop.f32.mrb[1].mxu0 }
  0xf8   :  { %v1333_v19 = vadd.f32 %v1332_v18, %v1331_v16  ;;  %v1396_v20 = vpop.f32.mrb[1].mxu1  ;;  %v1334_v21 = vpop.f32.mrb[2].mxu0 }
  0xf9   :  { %v1397_v22 = vadd.f32 %v1396_v20, %v1395_v17  ;;  %v1398_v23 = vpop.f32.mrb[2].mxu1  ;;  %v1335_v24 = vpop.f32.mrb[3].mxu0 }
  0xfa   :  { %v1336_v25 = vadd.f32 %v1335_v24, %v1334_v21  ;;  %v1399_v26 = vpop.f32.mrb[3].mxu1 }
  0xfb   :  { %v1400_v27 = vadd.f32 %v1399_v26, %v1398_v23  ;;  %v1863_v28 = vadd.f32 %v1397_v22, %v1333_v19 }
  0xfd   :  { %v1865_v29 = vadd.f32 %v1400_v27, %v1336_v25 }
  0xfe   :  { %v1337_v30 = vpop.f32.mrb[4].mxu0 }
  0xff   :  { %v1401_v31 = vpop.f32.mrb[4].mxu1  ;;  %v1338_v32 = vpop.f32.mrb[5].mxu0 }
 0x100   :  { %v1339_v33 = vadd.f32 %v1338_v32, %v1337_v30  ;;  %v1402_v34 = vpop.f32.mrb[5].mxu1  ;;  %v1340_v35 = vpop.f32.mrb[6].mxu0 }
 0x101   :  { %v1403_v36 = vadd.f32 %v1402_v34, %v1401_v31  ;;  %v1404_v37 = vpop.f32.mrb[6].mxu1  ;;  %v1341_v38 = vpop.f32.mrb[7].mxu0 }
 0x102   :  { %v1342_v39 = vadd.f32 %v1341_v38, %v1340_v35  ;;  %v1405_v40 = vpop.f32.mrb[7].mxu1 }
 0x103   :  { %v1406_v41 = vadd.f32 %v1405_v40, %v1404_v37  ;;  %v1867_v42 = vadd.f32 %v1403_v36, %v1339_v33 }
 0x105   :  { %v1869_v43 = vadd.f32 %v1406_v41, %v1342_v39 }
 0x106   :  { %v1343_v44 = vpop.f32.mrb[8].mxu0 }
 0x107   :  { %v1407_v45 = vpop.f32.mrb[8].mxu1  ;;  %v1344_v46 = vpop.f32.mrb[9].mxu0 }
 0x108   :  { %v1345_v47 = vadd.f32 %v1344_v46, %v1343_v44  ;;  %v1408_v48 = vpop.f32.mrb[9].mxu1  ;;  %v1346_v49 = vpop.f32.mrb[10].mxu0 }
 0x109   :  { %v1409_v50 = vadd.f32 %v1408_v48, %v1407_v45  ;;  %v1410_v51 = vpop.f32.mrb[10].mxu1  ;;  %v1347_v52 = vpop.f32.mrb[11].mxu0 }
 0x10a   :  { %v1348_v53 = vadd.f32 %v1347_v52, %v1346_v49  ;;  %v1411_v54 = vpop.f32.mrb[11].mxu1 }
 0x10b   :  { %v1412_v55 = vadd.f32 %v1411_v54, %v1410_v51  ;;  %v1871_v56 = vadd.f32 %v1409_v50, %v1345_v47 }
 0x10d   :  { %v1873_v57 = vadd.f32 %v1412_v55, %v1348_v53 }
 0x10e   :  { %v1349_v58 = vpop.f32.mrb[12].mxu0 }
 0x10f   :  { %v1413_v59 = vpop.f32.mrb[12].mxu1  ;;  %v1350_v60 = vpop.f32.mrb[13].mxu0 }
 0x110   :  { %v1351_v61 = vadd.f32 %v1350_v60, %v1349_v58  ;;  %v1414_v62 = vpop.f32.mrb[13].mxu1  ;;  %v1352_v63 = vpop.f32.mrb[14].mxu0 }
 0x111   :  { %v1415_v0 = vadd.f32 %v1414_v62, %v1413_v59  ;;  %v1416_v1 = vpop.f32.mrb[14].mxu1  ;;  %v1353_v2 = vpop.f32.mrb[15].mxu0 }
 0x112   :  { %v1354_v3 = vadd.f32 %v1353_v2, %v1352_v63  ;;  %v1417_v4 = vpop.f32.mrb[15].mxu1 }
 0x113   :  { %v1418_v5 = vadd.f32 %v1417_v4, %v1416_v1  ;;  %v1875_v6 = vadd.f32 %v1415_v0, %v1351_v61 }
 0x115   :  { %v1877_v7 = vadd.f32 %v1418_v5, %v1354_v3 }
 0x116   :  { %v1355_v8 = vpop.f32.mrb[16].mxu0 }
 0x117   :  { %v1419_v9 = vpop.f32.mrb[16].mxu1  ;;  %v1356_v10 = vpop.f32.mrb[17].mxu0 }
 0x118   :  { %v1357_v11 = vadd.f32 %v1356_v10, %v1355_v8  ;;  %v1420_v12 = vpop.f32.mrb[17].mxu1  ;;  %v1358_v13 = vpop.f32.mrb[18].mxu0 }
 0x119   :  { %v1421_v14 = vadd.f32 %v1420_v12, %v1419_v9  ;;  %v1422_v15 = vpop.f32.mrb[18].mxu1  ;;  %v1359_v16 = vpop.f32.mrb[19].mxu0  ;;  %v1890_v9 = vld [vmem:[%s1948_s2] ss:$0 sm:$0xff] }
 0x11a   :  { %v1360_v17 = vadd.f32 %v1359_v16, %v1358_v13  ;;  %v1423_v18 = vpop.f32.mrb[19].mxu1 }
 0x11b   :  { %v1424_v19 = vadd.f32 %v1423_v18, %v1422_v15  ;;  %v816_v20 = vadd.f32 %v1421_v14, %v1357_v11 }
 0x11d   :  { %v1879_v21 = vadd.f32 %v1424_v19, %v1360_v17 }
 0x11e   :  { %v1361_v22 = vpop.f32.mrb[20].mxu0 }
 0x11f   :  { %v1425_v23 = vpop.f32.mrb[20].mxu1  ;;  %v1362_v24 = vpop.f32.mrb[21].mxu0 }
 0x120   :  { %v1363_v25 = vadd.f32 %v1362_v24, %v1361_v22  ;;  %v1426_v26 = vpop.f32.mrb[21].mxu1  ;;  %v1364_v27 = vpop.f32.mrb[22].mxu0 }
 0x121   :  { %v1427_v30 = vadd.f32 %v1426_v26, %v1425_v23  ;;  %v1428_v31 = vpop.f32.mrb[22].mxu1  ;;  %v1365_v32 = vpop.f32.mrb[23].mxu0 }
 0x122   :  { %v1366_v33 = vadd.f32 %v1365_v32, %v1364_v27  ;;  %v1429_v34 = vpop.f32.mrb[23].mxu1 }
 0x123   :  { %v1430_v35 = vadd.f32 %v1429_v34, %v1428_v31  ;;  %v824_v36 = vadd.f32 %v1427_v30, %v1363_v25 }
 0x125   :  { %v827_v37 = vadd.f32 %v1430_v35, %v1366_v33 }
 0x126   :  { %v1367_v38 = vpop.f32.mrb[24].mxu0 }
 0x127   :  { %v1431_v39 = vpop.f32.mrb[24].mxu1  ;;  %v1368_v40 = vpop.f32.mrb[25].mxu0 }
 0x128   :  { %v1369_v41 = vadd.f32 %v1368_v40, %v1367_v38  ;;  %v1432_v44 = vpop.f32.mrb[25].mxu1  ;;  %v1370_v45 = vpop.f32.mrb[26].mxu0 }
 0x129   :  { %v1433_v46 = vadd.f32 %v1432_v44, %v1431_v39  ;;  %v1434_v47 = vpop.f32.mrb[26].mxu1  ;;  %v1371_v48 = vpop.f32.mrb[27].mxu0 }
 0x12a   :  { %v1372_v49 = vadd.f32 %v1371_v48, %v1370_v45  ;;  %v1435_v50 = vpop.f32.mrb[27].mxu1 }
 0x12b   :  { %v1436_v51 = vadd.f32 %v1435_v50, %v1434_v47  ;;  %v1881_v52 = vadd.f32 %v1433_v46, %v1369_v41 }
 0x12d   :  { %v1883_v53 = vadd.f32 %v1436_v51, %v1372_v49 }
 0x12e   :  { %v1373_v54 = vpop.f32.mrb[28].mxu0 }
 0x12f   :  { %v1437_v55 = vpop.f32.mrb[28].mxu1  ;;  %v1374_v58 = vpop.f32.mrb[29].mxu0 }
 0x130   :  { %v1375_v59 = vadd.f32 %v1374_v58, %v1373_v54  ;;  %v1438_v60 = vpop.f32.mrb[29].mxu1  ;;  %v1376_v61 = vpop.f32.mrb[30].mxu0 }
 0x131   :  { %v1439_v62 = vadd.f32 %v1438_v60, %v1437_v55  ;;  %v1440_v63 = vpop.f32.mrb[30].mxu1  ;;  %v1377_v0 = vpop.f32.mrb[31].mxu0 }
 0x132   :  { %v1378_v1 = vadd.f32 %v1377_v0, %v1376_v61  ;;  %v1441_v2 = vpop.f32.mrb[31].mxu1 }
 0x133   :  { %v1442_v3 = vadd.f32 %v1441_v2, %v1440_v63  ;;  %v840_v4 = vadd.f32 %v1439_v62, %v1375_v59 }
 0x135   :  { %v1885_v5 = vadd.f32 %v1442_v3, %v1378_v1 }
 0x136   :  { %v1477_v8 = vpop.f32.mrb[32].mxu0 }
 0x137   :  { %v889_v10 = vadd.f32 %v1477_v8, %v1867_v42  ;;  %v1485_v11 = vpop.f32.mrb[32].mxu1  ;;  %v880_v12 = vpop.f32.mrb[33].mxu0 }
 0x138   :  { %v921_v13 = vadd.f32 %v1485_v11, %v824_v36  ;;  %v881_v14 = vadd.f32 %v880_v12, %v1863_v28  ;;  %v912_v15 = vpop.f32.mrb[33].mxu1  ;;  %v1478_v16 = vpop.f32.mrb[34].mxu0 }
 0x139   :  { %v1003_v17 = vadd.f32 %v1890_v9, %v889_v10  ;;  %v913_v18 = vadd.f32 %v912_v15, %v816_v20  ;;  %v892_v19 = vadd.f32 %v1478_v16, %v1869_v43  ;;  %v1486_v22 = vpop.f32.mrb[34].mxu1  ;;  %v883_v23 = vpop.f32.mrb[35].mxu0 }
 0x13a   :  { %v1011_v24 = vadd.f32 %v1890_v9, %v921_v13  ;;  %v1001_v25 = vadd.f32 %v1890_v9, %v881_v14  ;;  %v924_v26 = vadd.f32 %v1486_v22, %v827_v37  ;;  %v884_v42 = vadd.f32 %v883_v23, %v1865_v29  ;;  %v915_v27 = vpop.f32.mrb[35].mxu1 }
 0x13b   :  { %vm1019_vm0 = vcmp.ge.f32.partialorder %v1003_v17, 0.0  ;;  %v1035_v30 = vmul.f32 0.1, %v1003_v17  ;;  %v1009_v28 = vadd.f32 %v1890_v9, %v913_v18  ;;  %v1004_v31 = vadd.f32 %v1890_v9, %v892_v19 }
 0x13c   :  { %vm1027_vm1 = vcmp.ge.f32.partialorder %v1011_v24, 0.0  ;;  %v1043_v20 = vmul.f32 0.1, %v1011_v24  ;;  %vm1017_vm2 = vcmp.ge.f32.partialorder %v1001_v25, 0.0  ;;  %v1033_v43 = vmul.f32 0.1, %v1001_v25 }
 0x13d   :  { %v1051_v32 = vsel %vm1019_vm0, %v1003_v17, %v1035_v30  ;;  %vm1025_vm3 = vcmp.ge.f32.partialorder %v1009_v28, 0.0  ;;  %vm1020_vm4 = vcmp.ge.f32.partialorder %v1004_v31, 0.0  ;;  %v1041_v34 = vmul.f32 0.1, %v1009_v28 }
 0x13e   :  { %v1059_v33 = vsel %vm1027_vm1, %v1011_v24, %v1043_v20  ;;  %v1036_v35 = vmul.f32 0.1, %v1004_v31  ;;  %v1012_v36 = vadd.f32 %v1890_v9, %v924_v26  ;;  %v1481_v29 = vpop.f32.mrb[36].mxu0  ;;  %v1049_v37 = vsel %vm1017_vm2, %v1001_v25, %v1033_v43 }
 0x13f   :  { %v1002_v38 = vadd.f32 %v1890_v9, %v884_v42  ;;  %v916_v39 = vadd.f32 %v915_v27, %v1879_v21  ;;  %v905_v40 = vadd.f32 %v1481_v29, %v1875_v6  ;;  %v1489_v41 = vpop.f32.mrb[36].mxu1  ;;  %v896_v44 = vpop.f32.mrb[37].mxu0  ;;  %v1057_v1 = vsel %vm1025_vm3, %v1009_v28, %v1041_v34 }
 0x140   :  { %v1052_v45 = vsel %vm1020_vm4, %v1004_v31, %v1036_v35  ;;  %vm1028_vm5 = vcmp.ge.f32.partialorder %v1012_v36, 0.0  ;;  %v1044_v46 = vmul.f32 0.1, %v1012_v36  ;;  %v937_v47 = vadd.f32 %v1489_v41, %v840_v4  ;;  %v928_v48 = vpop.f32.mrb[37].mxu1  ;;  %v1482_v49 = vpop.f32.mrb[38].mxu0 }
 0x141   :  { %v1276_v50 = vpack.c.bf16 %v1052_v45, %v1051_v32  ;;  %vm1018_vm6 = vcmp.ge.f32.partialorder %v1002_v38, 0.0  ;;  %v1034_v51 = vmul.f32 0.1, %v1002_v38  ;;  %v1010_v54 = vadd.f32 %v1890_v9, %v916_v39  ;;  %v1490_v55 = vpop.f32.mrb[38].mxu1  ;;  %v899_v58 = vpop.f32.mrb[39].mxu0 }
 0x142   :  { %v1060_v59 = vsel %vm1028_vm5, %v1012_v36, %v1044_v46  ;;  %v1007_v21 = vadd.f32 %v1890_v9, %v905_v40  ;;  %v1015_v6 = vadd.f32 %v1890_v9, %v937_v47  ;;  %v897_v60 = vadd.f32 %v896_v44, %v1871_v56  ;;  %v931_v61 = vpop.f32.mrb[39].mxu1 }
 0x143   :  { %1308 = vst [vmem:[%s1949_s3 + $0x8] sm:$0xff] %v1276_v50   ;;  %v1296_v62 = vpack.c.bf16 %v1060_v59, %v1059_v33  ;;  %v1050_v63 = vsel %vm1018_vm6, %v1002_v38, %v1034_v51  ;;  %vm1026_vm7 = vcmp.ge.f32.partialorder %v1010_v54, 0.0  ;;  %v1042_v0 = vmul.f32 0.1, %v1010_v54 }
 0x144   :  { %v1271_v2 = vpack.c.bf16 %v1050_v63, %v1049_v37  ;;  %vm1023_vm8 = vcmp.ge.f32.partialorder %v1007_v21, 0.0  ;;  %v1039_v4 = vmul.f32 0.1, %v1007_v21  ;;  %v1047_v56 = vmul.f32 0.1, %v1015_v6 }
 0x145   :  { %1312 = vst [vmem:[%s1949_s3 + $0x28] sm:$0xff] %v1296_v62   ;;  %v1058_v3 = vsel %vm1026_vm7, %v1010_v54, %v1042_v0  ;;  %v929_v8 = vadd.f32 %v928_v48, %v1881_v52  ;;  %vm1031_vm9 = vcmp.ge.f32.partialorder %v1015_v6, 0.0  ;;  %v908_v11 = vadd.f32 %v1482_v49, %v1877_v7 }
 0x146   :  { %1272 = vst [vmem:[%s1949_s3] sm:$0xff] %v1271_v2   ;;  %v1291_v10 = vpack.c.bf16 %v1058_v3, %v1057_v1  ;;  %v940_v12 = vadd.f32 %v1490_v55, %v1885_v5  ;;  %v1005_v13 = vadd.f32 %v1890_v9, %v897_v60  ;;  %v900_v16 = vadd.f32 %v899_v58, %v1873_v57 }
 0x147   :  { %v1013_v14 = vadd.f32 %v1890_v9, %v929_v8  ;;  %v1008_v52 = vadd.f32 %v1890_v9, %v908_v11  ;;  %v932_v17 = vadd.f32 %v931_v61, %v1883_v53  ;;  %v1055_v7 = vsel %vm1023_vm8, %v1007_v21, %v1039_v4 }
 0x148   :  { %1311 = vst [vmem:[%s1949_s3 + $0x20] sm:$0xff] %v1291_v10   ;;  %v1016_v15 = vadd.f32 %v1890_v9, %v940_v12  ;;  %v1063_v18 = vsel %vm1031_vm9, %v1015_v6, %v1047_v56  ;;  %vm1021_vm12 = vcmp.ge.f32.partialorder %v1005_v13, 0.0  ;;  %v1037_v22 = vmul.f32 0.1, %v1005_v13 }
 0x149   :  { %vm1024_vm10 = vcmp.ge.f32.partialorder %v1008_v52, 0.0  ;;  %v1040_v5 = vmul.f32 0.1, %v1008_v52  ;;  %v1006_v23 = vadd.f32 %v1890_v9, %v900_v16  ;;  %v1014_v24 = vadd.f32 %v1890_v9, %v932_v17 }
 0x14a   :  { %vm1032_vm11 = vcmp.ge.f32.partialorder %v1016_v15, 0.0  ;;  %v1048_v19 = vmul.f32 0.1, %v1016_v15  ;;  %vm1029_vm13 = vcmp.ge.f32.partialorder %v1013_v14, 0.0  ;;  %v1045_v25 = vmul.f32 0.1, %v1013_v14 }
 0x14b   :  { %v1056_v26 = vsel %vm1024_vm10, %v1008_v52, %v1040_v5  ;;  %vm1022_vm14 = vcmp.ge.f32.partialorder %v1006_v23, 0.0  ;;  %v1038_v53 = vmul.f32 0.1, %v1006_v23  ;;  %vm1030_vm15 = vcmp.ge.f32.partialorder %v1014_v24, 0.0 }
 0x14c   :  { %v1064_v42 = vsel %vm1032_vm11, %v1016_v15, %v1048_v19  ;;  %v1286_v57 = vpack.c.bf16 %v1056_v26, %v1055_v7  ;;  %v1046_v30 = vmul.f32 0.1, %v1014_v24  ;;  %v1053_v28 = vsel %vm1021_vm12, %v1005_v13, %v1037_v22 }
 0x14d   :  { %v1306_v27 = vpack.c.bf16 %v1064_v42, %v1063_v18  ;;  %v1054_v9 = vsel %vm1022_vm14, %v1006_v23, %v1038_v53  ;;  %v1061_v31 = vsel %vm1029_vm13, %v1013_v14, %v1045_v25 }
 0x14e   :  { %1310 = vst [vmem:[%s1949_s3 + $0x18] sm:$0xff] %v1286_v57   ;;  %v1281_v20 = vpack.c.bf16 %v1054_v9, %v1053_v28  ;;  %v1062_v43 = vsel %vm1030_vm15, %v1014_v24, %v1046_v30 }
 0x14f   :  { %1314 = vst [vmem:[%s1949_s3 + $0x38] sm:$0xff] %v1306_v27   ;;  %v1301_v32 = vpack.c.bf16 %v1062_v43, %v1061_v31 }
 0x150   :  { %1309 = vst [vmem:[%s1949_s3 + $0x10] sm:$0xff] %v1281_v20  }
 0x151   :  { %1313 = vst [vmem:[%s1949_s3 + $0x30] sm:$0xff] %v1301_v32  }

// kernel: tiny_flownet_s.20
= control target key start
LH: loop header
LB: loop body
LE: loop exit
PB: predicated region body
PF: predicated region fallthrough
CT: control target
= control target key end

     0   :  { %s872_s12 = smov 0   ;;  %s874_s13 = smov 0   ;;  %s970_s0 = inlined_call_operand.vmem [shape: bf16[224,384], index: 0, kind: input, shape index: {}]   ;;  %s971_s1 = inlined_call_operand.vmem [shape: bf16[3,384,128], index: 1, kind: input, shape index: {}]   ;;  %s972_s2 = inlined_call_operand.vmem [shape: f32[1,128], index: 2, kind: input, shape index: {}]   ;;  %s973_s3 = inlined_call_operand.vmem [shape: bf16[192,128], index: 3, kind: output, shape index: {}]  }
   0x1   :  { %s876_s14 = smov 0   ;;  %s878_s15 = smov 0  }
   0x2   :  { %s880_s16 = smov 0  }
   0x3 LB: > { %s22_s17 = sadd.s32 1, %s839_s14  ;;  %s25_s18 = sadd.s32 1, %s843_s15  ;;  %s847_s16 = sphi %s880_s16, %s13_s16   ;;  %s843_s15 = sphi %s878_s15, %s977_s15   ;;  %s839_s14 = sphi %s876_s14, %s976_s14   ;;  %s835_s13 = sphi %s874_s13, %s975_s13   ;;  %s831_s12 = sphi %s872_s12, %s974_s12  }
   0x4   : > { %p23_p0 = scmp.ge.s32.totalorder %s22_s17, 3  ;;  %p638_p1 = scmp.ge.s32.totalorder %s847_s16, 1 }
   0x5   : > { %p165_p2 = scmp.lt.s32.totalorder %s847_s16, 37 }
   0x6   : > { %s979_s17 = smov (%p23_p0, %s22_s17), 0  ;;  %s981_s18 = smov (!%p23_p0, %s25_s18), %s843_s15 }
   0x7   : > { %p166_p3 = pnand %p638_p1, %p165_p2  ;;  %p27_p4 = scmp.ge.s32.totalorder %s981_s18, 12 }
   0x8   : > { %s196_s19 = sadd.s32 (!%p166_p3), %s831_s12, %s835_s13  ;;  %p205_p5 = scmp.lt.s32.totalorder (!%p166_p3), %s831_s12, 2 }
   0x9   : > { %s983_s18 = smov (%p27_p4, %s981_s18), 0  ;;  %169 = sbr.rel (%p166_p3) target bundleno = 297 (0x129), region = 32 }
   0xa   : > { %s639_s20 = sshll.u32 (!%p166_p3), %s196_s19, 1  ;;  %s642_s21 = sshll.u32 (!%p166_p3), %s835_s13, 1 }
   0xb   : > { %p198_p6 = scmp.lt.s32.totalorder (!%p166_p3), %s639_s20, 27  ;;  %p211_p7 = scmp.lt.s32.totalorder (!%p166_p3), %s642_s21, 23 }
   0xc   : > { %p644_p8 = scmp.ne.s32.totalorder (!%p166_p3), %s831_s12, 0 }
  0x10   : > { %s206_s22 = scalar_select %p205_p5, %s831_s12, 2 }
  0x11   : > { %s985_s20 = smov (!%p198_p6, %s639_s20), 27  ;;  %s987_s21 = smov (!%p211_p7, %s642_s21), 23 }
  0x12   : > { %s737_s23 = smul.u32 192, %s206_s22  ;;  %s643_s4 = sshll.u32 %s987_s21, 2  ;;  %v849_v0 = vmov (!%p644_p8), 0.0  }
  0x13   : > { %s736_s24 = smul.u32 12, %s985_s20  ;;  %s920_s7 = scalar_lea.vmem %s973_s3, %s643_s4  ;;  %221 = vst [vmem:[#allocation2] sm:$0xff] (!%p644_p8), %v849_v0  ;;  %222 = vst [vmem:[#allocation2 + $0x8] sm:$0xff] (!%p644_p8), %v849_v0 }
  0x14   : > { %s910_s27 = scalar_lea.vmem %s971_s1, %s737_s23  ;;  %220 = sbr.rel (%p644_p8) target bundleno = 27 (0x1b), region = 36 }
  0x15   : > { %s915_s30 = scalar_lea.vmem %s970_s0, %s736_s24 }
  0x1b PF: > { %v781_v1 = vld [vmem:[%s910_s27 + $0x40] sm:$0xff]   ;;  %v850_v2 = vmov 0.0   ;;  %vm851_vm0 = vmmov 0   ;;  %v784_v5 = vld [vmem:[%s910_s27 + $0x48] sm:$0xff]   ;;  %v787_v8 = vld [vmem:[%s910_s27 + $0x50] sm:$0xff]   ;;  %p672_p9 = scmp.ne.s32.totalorder %s831_s12, 2 }
  0x1c   : > { %716 = vmatprep.subr.bf16.mxu1 %v850_v2  ;;  %v782_v3 = vld [vmem:[%s910_s27] sm:$0xff]   ;;  %685 = vmatprep.subr.bf16.mxu0 %v781_v1  ;;  %v785_v6 = vld [vmem:[%s910_s27 + $0x8] sm:$0xff]   ;;  %v788_v9 = vld [vmem:[%s910_s27 + $0x10] sm:$0xff]  }
  0x1d   : > { %v783_v4 = vld [vmem:[%s910_s27 + $0x80] sm:$0xff]   ;;  %732 = vmatprep.mubr.msk.bf16.mxu1 %vm851_vm0, %v850_v2  ;;  %686 = vmatpush3.bf16.msra.mxu0 %v782_v3  ;;  %v786_v7 = vld [vmem:[%s910_s27 + $0x88] sm:$0xff]   ;;  %v789_v10 = vld [vmem:[%s910_s27 + $0x90] sm:$0xff]  }
  0x1e   : > { %717 = vmatpush3.bf16.msra.mxu1 %v783_v4  ;;  %687 = vmatprep.subr.bf16.mxu0 %v784_v5  ;;  %v790_v11 = vld [vmem:[%s910_s27 + $0x58] sm:$0xff]   ;;  %v793_v14 = vld [vmem:[%s910_s27 + $0x60] sm:$0xff]   ;;  %v796_v17 = vld [vmem:[%s910_s27 + $0x68] sm:$0xff]  }
  0x1f   : > { %718 = vmatprep.subr.bf16.mxu1 %v850_v2  ;;  %v791_v12 = vld [vmem:[%s910_s27 + $0x18] sm:$0xff]   ;;  %v794_v15 = vld [vmem:[%s910_s27 + $0x20] sm:$0xff]   ;;  %v797_v18 = vld [vmem:[%s910_s27 + $0x28] sm:$0xff]  }
  0x20   : > { %v792_v13 = vld [vmem:[%s910_s27 + $0x98] sm:$0xff]   ;;  %v795_v16 = vld [vmem:[%s910_s27 + $0xa0] sm:$0xff]   ;;  %v798_v19 = vld [vmem:[%s910_s27 + $0xa8] sm:$0xff]  }
  0x21   : > { %688 = vmatpush3.bf16.msra.mxu0 %v785_v6  ;;  %v799_v20 = vld [vmem:[%s910_s27 + $0x70] sm:$0xff]   ;;  %v802_v23 = vld [vmem:[%s910_s27 + $0x78] sm:$0xff]   ;;  %v805_v27 = vld [vmem:[%s915_s30] ss:$12 sps:$4 sm:$0xff]  }
  0x22   : > { %719 = vmatpush3.bf16.msra.mxu1 %v786_v7  ;;  %689 = vmatprep.subr.bf16.mxu0 %v787_v8  ;;  %v800_v21 = vld [vmem:[%s910_s27 + $0x30] sm:$0xff]   ;;  %v803_v25 = vld [vmem:[%s910_s27 + $0x38] sm:$0xff]   ;;  %v223_v35 = vld [vmem:[#allocation2] sm:$0xff] }
  0x23   : > { %720 = vmatprep.subr.bf16.mxu1 %v850_v2  ;;  %v801_v22 = vld [vmem:[%s910_s27 + $0xb0] sm:$0xff]   ;;  %v804_v26 = vld [vmem:[%s910_s27 + $0xb8] sm:$0xff]   ;;  %v224_v41 = vld [vmem:[#allocation2 + $0x8] sm:$0xff] }
  0x24   : > { %v807_v24 = vld [vmem:[%s915_s30 + $0x4] ss:$12 sps:$4 sm:$0xff]   ;;  %v808_v28 = vld [vmem:[%s915_s30 + $0x8] ss:$12 sps:$4 sm:$0xff]   ;;  %v673_v47 = vld [vmem:[%s972_s2] ss:$0 sm:$0xff] (!%p672_p9) }
  0x25   : > { %690 = vmatpush3.bf16.msra.mxu0 %v788_v9  ;;  %469 = vmatprep.mubr.bf16.mxu0 %v807_v24 }
  0x26   : > { %721 = vmatpush3.bf16.msra.mxu1 %v789_v10  ;;  %691 = vmatprep.subr.bf16.mxu0 %v790_v11 }
  0x27   : > { %722 = vmatprep.subr.bf16.mxu1 %v850_v2 }
  0x29   : > { %692 = vmatpush3.bf16.msra.mxu0 %v791_v12 }
  0x2a   : > { %723 = vmatpush3.bf16.msra.mxu1 %v792_v13  ;;  %693 = vmatprep.subr.bf16.mxu0 %v793_v14 }
  0x2b   : > { %724 = vmatprep.subr.bf16.mxu1 %v850_v2 }
  0x2d   : > { %694 = vmatpush3.bf16.msra.mxu0 %v794_v15 }
  0x2e   : > { %725 = vmatpush3.bf16.msra.mxu1 %v795_v16  ;;  %695 = vmatprep.subr.bf16.mxu0 %v796_v17 }
  0x2f   : > { %726 = vmatprep.subr.bf16.mxu1 %v850_v2 }
  0x31   : > { %696 = vmatpush3.bf16.msra.mxu0 %v797_v18 }
  0x32   : > { %727 = vmatpush3.bf16.msra.mxu1 %v798_v19  ;;  %697 = vmatprep.subr.bf16.mxu0 %v799_v20 }
  0x33   : > { %728 = vmatprep.subr.bf16.mxu1 %v850_v2 }
  0x35   : > { %698 = vmatpush3.bf16.msra.mxu0 %v800_v21 }
  0x36   : > { %729 = vmatpush3.bf16.msra.mxu1 %v801_v22  ;;  %699 = vmatprep.subr.bf16.mxu0 %v802_v23 }
  0x37   : > { %730 = vmatprep.subr.bf16.mxu1 %v850_v2 }
  0x39   : > { %700 = vmatpush3.bf16.msra.mxu0 %v803_v25 }
  0x3a   : > { %731 = vmatpush3.bf16.msra.mxu1 %v804_v26 }
  0x3c   : > { %470 = vmatmul.mubr.bf16.vlgmr.msra.gmra.mrb[0].mxu0 %v805_v27 }
  0x3d   : > { %733 = vmatmul.mubr.bf16.vlgmr.msra.gmra.mrb[0].mxu1 %v808_v28 }
 0x10f   : > { %v701_v29 = vpop.f32.mrb[0].mxu0 }
 0x110   : > { %v512_v30 = vpop.f32.mrb[0].mxu1  ;;  %v702_v31 = vpop.f32.mrb[1].mxu0 }
 0x111   : > { %v703_v32 = vadd.f32 %v702_v31, %v701_v29  ;;  %v734_v33 = vpop.f32.mrb[1].mxu1  ;;  %v704_v34 = vpop.f32.mrb[2].mxu0 }
 0x112   : > { %v515_v36 = vpop.f32.mrb[2].mxu1  ;;  %v705_v37 = vpop.f32.mrb[3].mxu0 }
 0x113   : > { %v513_v38 = vadd.f32 %v703_v32, %v512_v30  ;;  %v706_v39 = vadd.f32 %v705_v37, %v704_v34  ;;  %v735_v40 = vpop.f32.mrb[3].mxu1  ;;  %526 = sbr.rel (%p672_p9) target bundleno = 297 (0x129), region = 40 }
 0x115   : > { %v519_v42 = vadd.f32 %v513_v38, %v223_v35  ;;  %v516_v43 = vadd.f32 %v706_v39, %v515_v36 }
 0x117   : > { %521 = vst [vmem:[#allocation2] sm:$0xff] %v519_v42  ;;  %v520_v44 = vadd.f32 %v516_v43, %v224_v41 }
 0x119   : > { %522 = vst [vmem:[#allocation2 + $0x8] sm:$0xff] %v520_v44 }
 0x11e   : > { %v527_v45 = vld [vmem:[#allocation2] sm:$0xff] }
 0x11f   : > { %v536_v48 = vadd.f32 %v673_v47, %v527_v45 }
 0x120   : > { %v528_v46 = vld [vmem:[#allocation2 + $0x8] sm:$0xff] }
 0x121   : > { %v537_v49 = vadd.f32 %v673_v47, %v528_v46  ;;  %vm538_vm1 = vcmp.ge.f32.partialorder %v536_v48, 0.0  ;;  %v540_v50 = vmul.f32 0.1, %v536_v48 }
 0x123   : > { %vm539_vm2 = vcmp.ge.f32.partialorder %v537_v49, 0.0  ;;  %v541_v51 = vmul.f32 0.1, %v537_v49  ;;  %v542_v52 = vsel %vm538_vm1, %v536_v48, %v540_v50 }
 0x125   : > { %v543_v53 = vsel %vm539_vm2, %v537_v49, %v541_v51 }
 0x126   : > { %v683_v54 = vpack.c.bf16 %v543_v53, %v542_v52 }
 0x128   : > { %684 = vst [vmem:[%s920_s7] sm:$0xff] %v683_v54  }
 0x129 PF: > { %s13_s16 = sadd.s32 1, %s847_s16   ;;  %s974_s12 = smov %s839_s14 }
 0x12a   : > { %p10_p10 = scmp.ge.s32.totalorder %s13_s16, 38   ;;  %s975_s13 = smov %s843_s15 }
 0x12b   : > { %s976_s14 = smov %s979_s17  ;;  %s977_s15 = smov %s983_s18 }
 0x12c   :  { %12 = sbr.rel (!%p10_p10) target bundleno = 3 (0x3), region = 73 }

// kernel: tiny_flownet_s.21
= control target key start
LH: loop header
LB: loop body
LE: loop exit
PB: predicated region body
PF: predicated region fallthrough
CT: control target
= control target key end

     0   :  { %s2899_s1 = inlined_call_operand.vmem [shape: bf16[1,1152,256], index: 1, kind: input, shape index: {}]   ;;  %s2900_s0 = inlined_call_operand.vmem [shape: bf16[64,1152], index: 0, kind: input, shape index: {}]   ;;  %s2901_s2 = inlined_call_operand.vmem [shape: f32[1,256], index: 2, kind: input, shape index: {}]   ;;  %s2902_s3 = inlined_call_operand.vmem [shape: bf16[64,256], index: 3, kind: output, shape index: {}]  }
   0x1   :  { %v1999_v0 = vld [vmem:[%s2899_s1 + $0x4] ss:$8 sps:$4 sm:$0xff]   ;;  %v2003_v2 = vld [vmem:[%s2899_s1] ss:$8 sps:$4 sm:$0xff]   ;;  %v2005_v4 = vld [vmem:[%s2899_s1 + $0x14] ss:$8 sps:$4 sm:$0xff]  }
   0x2   :  { %v2001_v1 = vld [vmem:[%s2899_s1 + $0x204] ss:$8 sps:$4 sm:$0xff]   ;;  %1164 = vmatprep.subr.bf16.mxu1 %v1999_v0  ;;  %v2004_v3 = vld [vmem:[%s2899_s1 + $0x200] ss:$8 sps:$4 sm:$0xff]   ;;  %v2007_v5 = vld [vmem:[%s2899_s1 + $0x214] ss:$8 sps:$4 sm:$0xff]  }
   0x3   :  { %1310 = vmatprep.subr.bf16.mxu0 %v2001_v1  ;;  %1165 = vmatpush1.bf16.msra.mxu1 %v2003_v2  ;;  %v2009_v6 = vld [vmem:[%s2899_s1 + $0x10] ss:$8 sps:$4 sm:$0xff]   ;;  %v2011_v8 = vld [vmem:[%s2899_s1 + $0x24] ss:$8 sps:$4 sm:$0xff]   ;;  %v2015_v10 = vld [vmem:[%s2899_s1 + $0x20] ss:$8 sps:$4 sm:$0xff]  }
   0x4   :  { %1311 = vmatpush1.bf16.msra.mxu0 %v2004_v3  ;;  %1166 = vmatprep.subr.bf16.mxu1 %v2005_v4  ;;  %v2010_v7 = vld [vmem:[%s2899_s1 + $0x210] ss:$8 sps:$4 sm:$0xff]   ;;  %v2013_v9 = vld [vmem:[%s2899_s1 + $0x224] ss:$8 sps:$4 sm:$0xff]   ;;  %v2016_v11 = vld [vmem:[%s2899_s1 + $0x220] ss:$8 sps:$4 sm:$0xff]  }
   0x5   :  { %1312 = vmatprep.subr.bf16.mxu0 %v2007_v5  ;;  %v2017_v12 = vld [vmem:[%s2899_s1 + $0x34] ss:$8 sps:$4 sm:$0xff]   ;;  %v2021_v14 = vld [vmem:[%s2899_s1 + $0x30] ss:$8 sps:$4 sm:$0xff]   ;;  %v2023_v16 = vld [vmem:[%s2899_s1 + $0x44] ss:$8 sps:$4 sm:$0xff]  }
   0x6   :  { %v2019_v13 = vld [vmem:[%s2899_s1 + $0x234] ss:$8 sps:$4 sm:$0xff]   ;;  %v2022_v15 = vld [vmem:[%s2899_s1 + $0x230] ss:$8 sps:$4 sm:$0xff]   ;;  %v2025_v17 = vld [vmem:[%s2899_s1 + $0x244] ss:$8 sps:$4 sm:$0xff]  }
   0x7   :  { %1167 = vmatpush1.bf16.msra.mxu1 %v2009_v6  ;;  %v2027_v18 = vld [vmem:[%s2899_s1 + $0x40] ss:$8 sps:$4 sm:$0xff]   ;;  %v2029_v20 = vld [vmem:[%s2899_s1 + $0x54] ss:$8 sps:$4 sm:$0xff]   ;;  %v2033_v22 = vld [vmem:[%s2899_s1 + $0x50] ss:$8 sps:$4 sm:$0xff]  }
   0x8   :  { %1313 = vmatpush1.bf16.msra.mxu0 %v2010_v7  ;;  %1168 = vmatprep.subr.bf16.mxu1 %v2011_v8  ;;  %v2028_v19 = vld [vmem:[%s2899_s1 + $0x240] ss:$8 sps:$4 sm:$0xff]   ;;  %v2031_v21 = vld [vmem:[%s2899_s1 + $0x254] ss:$8 sps:$4 sm:$0xff]   ;;  %v2034_v23 = vld [vmem:[%s2899_s1 + $0x250] ss:$8 sps:$4 sm:$0xff]  }
   0x9   :  { %1314 = vmatprep.subr.bf16.mxu0 %v2013_v9  ;;  %v2035_v24 = vld [vmem:[%s2899_s1 + $0x64] ss:$8 sps:$4 sm:$0xff]   ;;  %v2039_v26 = vld [vmem:[%s2899_s1 + $0x60] ss:$8 sps:$4 sm:$0xff]   ;;  %v2041_v28 = vld [vmem:[%s2899_s1 + $0x74] ss:$8 sps:$4 sm:$0xff]  }
   0xa   :  { %v2037_v25 = vld [vmem:[%s2899_s1 + $0x264] ss:$8 sps:$4 sm:$0xff]   ;;  %v2040_v27 = vld [vmem:[%s2899_s1 + $0x260] ss:$8 sps:$4 sm:$0xff]   ;;  %v2043_v29 = vld [vmem:[%s2899_s1 + $0x274] ss:$8 sps:$4 sm:$0xff]  }
   0xb   :  { %1169 = vmatpush1.bf16.msra.mxu1 %v2015_v10  ;;  %v2045_v30 = vld [vmem:[%s2899_s1 + $0x70] ss:$8 sps:$4 sm:$0xff]   ;;  %v2047_v32 = vld [vmem:[%s2899_s1 + $0x84] ss:$8 sps:$4 sm:$0xff]   ;;  %v2051_v34 = vld [vmem:[%s2899_s1 + $0x80] ss:$8 sps:$4 sm:$0xff]  }
   0xc   :  { %1315 = vmatpush1.bf16.msra.mxu0 %v2016_v11  ;;  %1170 = vmatprep.subr.bf16.mxu1 %v2017_v12  ;;  %v2046_v31 = vld [vmem:[%s2899_s1 + $0x270] ss:$8 sps:$4 sm:$0xff]   ;;  %v2049_v33 = vld [vmem:[%s2899_s1 + $0x284] ss:$8 sps:$4 sm:$0xff]   ;;  %v2052_v35 = vld [vmem:[%s2899_s1 + $0x280] ss:$8 sps:$4 sm:$0xff]  }
   0xd   :  { %1316 = vmatprep.subr.bf16.mxu0 %v2019_v13  ;;  %v2053_v36 = vld [vmem:[%s2899_s1 + $0x94] ss:$8 sps:$4 sm:$0xff]   ;;  %v2057_v38 = vld [vmem:[%s2899_s1 + $0x90] ss:$8 sps:$4 sm:$0xff]   ;;  %v2059_v40 = vld [vmem:[%s2899_s1 + $0xa4] ss:$8 sps:$4 sm:$0xff]  }
   0xe   :  { %v2055_v37 = vld [vmem:[%s2899_s1 + $0x294] ss:$8 sps:$4 sm:$0xff]   ;;  %v2058_v39 = vld [vmem:[%s2899_s1 + $0x290] ss:$8 sps:$4 sm:$0xff]   ;;  %v2061_v41 = vld [vmem:[%s2899_s1 + $0x2a4] ss:$8 sps:$4 sm:$0xff]  }
   0xf   :  { %1171 = vmatpush1.bf16.msra.mxu1 %v2021_v14  ;;  %v2063_v42 = vld [vmem:[%s2899_s1 + $0xa0] ss:$8 sps:$4 sm:$0xff]   ;;  %v2065_v44 = vld [vmem:[%s2899_s1 + $0xb4] ss:$8 sps:$4 sm:$0xff]   ;;  %v2069_v46 = vld [vmem:[%s2899_s1 + $0xb0] ss:$8 sps:$4 sm:$0xff]  }
  0x10   :  { %1317 = vmatpush1.bf16.msra.mxu0 %v2022_v15  ;;  %1172 = vmatprep.subr.bf16.mxu1 %v2023_v16  ;;  %v2064_v43 = vld [vmem:[%s2899_s1 + $0x2a0] ss:$8 sps:$4 sm:$0xff]   ;;  %v2067_v45 = vld [vmem:[%s2899_s1 + $0x2b4] ss:$8 sps:$4 sm:$0xff]   ;;  %v2070_v47 = vld [vmem:[%s2899_s1 + $0x2b0] ss:$8 sps:$4 sm:$0xff]  }
  0x11   :  { %1318 = vmatprep.subr.bf16.mxu0 %v2025_v17  ;;  %v2097_v48 = vld [vmem:[%s2900_s0 + $0x4] ss:$36 sps:$4 sm:$0xff]   ;;  %v2103_v51 = vld [vmem:[%s2900_s0 + $0x14] ss:$36 sps:$4 sm:$0xff]  }
  0x12   :  { %v2071_v49 = vld [vmem:[%s2899_s1 + $0xc4] ss:$8 sps:$4 sm:$0xff]   ;;  %1196 = vmatprep.mubr.bf16.mxu1 %v2097_v48  ;;  %v2075_v52 = vld [vmem:[%s2899_s1 + $0xc0] ss:$8 sps:$4 sm:$0xff]   ;;  %v2077_v54 = vld [vmem:[%s2899_s1 + $0xd4] ss:$8 sps:$4 sm:$0xff]   ;;  %1342 = vmatprep.mubr.bf16.mxu0 %v2103_v51 }
  0x13   :  { %1173 = vmatpush1.bf16.msra.mxu1 %v2027_v18  ;;  %v2073_v50 = vld [vmem:[%s2899_s1 + $0x2c4] ss:$8 sps:$4 sm:$0xff]   ;;  %v2076_v53 = vld [vmem:[%s2899_s1 + $0x2c0] ss:$8 sps:$4 sm:$0xff]   ;;  %v2079_v55 = vld [vmem:[%s2899_s1 + $0x2d4] ss:$8 sps:$4 sm:$0xff]  }
  0x14   :  { %1319 = vmatpush1.bf16.msra.mxu0 %v2028_v19  ;;  %1174 = vmatprep.subr.bf16.mxu1 %v2029_v20  ;;  %v2081_v56 = vld [vmem:[%s2899_s1 + $0xd0] ss:$8 sps:$4 sm:$0xff]   ;;  %v2083_v58 = vld [vmem:[%s2899_s1 + $0xe4] ss:$8 sps:$4 sm:$0xff]   ;;  %v2087_v60 = vld [vmem:[%s2899_s1 + $0xe0] ss:$8 sps:$4 sm:$0xff]  }
  0x15   :  { %1320 = vmatprep.subr.bf16.mxu0 %v2031_v21  ;;  %v2082_v57 = vld [vmem:[%s2899_s1 + $0x2d0] ss:$8 sps:$4 sm:$0xff]   ;;  %v2085_v59 = vld [vmem:[%s2899_s1 + $0x2e4] ss:$8 sps:$4 sm:$0xff]   ;;  %v2088_v61 = vld [vmem:[%s2899_s1 + $0x2e0] ss:$8 sps:$4 sm:$0xff]  }
  0x16   :  { %v2089_v62 = vld [vmem:[%s2899_s1 + $0xf4] ss:$8 sps:$4 sm:$0xff]   ;;  %v2093_v0 = vld [vmem:[%s2899_s1 + $0xf0] ss:$8 sps:$4 sm:$0xff]   ;;  %v2100_v2 = vld [vmem:[%s2899_s1 + $0x104] ss:$8 sps:$4 sm:$0xff]  }
  0x17   :  { %1175 = vmatpush1.bf16.msra.mxu1 %v2033_v22  ;;  %v2091_v63 = vld [vmem:[%s2899_s1 + $0x2f4] ss:$8 sps:$4 sm:$0xff]   ;;  %v2094_v1 = vld [vmem:[%s2899_s1 + $0x2f0] ss:$8 sps:$4 sm:$0xff]   ;;  %v2106_v3 = vld [vmem:[%s2899_s1 + $0x304] ss:$8 sps:$4 sm:$0xff]  }
  0x18   :  { %1321 = vmatpush1.bf16.msra.mxu0 %v2034_v23  ;;  %1176 = vmatprep.subr.bf16.mxu1 %v2035_v24  ;;  %v2095_v4 = vld [vmem:[%s2900_s0] ss:$36 sps:$4 sm:$0xff]   ;;  %v2101_v6 = vld [vmem:[%s2900_s0 + $0x10] ss:$36 sps:$4 sm:$0xff]   ;;  %v2165_v20 = vld [vmem:[%s2900_s0 + $0x48] ss:$36 sps:$4 sm:$0xff]  }
  0x19   :  { %1322 = vmatprep.subr.bf16.mxu0 %v2037_v25  ;;  %v2098_v5 = vld [vmem:[%s2899_s1 + $0x100] ss:$8 sps:$4 sm:$0xff]   ;;  %v2109_v8 = vld [vmem:[%s2899_s1 + $0x114] ss:$8 sps:$4 sm:$0xff]   ;;  %v2107_v10 = vld [vmem:[%s2899_s1 + $0x110] ss:$8 sps:$4 sm:$0xff]  }
  0x1a   :  { %v2104_v7 = vld [vmem:[%s2899_s1 + $0x300] ss:$8 sps:$4 sm:$0xff]   ;;  %v2112_v9 = vld [vmem:[%s2899_s1 + $0x314] ss:$8 sps:$4 sm:$0xff]   ;;  %v2110_v11 = vld [vmem:[%s2899_s1 + $0x310] ss:$8 sps:$4 sm:$0xff]  }
  0x1b   :  { %1177 = vmatpush1.bf16.msra.mxu1 %v2039_v26  ;;  %v2115_v12 = vld [vmem:[%s2899_s1 + $0x124] ss:$8 sps:$4 sm:$0xff]   ;;  %v2113_v14 = vld [vmem:[%s2899_s1 + $0x120] ss:$8 sps:$4 sm:$0xff]   ;;  %v2121_v16 = vld [vmem:[%s2899_s1 + $0x134] ss:$8 sps:$4 sm:$0xff]  }
  0x1c   :  { %1323 = vmatpush1.bf16.msra.mxu0 %v2040_v27  ;;  %1178 = vmatprep.subr.bf16.mxu1 %v2041_v28  ;;  %v2118_v13 = vld [vmem:[%s2899_s1 + $0x324] ss:$8 sps:$4 sm:$0xff]   ;;  %v2116_v15 = vld [vmem:[%s2899_s1 + $0x320] ss:$8 sps:$4 sm:$0xff]   ;;  %v2124_v17 = vld [vmem:[%s2899_s1 + $0x334] ss:$8 sps:$4 sm:$0xff]  }
  0x1d   :  { %1324 = vmatprep.subr.bf16.mxu0 %v2043_v29  ;;  %v2161_v18 = vld [vmem:[%s2900_s0 + $0x4c] ss:$36 sps:$4 sm:$0xff]   ;;  %v2163_v19 = vld [vmem:[%s2900_s0 + $0x5c] ss:$36 sps:$4 sm:$0xff]  }
  0x1e   :  { %v2119_v21 = vld [vmem:[%s2899_s1 + $0x130] ss:$8 sps:$4 sm:$0xff]   ;;  %v2127_v24 = vld [vmem:[%s2899_s1 + $0x144] ss:$8 sps:$4 sm:$0xff]   ;;  %v2125_v26 = vld [vmem:[%s2899_s1 + $0x140] ss:$8 sps:$4 sm:$0xff]  }
  0x1f   :  { %1179 = vmatpush1.bf16.msra.mxu1 %v2045_v30  ;;  %v2122_v22 = vld [vmem:[%s2899_s1 + $0x330] ss:$8 sps:$4 sm:$0xff]   ;;  %v2130_v25 = vld [vmem:[%s2899_s1 + $0x344] ss:$8 sps:$4 sm:$0xff]   ;;  %v2128_v27 = vld [vmem:[%s2899_s1 + $0x340] ss:$8 sps:$4 sm:$0xff]  }
  0x20   :  { %1325 = vmatpush1.bf16.msra.mxu0 %v2046_v31  ;;  %1180 = vmatprep.subr.bf16.mxu1 %v2047_v32  ;;  %v2169_v23 = vld [vmem:[%s2900_s0 + $0x58] ss:$36 sps:$4 sm:$0xff]   ;;  %v2181_v31 = vld [vmem:[%s2900_s0 + $0xa4] ss:$36 sps:$4 sm:$0xff]   ;;  %v2183_v32 = vld [vmem:[%s2900_s0 + $0x90] ss:$36 sps:$4 sm:$0xff]  }
  0x21   :  { %1326 = vmatprep.subr.bf16.mxu0 %v2049_v33  ;;  %v2133_v28 = vld [vmem:[%s2899_s1 + $0x154] ss:$8 sps:$4 sm:$0xff]   ;;  %v2131_v33 = vld [vmem:[%s2899_s1 + $0x150] ss:$8 sps:$4 sm:$0xff]   ;;  %v2151_v48 = vld [vmem:[%s2899_s1 + $0x184] ss:$8 sps:$4 sm:$0xff]  }
  0x22   :  { %v2136_v29 = vld [vmem:[%s2899_s1 + $0x354] ss:$8 sps:$4 sm:$0xff]   ;;  %v2152_v51 = vld [vmem:[%s2899_s1 + $0x380] ss:$8 sps:$4 sm:$0xff]  }
  0x23   :  { %1181 = vmatpush1.bf16.msra.mxu1 %v2051_v34  ;;  %v2179_v30 = vld [vmem:[%s2900_s0 + $0x94] ss:$36 sps:$4 sm:$0xff]  }
  0x24   :  { %1327 = vmatpush1.bf16.msra.mxu0 %v2052_v35  ;;  %1182 = vmatprep.subr.bf16.mxu1 %v2053_v36  ;;  %v2134_v34 = vld [vmem:[%s2899_s1 + $0x350] ss:$8 sps:$4 sm:$0xff]   ;;  %v2187_v35 = vld [vmem:[%s2900_s0 + $0xa0] ss:$36 sps:$4 sm:$0xff]  }
  0x25   :  { %1328 = vmatprep.subr.bf16.mxu0 %v2055_v37  ;;  %v2139_v36 = vld [vmem:[%s2899_s1 + $0x164] ss:$8 sps:$4 sm:$0xff]  }
  0x26   :  { %v2142_v37 = vld [vmem:[%s2899_s1 + $0x364] ss:$8 sps:$4 sm:$0xff]  }
  0x27   :  { %1183 = vmatpush1.bf16.msra.mxu1 %v2057_v38  ;;  %v2137_v38 = vld [vmem:[%s2899_s1 + $0x160] ss:$8 sps:$4 sm:$0xff]  }
  0x28   :  { %1329 = vmatpush1.bf16.msra.mxu0 %v2058_v39  ;;  %1184 = vmatprep.subr.bf16.mxu1 %v2059_v40  ;;  %v2140_v39 = vld [vmem:[%s2899_s1 + $0x360] ss:$8 sps:$4 sm:$0xff]   ;;  %v2145_v40 = vld [vmem:[%s2899_s1 + $0x174] ss:$8 sps:$4 sm:$0xff]  }
  0x29   :  { %1330 = vmatprep.subr.bf16.mxu0 %v2061_v41  ;;  %v2148_v41 = vld [vmem:[%s2899_s1 + $0x374] ss:$8 sps:$4 sm:$0xff]  }
  0x2b   :  { %1185 = vmatpush1.bf16.msra.mxu1 %v2063_v42  ;;  %v2197_v42 = vld [vmem:[%s2900_s0 + $0xdc] ss:$36 sps:$4 sm:$0xff]  }
  0x2c   :  { %1331 = vmatpush1.bf16.msra.mxu0 %v2064_v43  ;;  %1186 = vmatprep.subr.bf16.mxu1 %v2065_v44  ;;  %v2199_v43 = vld [vmem:[%s2900_s0 + $0xec] ss:$36 sps:$4 sm:$0xff]   ;;  %v2201_v44 = vld [vmem:[%s2900_s0 + $0xd8] ss:$36 sps:$4 sm:$0xff]  }
  0x2d   :  { %1332 = vmatprep.subr.bf16.mxu0 %v2067_v45  ;;  %v2143_v45 = vld [vmem:[%s2899_s1 + $0x170] ss:$8 sps:$4 sm:$0xff]  }
  0x2f   :  { %1187 = vmatpush1.bf16.msra.mxu1 %v2069_v46  ;;  %v2146_v46 = vld [vmem:[%s2899_s1 + $0x370] ss:$8 sps:$4 sm:$0xff]  }
  0x30   :  { %1333 = vmatpush1.bf16.msra.mxu0 %v2070_v47  ;;  %1188 = vmatprep.subr.bf16.mxu1 %v2071_v49  ;;  %v2205_v47 = vld [vmem:[%s2900_s0 + $0xe8] ss:$36 sps:$4 sm:$0xff]  }
  0x31   :  { %1334 = vmatprep.subr.bf16.mxu0 %v2073_v50  ;;  %v2154_v49 = vld [vmem:[%s2899_s1 + $0x384] ss:$8 sps:$4 sm:$0xff]   ;;  %v2149_v50 = vld [vmem:[%s2899_s1 + $0x180] ss:$8 sps:$4 sm:$0xff]  }
  0x33   :  { %1189 = vmatpush1.bf16.msra.mxu1 %v2075_v52  ;;  %v2157_v52 = vld [vmem:[%s2899_s1 + $0x194] ss:$8 sps:$4 sm:$0xff]  }
  0x34   :  { %1335 = vmatpush1.bf16.msra.mxu0 %v2076_v53  ;;  %1190 = vmatprep.subr.bf16.mxu1 %v2077_v54  ;;  %v2160_v53 = vld [vmem:[%s2899_s1 + $0x394] ss:$8 sps:$4 sm:$0xff]   ;;  %v2217_v54 = vld [vmem:[%s2900_s0 + $0xc] ss:$36 sps:$4 sm:$0xff]  }
  0x35   :  { %1336 = vmatprep.subr.bf16.mxu0 %v2079_v55  ;;  %v2220_v55 = vld [vmem:[%s2900_s0 + $0x1c] ss:$36 sps:$4 sm:$0xff]  }
  0x37   :  { %1191 = vmatpush1.bf16.msra.mxu1 %v2081_v56  ;;  %v2155_v56 = vld [vmem:[%s2899_s1 + $0x190] ss:$8 sps:$4 sm:$0xff]  }
  0x38   :  { %1337 = vmatpush1.bf16.msra.mxu0 %v2082_v57  ;;  %1192 = vmatprep.subr.bf16.mxu1 %v2083_v58  ;;  %v2158_v57 = vld [vmem:[%s2899_s1 + $0x390] ss:$8 sps:$4 sm:$0xff]   ;;  %v2168_v58 = vld [vmem:[%s2899_s1 + $0x1a4] ss:$8 sps:$4 sm:$0xff]  }
  0x39   :  { %1338 = vmatprep.subr.bf16.mxu0 %v2085_v59  ;;  %v2172_v59 = vld [vmem:[%s2899_s1 + $0x3a4] ss:$8 sps:$4 sm:$0xff]  }
  0x3b   :  { %1193 = vmatpush1.bf16.msra.mxu1 %v2087_v60  ;;  %v2166_v60 = vld [vmem:[%s2899_s1 + $0x1a0] ss:$8 sps:$4 sm:$0xff]  }
  0x3c   :  { %1339 = vmatpush1.bf16.msra.mxu0 %v2088_v61  ;;  %1194 = vmatprep.subr.bf16.mxu1 %v2089_v62  ;;  %v2170_v61 = vld [vmem:[%s2899_s1 + $0x3a0] ss:$8 sps:$4 sm:$0xff]   ;;  %v2175_v62 = vld [vmem:[%s2899_s1 + $0x1b4] ss:$8 sps:$4 sm:$0xff]  }
  0x3d   :  { %1340 = vmatprep.subr.bf16.mxu0 %v2091_v63  ;;  %v2178_v63 = vld [vmem:[%s2899_s1 + $0x3b4] ss:$8 sps:$4 sm:$0xff]  }
  0x3f   :  { %1195 = vmatpush1.bf16.msra.mxu1 %v2093_v0  ;;  %v2173_v0 = vld [vmem:[%s2899_s1 + $0x1b0] ss:$8 sps:$4 sm:$0xff]  }
  0x40   :  { %1341 = vmatpush1.bf16.msra.mxu0 %v2094_v1  ;;  %1237 = vmatprep.subr.bf16.mxu1 %v2100_v2  ;;  %v2176_v1 = vld [vmem:[%s2899_s1 + $0x3b0] ss:$8 sps:$4 sm:$0xff]   ;;  %v2186_v2 = vld [vmem:[%s2899_s1 + $0x1c4] ss:$8 sps:$4 sm:$0xff]  }
  0x41   :  { %1383 = vmatprep.subr.bf16.mxu0 %v2106_v3  ;;  %v2190_v3 = vld [vmem:[%s2899_s1 + $0x3c4] ss:$8 sps:$4 sm:$0xff]  }
  0x42   :  { %1197 = vmatmul.mubr.bf16.vlgmr.msra.gmra.mrb[0].mxu1 %v2095_v4  ;;  %v2184_v4 = vld [vmem:[%s2899_s1 + $0x1c0] ss:$8 sps:$4 sm:$0xff]  }
  0x43   :  { %1343 = vmatmul.mubr.bf16.vlgmr.msra.gmra.mrb[0].mxu0 %v2101_v6  ;;  %1238 = vmatpush1.bf16.msra.mxu1 %v2098_v5  ;;  %v2188_v5 = vld [vmem:[%s2899_s1 + $0x3c0] ss:$8 sps:$4 sm:$0xff]   ;;  %v2193_v6 = vld [vmem:[%s2899_s1 + $0x1d4] ss:$8 sps:$4 sm:$0xff]  }
  0x44   :  { %1384 = vmatpush1.bf16.msra.mxu0 %v2104_v7  ;;  %1239 = vmatprep.subr.bf16.mxu1 %v2109_v8  ;;  %v2196_v7 = vld [vmem:[%s2899_s1 + $0x3d4] ss:$8 sps:$4 sm:$0xff]   ;;  %v2191_v8 = vld [vmem:[%s2899_s1 + $0x1d0] ss:$8 sps:$4 sm:$0xff]  }
  0x45   :  { %1385 = vmatprep.subr.bf16.mxu0 %v2112_v9  ;;  %1206 = vmatprep.mubr.bf16.mxu1 %v2161_v18  ;;  %v2194_v9 = vld [vmem:[%s2899_s1 + $0x3d0] ss:$8 sps:$4 sm:$0xff]   ;;  %v2223_v18 = vld [vmem:[%s2899_s1 + $0x404] ss:$8 sps:$4 sm:$0xff]  }
  0x46   :  { %1352 = vmatprep.mubr.bf16.mxu0 %v2163_v19  ;;  %v2215_v19 = vld [vmem:[%s2900_s0 + $0x8] ss:$36 sps:$4 sm:$0xff]  }
  0x47   :  { %1240 = vmatpush1.bf16.msra.mxu1 %v2107_v10  ;;  %v2204_v10 = vld [vmem:[%s2899_s1 + $0x1e4] ss:$8 sps:$4 sm:$0xff]  }
  0x48   :  { %1386 = vmatpush1.bf16.msra.mxu0 %v2110_v11  ;;  %1241 = vmatprep.subr.bf16.mxu1 %v2115_v12  ;;  %v2208_v11 = vld [vmem:[%s2899_s1 + $0x3e4] ss:$8 sps:$4 sm:$0xff]   ;;  %v2202_v12 = vld [vmem:[%s2899_s1 + $0x1e0] ss:$8 sps:$4 sm:$0xff]  }
  0x49   :  { %1387 = vmatprep.subr.bf16.mxu0 %v2118_v13  ;;  %v2206_v13 = vld [vmem:[%s2899_s1 + $0x3e0] ss:$8 sps:$4 sm:$0xff]  }
  0x4a   :  { %1207 = vmatmul.mubr.bf16.gmra.mrb[4].mxu1 %v2165_v20  ;;  %v2218_v20 = vld [vmem:[%s2900_s0 + $0x18] ss:$36 sps:$4 sm:$0xff]  }
  0x4b   :  { %1242 = vmatpush1.bf16.msra.mxu1 %v2113_v14  ;;  %1353 = vmatmul.mubr.bf16.gmra.mrb[4].mxu0 %v2169_v23  ;;  %v2211_v14 = vld [vmem:[%s2899_s1 + $0x1f4] ss:$8 sps:$4 sm:$0xff]  }
  0x4c   :  { %1388 = vmatpush1.bf16.msra.mxu0 %v2116_v15  ;;  %1243 = vmatprep.subr.bf16.mxu1 %v2121_v16  ;;  %v2214_v15 = vld [vmem:[%s2899_s1 + $0x3f4] ss:$8 sps:$4 sm:$0xff]   ;;  %v2209_v16 = vld [vmem:[%s2899_s1 + $0x1f0] ss:$8 sps:$4 sm:$0xff]  }
  0x4d   :  { %1389 = vmatprep.subr.bf16.mxu0 %v2124_v17  ;;  %1216 = vmatprep.mubr.bf16.mxu1 %v2179_v30  ;;  %v2212_v17 = vld [vmem:[%s2899_s1 + $0x3f0] ss:$8 sps:$4 sm:$0xff]   ;;  %v2238_v30 = vld [vmem:[%s2899_s1 + $0x434] ss:$8 sps:$4 sm:$0xff]  }
  0x4e   :  { %1362 = vmatprep.mubr.bf16.mxu0 %v2181_v31  ;;  %v2227_v23 = vld [vmem:[%s2900_s0 + $0x54] ss:$36 sps:$4 sm:$0xff]   ;;  %v2239_v31 = vld [vmem:[%s2900_s0 + $0x9c] ss:$36 sps:$4 sm:$0xff]  }
  0x4f   :  { %1244 = vmatpush1.bf16.msra.mxu1 %v2119_v21  ;;  %v2221_v21 = vld [vmem:[%s2899_s1 + $0x400] ss:$8 sps:$4 sm:$0xff]  }
  0x50   :  { %1390 = vmatpush1.bf16.msra.mxu0 %v2122_v22  ;;  %1245 = vmatprep.subr.bf16.mxu1 %v2127_v24  ;;  %v2226_v22 = vld [vmem:[%s2899_s1 + $0x414] ss:$8 sps:$4 sm:$0xff]   ;;  %v2229_v24 = vld [vmem:[%s2900_s0 + $0x64] ss:$36 sps:$4 sm:$0xff]  }
  0x51   :  { %1391 = vmatprep.subr.bf16.mxu0 %v2130_v25  ;;  %v2224_v25 = vld [vmem:[%s2899_s1 + $0x410] ss:$8 sps:$4 sm:$0xff]  }
  0x52   :  { %1217 = vmatmul.mubr.bf16.gmra.mrb[8].mxu1 %v2183_v32  ;;  %v2241_v32 = vld [vmem:[%s2900_s0 + $0xac] ss:$36 sps:$4 sm:$0xff]  }
  0x53   :  { %1246 = vmatpush1.bf16.msra.mxu1 %v2125_v26  ;;  %1363 = vmatmul.mubr.bf16.gmra.mrb[8].mxu0 %v2187_v35  ;;  %v2235_v26 = vld [vmem:[%s2899_s1 + $0x424] ss:$8 sps:$4 sm:$0xff]   ;;  %v2243_v35 = vld [vmem:[%s2900_s0 + $0x98] ss:$36 sps:$4 sm:$0xff]  }
  0x54   :  { %1392 = vmatpush1.bf16.msra.mxu0 %v2128_v27  ;;  %1247 = vmatprep.subr.bf16.mxu1 %v2133_v28  ;;  %v2231_v27 = vld [vmem:[%s2900_s0 + $0x50] ss:$36 sps:$4 sm:$0xff]   ;;  %v2232_v28 = vld [vmem:[%s2900_s0 + $0x60] ss:$36 sps:$4 sm:$0xff]  }
  0x55   :  { %1393 = vmatprep.subr.bf16.mxu0 %v2136_v29  ;;  %1226 = vmatprep.mubr.bf16.mxu1 %v2197_v42  ;;  %v2233_v29 = vld [vmem:[%s2899_s1 + $0x420] ss:$8 sps:$4 sm:$0xff]   ;;  %v2259_v42 = vld [vmem:[%s2899_s1 + $0x464] ss:$8 sps:$4 sm:$0xff]  }
  0x56   :  { %1372 = vmatprep.mubr.bf16.mxu0 %v2199_v43  ;;  %v2255_v43 = vld [vmem:[%s2900_s0 + $0xe0] ss:$36 sps:$4 sm:$0xff]  }
  0x57   :  { %1248 = vmatpush1.bf16.msra.mxu1 %v2131_v33  ;;  %v2236_v33 = vld [vmem:[%s2899_s1 + $0x430] ss:$8 sps:$4 sm:$0xff]  }
  0x58   :  { %1394 = vmatpush1.bf16.msra.mxu0 %v2134_v34  ;;  %1249 = vmatprep.subr.bf16.mxu1 %v2139_v36  ;;  %v2247_v34 = vld [vmem:[%s2899_s1 + $0x444] ss:$8 sps:$4 sm:$0xff]  }
  0x59   :  { %1395 = vmatprep.subr.bf16.mxu0 %v2142_v37  ;;  %v2244_v36 = vld [vmem:[%s2900_s0 + $0xa8] ss:$36 sps:$4 sm:$0xff]  }
  0x5a   :  { %1227 = vmatmul.mubr.bf16.gmra.mrb[12].mxu1 %v2201_v44  ;;  %v2245_v37 = vld [vmem:[%s2899_s1 + $0x440] ss:$8 sps:$4 sm:$0xff]   ;;  %v2256_v44 = vld [vmem:[%s2900_s0 + $0xf0] ss:$36 sps:$4 sm:$0xff]  }
  0x5b   :  { %1250 = vmatpush1.bf16.msra.mxu1 %v2137_v38  ;;  %1373 = vmatmul.mubr.bf16.gmra.mrb[12].mxu0 %v2205_v47  ;;  %v2250_v38 = vld [vmem:[%s2899_s1 + $0x454] ss:$8 sps:$4 sm:$0xff]   ;;  %v2260_v47 = vld [vmem:[%s2899_s1 + $0x470] ss:$8 sps:$4 sm:$0xff]  }
  0x5c   :  { %1396 = vmatpush1.bf16.msra.mxu0 %v2140_v39  ;;  %1251 = vmatprep.subr.bf16.mxu1 %v2145_v40  ;;  %v2251_v39 = vld [vmem:[%s2900_s0 + $0xe4] ss:$36 sps:$4 sm:$0xff]   ;;  %v2253_v40 = vld [vmem:[%s2900_s0 + $0xf4] ss:$36 sps:$4 sm:$0xff]  }
  0x5d   :  { %1397 = vmatprep.subr.bf16.mxu0 %v2148_v41  ;;  %1269 = vmatprep.mubr.bf16.mxu1 %v2217_v54  ;;  %v2248_v41 = vld [vmem:[%s2899_s1 + $0x450] ss:$8 sps:$4 sm:$0xff]  }
  0x5e   :  { %1415 = vmatprep.mubr.bf16.mxu0 %v2220_v55 }
  0x5f   :  { %1252 = vmatpush1.bf16.msra.mxu1 %v2143_v45  ;;  %v2257_v45 = vld [vmem:[%s2899_s1 + $0x460] ss:$8 sps:$4 sm:$0xff]  }
  0x60   :  { %1398 = vmatpush1.bf16.msra.mxu0 %v2146_v46  ;;  %1253 = vmatprep.subr.bf16.mxu1 %v2151_v48  ;;  %v2262_v46 = vld [vmem:[%s2899_s1 + $0x474] ss:$8 sps:$4 sm:$0xff]   ;;  %v2267_v48 = vmov 0  }
  0x61   :  { %1399 = vmatprep.subr.bf16.mxu0 %v2154_v49  ;;  %v2263_v49 = vld [vmem:[%s2900_s0 + $0x20] ss:$36 sps:$4 sm:$0xff]  }
  0x63   :  { %1254 = vmatpush1.bf16.msra.mxu1 %v2149_v50  ;;  %v2264_v50 = vld [vmem:[%s2900_s0 + $0xb0] ss:$36 sps:$4 sm:$0xff]  }
  0x64   :  { %1400 = vmatpush1.bf16.msra.mxu0 %v2152_v51  ;;  %1255 = vmatprep.subr.bf16.mxu1 %v2157_v52  ;;  %v2265_v51 = vld [vmem:[%s2900_s0 + $0x68] ss:$36 sps:$4 sm:$0xff]   ;;  %v2266_v52 = vld [vmem:[%s2900_s0 + $0xf8] ss:$36 sps:$4 sm:$0xff]  }
  0x65   :  { %1401 = vmatprep.subr.bf16.mxu0 %v2160_v53 }
  0x67   :  { %1256 = vmatpush1.bf16.msra.mxu1 %v2155_v56 }
  0x68   :  { %1402 = vmatpush1.bf16.msra.mxu0 %v2158_v57  ;;  %1257 = vmatprep.subr.bf16.mxu1 %v2168_v58 }
  0x69   :  { %1403 = vmatprep.subr.bf16.mxu0 %v2172_v59 }
  0x6b   :  { %1258 = vmatpush1.bf16.msra.mxu1 %v2166_v60 }
  0x6c   :  { %1404 = vmatpush1.bf16.msra.mxu0 %v2170_v61  ;;  %1259 = vmatprep.subr.bf16.mxu1 %v2175_v62 }
  0x6d   :  { %1405 = vmatprep.subr.bf16.mxu0 %v2178_v63 }
  0x6f   :  { %1260 = vmatpush1.bf16.msra.mxu1 %v2173_v0 }
  0x70   :  { %1406 = vmatpush1.bf16.msra.mxu0 %v2176_v1  ;;  %1261 = vmatprep.subr.bf16.mxu1 %v2186_v2 }
  0x71   :  { %1407 = vmatprep.subr.bf16.mxu0 %v2190_v3 }
  0x73   :  { %1262 = vmatpush1.bf16.msra.mxu1 %v2184_v4 }
  0x74   :  { %1408 = vmatpush1.bf16.msra.mxu0 %v2188_v5  ;;  %1263 = vmatprep.subr.bf16.mxu1 %v2193_v6 }
  0x75   :  { %1409 = vmatprep.subr.bf16.mxu0 %v2196_v7 }
  0x77   :  { %1264 = vmatpush1.bf16.msra.mxu1 %v2191_v8  ;;  %v1582_v8 = vlaneseq }
  0x78   :  { %1410 = vmatpush1.bf16.msra.mxu0 %v2194_v9  ;;  %1265 = vmatprep.subr.bf16.mxu1 %v2204_v10 }
  0x79   :  { %1411 = vmatprep.subr.bf16.mxu0 %v2208_v11  ;;  %v1583_v10 = vshrl.u32 %v1582_v8, 7 }
  0x7b   :  { %1266 = vmatpush1.bf16.msra.mxu1 %v2202_v12 }
  0x7c   :  { %1412 = vmatpush1.bf16.msra.mxu0 %v2206_v13  ;;  %1267 = vmatprep.subr.bf16.mxu1 %v2211_v14 }
  0x7d   :  { %1413 = vmatprep.subr.bf16.mxu0 %v2214_v15 }
  0x7f   :  { %1268 = vmatpush1.bf16.msra.mxu1 %v2209_v16 }
  0x80   :  { %1414 = vmatpush1.bf16.msra.mxu0 %v2212_v17  ;;  %1918 = vmatprep.subr.bf16.mxu1 %v2223_v18 }
  0x81   :  { %1456 = vmatprep.subr.bf16.mxu0 %v2223_v18 }
  0x82   :  { %1270 = vmatmul.mubr.bf16.vlgmr.msra.gmra.mrb[0].mxu1 %v2215_v19 }
  0x83   :  { %1416 = vmatmul.mubr.bf16.vlgmr.msra.gmra.mrb[0].mxu0 %v2218_v20  ;;  %1926 = vmatpush1.bf16.msra.mxu1 %v2221_v21 }
  0x84   :  { %1457 = vmatpush1.bf16.msra.mxu0 %v2221_v21  ;;  %1919 = vmatprep.subr.bf16.mxu1 %v2226_v22 }
  0x85   :  { %1458 = vmatprep.subr.bf16.mxu0 %v2226_v22  ;;  %1279 = vmatprep.mubr.bf16.mxu1 %v2227_v23  ;;  %v1584_v22 = vsub.s32 0, %v1583_v10 }
  0x86   :  { %1425 = vmatprep.mubr.bf16.mxu0 %v2229_v24  ;;  %v1580_v24 = vld [vmem:[%s2901_s2] sm:$0x3] }
  0x87   :  { %1927 = vmatpush1.bf16.msra.mxu1 %v2224_v25 }
  0x88   :  { %1459 = vmatpush1.bf16.msra.mxu0 %v2224_v25  ;;  %1920 = vmatprep.subr.bf16.mxu1 %v2235_v26  ;;  %v1588_v25 = vsub.s32 1, %v1583_v10 }
  0x89   :  { %1460 = vmatprep.subr.bf16.mxu0 %v2235_v26  ;;  %v2847_v26 = vrot.slane %v1580_v24, %v1584_v22 }
  0x8a   :  { %1280 = vmatmul.mubr.bf16.gmra.mrb[4].mxu1 %v2231_v27 }
  0x8b   :  { %1426 = vmatmul.mubr.bf16.gmra.mrb[4].mxu0 %v2232_v28  ;;  %1928 = vmatpush1.bf16.msra.mxu1 %v2233_v29 }
  0x8c   :  { %1461 = vmatpush1.bf16.msra.mxu0 %v2233_v29  ;;  %1921 = vmatprep.subr.bf16.mxu1 %v2238_v30  ;;  %v2849_v29 = vrot.slane %v1580_v24, %v1588_v25 }
  0x8d   :  { %1462 = vmatprep.subr.bf16.mxu0 %v2238_v30  ;;  %1289 = vmatprep.mubr.bf16.mxu1 %v2239_v31 }
  0x8e   :  { %1435 = vmatprep.mubr.bf16.mxu0 %v2241_v32 }
  0x8f   :  { %1929 = vmatpush1.bf16.msra.mxu1 %v2236_v33 }
  0x90   :  { %1463 = vmatpush1.bf16.msra.mxu0 %v2236_v33  ;;  %1922 = vmatprep.subr.bf16.mxu1 %v2247_v34 }
  0x91   :  { %1464 = vmatprep.subr.bf16.mxu0 %v2247_v34 }
  0x92   :  { %1290 = vmatmul.mubr.bf16.gmra.mrb[8].mxu1 %v2243_v35 }
  0x93   :  { %1436 = vmatmul.mubr.bf16.gmra.mrb[8].mxu0 %v2244_v36  ;;  %1930 = vmatpush1.bf16.msra.mxu1 %v2245_v37 }
  0x94   :  { %1465 = vmatpush1.bf16.msra.mxu0 %v2245_v37  ;;  %1923 = vmatprep.subr.bf16.mxu1 %v2250_v38 }
  0x95   :  { %1466 = vmatprep.subr.bf16.mxu0 %v2250_v38  ;;  %1299 = vmatprep.mubr.bf16.mxu1 %v2251_v39 }
  0x96   :  { %1445 = vmatprep.mubr.bf16.mxu0 %v2253_v40 }
  0x97   :  { %1931 = vmatpush1.bf16.msra.mxu1 %v2248_v41 }
  0x98   :  { %1467 = vmatpush1.bf16.msra.mxu0 %v2248_v41  ;;  %1924 = vmatprep.subr.bf16.mxu1 %v2259_v42 }
  0x99   :  { %1468 = vmatprep.subr.bf16.mxu0 %v2259_v42 }
  0x9a   :  { %1300 = vmatmul.mubr.bf16.gmra.mrb[12].mxu1 %v2255_v43 }
  0x9b   :  { %1446 = vmatmul.mubr.bf16.gmra.mrb[12].mxu0 %v2256_v44  ;;  %1932 = vmatpush1.bf16.msra.mxu1 %v2257_v45 }
  0x9c   :  { %1469 = vmatpush1.bf16.msra.mxu0 %v2257_v45  ;;  %1925 = vmatprep.subr.bf16.mxu1 %v2262_v46 }
  0x9d   :  { %1470 = vmatprep.subr.bf16.mxu0 %v2262_v46  ;;  %1488 = vmatprep.mubr.bf16.mxu0 %v2267_v48 }
  0x9e   :  { %1508 = vmatprep.mubr.bf16.mxu1 %v2267_v48 }
  0x9f   :  { %1933 = vmatpush1.bf16.msra.mxu1 %v2260_v47 }
  0xa0   :  { %1471 = vmatpush1.bf16.msra.mxu0 %v2260_v47 }
  0xa2   :  { %1509 = vmatmul.mubr.bf16.vlgmr.msra.gmra.mrb[16].mxu1 %v2264_v50 }
  0xa3   :  { %1489 = vmatmul.mubr.bf16.vlgmr.msra.gmra.mrb[0].mxu0 %v2263_v49  ;;  %1518 = vmatprep.mubr.bf16.mxu1 %v2267_v48 }
  0xa4   :  { %1498 = vmatprep.mubr.bf16.mxu0 %v2267_v48 }
  0xaa   :  { %1519 = vmatmul.mubr.bf16.gmra.mrb[20].mxu1 %v2266_v52 }
  0xab   :  { %1499 = vmatmul.mubr.bf16.gmra.mrb[4].mxu0 %v2265_v51 }
 0x155   :  { %v1271_v53 = vpop.f32.mrb[0].mxu1 }
 0x156   :  { %v1273_v54 = vpop.f32.mrb[1].mxu1 }
 0x157   :  { %v1275_v55 = vpop.f32.mrb[2].mxu1 }
 0x158   :  { %v1277_v56 = vpop.f32.mrb[3].mxu1 }
 0x15d   :  { %v2828_v57 = vpop.f32.mrb[4].mxu1 }
 0x15e   :  { %v2830_v58 = vpop.f32.mrb[5].mxu1 }
 0x15f   :  { %v2832_v59 = vpop.f32.mrb[6].mxu1 }
 0x160   :  { %v2834_v60 = vpop.f32.mrb[7].mxu1 }
 0x165   :  { %v1291_v61 = vpop.f32.mrb[8].mxu1 }
 0x166   :  { %v1437_v62 = vpop.f32.mrb[8].mxu0  ;;  %v1293_v0 = vpop.f32.mrb[9].mxu1 }
 0x167   :  { %v1942_v63 = vadd.f32 %v1437_v62, %v1291_v61  ;;  %v1439_v1 = vpop.f32.mrb[9].mxu0  ;;  %v1295_v3 = vpop.f32.mrb[10].mxu1 }
 0x168   :  { %v1944_v2 = vadd.f32 %v1439_v1, %v1293_v0  ;;  %v1441_v4 = vpop.f32.mrb[10].mxu0  ;;  %v1297_v6 = vpop.f32.mrb[11].mxu1 }
 0x169   :  { %v1946_v5 = vadd.f32 %v1441_v4, %v1295_v3  ;;  %v1443_v7 = vpop.f32.mrb[11].mxu0 }
 0x16a   :  { %v1948_v9 = vadd.f32 %v1443_v7, %v1297_v6 }
 0x16d   :  { %v1301_v11 = vpop.f32.mrb[12].mxu1 }
 0x16e   :  { %v1447_v12 = vpop.f32.mrb[12].mxu0  ;;  %v1303_v14 = vpop.f32.mrb[13].mxu1 }
 0x16f   :  { %v2836_v13 = vadd.f32 %v1447_v12, %v1301_v11  ;;  %v1449_v15 = vpop.f32.mrb[13].mxu0  ;;  %v1305_v17 = vpop.f32.mrb[14].mxu1 }
 0x170   :  { %v2838_v16 = vadd.f32 %v1449_v15, %v1303_v14  ;;  %v1451_v18 = vpop.f32.mrb[14].mxu0  ;;  %v1307_v20 = vpop.f32.mrb[15].mxu1 }
 0x171   :  { %v2840_v19 = vadd.f32 %v1451_v18, %v1305_v17  ;;  %v1453_v21 = vpop.f32.mrb[15].mxu0 }
 0x172   :  { %v2842_v23 = vadd.f32 %v1453_v21, %v1307_v20 }
 0x175   :  { %v1510_v28 = vpop.f32.mrb[16].mxu1 }
 0x176   :  { %v1490_v27 = vpop.f32.mrb[0].mxu0  ;;  %v1943_v31 = vadd.f32 %v1942_v63, %v1510_v28  ;;  %v1512_v33 = vpop.f32.mrb[17].mxu1 }
 0x177   :  { %v1934_v30 = vadd.f32 %v1490_v27, %v1271_v53  ;;  %v1492_v32 = vpop.f32.mrb[1].mxu0  ;;  %v1945_v35 = vadd.f32 %v1944_v2, %v1512_v33  ;;  %v1514_v37 = vpop.f32.mrb[18].mxu1 }
 0x178   :  { %v1935_v34 = vadd.f32 %v1492_v32, %v1273_v54  ;;  %v1494_v36 = vpop.f32.mrb[2].mxu0  ;;  %v1600_v39 = vadd.f32 %v1943_v31, %v2847_v26  ;;  %v1947_v41 = vadd.f32 %v1946_v5, %v1514_v37  ;;  %v1516_v43 = vpop.f32.mrb[19].mxu1 }
 0x179   :  { %v1592_v38 = vadd.f32 %v1934_v30, %v2847_v26  ;;  %v1936_v40 = vadd.f32 %v1494_v36, %v1275_v55  ;;  %v1496_v42 = vpop.f32.mrb[3].mxu0  ;;  %v1601_v45 = vadd.f32 %v1945_v35, %v2849_v29  ;;  %v1949_v47 = vadd.f32 %v1948_v9, %v1516_v43 }
 0x17a   :  { %v1593_v44 = vadd.f32 %v1935_v34, %v2849_v29  ;;  %v1937_v46 = vadd.f32 %v1496_v42, %v1277_v56  ;;  %vm1616_vm1 = vcmp.ge.f32.partialorder %v1600_v39, 0.0  ;;  %v1632_v49 = vmul.f32 0.1, %v1600_v39 }
 0x17b   :  { %vm1608_vm0 = vcmp.ge.f32.partialorder %v1592_v38, 0.0  ;;  %v1624_v48 = vmul.f32 0.1, %v1592_v38  ;;  %vm1617_vm3 = vcmp.ge.f32.partialorder %v1601_v45, 0.0  ;;  %v1633_v51 = vmul.f32 0.1, %v1601_v45 }
 0x17c   :  { %vm1609_vm2 = vcmp.ge.f32.partialorder %v1593_v44, 0.0  ;;  %v1625_v50 = vmul.f32 0.1, %v1593_v44  ;;  %v1648_v53 = vsel %vm1616_vm1, %v1600_v39, %v1632_v49  ;;  %v1594_v54 = vadd.f32 %v1936_v40, %v2847_v26 }
 0x17d   :  { %v1640_v52 = vsel %vm1608_vm0, %v1592_v38, %v1624_v48  ;;  %v1602_v55 = vadd.f32 %v1947_v41, %v2847_v26  ;;  %v1649_v62 = vsel %vm1617_vm3, %v1601_v45, %v1633_v51  ;;  %v1595_v63 = vadd.f32 %v1937_v46, %v2849_v29  ;;  %v1520_v1 = vpop.f32.mrb[20].mxu1 }
 0x17e   :  { %v1641_v61 = vsel %vm1609_vm2, %v1593_v44, %v1625_v50  ;;  %v1603_v56 = vadd.f32 %v1949_v47, %v2849_v29  ;;  %v1500_v0 = vpop.f32.mrb[4].mxu0  ;;  %v1914_v3 = vpack.c.bf16 %v1649_v62, %v1648_v53  ;;  %vm1610_vm4 = vcmp.ge.f32.partialorder %v1594_v54, 0.0  ;;  %v1522_v6 = vpop.f32.mrb[21].mxu1 }
 0x17f   :  { %v1910_v2 = vpack.c.bf16 %v1641_v61, %v1640_v52  ;;  %v1626_v4 = vmul.f32 0.1, %v1594_v54  ;;  %v1502_v5 = vpop.f32.mrb[5].mxu0  ;;  %vm1618_vm5 = vcmp.ge.f32.partialorder %v1602_v55, 0.0  ;;  %v1634_v7 = vmul.f32 0.1, %v1602_v55 }
 0x180   :  { %vm1611_vm6 = vcmp.ge.f32.partialorder %v1595_v63, 0.0  ;;  %v1627_v8 = vmul.f32 0.1, %v1595_v63  ;;  %1708 = vst [vmem:[%s2902_s3 + $0x20] sm:$0xff] %v1914_v3  ;;  %vm1619_vm7 = vcmp.ge.f32.partialorder %v1603_v56, 0.0  ;;  %v1938_v11 = vadd.f32 %v1500_v0, %v2828_v57  ;;  %v1504_v12 = vpop.f32.mrb[6].mxu0 }
 0x181   :  { %1704 = vst [vmem:[%s2902_s3] sm:$0xff] %v1910_v2  ;;  %v1642_v9 = vsel %vm1610_vm4, %v1594_v54, %v1626_v4  ;;  %v1635_v10 = vmul.f32 0.1, %v1603_v56  ;;  %v1524_v14 = vpop.f32.mrb[22].mxu1  ;;  %v1650_v15 = vsel %vm1618_vm5, %v1602_v55, %v1634_v7  ;;  %v1951_v18 = vadd.f32 %v2836_v13, %v1520_v1  ;;  %v1506_v21 = vpop.f32.mrb[7].mxu0 }
 0x182   :  { %v1643_v17 = vsel %vm1611_vm6, %v1595_v63, %v1627_v8  ;;  %v1939_v20 = vadd.f32 %v1502_v5, %v2830_v58  ;;  %v1526_v22 = vpop.f32.mrb[23].mxu1  ;;  %v1596_v27 = vadd.f32 %v1938_v11, %v2847_v26  ;;  %v1953_v28 = vadd.f32 %v2838_v16, %v1522_v6 }
 0x183   :  { %v1911_v24 = vpack.c.bf16 %v1643_v17, %v1642_v9  ;;  %v1651_v25 = vsel %vm1619_vm7, %v1603_v56, %v1635_v10  ;;  %v1604_v31 = vadd.f32 %v1951_v18, %v2847_v26  ;;  %v1940_v32 = vadd.f32 %v1504_v12, %v2832_v59 }
 0x184   :  { %v1915_v30 = vpack.c.bf16 %v1651_v25, %v1650_v15  ;;  %v1597_v57 = vadd.f32 %v1939_v20, %v2849_v29  ;;  %vm1612_vm8 = vcmp.ge.f32.partialorder %v1596_v27, 0.0  ;;  %v1628_v58 = vmul.f32 0.1, %v1596_v27 }
 0x185   :  { %1705 = vst [vmem:[%s2902_s3 + $0x8] sm:$0xff] %v1911_v24  ;;  %v1605_v13 = vadd.f32 %v1953_v28, %v2849_v29  ;;  %v1955_v33 = vadd.f32 %v2840_v19, %v1524_v14  ;;  %vm1620_vm9 = vcmp.ge.f32.partialorder %v1604_v31, 0.0  ;;  %v1636_v16 = vmul.f32 0.1, %v1604_v31 }
 0x186   :  { %1709 = vst [vmem:[%s2902_s3 + $0x28] sm:$0xff] %v1915_v30  ;;  %vm1613_vm10 = vcmp.ge.f32.partialorder %v1597_v57, 0.0  ;;  %v1629_v34 = vmul.f32 0.1, %v1597_v57  ;;  %v1644_v35 = vsel %vm1612_vm8, %v1596_v27, %v1628_v58  ;;  %v1598_v36 = vadd.f32 %v1940_v32, %v2847_v26 }
 0x187   :  { %vm1621_vm11 = vcmp.ge.f32.partialorder %v1605_v13, 0.0  ;;  %v1637_v59 = vmul.f32 0.1, %v1605_v13  ;;  %v1652_v37 = vsel %vm1620_vm9, %v1604_v31, %v1636_v16  ;;  %v1606_v39 = vadd.f32 %v1955_v33, %v2847_v26 }
 0x188   :  { %v1645_v38 = vsel %vm1613_vm10, %v1597_v57, %v1629_v34  ;;  %v1941_v40 = vadd.f32 %v1506_v21, %v2834_v60  ;;  %vm1614_vm12 = vcmp.ge.f32.partialorder %v1598_v36, 0.0  ;;  %v1630_v42 = vmul.f32 0.1, %v1598_v36 }
 0x189   :  { %v1912_v19 = vpack.c.bf16 %v1645_v38, %v1644_v35  ;;  %v1653_v41 = vsel %vm1621_vm11, %v1605_v13, %v1637_v59  ;;  %v1638_v45 = vmul.f32 0.1, %v1606_v39  ;;  %v1957_v46 = vadd.f32 %v2842_v23, %v1526_v22 }
 0x18a   :  { %v1916_v43 = vpack.c.bf16 %v1653_v41, %v1652_v37  ;;  %v1599_v44 = vadd.f32 %v1941_v40, %v2849_v29  ;;  %v1646_v26 = vsel %vm1614_vm12, %v1598_v36, %v1630_v42  ;;  %vm1622_vm13 = vcmp.ge.f32.partialorder %v1606_v39, 0.0 }
 0x18b   :  { %1706 = vst [vmem:[%s2902_s3 + $0x10] sm:$0xff] %v1912_v19  ;;  %v1607_v47 = vadd.f32 %v1957_v46, %v2849_v29  ;;  %v1654_v49 = vsel %vm1622_vm13, %v1606_v39, %v1638_v45 }
 0x18c   :  { %1710 = vst [vmem:[%s2902_s3 + $0x30] sm:$0xff] %v1916_v43  ;;  %vm1615_vm14 = vcmp.ge.f32.partialorder %v1599_v44, 0.0  ;;  %v1631_v60 = vmul.f32 0.1, %v1599_v44 }
 0x18d   :  { %vm1623_vm15 = vcmp.ge.f32.partialorder %v1607_v47, 0.0  ;;  %v1639_v51 = vmul.f32 0.1, %v1607_v47 }
 0x18e   :  { %v1647_v48 = vsel %vm1615_vm14, %v1599_v44, %v1631_v60 }
 0x18f   :  { %v1913_v50 = vpack.c.bf16 %v1647_v48, %v1646_v26  ;;  %v1655_v23 = vsel %vm1623_vm15, %v1607_v47, %v1639_v51 }
 0x190   :  { %v1917_v52 = vpack.c.bf16 %v1655_v23, %v1654_v49 }
 0x191   :  { %1707 = vst [vmem:[%s2902_s3 + $0x18] sm:$0xff] %v1913_v50 }
 0x192   :  { %1711 = vst [vmem:[%s2902_s3 + $0x38] sm:$0xff] %v1917_v52 }

// kernel: tiny_flownet_s.22
= control target key start
LH: loop header
LB: loop body
LE: loop exit
PB: predicated region body
PF: predicated region fallthrough
CT: control target
= control target key end

     0   :  { %s1498_s12 = smov 0   ;;  %s1500_s13 = smov 0   ;;  %s1672_s0 = inlined_call_operand.vmem [shape: bf16[160,768], index: 0, kind: input, shape index: {}]   ;;  %s1673_s1 = inlined_call_operand.vmem [shape: bf16[3,768,256], index: 1, kind: input, shape index: {}]   ;;  %s1674_s2 = inlined_call_operand.vmem [shape: f32[1,256], index: 2, kind: input, shape index: {}]   ;;  %s1675_s3 = inlined_call_operand.vmem [shape: bf16[128,256], index: 3, kind: output, shape index: {}]  }
   0x1   :  { %s1502_s14 = smov 0   ;;  %s1504_s15 = smov 0  }
   0x2   :  { %s1506_s16 = smov 0  }
   0x3 LB: > { %s22_s17 = sadd.s32 1, %s1467_s14  ;;  %s25_s18 = sadd.s32 1, %s1471_s15  ;;  %s1475_s16 = sphi %s1506_s16, %s13_s16   ;;  %s1471_s15 = sphi %s1504_s15, %s1679_s15   ;;  %s1467_s14 = sphi %s1502_s14, %s1678_s14   ;;  %s1463_s13 = sphi %s1500_s13, %s1677_s13   ;;  %s1459_s12 = sphi %s1498_s12, %s1676_s12  }
   0x4   : > { %p23_p0 = scmp.ge.s32.totalorder %s22_s17, 3  ;;  %p1115_p1 = scmp.ge.s32.totalorder %s1475_s16, 1 }
   0x5   : > { %p165_p2 = scmp.lt.s32.totalorder %s1475_s16, 25 }
   0x6   : > { %s1681_s17 = smov (%p23_p0, %s22_s17), 0  ;;  %s1683_s18 = smov (!%p23_p0, %s25_s18), %s1471_s15 }
   0x7   : > { %p166_p3 = pnand %p1115_p1, %p165_p2  ;;  %p27_p4 = scmp.ge.s32.totalorder %s1683_s18, 8 }
   0x8   : > { %s197_s19 = sadd.s32 (!%p166_p3), %s1459_s12, %s1463_s13  ;;  %p206_p5 = scmp.lt.s32.totalorder (!%p166_p3), %s1459_s12, 2 }
   0x9   : > { %s1685_s18 = smov (%p27_p4, %s1683_s18), 0  ;;  %169 = sbr.rel (%p166_p3) target bundleno = 391 (0x187), region = 32 }
   0xa   : > { %s1116_s20 = sshll.u32 (!%p166_p3), %s197_s19, 1  ;;  %s1119_s21 = sshll.u32 (!%p166_p3), %s1463_s13, 1 }
   0xb   : > { %p199_p6 = scmp.lt.s32.totalorder (!%p166_p3), %s1116_s20, 19  ;;  %p212_p7 = scmp.lt.s32.totalorder (!%p166_p3), %s1119_s21, 15 }
   0xc   : > { %p1122_p8 = scmp.ne.s32.totalorder (!%p166_p3), %s1459_s12, 0 }
  0x10   : > { %s207_s22 = scalar_select %p206_p5, %s1459_s12, 2 }
  0x11   : > { %s1687_s20 = smov (!%p199_p6, %s1116_s20), 19  ;;  %s1689_s21 = smov (!%p212_p7, %s1119_s21), 15 }
  0x12   : > { %s1242_s23 = smul.u32 768, %s207_s22  ;;  %s1230_s4 = sshll.u32 %s1689_s21, 3  ;;  %v1477_v0 = vmov (!%p1122_p8), 0.0  }
  0x13   : > { %s1241_s24 = smul.u32 24, %s1687_s20  ;;  %s1546_s7 = scalar_lea.vmem %s1675_s3, %s1230_s4  ;;  %222 = vst [vmem:[#allocation2] sm:$0xff] (!%p1122_p8), %v1477_v0  ;;  %223 = vst [vmem:[#allocation2 + $0x8] sm:$0xff] (!%p1122_p8), %v1477_v0 }
  0x14   : > { %s1536_s27 = scalar_lea.vmem %s1673_s1, %s1242_s23  ;;  %221 = sbr.rel (%p1122_p8) target bundleno = 27 (0x1b), region = 36  ;;  %224 = vst [vmem:[#allocation2 + $0x10] sm:$0xff] (!%p1122_p8), %v1477_v0  ;;  %225 = vst [vmem:[#allocation2 + $0x18] sm:$0xff] (!%p1122_p8), %v1477_v0 }
  0x15   : > { %s1541_s30 = scalar_lea.vmem %s1672_s0, %s1241_s24 }
  0x1b PF: > { %v1284_v1 = vld [vmem:[%s1536_s27 + $0x104] ss:$8 sps:$4 sm:$0xff]   ;;  %v1286_v2 = vld [vmem:[%s1536_s27 + $0x100] ss:$8 sps:$4 sm:$0xff]   ;;  %v1287_v3 = vld [vmem:[%s1536_s27 + $0x114] ss:$8 sps:$4 sm:$0xff]  }
  0x1c   : > { %885 = vmatprep.subr.bf16.mxu0 %v1284_v1  ;;  %v1289_v4 = vld [vmem:[%s1536_s27 + $0x110] ss:$8 sps:$4 sm:$0xff]   ;;  %v1290_v5 = vld [vmem:[%s1536_s27 + $0x124] ss:$8 sps:$4 sm:$0xff]   ;;  %v1292_v6 = vld [vmem:[%s1536_s27 + $0x120] ss:$8 sps:$4 sm:$0xff]  }
  0x1d   : > { %886 = vmatpush1.bf16.msra.mxu0 %v1286_v2  ;;  %v1293_v7 = vld [vmem:[%s1536_s27 + $0x134] ss:$8 sps:$4 sm:$0xff]   ;;  %v1295_v8 = vld [vmem:[%s1536_s27 + $0x130] ss:$8 sps:$4 sm:$0xff]   ;;  %v1296_v9 = vld [vmem:[%s1536_s27 + $0x144] ss:$8 sps:$4 sm:$0xff]  }
  0x1e   : > { %887 = vmatprep.subr.bf16.mxu0 %v1287_v3  ;;  %v1298_v10 = vld [vmem:[%s1536_s27 + $0x140] ss:$8 sps:$4 sm:$0xff]   ;;  %v1299_v11 = vld [vmem:[%s1536_s27 + $0x154] ss:$8 sps:$4 sm:$0xff]   ;;  %v1301_v12 = vld [vmem:[%s1536_s27 + $0x150] ss:$8 sps:$4 sm:$0xff]  }
  0x1f   : > { %v1302_v13 = vld [vmem:[%s1536_s27 + $0x164] ss:$8 sps:$4 sm:$0xff]   ;;  %v1334_v15 = vld [vmem:[%s1536_s27] ss:$8 sps:$4 sm:$0xff]   ;;  %v1305_v18 = vld [vmem:[%s1536_s27 + $0x174] ss:$8 sps:$4 sm:$0xff]  }
  0x20   : > { %v1331_v14 = vld [vmem:[%s1536_s27 + $0x4] ss:$8 sps:$4 sm:$0xff]   ;;  %v1304_v16 = vld [vmem:[%s1536_s27 + $0x160] ss:$8 sps:$4 sm:$0xff]   ;;  %v1341_v19 = vld [vmem:[%s1536_s27 + $0x14] ss:$8 sps:$4 sm:$0xff]  }
  0x21   : > { %888 = vmatpush1.bf16.msra.mxu0 %v1289_v4  ;;  %842 = vmatprep.subr.bf16.mxu1 %v1331_v14  ;;  %v1337_v17 = vld [vmem:[%s1541_s30 + $0xc] ss:$24 sps:$4 sm:$0xff]   ;;  %v1343_v20 = vld [vmem:[%s1536_s27 + $0x10] ss:$8 sps:$4 sm:$0xff]   ;;  %v1349_v24 = vld [vmem:[%s1536_s27 + $0x20] ss:$8 sps:$4 sm:$0xff]  }
  0x22   : > { %889 = vmatprep.subr.bf16.mxu0 %v1290_v5  ;;  %843 = vmatpush1.bf16.msra.mxu1 %v1334_v15  ;;  %v1307_v21 = vld [vmem:[%s1536_s27 + $0x170] ss:$8 sps:$4 sm:$0xff]   ;;  %v1308_v22 = vld [vmem:[%s1536_s27 + $0x184] ss:$8 sps:$4 sm:$0xff]   ;;  %v1310_v25 = vld [vmem:[%s1536_s27 + $0x180] ss:$8 sps:$4 sm:$0xff]  }
  0x23   : > { %917 = vmatprep.mubr.bf16.mxu0 %v1337_v17  ;;  %844 = vmatprep.subr.bf16.mxu1 %v1341_v19  ;;  %v1347_v23 = vld [vmem:[%s1536_s27 + $0x24] ss:$8 sps:$4 sm:$0xff]   ;;  %v1353_v26 = vld [vmem:[%s1536_s27 + $0x34] ss:$8 sps:$4 sm:$0xff]   ;;  %v1355_v28 = vld [vmem:[%s1536_s27 + $0x30] ss:$8 sps:$4 sm:$0xff]  }
  0x24   : > { %v1311_v27 = vld [vmem:[%s1536_s27 + $0x194] ss:$8 sps:$4 sm:$0xff]   ;;  %v1359_v29 = vld [vmem:[%s1536_s27 + $0x44] ss:$8 sps:$4 sm:$0xff]   ;;  %v1313_v30 = vld [vmem:[%s1536_s27 + $0x190] ss:$8 sps:$4 sm:$0xff]  }
  0x25   : > { %890 = vmatpush1.bf16.msra.mxu0 %v1292_v6  ;;  %v1314_v31 = vld [vmem:[%s1536_s27 + $0x1a4] ss:$8 sps:$4 sm:$0xff]   ;;  %v1361_v32 = vld [vmem:[%s1536_s27 + $0x40] ss:$8 sps:$4 sm:$0xff]   ;;  %v1365_v33 = vld [vmem:[%s1536_s27 + $0x54] ss:$8 sps:$4 sm:$0xff]  }
  0x26   : > { %891 = vmatprep.subr.bf16.mxu0 %v1293_v7  ;;  %845 = vmatpush1.bf16.msra.mxu1 %v1343_v20  ;;  %v1316_v34 = vld [vmem:[%s1536_s27 + $0x1a0] ss:$8 sps:$4 sm:$0xff]   ;;  %v1317_v35 = vld [vmem:[%s1536_s27 + $0x1b4] ss:$8 sps:$4 sm:$0xff]   ;;  %v1367_v36 = vld [vmem:[%s1536_s27 + $0x50] ss:$8 sps:$4 sm:$0xff]  }
  0x27   : > { %846 = vmatprep.subr.bf16.mxu1 %v1347_v23  ;;  %v1371_v37 = vld [vmem:[%s1536_s27 + $0x64] ss:$8 sps:$4 sm:$0xff]   ;;  %v1319_v38 = vld [vmem:[%s1536_s27 + $0x1b0] ss:$8 sps:$4 sm:$0xff]   ;;  %v1373_v40 = vld [vmem:[%s1536_s27 + $0x60] ss:$8 sps:$4 sm:$0xff]  }
  0x28   : > { %v1320_v39 = vld [vmem:[%s1536_s27 + $0x1c4] ss:$8 sps:$4 sm:$0xff]   ;;  %v1377_v41 = vld [vmem:[%s1536_s27 + $0x74] ss:$8 sps:$4 sm:$0xff]   ;;  %v1322_v42 = vld [vmem:[%s1536_s27 + $0x1c0] ss:$8 sps:$4 sm:$0xff]  }
  0x29   : > { %892 = vmatpush1.bf16.msra.mxu0 %v1295_v8  ;;  %v1323_v43 = vld [vmem:[%s1536_s27 + $0x1d4] ss:$8 sps:$4 sm:$0xff]   ;;  %v1379_v44 = vld [vmem:[%s1536_s27 + $0x70] ss:$8 sps:$4 sm:$0xff]   ;;  %v1383_v45 = vld [vmem:[%s1536_s27 + $0x84] ss:$8 sps:$4 sm:$0xff]  }
  0x2a   : > { %893 = vmatprep.subr.bf16.mxu0 %v1296_v9  ;;  %847 = vmatpush1.bf16.msra.mxu1 %v1349_v24  ;;  %v1325_v46 = vld [vmem:[%s1536_s27 + $0x1d0] ss:$8 sps:$4 sm:$0xff]   ;;  %v1326_v47 = vld [vmem:[%s1536_s27 + $0x1e4] ss:$8 sps:$4 sm:$0xff]   ;;  %v1385_v48 = vld [vmem:[%s1536_s27 + $0x80] ss:$8 sps:$4 sm:$0xff]  }
  0x2b   : > { %848 = vmatprep.subr.bf16.mxu1 %v1353_v26  ;;  %v1389_v49 = vld [vmem:[%s1536_s27 + $0x94] ss:$8 sps:$4 sm:$0xff]   ;;  %v1328_v50 = vld [vmem:[%s1536_s27 + $0x1e0] ss:$8 sps:$4 sm:$0xff]   ;;  %v1391_v52 = vld [vmem:[%s1536_s27 + $0x90] ss:$8 sps:$4 sm:$0xff]  }
  0x2c   : > { %v1329_v51 = vld [vmem:[%s1536_s27 + $0x1f4] ss:$8 sps:$4 sm:$0xff]   ;;  %v1395_v53 = vld [vmem:[%s1536_s27 + $0xa4] ss:$8 sps:$4 sm:$0xff]   ;;  %v1333_v54 = vld [vmem:[%s1536_s27 + $0x1f0] ss:$8 sps:$4 sm:$0xff]  }
  0x2d   : > { %894 = vmatpush1.bf16.msra.mxu0 %v1298_v10  ;;  %v1340_v55 = vld [vmem:[%s1536_s27 + $0x204] ss:$8 sps:$4 sm:$0xff]   ;;  %v1397_v56 = vld [vmem:[%s1536_s27 + $0xa0] ss:$8 sps:$4 sm:$0xff]   ;;  %v1401_v58 = vld [vmem:[%s1536_s27 + $0xb4] ss:$8 sps:$4 sm:$0xff]  }
  0x2e   : > { %895 = vmatprep.subr.bf16.mxu0 %v1299_v11  ;;  %849 = vmatpush1.bf16.msra.mxu1 %v1355_v28  ;;  %v1335_v57 = vld [vmem:[%s1541_s30 + $0x8] ss:$24 sps:$4 sm:$0xff]   ;;  %v1346_v60 = vld [vmem:[%s1536_s27 + $0x214] ss:$8 sps:$4 sm:$0xff]   ;;  %v1403_v61 = vld [vmem:[%s1536_s27 + $0xb0] ss:$8 sps:$4 sm:$0xff]  }
  0x2f   : > { %850 = vmatprep.subr.bf16.mxu1 %v1359_v29  ;;  %v1338_v59 = vld [vmem:[%s1536_s27 + $0x200] ss:$8 sps:$4 sm:$0xff]   ;;  %v1430_v62 = vld [vmem:[%s1541_s30 + $0x4] ss:$24 sps:$4 sm:$0xff]   ;;  %v1344_v0 = vld [vmem:[%s1536_s27 + $0x210] ss:$8 sps:$4 sm:$0xff]  }
  0x30   : > { %v1407_v63 = vld [vmem:[%s1536_s27 + $0xc4] ss:$8 sps:$4 sm:$0xff]   ;;  %874 = vmatprep.mubr.bf16.mxu1 %v1430_v62  ;;  %v1409_v3 = vld [vmem:[%s1536_s27 + $0xc0] ss:$8 sps:$4 sm:$0xff]   ;;  %v1413_v4 = vld [vmem:[%s1536_s27 + $0xd4] ss:$8 sps:$4 sm:$0xff]  }
  0x31   : > { %896 = vmatpush1.bf16.msra.mxu0 %v1301_v12  ;;  %v1436_v1 = vld [vmem:[%s1541_s30 + $0x14] ss:$24 sps:$4 sm:$0xff]   ;;  %v1350_v5 = vld [vmem:[%s1536_s27 + $0x220] ss:$8 sps:$4 sm:$0xff]   ;;  %v1415_v7 = vld [vmem:[%s1536_s27 + $0xd0] ss:$8 sps:$4 sm:$0xff]  }
  0x32   : > { %897 = vmatprep.subr.bf16.mxu0 %v1302_v13  ;;  %851 = vmatpush1.bf16.msra.mxu1 %v1361_v32  ;;  %v1352_v2 = vld [vmem:[%s1536_s27 + $0x224] ss:$8 sps:$4 sm:$0xff]   ;;  %v1358_v6 = vld [vmem:[%s1536_s27 + $0x234] ss:$8 sps:$4 sm:$0xff]   ;;  %v1356_v9 = vld [vmem:[%s1536_s27 + $0x230] ss:$8 sps:$4 sm:$0xff]  }
  0x33   : > { %852 = vmatprep.subr.bf16.mxu1 %v1365_v33  ;;  %v1419_v8 = vld [vmem:[%s1536_s27 + $0xe4] ss:$8 sps:$4 sm:$0xff]   ;;  %v1421_v11 = vld [vmem:[%s1536_s27 + $0xe0] ss:$8 sps:$4 sm:$0xff]   ;;  %v1425_v12 = vld [vmem:[%s1536_s27 + $0xf4] ss:$8 sps:$4 sm:$0xff]  }
  0x34   : > { %v1364_v10 = vld [vmem:[%s1536_s27 + $0x244] ss:$8 sps:$4 sm:$0xff]   ;;  %v1362_v13 = vld [vmem:[%s1536_s27 + $0x240] ss:$8 sps:$4 sm:$0xff]   ;;  %v1370_v14 = vld [vmem:[%s1536_s27 + $0x254] ss:$8 sps:$4 sm:$0xff]  }
  0x35   : > { %898 = vmatpush1.bf16.msra.mxu0 %v1304_v16  ;;  %v1427_v15 = vld [vmem:[%s1536_s27 + $0xf0] ss:$8 sps:$4 sm:$0xff]   ;;  %v1376_v17 = vld [vmem:[%s1536_s27 + $0x264] ss:$8 sps:$4 sm:$0xff]   ;;  %v1374_v19 = vld [vmem:[%s1536_s27 + $0x260] ss:$8 sps:$4 sm:$0xff]  }
  0x36   : > { %899 = vmatprep.subr.bf16.mxu0 %v1305_v18  ;;  %853 = vmatpush1.bf16.msra.mxu1 %v1367_v36  ;;  %v1368_v16 = vld [vmem:[%s1536_s27 + $0x250] ss:$8 sps:$4 sm:$0xff]   ;;  %v1382_v20 = vld [vmem:[%s1536_s27 + $0x274] ss:$8 sps:$4 sm:$0xff]   ;;  %v1386_v23 = vld [vmem:[%s1536_s27 + $0x280] ss:$8 sps:$4 sm:$0xff]  }
  0x37   : > { %854 = vmatprep.subr.bf16.mxu1 %v1371_v37  ;;  %v1428_v18 = vld [vmem:[%s1541_s30] ss:$24 sps:$4 sm:$0xff]   ;;  %v1394_v24 = vld [vmem:[%s1536_s27 + $0x294] ss:$8 sps:$4 sm:$0xff]   ;;  %v1400_v26 = vld [vmem:[%s1536_s27 + $0x2a4] ss:$8 sps:$4 sm:$0xff]  }
  0x38   : > { %v1406_v28 = vld [vmem:[%s1536_s27 + $0x2b4] ss:$8 sps:$4 sm:$0xff]   ;;  %v1404_v29 = vld [vmem:[%s1536_s27 + $0x2b0] ss:$8 sps:$4 sm:$0xff]   ;;  %p1225_p9 = scmp.ne.s32.totalorder %s1459_s12, 2 }
  0x39   : > { %900 = vmatpush1.bf16.msra.mxu0 %v1307_v21  ;;  %v1380_v21 = vld [vmem:[%s1536_s27 + $0x270] ss:$8 sps:$4 sm:$0xff]   ;;  %v1418_v32 = vld [vmem:[%s1536_s27 + $0x2d4] ss:$8 sps:$4 sm:$0xff]  }
  0x3a   : > { %901 = vmatprep.subr.bf16.mxu0 %v1308_v22  ;;  %855 = vmatpush1.bf16.msra.mxu1 %v1373_v40  ;;  %v1388_v22 = vld [vmem:[%s1536_s27 + $0x284] ss:$8 sps:$4 sm:$0xff]   ;;  %v1416_v33 = vld [vmem:[%s1536_s27 + $0x2d0] ss:$8 sps:$4 sm:$0xff]   ;;  %v1433_v36 = vld [vmem:[%s1536_s27 + $0x2f4] ss:$8 sps:$4 sm:$0xff]  }
  0x3b   : > { %856 = vmatprep.subr.bf16.mxu1 %v1377_v41  ;;  %v1431_v37 = vld [vmem:[%s1536_s27 + $0x2f0] ss:$8 sps:$4 sm:$0xff]  }
  0x3d   : > { %902 = vmatpush1.bf16.msra.mxu0 %v1310_v25  ;;  %v1392_v25 = vld [vmem:[%s1536_s27 + $0x290] ss:$8 sps:$4 sm:$0xff]  }
  0x3e   : > { %903 = vmatprep.subr.bf16.mxu0 %v1311_v27  ;;  %857 = vmatpush1.bf16.msra.mxu1 %v1379_v44  ;;  %v1398_v27 = vld [vmem:[%s1536_s27 + $0x2a0] ss:$8 sps:$4 sm:$0xff]  }
  0x3f   : > { %858 = vmatprep.subr.bf16.mxu1 %v1383_v45 }
  0x41   : > { %904 = vmatpush1.bf16.msra.mxu0 %v1313_v30  ;;  %v1412_v30 = vld [vmem:[%s1536_s27 + $0x2c4] ss:$8 sps:$4 sm:$0xff]  }
  0x42   : > { %905 = vmatprep.subr.bf16.mxu0 %v1314_v31  ;;  %859 = vmatpush1.bf16.msra.mxu1 %v1385_v48  ;;  %v1410_v31 = vld [vmem:[%s1536_s27 + $0x2c0] ss:$8 sps:$4 sm:$0xff]  }
  0x43   : > { %860 = vmatprep.subr.bf16.mxu1 %v1389_v49  ;;  %v228_v49 = vld [vmem:[#allocation2 + $0x10] sm:$0xff] }
  0x45   : > { %906 = vmatpush1.bf16.msra.mxu0 %v1316_v34  ;;  %v1424_v34 = vld [vmem:[%s1536_s27 + $0x2e4] ss:$8 sps:$4 sm:$0xff]  }
  0x46   : > { %907 = vmatprep.subr.bf16.mxu0 %v1317_v35  ;;  %861 = vmatpush1.bf16.msra.mxu1 %v1391_v52  ;;  %v1422_v35 = vld [vmem:[%s1536_s27 + $0x2e0] ss:$8 sps:$4 sm:$0xff]  }
  0x47   : > { %862 = vmatprep.subr.bf16.mxu1 %v1395_v53  ;;  %v229_v53 = vld [vmem:[#allocation2 + $0x18] sm:$0xff] }
  0x49   : > { %908 = vmatpush1.bf16.msra.mxu0 %v1319_v38  ;;  %v1434_v38 = vld [vmem:[%s1541_s30 + $0x10] ss:$24 sps:$4 sm:$0xff]  }
  0x4a   : > { %909 = vmatprep.subr.bf16.mxu0 %v1320_v39  ;;  %863 = vmatpush1.bf16.msra.mxu1 %v1397_v56 }
  0x4b   : > { %864 = vmatprep.subr.bf16.mxu1 %v1401_v58 }
  0x4d   : > { %910 = vmatpush1.bf16.msra.mxu0 %v1322_v42 }
  0x4e   : > { %911 = vmatprep.subr.bf16.mxu0 %v1323_v43  ;;  %865 = vmatpush1.bf16.msra.mxu1 %v1403_v61  ;;  %v226_v43 = vld [vmem:[#allocation2] sm:$0xff] }
  0x4f   : > { %866 = vmatprep.subr.bf16.mxu1 %v1407_v63  ;;  %v987_v61 = vld [vmem:[%s1674_s2] sm:$0x3] (!%p1225_p9) }
  0x51   : > { %912 = vmatpush1.bf16.msra.mxu0 %v1325_v46  ;;  %v227_v46 = vld [vmem:[#allocation2 + $0x8] sm:$0xff] }
  0x52   : > { %913 = vmatprep.subr.bf16.mxu0 %v1326_v47  ;;  %867 = vmatpush1.bf16.msra.mxu1 %v1409_v3 }
  0x53   : > { %868 = vmatprep.subr.bf16.mxu1 %v1413_v4 }
  0x55   : > { %914 = vmatpush1.bf16.msra.mxu0 %v1328_v50 }
  0x56   : > { %915 = vmatprep.subr.bf16.mxu0 %v1329_v51  ;;  %869 = vmatpush1.bf16.msra.mxu1 %v1415_v7 }
  0x57   : > { %870 = vmatprep.subr.bf16.mxu1 %v1419_v8 }
  0x59   : > { %916 = vmatpush1.bf16.msra.mxu0 %v1333_v54 }
  0x5a   : > { %928 = vmatprep.subr.bf16.mxu0 %v1340_v55  ;;  %871 = vmatpush1.bf16.msra.mxu1 %v1421_v11 }
  0x5b   : > { %872 = vmatprep.subr.bf16.mxu1 %v1425_v12 }
  0x5c   : > { %918 = vmatmul.mubr.bf16.vlgmr.msra.gmra.mrb[0].mxu0 %v1335_v57 }
  0x5d   : > { %929 = vmatpush1.bf16.msra.mxu0 %v1338_v59  ;;  %960 = vmatprep.mubr.bf16.mxu0 %v1436_v1  ;;  %v989_v59 = vlaneseq (!%p1225_p9) }
  0x5e   : > { %930 = vmatprep.subr.bf16.mxu0 %v1346_v60  ;;  %873 = vmatpush1.bf16.msra.mxu1 %v1427_v15 }
  0x5f   : > { %v990_v60 = vshrl.u32 (!%p1225_p9), %v989_v59, 7 }
  0x61   : > { %931 = vmatpush1.bf16.msra.mxu0 %v1344_v0  ;;  %875 = vmatmul.mubr.bf16.vlgmr.msra.gmra.mrb[0].mxu1 %v1428_v18  ;;  %v991_v63 = vsub.s32 (!%p1225_p9), 0, %v990_v60  ;;  %v995_v0 = vsub.s32 (!%p1225_p9), 1, %v990_v60 }
  0x62   : > { %932 = vmatprep.subr.bf16.mxu0 %v1352_v2 }
  0x63   : > { %v992_v4 = vrot.slane (!%p1225_p9), %v987_v61, %v991_v63 }
  0x65   : > { %933 = vmatpush1.bf16.msra.mxu0 %v1350_v5  ;;  %v996_v5 = vrot.slane (!%p1225_p9), %v987_v61, %v995_v0 }
  0x66   : > { %934 = vmatprep.subr.bf16.mxu0 %v1358_v6 }
  0x69   : > { %935 = vmatpush1.bf16.msra.mxu0 %v1356_v9 }
  0x6a   : > { %936 = vmatprep.subr.bf16.mxu0 %v1364_v10 }
  0x6d   : > { %937 = vmatpush1.bf16.msra.mxu0 %v1362_v13 }
  0x6e   : > { %938 = vmatprep.subr.bf16.mxu0 %v1370_v14 }
  0x71   : > { %939 = vmatpush1.bf16.msra.mxu0 %v1368_v16 }
  0x72   : > { %940 = vmatprep.subr.bf16.mxu0 %v1376_v17 }
  0x75   : > { %941 = vmatpush1.bf16.msra.mxu0 %v1374_v19 }
  0x76   : > { %942 = vmatprep.subr.bf16.mxu0 %v1382_v20 }
  0x79   : > { %943 = vmatpush1.bf16.msra.mxu0 %v1380_v21 }
  0x7a   : > { %944 = vmatprep.subr.bf16.mxu0 %v1388_v22 }
  0x7d   : > { %945 = vmatpush1.bf16.msra.mxu0 %v1386_v23 }
  0x7e   : > { %946 = vmatprep.subr.bf16.mxu0 %v1394_v24 }
  0x81   : > { %947 = vmatpush1.bf16.msra.mxu0 %v1392_v25 }
  0x82   : > { %948 = vmatprep.subr.bf16.mxu0 %v1400_v26 }
  0x85   : > { %949 = vmatpush1.bf16.msra.mxu0 %v1398_v27 }
  0x86   : > { %950 = vmatprep.subr.bf16.mxu0 %v1406_v28 }
  0x89   : > { %951 = vmatpush1.bf16.msra.mxu0 %v1404_v29 }
  0x8a   : > { %952 = vmatprep.subr.bf16.mxu0 %v1412_v30 }
  0x8d   : > { %953 = vmatpush1.bf16.msra.mxu0 %v1410_v31 }
  0x8e   : > { %954 = vmatprep.subr.bf16.mxu0 %v1418_v32 }
  0x91   : > { %955 = vmatpush1.bf16.msra.mxu0 %v1416_v33 }
  0x92   : > { %956 = vmatprep.subr.bf16.mxu0 %v1424_v34 }
  0x95   : > { %957 = vmatpush1.bf16.msra.mxu0 %v1422_v35 }
  0x96   : > { %958 = vmatprep.subr.bf16.mxu0 %v1433_v36 }
  0x99   : > { %959 = vmatpush1.bf16.msra.mxu0 %v1431_v37 }
  0x9c   : > { %961 = vmatmul.mubr.bf16.vlgmr.msra.gmra.mrb[0].mxu0 %v1434_v38 }
 0x134   : > { %v876_v39 = vpop.f32.mrb[0].mxu1 }
 0x135   : > { %v878_v40 = vpop.f32.mrb[1].mxu1 }
 0x136   : > { %v880_v41 = vpop.f32.mrb[2].mxu1 }
 0x137   : > { %v882_v42 = vpop.f32.mrb[3].mxu1 }
 0x16f   : > { %v962_v44 = vpop.f32.mrb[0].mxu0 }
 0x170   : > { %v1233_v45 = vadd.f32 %v962_v44, %v876_v39  ;;  %v964_v47 = vpop.f32.mrb[1].mxu0 }
 0x171   : > { %v1234_v48 = vadd.f32 %v964_v47, %v878_v40  ;;  %v966_v50 = vpop.f32.mrb[2].mxu0  ;;  %982 = sbr.rel (%p1225_p9) target bundleno = 391 (0x187), region = 40 }
 0x172   : > { %v971_v51 = vadd.f32 %v1233_v45, %v226_v43  ;;  %v1235_v52 = vadd.f32 %v966_v50, %v880_v41  ;;  %v968_v54 = vpop.f32.mrb[3].mxu0 }
 0x173   : > { %v972_v55 = vadd.f32 %v1234_v48, %v227_v46  ;;  %v1236_v56 = vadd.f32 %v968_v54, %v882_v42 }
 0x174   : > { %975 = vst [vmem:[#allocation2] sm:$0xff] %v971_v51  ;;  %v973_v57 = vadd.f32 %v1235_v52, %v228_v49 }
 0x175   : > { %976 = vst [vmem:[#allocation2 + $0x8] sm:$0xff] %v972_v55  ;;  %v974_v58 = vadd.f32 %v1236_v56, %v229_v53 }
 0x176   : > { %977 = vst [vmem:[#allocation2 + $0x10] sm:$0xff] %v973_v57 }
 0x177   : > { %978 = vst [vmem:[#allocation2 + $0x18] sm:$0xff] %v974_v58 }
 0x17b   : > { %v983_v62 = vld [vmem:[#allocation2] sm:$0xff] }
 0x17c   : > { %v984_v1 = vld [vmem:[#allocation2 + $0x8] sm:$0xff]  ;;  %v999_v6 = vadd.f32 %v992_v4, %v983_v62 }
 0x17d   : > { %v985_v2 = vld [vmem:[#allocation2 + $0x10] sm:$0xff]  ;;  %v1000_v7 = vadd.f32 %v996_v5, %v984_v1 }
 0x17e   : > { %v986_v3 = vld [vmem:[#allocation2 + $0x18] sm:$0xff]  ;;  %v1001_v8 = vadd.f32 %v992_v4, %v985_v2  ;;  %vm1003_vm0 = vcmp.ge.f32.partialorder %v999_v6, 0.0  ;;  %v1007_v10 = vmul.f32 0.1, %v999_v6 }
 0x17f   : > { %v1002_v9 = vadd.f32 %v996_v5, %v986_v3  ;;  %vm1004_vm1 = vcmp.ge.f32.partialorder %v1000_v7, 0.0  ;;  %v1008_v11 = vmul.f32 0.1, %v1000_v7 }
 0x180   : > { %vm1005_vm2 = vcmp.ge.f32.partialorder %v1001_v8, 0.0  ;;  %v1009_v12 = vmul.f32 0.1, %v1001_v8  ;;  %v1011_v14 = vsel %vm1003_vm0, %v999_v6, %v1007_v10 }
 0x181   : > { %vm1006_vm3 = vcmp.ge.f32.partialorder %v1002_v9, 0.0  ;;  %v1010_v13 = vmul.f32 0.1, %v1002_v9  ;;  %v1012_v15 = vsel %vm1004_vm1, %v1000_v7, %v1008_v11 }
 0x182   : > { %v1231_v16 = vpack.c.bf16 %v1012_v15, %v1011_v14  ;;  %v1013_v17 = vsel %vm1005_vm2, %v1001_v8, %v1009_v12 }
 0x183   : > { %v1014_v18 = vsel %vm1006_vm3, %v1002_v9, %v1010_v13 }
 0x184   : > { %v1232_v19 = vpack.c.bf16 %v1014_v18, %v1013_v17  ;;  %1027 = vst [vmem:[%s1546_s7] sm:$0xff] %v1231_v16 }
 0x186   : > { %1028 = vst [vmem:[%s1546_s7 + $0x8] sm:$0xff] %v1232_v19 }
 0x187 PF: > { %s13_s16 = sadd.s32 1, %s1475_s16   ;;  %s1676_s12 = smov %s1467_s14 }
 0x188   : > { %p10_p10 = scmp.ge.s32.totalorder %s13_s16, 26   ;;  %s1677_s13 = smov %s1471_s15 }
 0x189   : > { %s1678_s14 = smov %s1681_s17  ;;  %s1679_s15 = smov %s1685_s18 }
 0x18a   :  { %12 = sbr.rel (!%p10_p10) target bundleno = 3 (0x3), region = 73 }

// kernel: tiny_flownet_s.25
= control target key start
LH: loop header
LB: loop body
LE: loop exit
PB: predicated region body
PF: predicated region fallthrough
CT: control target
= control target key end

     0   :  { %s710_s12 = smov 0   ;;  %s712_s13 = smov 0   ;;  %s799_s0 = inlined_call_operand.vmem [shape: bf16[80,256], index: 0, kind: input, shape index: {}]   ;;  %s800_s1 = inlined_call_operand.vmem [shape: bf16[2,256,128], index: 1, kind: input, shape index: {}]   ;;  %s801_s2 = inlined_call_operand.vmem [shape: f32[1,128], index: 2, kind: input, shape index: {}]   ;;  %s802_s3 = inlined_call_operand.vmem [shape: bf16[64,128], index: 3, kind: output, shape index: {}]  }
   0x1   :  { %s714_s14 = smov 0   ;;  %s716_s15 = smov 0  }
   0x2   :  { %s718_s16 = smov 0  }
   0x3 LB: > { %s22_s17 = sadd.s32 1, %s679_s14  ;;  %s25_s18 = sadd.s32 1, %s683_s15  ;;  %s687_s16 = sphi %s718_s16, %s13_s16   ;;  %s683_s15 = sphi %s716_s15, %s806_s15   ;;  %s679_s14 = sphi %s714_s14, %s805_s14   ;;  %s675_s13 = sphi %s712_s13, %s804_s13   ;;  %s671_s12 = sphi %s710_s12, %s803_s12  }
   0x4   : > { %p23_p0 = scmp.ge.s32.totalorder %s22_s17, 2  ;;  %p525_p1 = scmp.ge.s32.totalorder %s687_s16, 1 }
   0x5   : > { %p165_p2 = scmp.lt.s32.totalorder %s687_s16, 9 }
   0x6   : > { %s808_s17 = smov (%p23_p0, %s22_s17), 0  ;;  %s810_s18 = smov (!%p23_p0, %s25_s18), %s683_s15 }
   0x7   : > { %p166_p3 = pnand %p525_p1, %p165_p2  ;;  %p27_p4 = scmp.ge.s32.totalorder %s810_s18, 4 }
   0x8   : > { %s196_s19 = sadd.s32 (!%p166_p3), %s671_s12, %s675_s13  ;;  %p205_p5 = scmp.lt.s32.totalorder (!%p166_p3), %s671_s12, 1 }
   0x9   : > { %s812_s18 = smov (%p27_p4, %s810_s18), 0  ;;  %169 = sbr.rel (%p166_p3) target bundleno = 295 (0x127), region = 32 }
   0xa   : > { %s526_s20 = sshll.u32 (!%p166_p3), %s196_s19, 1  ;;  %s531_s21 = sshll.u32 (!%p166_p3), %s675_s13, 1 }
   0xb   : > { %p198_p6 = scmp.lt.s32.totalorder (!%p166_p3), %s526_s20, 9  ;;  %p211_p7 = scmp.lt.s32.totalorder (!%p166_p3), %s531_s21, 7 }
   0xc   : > { %p533_p8 = scmp.ne.s32.totalorder (!%p166_p3), %s671_s12, 0 }
  0x10   : > { %s206_s22 = scalar_select %p205_p5, %s671_s12, 1 }
  0x11   : > { %s814_s20 = smov (!%p198_p6, %s526_s20), 9  ;;  %s816_s21 = smov (!%p211_p7, %s531_s21), 7 }
  0x12   : > { %s559_s23 = sshll.u32 %s206_s22, 7  ;;  %s558_s24 = sshll.u32 %s814_s20, 3  ;;  %v689_v0 = vmov (!%p533_p8), 0.0  }
  0x13   : > { %s748_s27 = scalar_lea.vmem %s800_s1, %s559_s23  ;;  %s753_s30 = scalar_lea.vmem %s799_s0, %s558_s24  ;;  %221 = vst [vmem:[#allocation2] sm:$0xff] (!%p533_p8), %v689_v0  ;;  %222 = vst [vmem:[#allocation2 + $0x8] sm:$0xff] (!%p533_p8), %v689_v0 }
  0x14   : > { %s532_s4 = sshll.u32 %s816_s21, 2  ;;  %220 = sbr.rel (%p533_p8) target bundleno = 27 (0x1b), region = 36 }
  0x15   : > { %s758_s7 = scalar_lea.vmem %s802_s3, %s532_s4 }
  0x1b PF: > { %v630_v1 = vld [vmem:[%s748_s27 + $0x40] sm:$0xff]   ;;  %v632_v3 = vld [vmem:[%s748_s27 + $0x48] sm:$0xff]   ;;  %v634_v5 = vld [vmem:[%s748_s27 + $0x50] sm:$0xff]   ;;  %p552_p9 = scmp.ne.s32.totalorder %s671_s12, 1 }
  0x1c   : > { %v631_v2 = vld [vmem:[%s748_s27] sm:$0xff]   ;;  %567 = vmatprep.subr.bf16.mxu0 %v630_v1  ;;  %v633_v4 = vld [vmem:[%s748_s27 + $0x8] sm:$0xff]   ;;  %v635_v6 = vld [vmem:[%s748_s27 + $0x10] sm:$0xff]  }
  0x1d   : > { %568 = vmatpush3.bf16.msra.mxu0 %v631_v2  ;;  %v636_v7 = vld [vmem:[%s748_s27 + $0x58] sm:$0xff]   ;;  %v638_v9 = vld [vmem:[%s748_s27 + $0x60] sm:$0xff]   ;;  %v640_v11 = vld [vmem:[%s748_s27 + $0x68] sm:$0xff]  }
  0x1e   : > { %569 = vmatprep.subr.bf16.mxu0 %v632_v3  ;;  %v637_v8 = vld [vmem:[%s748_s27 + $0x18] sm:$0xff]   ;;  %v639_v10 = vld [vmem:[%s748_s27 + $0x20] sm:$0xff]   ;;  %v641_v13 = vld [vmem:[%s748_s27 + $0x28] sm:$0xff]  }
  0x1f   : > { %v648_v12 = vld [vmem:[%s753_s30 + $0x4] ss:$8 sps:$4 sm:$0xff]   ;;  %v642_v14 = vld [vmem:[%s748_s27 + $0x70] sm:$0xff]   ;;  %v644_v16 = vld [vmem:[%s748_s27 + $0x78] sm:$0xff]  }
  0x20   : > { %397 = vmatprep.mubr.bf16.mxu0 %v648_v12  ;;  %v643_v15 = vld [vmem:[%s748_s27 + $0x30] sm:$0xff]   ;;  %v645_v17 = vld [vmem:[%s748_s27 + $0x38] sm:$0xff]   ;;  %v646_v18 = vld [vmem:[%s753_s30] ss:$8 sps:$4 sm:$0xff]  }
  0x21   : > { %570 = vmatpush3.bf16.msra.mxu0 %v633_v4  ;;  %v223_v20 = vld [vmem:[#allocation2] sm:$0xff]  ;;  %v224_v24 = vld [vmem:[#allocation2 + $0x8] sm:$0xff] }
  0x22   : > { %571 = vmatprep.subr.bf16.mxu0 %v634_v5  ;;  %v553_v31 = vld [vmem:[%s801_s2] ss:$0 sm:$0xff] (!%p552_p9) }
  0x25   : > { %572 = vmatpush3.bf16.msra.mxu0 %v635_v6 }
  0x26   : > { %573 = vmatprep.subr.bf16.mxu0 %v636_v7 }
  0x29   : > { %574 = vmatpush3.bf16.msra.mxu0 %v637_v8 }
  0x2a   : > { %575 = vmatprep.subr.bf16.mxu0 %v638_v9 }
  0x2d   : > { %576 = vmatpush3.bf16.msra.mxu0 %v639_v10 }
  0x2e   : > { %577 = vmatprep.subr.bf16.mxu0 %v640_v11 }
  0x31   : > { %578 = vmatpush3.bf16.msra.mxu0 %v641_v13 }
  0x32   : > { %579 = vmatprep.subr.bf16.mxu0 %v642_v14 }
  0x35   : > { %580 = vmatpush3.bf16.msra.mxu0 %v643_v15 }
  0x36   : > { %581 = vmatprep.subr.bf16.mxu0 %v644_v16 }
  0x39   : > { %582 = vmatpush3.bf16.msra.mxu0 %v645_v17 }
  0x3c   : > { %398 = vmatmul.mubr.bf16.vlgmr.msra.gmra.mrb[0].mxu0 %v646_v18 }
 0x10f   : > { %v583_v19 = vpop.f32.mrb[0].mxu0 }
 0x110   : > { %v584_v21 = vpop.f32.mrb[1].mxu0 }
 0x111   : > { %v585_v22 = vadd.f32 %v584_v21, %v583_v19  ;;  %v586_v23 = vpop.f32.mrb[2].mxu0  ;;  %413 = sbr.rel (%p552_p9) target bundleno = 295 (0x127), region = 40 }
 0x112   : > { %v587_v25 = vpop.f32.mrb[3].mxu0 }
 0x113   : > { %v406_v26 = vadd.f32 %v585_v22, %v223_v20  ;;  %v588_v27 = vadd.f32 %v587_v25, %v586_v23 }
 0x115   : > { %408 = vst [vmem:[#allocation2] sm:$0xff] %v406_v26  ;;  %v407_v28 = vadd.f32 %v588_v27, %v224_v24 }
 0x117   : > { %409 = vst [vmem:[#allocation2 + $0x8] sm:$0xff] %v407_v28 }
 0x11c   : > { %v414_v29 = vld [vmem:[#allocation2] sm:$0xff] }
 0x11d   : > { %v423_v32 = vadd.f32 %v553_v31, %v414_v29 }
 0x11e   : > { %v415_v30 = vld [vmem:[#allocation2 + $0x8] sm:$0xff] }
 0x11f   : > { %v424_v33 = vadd.f32 %v553_v31, %v415_v30  ;;  %vm425_vm0 = vcmp.ge.f32.partialorder %v423_v32, 0.0  ;;  %v427_v34 = vmul.f32 0.1, %v423_v32 }
 0x121   : > { %vm426_vm1 = vcmp.ge.f32.partialorder %v424_v33, 0.0  ;;  %v428_v35 = vmul.f32 0.1, %v424_v33  ;;  %v429_v36 = vsel %vm425_vm0, %v423_v32, %v427_v34 }
 0x123   : > { %v430_v37 = vsel %vm426_vm1, %v424_v33, %v428_v35 }
 0x124   : > { %v565_v38 = vpack.c.bf16 %v430_v37, %v429_v36 }
 0x126   : > { %566 = vst [vmem:[%s758_s7] sm:$0xff] %v565_v38  }
 0x127 PF: > { %s13_s16 = sadd.s32 1, %s687_s16   ;;  %s803_s12 = smov %s679_s14 }
 0x128   : > { %p10_p10 = scmp.ge.s32.totalorder %s13_s16, 10   ;;  %s804_s13 = smov %s683_s15 }
 0x129   : > { %s805_s14 = smov %s808_s17  ;;  %s806_s15 = smov %s812_s18 }
 0x12a   :  { %12 = sbr.rel (!%p10_p10) target bundleno = 3 (0x3), region = 73 }

// kernel: tiny_flownet_s.26
= control target key start
LH: loop header
LB: loop body
LE: loop exit
PB: predicated region body
PF: predicated region fallthrough
CT: control target
= control target key end

     0   :  { %s950_s12 = smov 0   ;;  %s952_s13 = smov 0   ;;  %s1057_s0 = inlined_call_operand.vmem [shape: bf16[80,512], index: 0, kind: input, shape index: {}]   ;;  %s1058_s1 = inlined_call_operand.vmem [shape: bf16[2,512,128], index: 1, kind: input, shape index: {}]   ;;  %s1059_s2 = inlined_call_operand.vmem [shape: f32[1,128], index: 2, kind: input, shape index: {}]   ;;  %s1060_s3 = inlined_call_operand.vmem [shape: bf16[64,128], index: 3, kind: output, shape index: {}]  }
   0x1   :  { %s954_s14 = smov 0   ;;  %s956_s15 = smov 0  }
   0x2   :  { %s958_s16 = smov 0  }
   0x3 LB: > { %s22_s17 = sadd.s32 1, %s919_s14  ;;  %s25_s18 = sadd.s32 1, %s923_s15  ;;  %s927_s16 = sphi %s958_s16, %s13_s16   ;;  %s923_s15 = sphi %s956_s15, %s1064_s15   ;;  %s919_s14 = sphi %s954_s14, %s1063_s14   ;;  %s915_s13 = sphi %s952_s13, %s1062_s13   ;;  %s911_s12 = sphi %s950_s12, %s1061_s12  }
   0x4   : > { %p23_p0 = scmp.ge.s32.totalorder %s22_s17, 2  ;;  %p706_p1 = scmp.ge.s32.totalorder %s927_s16, 1 }
   0x5   : > { %p165_p2 = scmp.lt.s32.totalorder %s927_s16, 9 }
   0x6   : > { %s1066_s17 = smov (%p23_p0, %s22_s17), 0  ;;  %s1068_s18 = smov (!%p23_p0, %s25_s18), %s923_s15 }
   0x7   : > { %p166_p3 = pnand %p706_p1, %p165_p2  ;;  %p27_p4 = scmp.ge.s32.totalorder %s1068_s18, 4 }
   0x8   : > { %s196_s19 = sadd.s32 (!%p166_p3), %s911_s12, %s915_s13  ;;  %p205_p5 = scmp.lt.s32.totalorder (!%p166_p3), %s911_s12, 1 }
   0x9   : > { %s1070_s18 = smov (%p27_p4, %s1068_s18), 0  ;;  %169 = sbr.rel (%p166_p3) target bundleno = 299 (0x12b), region = 32 }
   0xa   : > { %s707_s20 = sshll.u32 (!%p166_p3), %s196_s19, 1  ;;  %s712_s21 = sshll.u32 (!%p166_p3), %s915_s13, 1 }
   0xb   : > { %p198_p6 = scmp.lt.s32.totalorder (!%p166_p3), %s707_s20, 9  ;;  %p211_p7 = scmp.lt.s32.totalorder (!%p166_p3), %s712_s21, 7 }
   0xc   : > { %p714_p8 = scmp.ne.s32.totalorder (!%p166_p3), %s911_s12, 0 }
  0x10   : > { %s206_s22 = scalar_select %p205_p5, %s911_s12, 1 }
  0x11   : > { %s1072_s20 = smov (!%p198_p6, %s707_s20), 9  ;;  %s1074_s21 = smov (!%p211_p7, %s712_s21), 7 }
  0x12   : > { %s758_s23 = sshll.u32 %s206_s22, 8  ;;  %s757_s24 = sshll.u32 %s1072_s20, 4  ;;  %v929_v0 = vmov (!%p714_p8), 0.0  }
  0x13   : > { %s988_s27 = scalar_lea.vmem %s1058_s1, %s758_s23  ;;  %s993_s30 = scalar_lea.vmem %s1057_s0, %s757_s24  ;;  %221 = vst [vmem:[#allocation2] sm:$0xff] (!%p714_p8), %v929_v0  ;;  %222 = vst [vmem:[#allocation2 + $0x8] sm:$0xff] (!%p714_p8), %v929_v0 }
  0x14   : > { %s713_s4 = sshll.u32 %s1074_s21, 2  ;;  %220 = sbr.rel (%p714_p8) target bundleno = 27 (0x1b), region = 36 }
  0x15   : > { %s998_s7 = scalar_lea.vmem %s1060_s3, %s713_s4 }
  0x1b PF: > { %v851_v1 = vld [vmem:[%s988_s27 + $0x40] sm:$0xff]   ;;  %v855_v5 = vld [vmem:[%s988_s27 + $0x48] sm:$0xff]   ;;  %v859_v9 = vld [vmem:[%s988_s27 + $0x50] sm:$0xff]   ;;  %p751_p9 = scmp.ne.s32.totalorder %s911_s12, 1 }
  0x1c   : > { %v852_v2 = vld [vmem:[%s988_s27 + $0xc0] sm:$0xff]   ;;  %766 = vmatprep.subr.bf16.mxu0 %v851_v1  ;;  %v856_v6 = vld [vmem:[%s988_s27 + $0xc8] sm:$0xff]   ;;  %v860_v10 = vld [vmem:[%s988_s27 + $0xd0] sm:$0xff]  }
  0x1d   : > { %v853_v3 = vld [vmem:[%s988_s27] sm:$0xff]   ;;  %788 = vmatprep.subr.bf16.mxu1 %v852_v2  ;;  %v857_v7 = vld [vmem:[%s988_s27 + $0x8] sm:$0xff]   ;;  %v861_v11 = vld [vmem:[%s988_s27 + $0x10] sm:$0xff]  }
  0x1e   : > { %v854_v4 = vld [vmem:[%s988_s27 + $0x80] sm:$0xff]   ;;  %767 = vmatpush3.bf16.msra.mxu0 %v853_v3  ;;  %v858_v8 = vld [vmem:[%s988_s27 + $0x88] sm:$0xff]   ;;  %v862_v12 = vld [vmem:[%s988_s27 + $0x90] sm:$0xff]  }
  0x1f   : > { %789 = vmatpush3.bf16.msra.mxu1 %v854_v4  ;;  %768 = vmatprep.subr.bf16.mxu0 %v855_v5  ;;  %v863_v13 = vld [vmem:[%s988_s27 + $0x58] sm:$0xff]   ;;  %v867_v17 = vld [vmem:[%s988_s27 + $0x60] sm:$0xff]   ;;  %v871_v21 = vld [vmem:[%s988_s27 + $0x68] sm:$0xff]  }
  0x20   : > { %790 = vmatprep.subr.bf16.mxu1 %v856_v6  ;;  %v864_v14 = vld [vmem:[%s988_s27 + $0xd8] sm:$0xff]   ;;  %v868_v18 = vld [vmem:[%s988_s27 + $0xe0] sm:$0xff]   ;;  %v872_v22 = vld [vmem:[%s988_s27 + $0xe8] sm:$0xff]  }
  0x21   : > { %v865_v15 = vld [vmem:[%s988_s27 + $0x18] sm:$0xff]   ;;  %v869_v19 = vld [vmem:[%s988_s27 + $0x20] sm:$0xff]   ;;  %v873_v23 = vld [vmem:[%s988_s27 + $0x28] sm:$0xff]  }
  0x22   : > { %769 = vmatpush3.bf16.msra.mxu0 %v857_v7  ;;  %v866_v16 = vld [vmem:[%s988_s27 + $0x98] sm:$0xff]   ;;  %v870_v20 = vld [vmem:[%s988_s27 + $0xa0] sm:$0xff]   ;;  %v874_v24 = vld [vmem:[%s988_s27 + $0xa8] sm:$0xff]  }
  0x23   : > { %791 = vmatpush3.bf16.msra.mxu1 %v858_v8  ;;  %770 = vmatprep.subr.bf16.mxu0 %v859_v9  ;;  %v875_v25 = vld [vmem:[%s988_s27 + $0x70] sm:$0xff]   ;;  %v879_v29 = vld [vmem:[%s988_s27 + $0x78] sm:$0xff]   ;;  %v223_v46 = vld [vmem:[#allocation2] sm:$0xff] }
  0x24   : > { %792 = vmatprep.subr.bf16.mxu1 %v860_v10  ;;  %v876_v26 = vld [vmem:[%s988_s27 + $0xf0] sm:$0xff]   ;;  %v880_v30 = vld [vmem:[%s988_s27 + $0xf8] sm:$0xff]   ;;  %v224_v51 = vld [vmem:[#allocation2 + $0x8] sm:$0xff] }
  0x25   : > { %v877_v27 = vld [vmem:[%s988_s27 + $0x30] sm:$0xff]   ;;  %v881_v31 = vld [vmem:[%s988_s27 + $0x38] sm:$0xff]   ;;  %v752_v57 = vld [vmem:[%s1059_s2] ss:$0 sm:$0xff] (!%p751_p9) }
  0x26   : > { %771 = vmatpush3.bf16.msra.mxu0 %v861_v11  ;;  %v878_v28 = vld [vmem:[%s988_s27 + $0xb0] sm:$0xff]   ;;  %v882_v32 = vld [vmem:[%s988_s27 + $0xb8] sm:$0xff]  }
  0x27   : > { %793 = vmatpush3.bf16.msra.mxu1 %v862_v12  ;;  %772 = vmatprep.subr.bf16.mxu0 %v863_v13  ;;  %v883_v33 = vld [vmem:[%s993_s30] ss:$16 sps:$4 sm:$0xff]   ;;  %v885_v34 = vld [vmem:[%s993_s30 + $0x4] ss:$16 sps:$4 sm:$0xff]   ;;  %v886_v35 = vld [vmem:[%s993_s30 + $0x8] ss:$16 sps:$4 sm:$0xff]  }
  0x28   : > { %794 = vmatprep.subr.bf16.mxu1 %v864_v14  ;;  %v888_v36 = vld [vmem:[%s993_s30 + $0xc] ss:$16 sps:$4 sm:$0xff]   ;;  %537 = vmatprep.mubr.bf16.mxu0 %v885_v34 }
  0x29   : > { %578 = vmatprep.mubr.bf16.mxu1 %v888_v36 }
  0x2a   : > { %773 = vmatpush3.bf16.msra.mxu0 %v865_v15 }
  0x2b   : > { %795 = vmatpush3.bf16.msra.mxu1 %v866_v16  ;;  %774 = vmatprep.subr.bf16.mxu0 %v867_v17 }
  0x2c   : > { %796 = vmatprep.subr.bf16.mxu1 %v868_v18 }
  0x2e   : > { %775 = vmatpush3.bf16.msra.mxu0 %v869_v19 }
  0x2f   : > { %797 = vmatpush3.bf16.msra.mxu1 %v870_v20  ;;  %776 = vmatprep.subr.bf16.mxu0 %v871_v21 }
  0x30   : > { %798 = vmatprep.subr.bf16.mxu1 %v872_v22 }
  0x32   : > { %777 = vmatpush3.bf16.msra.mxu0 %v873_v23 }
  0x33   : > { %799 = vmatpush3.bf16.msra.mxu1 %v874_v24  ;;  %778 = vmatprep.subr.bf16.mxu0 %v875_v25 }
  0x34   : > { %800 = vmatprep.subr.bf16.mxu1 %v876_v26 }
  0x36   : > { %779 = vmatpush3.bf16.msra.mxu0 %v877_v27 }
  0x37   : > { %801 = vmatpush3.bf16.msra.mxu1 %v878_v28  ;;  %780 = vmatprep.subr.bf16.mxu0 %v879_v29 }
  0x38   : > { %802 = vmatprep.subr.bf16.mxu1 %v880_v30 }
  0x3a   : > { %781 = vmatpush3.bf16.msra.mxu0 %v881_v31 }
  0x3b   : > { %803 = vmatpush3.bf16.msra.mxu1 %v882_v32 }
  0x3d   : > { %538 = vmatmul.mubr.bf16.vlgmr.msra.gmra.mrb[0].mxu0 %v883_v33 }
  0x3e   : > { %579 = vmatmul.mubr.bf16.vlgmr.msra.gmra.mrb[0].mxu1 %v886_v35 }
 0x110   : > { %v782_v37 = vpop.f32.mrb[0].mxu0 }
 0x111   : > { %v804_v38 = vpop.f32.mrb[0].mxu1  ;;  %v783_v39 = vpop.f32.mrb[1].mxu0 }
 0x112   : > { %v784_v40 = vadd.f32 %v783_v39, %v782_v37  ;;  %v805_v41 = vpop.f32.mrb[1].mxu1  ;;  %v785_v42 = vpop.f32.mrb[2].mxu0 }
 0x113   : > { %v806_v43 = vadd.f32 %v805_v41, %v804_v38  ;;  %v807_v44 = vpop.f32.mrb[2].mxu1  ;;  %v786_v45 = vpop.f32.mrb[3].mxu0 }
 0x114   : > { %v787_v47 = vadd.f32 %v786_v45, %v785_v42  ;;  %v808_v48 = vpop.f32.mrb[3].mxu1 }
 0x115   : > { %v581_v49 = vadd.f32 %v806_v43, %v784_v40  ;;  %v809_v50 = vadd.f32 %v808_v48, %v807_v44  ;;  %594 = sbr.rel (%p751_p9) target bundleno = 299 (0x12b), region = 40 }
 0x117   : > { %v587_v52 = vadd.f32 %v581_v49, %v223_v46  ;;  %v584_v53 = vadd.f32 %v809_v50, %v787_v47 }
 0x119   : > { %589 = vst [vmem:[#allocation2] sm:$0xff] %v587_v52  ;;  %v588_v54 = vadd.f32 %v584_v53, %v224_v51 }
 0x11b   : > { %590 = vst [vmem:[#allocation2 + $0x8] sm:$0xff] %v588_v54 }
 0x120   : > { %v595_v55 = vld [vmem:[#allocation2] sm:$0xff] }
 0x121   : > { %v604_v58 = vadd.f32 %v752_v57, %v595_v55 }
 0x122   : > { %v596_v56 = vld [vmem:[#allocation2 + $0x8] sm:$0xff] }
 0x123   : > { %v605_v59 = vadd.f32 %v752_v57, %v596_v56  ;;  %vm606_vm0 = vcmp.ge.f32.partialorder %v604_v58, 0.0  ;;  %v608_v60 = vmul.f32 0.1, %v604_v58 }
 0x125   : > { %vm607_vm1 = vcmp.ge.f32.partialorder %v605_v59, 0.0  ;;  %v609_v61 = vmul.f32 0.1, %v605_v59  ;;  %v610_v62 = vsel %vm606_vm0, %v604_v58, %v608_v60 }
 0x127   : > { %v611_v63 = vsel %vm607_vm1, %v605_v59, %v609_v61 }
 0x128   : > { %v764_v0 = vpack.c.bf16 %v611_v63, %v610_v62 }
 0x12a   : > { %765 = vst [vmem:[%s998_s7] sm:$0xff] %v764_v0  }
 0x12b PF: > { %s13_s16 = sadd.s32 1, %s927_s16   ;;  %s1061_s12 = smov %s919_s14 }
 0x12c   : > { %p10_p10 = scmp.ge.s32.totalorder %s13_s16, 10   ;;  %s1062_s13 = smov %s923_s15 }
 0x12d   : > { %s1063_s14 = smov %s1066_s17  ;;  %s1064_s15 = smov %s1070_s18 }
 0x12e   :  { %12 = sbr.rel (!%p10_p10) target bundleno = 3 (0x3), region = 73 }

// kernel: tiny_flownet_s.24
= control target key start
LH: loop header
LB: loop body
LE: loop exit
PB: predicated region body
PF: predicated region fallthrough
CT: control target
= control target key end

     0   :  { %s911_s12 = smov 0   ;;  %s913_s13 = smov 0   ;;  %s1050_s0 = inlined_call_operand.vmem [shape: bf16[64,512], index: 0, kind: input, shape index: {}]   ;;  %s1051_s1 = inlined_call_operand.vmem [shape: bf16[1,512,128], index: 1, kind: input, shape index: {}]   ;;  %s1052_s2 = inlined_call_operand.vmem [shape: f32[1,128], index: 2, kind: input, shape index: {}]   ;;  %s1053_s3 = inlined_call_operand.vmem [shape: bf16[64,128], index: 3, kind: output, shape index: {}]  }
   0x1   :  { %s915_s14 = smov 0  }
   0x2 LB: > { %s25_s15 = sadd.s32 1, %s885_s13  ;;  %p706_p0 = scmp.ge.s32.totalorder %s889_s14, 1  ;;  %s889_s14 = sphi %s915_s14, %s13_s14   ;;  %s885_s13 = sphi %s913_s13, %s1055_s13   ;;  %s881_s12 = sphi %s911_s12, %s1054_s12  }
   0x3   : > { %p27_p1 = scmp.ge.s32.totalorder %s25_s15, 4  ;;  %p165_p2 = scmp.lt.s32.totalorder %s889_s14, 5 }
   0x5   : > { %s1057_s15 = smov (%p27_p1, %s25_s15), 0  ;;  %p166_p3 = pnand %p706_p0, %p165_p2 }
   0x6   : > { %v829_v0 = vld [vmem:[%s1051_s1 + $0x40] sm:$0xff] (!%p166_p3)   ;;  %v833_v4 = vld [vmem:[%s1051_s1 + $0x48] sm:$0xff] (!%p166_p3)   ;;  %v837_v8 = vld [vmem:[%s1051_s1 + $0x50] sm:$0xff] (!%p166_p3)   ;;  %s707_s25 = sshll.u32 (!%p166_p3), %s881_s12, 1 }
   0x7   : > { %169 = sbr.rel (%p166_p3) target bundleno = 268 (0x10c), region = 32  ;;  %v830_v1 = vld [vmem:[%s1051_s1 + $0xc0] sm:$0xff] (!%p166_p3)   ;;  %761 = vmatprep.subr.bf16.mxu0 (!%p166_p3), %v829_v0  ;;  %v834_v5 = vld [vmem:[%s1051_s1 + $0xc8] sm:$0xff] (!%p166_p3)   ;;  %v838_v9 = vld [vmem:[%s1051_s1 + $0xd0] sm:$0xff] (!%p166_p3)   ;;  %p198_p4 = scmp.lt.s32.totalorder (!%p166_p3), %s707_s25, 7 }
   0x8   : > { %v831_v2 = vld [vmem:[%s1051_s1] sm:$0xff] (!%p166_p3)   ;;  %783 = vmatprep.subr.bf16.mxu1 (!%p166_p3), %v830_v1  ;;  %v835_v6 = vld [vmem:[%s1051_s1 + $0x8] sm:$0xff] (!%p166_p3)   ;;  %v839_v10 = vld [vmem:[%s1051_s1 + $0x10] sm:$0xff] (!%p166_p3)  }
   0x9   : > { %v832_v3 = vld [vmem:[%s1051_s1 + $0x80] sm:$0xff] (!%p166_p3)   ;;  %762 = vmatpush3.bf16.msra.mxu0 (!%p166_p3), %v831_v2  ;;  %v836_v7 = vld [vmem:[%s1051_s1 + $0x88] sm:$0xff] (!%p166_p3)   ;;  %v840_v11 = vld [vmem:[%s1051_s1 + $0x90] sm:$0xff] (!%p166_p3)  }
   0xa   : > { %784 = vmatpush3.bf16.msra.mxu1 (!%p166_p3), %v832_v3  ;;  %763 = vmatprep.subr.bf16.mxu0 (!%p166_p3), %v833_v4  ;;  %v841_v12 = vld [vmem:[%s1051_s1 + $0x58] sm:$0xff] (!%p166_p3)   ;;  %v845_v16 = vld [vmem:[%s1051_s1 + $0x60] sm:$0xff] (!%p166_p3)   ;;  %v849_v20 = vld [vmem:[%s1051_s1 + $0x68] sm:$0xff] (!%p166_p3)  }
   0xb   : > { %785 = vmatprep.subr.bf16.mxu1 (!%p166_p3), %v834_v5  ;;  %v842_v13 = vld [vmem:[%s1051_s1 + $0xd8] sm:$0xff] (!%p166_p3)   ;;  %v846_v17 = vld [vmem:[%s1051_s1 + $0xe0] sm:$0xff] (!%p166_p3)   ;;  %v850_v21 = vld [vmem:[%s1051_s1 + $0xe8] sm:$0xff] (!%p166_p3)  }
   0xc   : > { %v843_v14 = vld [vmem:[%s1051_s1 + $0x18] sm:$0xff] (!%p166_p3)   ;;  %v847_v18 = vld [vmem:[%s1051_s1 + $0x20] sm:$0xff] (!%p166_p3)   ;;  %v851_v22 = vld [vmem:[%s1051_s1 + $0x28] sm:$0xff] (!%p166_p3)  }
   0xd   : > { %764 = vmatpush3.bf16.msra.mxu0 (!%p166_p3), %v835_v6  ;;  %v844_v15 = vld [vmem:[%s1051_s1 + $0x98] sm:$0xff] (!%p166_p3)   ;;  %v848_v19 = vld [vmem:[%s1051_s1 + $0xa0] sm:$0xff] (!%p166_p3)   ;;  %v852_v23 = vld [vmem:[%s1051_s1 + $0xa8] sm:$0xff] (!%p166_p3)  }
   0xe   : > { %786 = vmatpush3.bf16.msra.mxu1 %v836_v7  ;;  %765 = vmatprep.subr.bf16.mxu0 %v837_v8  ;;  %s1059_s25 = smov (!%p198_p4, %s707_s25), 7  ;;  %v853_v24 = vld [vmem:[%s1051_s1 + $0x70] sm:$0xff]   ;;  %v857_v28 = vld [vmem:[%s1051_s1 + $0x78] sm:$0xff]   ;;  %v748_v45 = vld [vmem:[%s1052_s2] ss:$0 sm:$0xff] }
   0xf   : > { %787 = vmatprep.subr.bf16.mxu1 %v838_v9  ;;  %v854_v25 = vld [vmem:[%s1051_s1 + $0xf0] sm:$0xff]   ;;  %s753_s24 = sshll.u32 %s1059_s25, 4  ;;  %v858_v29 = vld [vmem:[%s1051_s1 + $0xf8] sm:$0xff]   ;;  %s711_s17 = sshll.u32 %s1059_s25, 2 }
  0x10   : > { %v855_v26 = vld [vmem:[%s1051_s1 + $0x30] sm:$0xff]   ;;  %s202_s12 = scalar_lea.vmem %s1050_s0, %s753_s24  ;;  %v859_v30 = vld [vmem:[%s1051_s1 + $0x38] sm:$0xff]   ;;  %s214_s20 = scalar_lea.vmem %s1053_s3, %s711_s17 }
  0x11   : > { %766 = vmatpush3.bf16.msra.mxu0 %v839_v10  ;;  %v856_v27 = vld [vmem:[%s1051_s1 + $0xb0] sm:$0xff]   ;;  %v860_v31 = vld [vmem:[%s1051_s1 + $0xb8] sm:$0xff]  }
  0x12   : > { %788 = vmatpush3.bf16.msra.mxu1 %v840_v11  ;;  %767 = vmatprep.subr.bf16.mxu0 %v841_v12  ;;  %v861_v32 = vld [vmem:[%s202_s12] ss:$16 sps:$4 sm:$0xff]   ;;  %v863_v33 = vld [vmem:[%s202_s12 + $0x4] ss:$16 sps:$4 sm:$0xff]   ;;  %v864_v34 = vld [vmem:[%s202_s12 + $0x8] ss:$16 sps:$4 sm:$0xff]  }
  0x13   : > { %789 = vmatprep.subr.bf16.mxu1 %v842_v13  ;;  %v866_v35 = vld [vmem:[%s202_s12 + $0xc] ss:$16 sps:$4 sm:$0xff]   ;;  %537 = vmatprep.mubr.bf16.mxu0 %v863_v33 }
  0x14   : > { %578 = vmatprep.mubr.bf16.mxu1 %v866_v35 }
  0x15   : > { %768 = vmatpush3.bf16.msra.mxu0 %v843_v14 }
  0x16   : > { %790 = vmatpush3.bf16.msra.mxu1 %v844_v15  ;;  %769 = vmatprep.subr.bf16.mxu0 %v845_v16 }
  0x17   : > { %791 = vmatprep.subr.bf16.mxu1 %v846_v17 }
  0x19   : > { %770 = vmatpush3.bf16.msra.mxu0 %v847_v18 }
  0x1a   : > { %792 = vmatpush3.bf16.msra.mxu1 %v848_v19  ;;  %771 = vmatprep.subr.bf16.mxu0 %v849_v20 }
  0x1b   : > { %793 = vmatprep.subr.bf16.mxu1 %v850_v21 }
  0x1d   : > { %772 = vmatpush3.bf16.msra.mxu0 %v851_v22 }
  0x1e   : > { %794 = vmatpush3.bf16.msra.mxu1 %v852_v23  ;;  %773 = vmatprep.subr.bf16.mxu0 %v853_v24 }
  0x1f   : > { %795 = vmatprep.subr.bf16.mxu1 %v854_v25 }
  0x21   : > { %774 = vmatpush3.bf16.msra.mxu0 %v855_v26 }
  0x22   : > { %796 = vmatpush3.bf16.msra.mxu1 %v856_v27  ;;  %775 = vmatprep.subr.bf16.mxu0 %v857_v28 }
  0x23   : > { %797 = vmatprep.subr.bf16.mxu1 %v858_v29 }
  0x25   : > { %776 = vmatpush3.bf16.msra.mxu0 %v859_v30 }
  0x26   : > { %798 = vmatpush3.bf16.msra.mxu1 %v860_v31 }
  0x28   : > { %538 = vmatmul.mubr.bf16.vlgmr.msra.gmra.mrb[0].mxu0 %v861_v32 }
  0x29   : > { %579 = vmatmul.mubr.bf16.vlgmr.msra.gmra.mrb[0].mxu1 %v864_v34 }
  0xfb   : > { %v777_v36 = vpop.f32.mrb[0].mxu0 }
  0xfc   : > { %v799_v37 = vpop.f32.mrb[0].mxu1  ;;  %v778_v38 = vpop.f32.mrb[1].mxu0 }
  0xfd   : > { %v779_v39 = vadd.f32 %v778_v38, %v777_v36  ;;  %v800_v40 = vpop.f32.mrb[1].mxu1  ;;  %v780_v41 = vpop.f32.mrb[2].mxu0 }
  0xfe   : > { %v801_v42 = vadd.f32 %v800_v40, %v799_v37  ;;  %v802_v43 = vpop.f32.mrb[2].mxu1  ;;  %v781_v44 = vpop.f32.mrb[3].mxu0 }
  0xff   : > { %v782_v46 = vadd.f32 %v781_v44, %v780_v41  ;;  %v803_v47 = vpop.f32.mrb[3].mxu1 }
 0x100   : > { %v581_v48 = vadd.f32 %v801_v42, %v779_v39  ;;  %v804_v49 = vadd.f32 %v803_v47, %v802_v43 }
 0x102   : > { %v603_v50 = vadd.f32 %v748_v45, %v581_v48  ;;  %v584_v51 = vadd.f32 %v804_v49, %v782_v46 }
 0x104   : > { %v607_v52 = vmul.f32 0.1, %v603_v50  ;;  %v604_v53 = vadd.f32 %v748_v45, %v584_v51  ;;  %vm605_vm0 = vcmp.ge.f32.partialorder %v603_v50, 0.0 }
 0x106   : > { %vm606_vm1 = vcmp.ge.f32.partialorder %v604_v53, 0.0  ;;  %v608_v54 = vmul.f32 0.1, %v604_v53  ;;  %v609_v55 = vsel %vm605_vm0, %v603_v50, %v607_v52 }
 0x108   : > { %v610_v56 = vsel %vm606_vm1, %v604_v53, %v608_v54 }
 0x109   : > { %v759_v57 = vpack.c.bf16 %v610_v56, %v609_v55 }
 0x10b   : > { %760 = vst [vmem:[%s214_s20] sm:$0xff] %v759_v57  }
 0x10c PF: > { %s13_s14 = sadd.s32 1, %s889_s14   ;;  %s1054_s12 = smov %s885_s13 }
 0x10d   : > { %p10_p5 = scmp.ge.s32.totalorder %s13_s14, 6   ;;  %s1055_s13 = smov %s1057_s15 }
 0x10f   :  { %12 = sbr.rel (!%p10_p5) target bundleno = 2 (0x2), region = 73 }

// kernel: tiny_flownet_s.23
= control target key start
LH: loop header
LB: loop body
LE: loop exit
PB: predicated region body
PF: predicated region fallthrough
CT: control target
= control target key end

     0   :  { %s671_s12 = smov 0   ;;  %s673_s13 = smov 0   ;;  %s759_s0 = inlined_call_operand.vmem [shape: bf16[64,256], index: 0, kind: input, shape index: {}]   ;;  %s760_s1 = inlined_call_operand.vmem [shape: bf16[1,256,128], index: 1, kind: input, shape index: {}]   ;;  %s761_s2 = inlined_call_operand.vmem [shape: f32[1,128], index: 2, kind: input, shape index: {}]   ;;  %s762_s3 = inlined_call_operand.vmem [shape: bf16[64,128], index: 3, kind: output, shape index: {}]  }
   0x1   :  { %s675_s14 = smov 0  }
   0x2 LB: > { %s25_s15 = sadd.s32 1, %s645_s13  ;;  %p525_p0 = scmp.ge.s32.totalorder %s649_s14, 1  ;;  %s649_s14 = sphi %s675_s14, %s13_s14   ;;  %s645_s13 = sphi %s673_s13, %s764_s13   ;;  %s641_s12 = sphi %s671_s12, %s763_s12  }
   0x3   : > { %p27_p1 = scmp.ge.s32.totalorder %s25_s15, 4  ;;  %p165_p2 = scmp.lt.s32.totalorder %s649_s14, 5 }
   0x5   : > { %s766_s15 = smov (%p27_p1, %s25_s15), 0  ;;  %p166_p3 = pnand %p525_p0, %p165_p2 }
   0x6   : > { %v608_v0 = vld [vmem:[%s760_s1 + $0x40] sm:$0xff] (!%p166_p3)   ;;  %s526_s18 = sshll.u32 (!%p166_p3), %s641_s12, 1  ;;  %v610_v2 = vld [vmem:[%s760_s1 + $0x48] sm:$0xff] (!%p166_p3)   ;;  %v612_v4 = vld [vmem:[%s760_s1 + $0x50] sm:$0xff] (!%p166_p3)  }
   0x7   : > { %169 = sbr.rel (%p166_p3) target bundleno = 264 (0x108), region = 32  ;;  %v609_v1 = vld [vmem:[%s760_s1] sm:$0xff] (!%p166_p3)   ;;  %562 = vmatprep.subr.bf16.mxu0 (!%p166_p3), %v608_v0  ;;  %v611_v3 = vld [vmem:[%s760_s1 + $0x8] sm:$0xff] (!%p166_p3)   ;;  %p198_p4 = scmp.lt.s32.totalorder (!%p166_p3), %s526_s18, 7  ;;  %v613_v5 = vld [vmem:[%s760_s1 + $0x10] sm:$0xff] (!%p166_p3)  }
   0x8   : > { %563 = vmatpush3.bf16.msra.mxu0 (!%p166_p3), %v609_v1  ;;  %v614_v6 = vld [vmem:[%s760_s1 + $0x58] sm:$0xff] (!%p166_p3)   ;;  %v616_v8 = vld [vmem:[%s760_s1 + $0x60] sm:$0xff] (!%p166_p3)   ;;  %v618_v10 = vld [vmem:[%s760_s1 + $0x68] sm:$0xff] (!%p166_p3)  }
   0x9   : > { %564 = vmatprep.subr.bf16.mxu0 (!%p166_p3), %v610_v2  ;;  %v615_v7 = vld [vmem:[%s760_s1 + $0x18] sm:$0xff] (!%p166_p3)   ;;  %v617_v9 = vld [vmem:[%s760_s1 + $0x20] sm:$0xff] (!%p166_p3)   ;;  %v619_v12 = vld [vmem:[%s760_s1 + $0x28] sm:$0xff] (!%p166_p3)  }
   0xa   : > { %v620_v13 = vld [vmem:[%s760_s1 + $0x70] sm:$0xff] (!%p166_p3)   ;;  %v622_v15 = vld [vmem:[%s760_s1 + $0x78] sm:$0xff] (!%p166_p3)   ;;  %v549_v20 = vld [vmem:[%s761_s2] ss:$0 sm:$0xff] (!%p166_p3) }
   0xb   : > { %v621_v14 = vld [vmem:[%s760_s1 + $0x30] sm:$0xff] (!%p166_p3)   ;;  %v623_v16 = vld [vmem:[%s760_s1 + $0x38] sm:$0xff] (!%p166_p3)  }
   0xc   : > { %565 = vmatpush3.bf16.msra.mxu0 (!%p166_p3), %v611_v3 }
   0xd   : > { %566 = vmatprep.subr.bf16.mxu0 (!%p166_p3), %v612_v4 }
   0xe   : > { %s768_s18 = smov (!%p198_p4, %s526_s18), 7 }
   0xf   : > { %s554_s6 = sshll.u32 %s768_s18, 3  ;;  %s530_s5 = sshll.u32 %s768_s18, 2 }
  0x10   : > { %567 = vmatpush3.bf16.msra.mxu0 %v613_v5  ;;  %s202_s11 = scalar_lea.vmem %s759_s0, %s554_s6  ;;  %s214_s8 = scalar_lea.vmem %s762_s3, %s530_s5 }
  0x11   : > { %568 = vmatprep.subr.bf16.mxu0 %v614_v6  ;;  %v626_v11 = vld [vmem:[%s202_s11 + $0x4] ss:$8 sps:$4 sm:$0xff]   ;;  %v624_v17 = vld [vmem:[%s202_s11] ss:$8 sps:$4 sm:$0xff]  }
  0x12   : > { %397 = vmatprep.mubr.bf16.mxu0 %v626_v11 }
  0x14   : > { %569 = vmatpush3.bf16.msra.mxu0 %v615_v7 }
  0x15   : > { %570 = vmatprep.subr.bf16.mxu0 %v616_v8 }
  0x18   : > { %571 = vmatpush3.bf16.msra.mxu0 %v617_v9 }
  0x19   : > { %572 = vmatprep.subr.bf16.mxu0 %v618_v10 }
  0x1c   : > { %573 = vmatpush3.bf16.msra.mxu0 %v619_v12 }
  0x1d   : > { %574 = vmatprep.subr.bf16.mxu0 %v620_v13 }
  0x20   : > { %575 = vmatpush3.bf16.msra.mxu0 %v621_v14 }
  0x21   : > { %576 = vmatprep.subr.bf16.mxu0 %v622_v15 }
  0x24   : > { %577 = vmatpush3.bf16.msra.mxu0 %v623_v16 }
  0x27   : > { %398 = vmatmul.mubr.bf16.vlgmr.msra.gmra.mrb[0].mxu0 %v624_v17 }
  0xfa   : > { %v578_v18 = vpop.f32.mrb[0].mxu0 }
  0xfb   : > { %v579_v19 = vpop.f32.mrb[1].mxu0 }
  0xfc   : > { %v580_v21 = vadd.f32 %v579_v19, %v578_v18  ;;  %v581_v22 = vpop.f32.mrb[2].mxu0 }
  0xfd   : > { %v582_v23 = vpop.f32.mrb[3].mxu0 }
  0xfe   : > { %v422_v24 = vadd.f32 %v580_v21, %v549_v20  ;;  %v583_v25 = vadd.f32 %v582_v23, %v581_v22 }
 0x100   : > { %v426_v26 = vmul.f32 0.1, %v422_v24  ;;  %v423_v27 = vadd.f32 %v583_v25, %v549_v20  ;;  %vm424_vm0 = vcmp.ge.f32.partialorder %v422_v24, 0.0 }
 0x102   : > { %vm425_vm1 = vcmp.ge.f32.partialorder %v423_v27, 0.0  ;;  %v427_v28 = vmul.f32 0.1, %v423_v27  ;;  %v428_v29 = vsel %vm424_vm0, %v422_v24, %v426_v26 }
 0x104   : > { %v429_v30 = vsel %vm425_vm1, %v423_v27, %v427_v28 }
 0x105   : > { %v560_v31 = vpack.c.bf16 %v429_v30, %v428_v29 }
 0x107   : > { %561 = vst [vmem:[%s214_s8] sm:$0xff] %v560_v31  }
 0x108 PF: > { %s13_s14 = sadd.s32 1, %s649_s14   ;;  %s763_s12 = smov %s645_s13 }
 0x109   : > { %p10_p5 = scmp.ge.s32.totalorder %s13_s14, 6   ;;  %s764_s13 = smov %s766_s15 }
 0x10b   :  { %12 = sbr.rel (!%p10_p5) target bundleno = 2 (0x2), region = 73 }

// kernel: tiny_flownet_s.30
= control target key start
LH: loop header
LB: loop body
LE: loop exit
PB: predicated region body
PF: predicated region fallthrough
CT: control target
= control target key end

     0   :  { %s950_s12 = smov 0   ;;  %s952_s13 = smov 0   ;;  %s1057_s0 = inlined_call_operand.vmem [shape: bf16[144,512], index: 0, kind: input, shape index: {}]   ;;  %s1058_s1 = inlined_call_operand.vmem [shape: bf16[2,512,128], index: 1, kind: input, shape index: {}]   ;;  %s1059_s2 = inlined_call_operand.vmem [shape: f32[1,128], index: 2, kind: input, shape index: {}]   ;;  %s1060_s3 = inlined_call_operand.vmem [shape: bf16[128,128], index: 3, kind: output, shape index: {}]  }
   0x1   :  { %s954_s14 = smov 0   ;;  %s956_s15 = smov 0  }
   0x2   :  { %s958_s16 = smov 0  }
   0x3 LB: > { %s22_s17 = sadd.s32 1, %s919_s14  ;;  %s25_s18 = sadd.s32 1, %s923_s15  ;;  %s927_s16 = sphi %s958_s16, %s13_s16   ;;  %s923_s15 = sphi %s956_s15, %s1064_s15   ;;  %s919_s14 = sphi %s954_s14, %s1063_s14   ;;  %s915_s13 = sphi %s952_s13, %s1062_s13   ;;  %s911_s12 = sphi %s950_s12, %s1061_s12  }
   0x4   : > { %p23_p0 = scmp.ge.s32.totalorder %s22_s17, 2  ;;  %p706_p1 = scmp.ge.s32.totalorder %s927_s16, 1 }
   0x5   : > { %p165_p2 = scmp.lt.s32.totalorder %s927_s16, 17 }
   0x6   : > { %s1066_s17 = smov (%p23_p0, %s22_s17), 0  ;;  %s1068_s18 = smov (!%p23_p0, %s25_s18), %s923_s15 }
   0x7   : > { %p166_p3 = pnand %p706_p1, %p165_p2  ;;  %p27_p4 = scmp.ge.s32.totalorder %s1068_s18, 8 }
   0x8   : > { %s196_s19 = sadd.s32 (!%p166_p3), %s911_s12, %s915_s13  ;;  %p205_p5 = scmp.lt.s32.totalorder (!%p166_p3), %s911_s12, 1 }
   0x9   : > { %s1070_s18 = smov (%p27_p4, %s1068_s18), 0  ;;  %169 = sbr.rel (%p166_p3) target bundleno = 299 (0x12b), region = 32 }
   0xa   : > { %s707_s20 = sshll.u32 (!%p166_p3), %s196_s19, 1  ;;  %s712_s21 = sshll.u32 (!%p166_p3), %s915_s13, 1 }
   0xb   : > { %p198_p6 = scmp.lt.s32.totalorder (!%p166_p3), %s707_s20, 17  ;;  %p211_p7 = scmp.lt.s32.totalorder (!%p166_p3), %s712_s21, 15 }
   0xc   : > { %p714_p8 = scmp.ne.s32.totalorder (!%p166_p3), %s911_s12, 0 }
  0x10   : > { %s206_s22 = scalar_select %p205_p5, %s911_s12, 1 }
  0x11   : > { %s1072_s20 = smov (!%p198_p6, %s707_s20), 17  ;;  %s1074_s21 = smov (!%p211_p7, %s712_s21), 15 }
  0x12   : > { %s758_s23 = sshll.u32 %s206_s22, 8  ;;  %s757_s24 = sshll.u32 %s1072_s20, 4  ;;  %v929_v0 = vmov (!%p714_p8), 0.0  }
  0x13   : > { %s988_s27 = scalar_lea.vmem %s1058_s1, %s758_s23  ;;  %s993_s30 = scalar_lea.vmem %s1057_s0, %s757_s24  ;;  %221 = vst [vmem:[#allocation2] sm:$0xff] (!%p714_p8), %v929_v0  ;;  %222 = vst [vmem:[#allocation2 + $0x8] sm:$0xff] (!%p714_p8), %v929_v0 }
  0x14   : > { %s713_s4 = sshll.u32 %s1074_s21, 2  ;;  %220 = sbr.rel (%p714_p8) target bundleno = 27 (0x1b), region = 36 }
  0x15   : > { %s998_s7 = scalar_lea.vmem %s1060_s3, %s713_s4 }
  0x1b PF: > { %v851_v1 = vld [vmem:[%s988_s27 + $0x40] sm:$0xff]   ;;  %v855_v5 = vld [vmem:[%s988_s27 + $0x48] sm:$0xff]   ;;  %v859_v9 = vld [vmem:[%s988_s27 + $0x50] sm:$0xff]   ;;  %p751_p9 = scmp.ne.s32.totalorder %s911_s12, 1 }
  0x1c   : > { %v852_v2 = vld [vmem:[%s988_s27 + $0xc0] sm:$0xff]   ;;  %766 = vmatprep.subr.bf16.mxu0 %v851_v1  ;;  %v856_v6 = vld [vmem:[%s988_s27 + $0xc8] sm:$0xff]   ;;  %v860_v10 = vld [vmem:[%s988_s27 + $0xd0] sm:$0xff]  }
  0x1d   : > { %v853_v3 = vld [vmem:[%s988_s27] sm:$0xff]   ;;  %788 = vmatprep.subr.bf16.mxu1 %v852_v2  ;;  %v857_v7 = vld [vmem:[%s988_s27 + $0x8] sm:$0xff]   ;;  %v861_v11 = vld [vmem:[%s988_s27 + $0x10] sm:$0xff]  }
  0x1e   : > { %v854_v4 = vld [vmem:[%s988_s27 + $0x80] sm:$0xff]   ;;  %767 = vmatpush3.bf16.msra.mxu0 %v853_v3  ;;  %v858_v8 = vld [vmem:[%s988_s27 + $0x88] sm:$0xff]   ;;  %v862_v12 = vld [vmem:[%s988_s27 + $0x90] sm:$0xff]  }
  0x1f   : > { %789 = vmatpush3.bf16.msra.mxu1 %v854_v4  ;;  %768 = vmatprep.subr.bf16.mxu0 %v855_v5  ;;  %v863_v13 = vld [vmem:[%s988_s27 + $0x58] sm:$0xff]   ;;  %v867_v17 = vld [vmem:[%s988_s27 + $0x60] sm:$0xff]   ;;  %v871_v21 = vld [vmem:[%s988_s27 + $0x68] sm:$0xff]  }
  0x20   : > { %790 = vmatprep.subr.bf16.mxu1 %v856_v6  ;;  %v864_v14 = vld [vmem:[%s988_s27 + $0xd8] sm:$0xff]   ;;  %v868_v18 = vld [vmem:[%s988_s27 + $0xe0] sm:$0xff]   ;;  %v872_v22 = vld [vmem:[%s988_s27 + $0xe8] sm:$0xff]  }
  0x21   : > { %v865_v15 = vld [vmem:[%s988_s27 + $0x18] sm:$0xff]   ;;  %v869_v19 = vld [vmem:[%s988_s27 + $0x20] sm:$0xff]   ;;  %v873_v23 = vld [vmem:[%s988_s27 + $0x28] sm:$0xff]  }
  0x22   : > { %769 = vmatpush3.bf16.msra.mxu0 %v857_v7  ;;  %v866_v16 = vld [vmem:[%s988_s27 + $0x98] sm:$0xff]   ;;  %v870_v20 = vld [vmem:[%s988_s27 + $0xa0] sm:$0xff]   ;;  %v874_v24 = vld [vmem:[%s988_s27 + $0xa8] sm:$0xff]  }
  0x23   : > { %791 = vmatpush3.bf16.msra.mxu1 %v858_v8  ;;  %770 = vmatprep.subr.bf16.mxu0 %v859_v9  ;;  %v875_v25 = vld [vmem:[%s988_s27 + $0x70] sm:$0xff]   ;;  %v879_v29 = vld [vmem:[%s988_s27 + $0x78] sm:$0xff]   ;;  %v223_v46 = vld [vmem:[#allocation2] sm:$0xff] }
  0x24   : > { %792 = vmatprep.subr.bf16.mxu1 %v860_v10  ;;  %v876_v26 = vld [vmem:[%s988_s27 + $0xf0] sm:$0xff]   ;;  %v880_v30 = vld [vmem:[%s988_s27 + $0xf8] sm:$0xff]   ;;  %v224_v51 = vld [vmem:[#allocation2 + $0x8] sm:$0xff] }
  0x25   : > { %v877_v27 = vld [vmem:[%s988_s27 + $0x30] sm:$0xff]   ;;  %v881_v31 = vld [vmem:[%s988_s27 + $0x38] sm:$0xff]   ;;  %v752_v57 = vld [vmem:[%s1059_s2] ss:$0 sm:$0xff] (!%p751_p9) }
  0x26   : > { %771 = vmatpush3.bf16.msra.mxu0 %v861_v11  ;;  %v878_v28 = vld [vmem:[%s988_s27 + $0xb0] sm:$0xff]   ;;  %v882_v32 = vld [vmem:[%s988_s27 + $0xb8] sm:$0xff]  }
  0x27   : > { %793 = vmatpush3.bf16.msra.mxu1 %v862_v12  ;;  %772 = vmatprep.subr.bf16.mxu0 %v863_v13  ;;  %v883_v33 = vld [vmem:[%s993_s30] ss:$16 sps:$4 sm:$0xff]   ;;  %v885_v34 = vld [vmem:[%s993_s30 + $0x4] ss:$16 sps:$4 sm:$0xff]   ;;  %v886_v35 = vld [vmem:[%s993_s30 + $0x8] ss:$16 sps:$4 sm:$0xff]  }
  0x28   : > { %794 = vmatprep.subr.bf16.mxu1 %v864_v14  ;;  %v888_v36 = vld [vmem:[%s993_s30 + $0xc] ss:$16 sps:$4 sm:$0xff]   ;;  %537 = vmatprep.mubr.bf16.mxu0 %v885_v34 }
  0x29   : > { %578 = vmatprep.mubr.bf16.mxu1 %v888_v36 }
  0x2a   : > { %773 = vmatpush3.bf16.msra.mxu0 %v865_v15 }
  0x2b   : > { %795 = vmatpush3.bf16.msra.mxu1 %v866_v16  ;;  %774 = vmatprep.subr.bf16.mxu0 %v867_v17 }
  0x2c   : > { %796 = vmatprep.subr.bf16.mxu1 %v868_v18 }
  0x2e   : > { %775 = vmatpush3.bf16.msra.mxu0 %v869_v19 }
  0x2f   : > { %797 = vmatpush3.bf16.msra.mxu1 %v870_v20  ;;  %776 = vmatprep.subr.bf16.mxu0 %v871_v21 }
  0x30   : > { %798 = vmatprep.subr.bf16.mxu1 %v872_v22 }
  0x32   : > { %777 = vmatpush3.bf16.msra.mxu0 %v873_v23 }
  0x33   : > { %799 = vmatpush3.bf16.msra.mxu1 %v874_v24  ;;  %778 = vmatprep.subr.bf16.mxu0 %v875_v25 }
  0x34   : > { %800 = vmatprep.subr.bf16.mxu1 %v876_v26 }
  0x36   : > { %779 = vmatpush3.bf16.msra.mxu0 %v877_v27 }
  0x37   : > { %801 = vmatpush3.bf16.msra.mxu1 %v878_v28  ;;  %780 = vmatprep.subr.bf16.mxu0 %v879_v29 }
  0x38   : > { %802 = vmatprep.subr.bf16.mxu1 %v880_v30 }
  0x3a   : > { %781 = vmatpush3.bf16.msra.mxu0 %v881_v31 }
  0x3b   : > { %803 = vmatpush3.bf16.msra.mxu1 %v882_v32 }
  0x3d   : > { %538 = vmatmul.mubr.bf16.vlgmr.msra.gmra.mrb[0].mxu0 %v883_v33 }
  0x3e   : > { %579 = vmatmul.mubr.bf16.vlgmr.msra.gmra.mrb[0].mxu1 %v886_v35 }
 0x110   : > { %v782_v37 = vpop.f32.mrb[0].mxu0 }
 0x111   : > { %v804_v38 = vpop.f32.mrb[0].mxu1  ;;  %v783_v39 = vpop.f32.mrb[1].mxu0 }
 0x112   : > { %v784_v40 = vadd.f32 %v783_v39, %v782_v37  ;;  %v805_v41 = vpop.f32.mrb[1].mxu1  ;;  %v785_v42 = vpop.f32.mrb[2].mxu0 }
 0x113   : > { %v806_v43 = vadd.f32 %v805_v41, %v804_v38  ;;  %v807_v44 = vpop.f32.mrb[2].mxu1  ;;  %v786_v45 = vpop.f32.mrb[3].mxu0 }
 0x114   : > { %v787_v47 = vadd.f32 %v786_v45, %v785_v42  ;;  %v808_v48 = vpop.f32.mrb[3].mxu1 }
 0x115   : > { %v581_v49 = vadd.f32 %v806_v43, %v784_v40  ;;  %v809_v50 = vadd.f32 %v808_v48, %v807_v44  ;;  %594 = sbr.rel (%p751_p9) target bundleno = 299 (0x12b), region = 40 }
 0x117   : > { %v587_v52 = vadd.f32 %v581_v49, %v223_v46  ;;  %v584_v53 = vadd.f32 %v809_v50, %v787_v47 }
 0x119   : > { %589 = vst [vmem:[#allocation2] sm:$0xff] %v587_v52  ;;  %v588_v54 = vadd.f32 %v584_v53, %v224_v51 }
 0x11b   : > { %590 = vst [vmem:[#allocation2 + $0x8] sm:$0xff] %v588_v54 }
 0x120   : > { %v595_v55 = vld [vmem:[#allocation2] sm:$0xff] }
 0x121   : > { %v604_v58 = vadd.f32 %v752_v57, %v595_v55 }
 0x122   : > { %v596_v56 = vld [vmem:[#allocation2 + $0x8] sm:$0xff] }
 0x123   : > { %v605_v59 = vadd.f32 %v752_v57, %v596_v56  ;;  %vm606_vm0 = vcmp.ge.f32.partialorder %v604_v58, 0.0  ;;  %v608_v60 = vmul.f32 0.1, %v604_v58 }
 0x125   : > { %vm607_vm1 = vcmp.ge.f32.partialorder %v605_v59, 0.0  ;;  %v609_v61 = vmul.f32 0.1, %v605_v59  ;;  %v610_v62 = vsel %vm606_vm0, %v604_v58, %v608_v60 }
 0x127   : > { %v611_v63 = vsel %vm607_vm1, %v605_v59, %v609_v61 }
 0x128   : > { %v764_v0 = vpack.c.bf16 %v611_v63, %v610_v62 }
 0x12a   : > { %765 = vst [vmem:[%s998_s7] sm:$0xff] %v764_v0  }
 0x12b PF: > { %s13_s16 = sadd.s32 1, %s927_s16   ;;  %s1061_s12 = smov %s919_s14 }
 0x12c   : > { %p10_p10 = scmp.ge.s32.totalorder %s13_s16, 18   ;;  %s1062_s13 = smov %s923_s15 }
 0x12d   : > { %s1063_s14 = smov %s1066_s17  ;;  %s1064_s15 = smov %s1070_s18 }
 0x12e   :  { %12 = sbr.rel (!%p10_p10) target bundleno = 3 (0x3), region = 73 }

// kernel: tiny_flownet_s.29
= control target key start
LH: loop header
LB: loop body
LE: loop exit
PB: predicated region body
PF: predicated region fallthrough
CT: control target
= control target key end

     0   :  { %s710_s12 = smov 0   ;;  %s712_s13 = smov 0   ;;  %s799_s0 = inlined_call_operand.vmem [shape: bf16[144,256], index: 0, kind: input, shape index: {}]   ;;  %s800_s1 = inlined_call_operand.vmem [shape: bf16[2,256,128], index: 1, kind: input, shape index: {}]   ;;  %s801_s2 = inlined_call_operand.vmem [shape: f32[1,128], index: 2, kind: input, shape index: {}]   ;;  %s802_s3 = inlined_call_operand.vmem [shape: bf16[128,128], index: 3, kind: output, shape index: {}]  }
   0x1   :  { %s714_s14 = smov 0   ;;  %s716_s15 = smov 0  }
   0x2   :  { %s718_s16 = smov 0  }
   0x3 LB: > { %s22_s17 = sadd.s32 1, %s679_s14  ;;  %s25_s18 = sadd.s32 1, %s683_s15  ;;  %s687_s16 = sphi %s718_s16, %s13_s16   ;;  %s683_s15 = sphi %s716_s15, %s806_s15   ;;  %s679_s14 = sphi %s714_s14, %s805_s14   ;;  %s675_s13 = sphi %s712_s13, %s804_s13   ;;  %s671_s12 = sphi %s710_s12, %s803_s12  }
   0x4   : > { %p23_p0 = scmp.ge.s32.totalorder %s22_s17, 2  ;;  %p525_p1 = scmp.ge.s32.totalorder %s687_s16, 1 }
   0x5   : > { %p165_p2 = scmp.lt.s32.totalorder %s687_s16, 17 }
   0x6   : > { %s808_s17 = smov (%p23_p0, %s22_s17), 0  ;;  %s810_s18 = smov (!%p23_p0, %s25_s18), %s683_s15 }
   0x7   : > { %p166_p3 = pnand %p525_p1, %p165_p2  ;;  %p27_p4 = scmp.ge.s32.totalorder %s810_s18, 8 }
   0x8   : > { %s196_s19 = sadd.s32 (!%p166_p3), %s671_s12, %s675_s13  ;;  %p205_p5 = scmp.lt.s32.totalorder (!%p166_p3), %s671_s12, 1 }
   0x9   : > { %s812_s18 = smov (%p27_p4, %s810_s18), 0  ;;  %169 = sbr.rel (%p166_p3) target bundleno = 295 (0x127), region = 32 }
   0xa   : > { %s526_s20 = sshll.u32 (!%p166_p3), %s196_s19, 1  ;;  %s531_s21 = sshll.u32 (!%p166_p3), %s675_s13, 1 }
   0xb   : > { %p198_p6 = scmp.lt.s32.totalorder (!%p166_p3), %s526_s20, 17  ;;  %p211_p7 = scmp.lt.s32.totalorder (!%p166_p3), %s531_s21, 15 }
   0xc   : > { %p533_p8 = scmp.ne.s32.totalorder (!%p166_p3), %s671_s12, 0 }
  0x10   : > { %s206_s22 = scalar_select %p205_p5, %s671_s12, 1 }
  0x11   : > { %s814_s20 = smov (!%p198_p6, %s526_s20), 17  ;;  %s816_s21 = smov (!%p211_p7, %s531_s21), 15 }
  0x12   : > { %s559_s23 = sshll.u32 %s206_s22, 7  ;;  %s558_s24 = sshll.u32 %s814_s20, 3  ;;  %v689_v0 = vmov (!%p533_p8), 0.0  }
  0x13   : > { %s748_s27 = scalar_lea.vmem %s800_s1, %s559_s23  ;;  %s753_s30 = scalar_lea.vmem %s799_s0, %s558_s24  ;;  %221 = vst [vmem:[#allocation2] sm:$0xff] (!%p533_p8), %v689_v0  ;;  %222 = vst [vmem:[#allocation2 + $0x8] sm:$0xff] (!%p533_p8), %v689_v0 }
  0x14   : > { %s532_s4 = sshll.u32 %s816_s21, 2  ;;  %220 = sbr.rel (%p533_p8) target bundleno = 27 (0x1b), region = 36 }
  0x15   : > { %s758_s7 = scalar_lea.vmem %s802_s3, %s532_s4 }
  0x1b PF: > { %v630_v1 = vld [vmem:[%s748_s27 + $0x40] sm:$0xff]   ;;  %v632_v3 = vld [vmem:[%s748_s27 + $0x48] sm:$0xff]   ;;  %v634_v5 = vld [vmem:[%s748_s27 + $0x50] sm:$0xff]   ;;  %p552_p9 = scmp.ne.s32.totalorder %s671_s12, 1 }
  0x1c   : > { %v631_v2 = vld [vmem:[%s748_s27] sm:$0xff]   ;;  %567 = vmatprep.subr.bf16.mxu0 %v630_v1  ;;  %v633_v4 = vld [vmem:[%s748_s27 + $0x8] sm:$0xff]   ;;  %v635_v6 = vld [vmem:[%s748_s27 + $0x10] sm:$0xff]  }
  0x1d   : > { %568 = vmatpush3.bf16.msra.mxu0 %v631_v2  ;;  %v636_v7 = vld [vmem:[%s748_s27 + $0x58] sm:$0xff]   ;;  %v638_v9 = vld [vmem:[%s748_s27 + $0x60] sm:$0xff]   ;;  %v640_v11 = vld [vmem:[%s748_s27 + $0x68] sm:$0xff]  }
  0x1e   : > { %569 = vmatprep.subr.bf16.mxu0 %v632_v3  ;;  %v637_v8 = vld [vmem:[%s748_s27 + $0x18] sm:$0xff]   ;;  %v639_v10 = vld [vmem:[%s748_s27 + $0x20] sm:$0xff]   ;;  %v641_v13 = vld [vmem:[%s748_s27 + $0x28] sm:$0xff]  }
  0x1f   : > { %v648_v12 = vld [vmem:[%s753_s30 + $0x4] ss:$8 sps:$4 sm:$0xff]   ;;  %v642_v14 = vld [vmem:[%s748_s27 + $0x70] sm:$0xff]   ;;  %v644_v16 = vld [vmem:[%s748_s27 + $0x78] sm:$0xff]  }
  0x20   : > { %397 = vmatprep.mubr.bf16.mxu0 %v648_v12  ;;  %v643_v15 = vld [vmem:[%s748_s27 + $0x30] sm:$0xff]   ;;  %v645_v17 = vld [vmem:[%s748_s27 + $0x38] sm:$0xff]   ;;  %v646_v18 = vld [vmem:[%s753_s30] ss:$8 sps:$4 sm:$0xff]  }
  0x21   : > { %570 = vmatpush3.bf16.msra.mxu0 %v633_v4  ;;  %v223_v20 = vld [vmem:[#allocation2] sm:$0xff]  ;;  %v224_v24 = vld [vmem:[#allocation2 + $0x8] sm:$0xff] }
  0x22   : > { %571 = vmatprep.subr.bf16.mxu0 %v634_v5  ;;  %v553_v31 = vld [vmem:[%s801_s2] ss:$0 sm:$0xff] (!%p552_p9) }
  0x25   : > { %572 = vmatpush3.bf16.msra.mxu0 %v635_v6 }
  0x26   : > { %573 = vmatprep.subr.bf16.mxu0 %v636_v7 }
  0x29   : > { %574 = vmatpush3.bf16.msra.mxu0 %v637_v8 }
  0x2a   : > { %575 = vmatprep.subr.bf16.mxu0 %v638_v9 }
  0x2d   : > { %576 = vmatpush3.bf16.msra.mxu0 %v639_v10 }
  0x2e   : > { %577 = vmatprep.subr.bf16.mxu0 %v640_v11 }
  0x31   : > { %578 = vmatpush3.bf16.msra.mxu0 %v641_v13 }
  0x32   : > { %579 = vmatprep.subr.bf16.mxu0 %v642_v14 }
  0x35   : > { %580 = vmatpush3.bf16.msra.mxu0 %v643_v15 }
  0x36   : > { %581 = vmatprep.subr.bf16.mxu0 %v644_v16 }
  0x39   : > { %582 = vmatpush3.bf16.msra.mxu0 %v645_v17 }
  0x3c   : > { %398 = vmatmul.mubr.bf16.vlgmr.msra.gmra.mrb[0].mxu0 %v646_v18 }
 0x10f   : > { %v583_v19 = vpop.f32.mrb[0].mxu0 }
 0x110   : > { %v584_v21 = vpop.f32.mrb[1].mxu0 }
 0x111   : > { %v585_v22 = vadd.f32 %v584_v21, %v583_v19  ;;  %v586_v23 = vpop.f32.mrb[2].mxu0  ;;  %413 = sbr.rel (%p552_p9) target bundleno = 295 (0x127), region = 40 }
 0x112   : > { %v587_v25 = vpop.f32.mrb[3].mxu0 }
 0x113   : > { %v406_v26 = vadd.f32 %v585_v22, %v223_v20  ;;  %v588_v27 = vadd.f32 %v587_v25, %v586_v23 }
 0x115   : > { %408 = vst [vmem:[#allocation2] sm:$0xff] %v406_v26  ;;  %v407_v28 = vadd.f32 %v588_v27, %v224_v24 }
 0x117   : > { %409 = vst [vmem:[#allocation2 + $0x8] sm:$0xff] %v407_v28 }
 0x11c   : > { %v414_v29 = vld [vmem:[#allocation2] sm:$0xff] }
 0x11d   : > { %v423_v32 = vadd.f32 %v553_v31, %v414_v29 }
 0x11e   : > { %v415_v30 = vld [vmem:[#allocation2 + $0x8] sm:$0xff] }
 0x11f   : > { %v424_v33 = vadd.f32 %v553_v31, %v415_v30  ;;  %vm425_vm0 = vcmp.ge.f32.partialorder %v423_v32, 0.0  ;;  %v427_v34 = vmul.f32 0.1, %v423_v32 }
 0x121   : > { %vm426_vm1 = vcmp.ge.f32.partialorder %v424_v33, 0.0  ;;  %v428_v35 = vmul.f32 0.1, %v424_v33  ;;  %v429_v36 = vsel %vm425_vm0, %v423_v32, %v427_v34 }
 0x123   : > { %v430_v37 = vsel %vm426_vm1, %v424_v33, %v428_v35 }
 0x124   : > { %v565_v38 = vpack.c.bf16 %v430_v37, %v429_v36 }
 0x126   : > { %566 = vst [vmem:[%s758_s7] sm:$0xff] %v565_v38  }
 0x127 PF: > { %s13_s16 = sadd.s32 1, %s687_s16   ;;  %s803_s12 = smov %s679_s14 }
 0x128   : > { %p10_p10 = scmp.ge.s32.totalorder %s13_s16, 18   ;;  %s804_s13 = smov %s683_s15 }
 0x129   : > { %s805_s14 = smov %s808_s17  ;;  %s806_s15 = smov %s812_s18 }
 0x12a   :  { %12 = sbr.rel (!%p10_p10) target bundleno = 3 (0x3), region = 73 }

// kernel: tiny_flownet_s.28
= control target key start
LH: loop header
LB: loop body
LE: loop exit
PB: predicated region body
PF: predicated region fallthrough
CT: control target
= control target key end

     0   :  { %s911_s12 = smov 0   ;;  %s913_s13 = smov 0   ;;  %s1050_s0 = inlined_call_operand.vmem [shape: bf16[128,512], index: 0, kind: input, shape index: {}]   ;;  %s1051_s1 = inlined_call_operand.vmem [shape: bf16[1,512,128], index: 1, kind: input, shape index: {}]   ;;  %s1052_s2 = inlined_call_operand.vmem [shape: f32[1,128], index: 2, kind: input, shape index: {}]   ;;  %s1053_s3 = inlined_call_operand.vmem [shape: bf16[128,128], index: 3, kind: output, shape index: {}]  }
   0x1   :  { %s915_s14 = smov 0  }
   0x2 LB: > { %s25_s15 = sadd.s32 1, %s885_s13  ;;  %p706_p0 = scmp.ge.s32.totalorder %s889_s14, 1  ;;  %s889_s14 = sphi %s915_s14, %s13_s14   ;;  %s885_s13 = sphi %s913_s13, %s1055_s13   ;;  %s881_s12 = sphi %s911_s12, %s1054_s12  }
   0x3   : > { %p27_p1 = scmp.ge.s32.totalorder %s25_s15, 8  ;;  %p165_p2 = scmp.lt.s32.totalorder %s889_s14, 9 }
   0x5   : > { %s1057_s15 = smov (%p27_p1, %s25_s15), 0  ;;  %p166_p3 = pnand %p706_p0, %p165_p2 }
   0x6   : > { %v829_v0 = vld [vmem:[%s1051_s1 + $0x40] sm:$0xff] (!%p166_p3)   ;;  %v833_v4 = vld [vmem:[%s1051_s1 + $0x48] sm:$0xff] (!%p166_p3)   ;;  %v837_v8 = vld [vmem:[%s1051_s1 + $0x50] sm:$0xff] (!%p166_p3)   ;;  %s707_s25 = sshll.u32 (!%p166_p3), %s881_s12, 1 }
   0x7   : > { %169 = sbr.rel (%p166_p3) target bundleno = 268 (0x10c), region = 32  ;;  %v830_v1 = vld [vmem:[%s1051_s1 + $0xc0] sm:$0xff] (!%p166_p3)   ;;  %761 = vmatprep.subr.bf16.mxu0 (!%p166_p3), %v829_v0  ;;  %v834_v5 = vld [vmem:[%s1051_s1 + $0xc8] sm:$0xff] (!%p166_p3)   ;;  %v838_v9 = vld [vmem:[%s1051_s1 + $0xd0] sm:$0xff] (!%p166_p3)   ;;  %p198_p4 = scmp.lt.s32.totalorder (!%p166_p3), %s707_s25, 15 }
   0x8   : > { %v831_v2 = vld [vmem:[%s1051_s1] sm:$0xff] (!%p166_p3)   ;;  %783 = vmatprep.subr.bf16.mxu1 (!%p166_p3), %v830_v1  ;;  %v835_v6 = vld [vmem:[%s1051_s1 + $0x8] sm:$0xff] (!%p166_p3)   ;;  %v839_v10 = vld [vmem:[%s1051_s1 + $0x10] sm:$0xff] (!%p166_p3)  }
   0x9   : > { %v832_v3 = vld [vmem:[%s1051_s1 + $0x80] sm:$0xff] (!%p166_p3)   ;;  %762 = vmatpush3.bf16.msra.mxu0 (!%p166_p3), %v831_v2  ;;  %v836_v7 = vld [vmem:[%s1051_s1 + $0x88] sm:$0xff] (!%p166_p3)   ;;  %v840_v11 = vld [vmem:[%s1051_s1 + $0x90] sm:$0xff] (!%p166_p3)  }
   0xa   : > { %784 = vmatpush3.bf16.msra.mxu1 (!%p166_p3), %v832_v3  ;;  %763 = vmatprep.subr.bf16.mxu0 (!%p166_p3), %v833_v4  ;;  %v841_v12 = vld [vmem:[%s1051_s1 + $0x58] sm:$0xff] (!%p166_p3)   ;;  %v845_v16 = vld [vmem:[%s1051_s1 + $0x60] sm:$0xff] (!%p166_p3)   ;;  %v849_v20 = vld [vmem:[%s1051_s1 + $0x68] sm:$0xff] (!%p166_p3)  }
   0xb   : > { %785 = vmatprep.subr.bf16.mxu1 (!%p166_p3), %v834_v5  ;;  %v842_v13 = vld [vmem:[%s1051_s1 + $0xd8] sm:$0xff] (!%p166_p3)   ;;  %v846_v17 = vld [vmem:[%s1051_s1 + $0xe0] sm:$0xff] (!%p166_p3)   ;;  %v850_v21 = vld [vmem:[%s1051_s1 + $0xe8] sm:$0xff] (!%p166_p3)  }
   0xc   : > { %v843_v14 = vld [vmem:[%s1051_s1 + $0x18] sm:$0xff] (!%p166_p3)   ;;  %v847_v18 = vld [vmem:[%s1051_s1 + $0x20] sm:$0xff] (!%p166_p3)   ;;  %v851_v22 = vld [vmem:[%s1051_s1 + $0x28] sm:$0xff] (!%p166_p3)  }
   0xd   : > { %764 = vmatpush3.bf16.msra.mxu0 (!%p166_p3), %v835_v6  ;;  %v844_v15 = vld [vmem:[%s1051_s1 + $0x98] sm:$0xff] (!%p166_p3)   ;;  %v848_v19 = vld [vmem:[%s1051_s1 + $0xa0] sm:$0xff] (!%p166_p3)   ;;  %v852_v23 = vld [vmem:[%s1051_s1 + $0xa8] sm:$0xff] (!%p166_p3)  }
   0xe   : > { %786 = vmatpush3.bf16.msra.mxu1 %v836_v7  ;;  %765 = vmatprep.subr.bf16.mxu0 %v837_v8  ;;  %s1059_s25 = smov (!%p198_p4, %s707_s25), 15  ;;  %v853_v24 = vld [vmem:[%s1051_s1 + $0x70] sm:$0xff]   ;;  %v857_v28 = vld [vmem:[%s1051_s1 + $0x78] sm:$0xff]   ;;  %v748_v45 = vld [vmem:[%s1052_s2] ss:$0 sm:$0xff] }
   0xf   : > { %787 = vmatprep.subr.bf16.mxu1 %v838_v9  ;;  %v854_v25 = vld [vmem:[%s1051_s1 + $0xf0] sm:$0xff]   ;;  %s753_s24 = sshll.u32 %s1059_s25, 4  ;;  %v858_v29 = vld [vmem:[%s1051_s1 + $0xf8] sm:$0xff]   ;;  %s711_s17 = sshll.u32 %s1059_s25, 2 }
  0x10   : > { %v855_v26 = vld [vmem:[%s1051_s1 + $0x30] sm:$0xff]   ;;  %s202_s12 = scalar_lea.vmem %s1050_s0, %s753_s24  ;;  %v859_v30 = vld [vmem:[%s1051_s1 + $0x38] sm:$0xff]   ;;  %s214_s20 = scalar_lea.vmem %s1053_s3, %s711_s17 }
  0x11   : > { %766 = vmatpush3.bf16.msra.mxu0 %v839_v10  ;;  %v856_v27 = vld [vmem:[%s1051_s1 + $0xb0] sm:$0xff]   ;;  %v860_v31 = vld [vmem:[%s1051_s1 + $0xb8] sm:$0xff]  }
  0x12   : > { %788 = vmatpush3.bf16.msra.mxu1 %v840_v11  ;;  %767 = vmatprep.subr.bf16.mxu0 %v841_v12  ;;  %v861_v32 = vld [vmem:[%s202_s12] ss:$16 sps:$4 sm:$0xff]   ;;  %v863_v33 = vld [vmem:[%s202_s12 + $0x4] ss:$16 sps:$4 sm:$0xff]   ;;  %v864_v34 = vld [vmem:[%s202_s12 + $0x8] ss:$16 sps:$4 sm:$0xff]  }
  0x13   : > { %789 = vmatprep.subr.bf16.mxu1 %v842_v13  ;;  %v866_v35 = vld [vmem:[%s202_s12 + $0xc] ss:$16 sps:$4 sm:$0xff]   ;;  %537 = vmatprep.mubr.bf16.mxu0 %v863_v33 }
  0x14   : > { %578 = vmatprep.mubr.bf16.mxu1 %v866_v35 }
  0x15   : > { %768 = vmatpush3.bf16.msra.mxu0 %v843_v14 }
  0x16   : > { %790 = vmatpush3.bf16.msra.mxu1 %v844_v15  ;;  %769 = vmatprep.subr.bf16.mxu0 %v845_v16 }
  0x17   : > { %791 = vmatprep.subr.bf16.mxu1 %v846_v17 }
  0x19   : > { %770 = vmatpush3.bf16.msra.mxu0 %v847_v18 }
  0x1a   : > { %792 = vmatpush3.bf16.msra.mxu1 %v848_v19  ;;  %771 = vmatprep.subr.bf16.mxu0 %v849_v20 }
  0x1b   : > { %793 = vmatprep.subr.bf16.mxu1 %v850_v21 }
  0x1d   : > { %772 = vmatpush3.bf16.msra.mxu0 %v851_v22 }
  0x1e   : > { %794 = vmatpush3.bf16.msra.mxu1 %v852_v23  ;;  %773 = vmatprep.subr.bf16.mxu0 %v853_v24 }
  0x1f   : > { %795 = vmatprep.subr.bf16.mxu1 %v854_v25 }
  0x21   : > { %774 = vmatpush3.bf16.msra.mxu0 %v855_v26 }
  0x22   : > { %796 = vmatpush3.bf16.msra.mxu1 %v856_v27  ;;  %775 = vmatprep.subr.bf16.mxu0 %v857_v28 }
  0x23   : > { %797 = vmatprep.subr.bf16.mxu1 %v858_v29 }
  0x25   : > { %776 = vmatpush3.bf16.msra.mxu0 %v859_v30 }
  0x26   : > { %798 = vmatpush3.bf16.msra.mxu1 %v860_v31 }
  0x28   : > { %538 = vmatmul.mubr.bf16.vlgmr.msra.gmra.mrb[0].mxu0 %v861_v32 }
  0x29   : > { %579 = vmatmul.mubr.bf16.vlgmr.msra.gmra.mrb[0].mxu1 %v864_v34 }
  0xfb   : > { %v777_v36 = vpop.f32.mrb[0].mxu0 }
  0xfc   : > { %v799_v37 = vpop.f32.mrb[0].mxu1  ;;  %v778_v38 = vpop.f32.mrb[1].mxu0 }
  0xfd   : > { %v779_v39 = vadd.f32 %v778_v38, %v777_v36  ;;  %v800_v40 = vpop.f32.mrb[1].mxu1  ;;  %v780_v41 = vpop.f32.mrb[2].mxu0 }
  0xfe   : > { %v801_v42 = vadd.f32 %v800_v40, %v799_v37  ;;  %v802_v43 = vpop.f32.mrb[2].mxu1  ;;  %v781_v44 = vpop.f32.mrb[3].mxu0 }
  0xff   : > { %v782_v46 = vadd.f32 %v781_v44, %v780_v41  ;;  %v803_v47 = vpop.f32.mrb[3].mxu1 }
 0x100   : > { %v581_v48 = vadd.f32 %v801_v42, %v779_v39  ;;  %v804_v49 = vadd.f32 %v803_v47, %v802_v43 }
 0x102   : > { %v603_v50 = vadd.f32 %v748_v45, %v581_v48  ;;  %v584_v51 = vadd.f32 %v804_v49, %v782_v46 }
 0x104   : > { %v607_v52 = vmul.f32 0.1, %v603_v50  ;;  %v604_v53 = vadd.f32 %v748_v45, %v584_v51  ;;  %vm605_vm0 = vcmp.ge.f32.partialorder %v603_v50, 0.0 }
 0x106   : > { %vm606_vm1 = vcmp.ge.f32.partialorder %v604_v53, 0.0  ;;  %v608_v54 = vmul.f32 0.1, %v604_v53  ;;  %v609_v55 = vsel %vm605_vm0, %v603_v50, %v607_v52 }
 0x108   : > { %v610_v56 = vsel %vm606_vm1, %v604_v53, %v608_v54 }
 0x109   : > { %v759_v57 = vpack.c.bf16 %v610_v56, %v609_v55 }
 0x10b   : > { %760 = vst [vmem:[%s214_s20] sm:$0xff] %v759_v57  }
 0x10c PF: > { %s13_s14 = sadd.s32 1, %s889_s14   ;;  %s1054_s12 = smov %s885_s13 }
 0x10d   : > { %p10_p5 = scmp.ge.s32.totalorder %s13_s14, 10   ;;  %s1055_s13 = smov %s1057_s15 }
 0x10f   :  { %12 = sbr.rel (!%p10_p5) target bundleno = 2 (0x2), region = 73 }

// kernel: tiny_flownet_s.27
= control target key start
LH: loop header
LB: loop body
LE: loop exit
PB: predicated region body
PF: predicated region fallthrough
CT: control target
= control target key end

     0   :  { %s671_s12 = smov 0   ;;  %s673_s13 = smov 0   ;;  %s759_s0 = inlined_call_operand.vmem [shape: bf16[128,256], index: 0, kind: input, shape index: {}]   ;;  %s760_s1 = inlined_call_operand.vmem [shape: bf16[1,256,128], index: 1, kind: input, shape index: {}]   ;;  %s761_s2 = inlined_call_operand.vmem [shape: f32[1,128], index: 2, kind: input, shape index: {}]   ;;  %s762_s3 = inlined_call_operand.vmem [shape: bf16[128,128], index: 3, kind: output, shape index: {}]  }
   0x1   :  { %s675_s14 = smov 0  }
   0x2 LB: > { %s25_s15 = sadd.s32 1, %s645_s13  ;;  %p525_p0 = scmp.ge.s32.totalorder %s649_s14, 1  ;;  %s649_s14 = sphi %s675_s14, %s13_s14   ;;  %s645_s13 = sphi %s673_s13, %s764_s13   ;;  %s641_s12 = sphi %s671_s12, %s763_s12  }
   0x3   : > { %p27_p1 = scmp.ge.s32.totalorder %s25_s15, 8  ;;  %p165_p2 = scmp.lt.s32.totalorder %s649_s14, 9 }
   0x5   : > { %s766_s15 = smov (%p27_p1, %s25_s15), 0  ;;  %p166_p3 = pnand %p525_p0, %p165_p2 }
   0x6   : > { %v608_v0 = vld [vmem:[%s760_s1 + $0x40] sm:$0xff] (!%p166_p3)   ;;  %s526_s18 = sshll.u32 (!%p166_p3), %s641_s12, 1  ;;  %v610_v2 = vld [vmem:[%s760_s1 + $0x48] sm:$0xff] (!%p166_p3)   ;;  %v612_v4 = vld [vmem:[%s760_s1 + $0x50] sm:$0xff] (!%p166_p3)  }
   0x7   : > { %169 = sbr.rel (%p166_p3) target bundleno = 264 (0x108), region = 32  ;;  %v609_v1 = vld [vmem:[%s760_s1] sm:$0xff] (!%p166_p3)   ;;  %562 = vmatprep.subr.bf16.mxu0 (!%p166_p3), %v608_v0  ;;  %v611_v3 = vld [vmem:[%s760_s1 + $0x8] sm:$0xff] (!%p166_p3)   ;;  %p198_p4 = scmp.lt.s32.totalorder (!%p166_p3), %s526_s18, 15  ;;  %v613_v5 = vld [vmem:[%s760_s1 + $0x10] sm:$0xff] (!%p166_p3)  }
   0x8   : > { %563 = vmatpush3.bf16.msra.mxu0 (!%p166_p3), %v609_v1  ;;  %v614_v6 = vld [vmem:[%s760_s1 + $0x58] sm:$0xff] (!%p166_p3)   ;;  %v616_v8 = vld [vmem:[%s760_s1 + $0x60] sm:$0xff] (!%p166_p3)   ;;  %v618_v10 = vld [vmem:[%s760_s1 + $0x68] sm:$0xff] (!%p166_p3)  }
   0x9   : > { %564 = vmatprep.subr.bf16.mxu0 (!%p166_p3), %v610_v2  ;;  %v615_v7 = vld [vmem:[%s760_s1 + $0x18] sm:$0xff] (!%p166_p3)   ;;  %v617_v9 = vld [vmem:[%s760_s1 + $0x20] sm:$0xff] (!%p166_p3)   ;;  %v619_v12 = vld [vmem:[%s760_s1 + $0x28] sm:$0xff] (!%p166_p3)  }
   0xa   : > { %v620_v13 = vld [vmem:[%s760_s1 + $0x70] sm:$0xff] (!%p166_p3)   ;;  %v622_v15 = vld [vmem:[%s760_s1 + $0x78] sm:$0xff] (!%p166_p3)   ;;  %v549_v20 = vld [vmem:[%s761_s2] ss:$0 sm:$0xff] (!%p166_p3) }
   0xb   : > { %v621_v14 = vld [vmem:[%s760_s1 + $0x30] sm:$0xff] (!%p166_p3)   ;;  %v623_v16 = vld [vmem:[%s760_s1 + $0x38] sm:$0xff] (!%p166_p3)  }
   0xc   : > { %565 = vmatpush3.bf16.msra.mxu0 (!%p166_p3), %v611_v3 }
   0xd   : > { %566 = vmatprep.subr.bf16.mxu0 (!%p166_p3), %v612_v4 }
   0xe   : > { %s768_s18 = smov (!%p198_p4, %s526_s18), 15 }
   0xf   : > { %s554_s6 = sshll.u32 %s768_s18, 3  ;;  %s530_s5 = sshll.u32 %s768_s18, 2 }
  0x10   : > { %567 = vmatpush3.bf16.msra.mxu0 %v613_v5  ;;  %s202_s11 = scalar_lea.vmem %s759_s0, %s554_s6  ;;  %s214_s8 = scalar_lea.vmem %s762_s3, %s530_s5 }
  0x11   : > { %568 = vmatprep.subr.bf16.mxu0 %v614_v6  ;;  %v626_v11 = vld [vmem:[%s202_s11 + $0x4] ss:$8 sps:$4 sm:$0xff]   ;;  %v624_v17 = vld [vmem:[%s202_s11] ss:$8 sps:$4 sm:$0xff]  }
  0x12   : > { %397 = vmatprep.mubr.bf16.mxu0 %v626_v11 }
  0x14   : > { %569 = vmatpush3.bf16.msra.mxu0 %v615_v7 }
  0x15   : > { %570 = vmatprep.subr.bf16.mxu0 %v616_v8 }
  0x18   : > { %571 = vmatpush3.bf16.msra.mxu0 %v617_v9 }
  0x19   : > { %572 = vmatprep.subr.bf16.mxu0 %v618_v10 }
  0x1c   : > { %573 = vmatpush3.bf16.msra.mxu0 %v619_v12 }
  0x1d   : > { %574 = vmatprep.subr.bf16.mxu0 %v620_v13 }
  0x20   : > { %575 = vmatpush3.bf16.msra.mxu0 %v621_v14 }
  0x21   : > { %576 = vmatprep.subr.bf16.mxu0 %v622_v15 }
  0x24   : > { %577 = vmatpush3.bf16.msra.mxu0 %v623_v16 }
  0x27   : > { %398 = vmatmul.mubr.bf16.vlgmr.msra.gmra.mrb[0].mxu0 %v624_v17 }
  0xfa   : > { %v578_v18 = vpop.f32.mrb[0].mxu0 }
  0xfb   : > { %v579_v19 = vpop.f32.mrb[1].mxu0 }
  0xfc   : > { %v580_v21 = vadd.f32 %v579_v19, %v578_v18  ;;  %v581_v22 = vpop.f32.mrb[2].mxu0 }
  0xfd   : > { %v582_v23 = vpop.f32.mrb[3].mxu0 }
  0xfe   : > { %v422_v24 = vadd.f32 %v580_v21, %v549_v20  ;;  %v583_v25 = vadd.f32 %v582_v23, %v581_v22 }
 0x100   : > { %v426_v26 = vmul.f32 0.1, %v422_v24  ;;  %v423_v27 = vadd.f32 %v583_v25, %v549_v20  ;;  %vm424_vm0 = vcmp.ge.f32.partialorder %v422_v24, 0.0 }
 0x102   : > { %vm425_vm1 = vcmp.ge.f32.partialorder %v423_v27, 0.0  ;;  %v427_v28 = vmul.f32 0.1, %v423_v27  ;;  %v428_v29 = vsel %vm424_vm0, %v422_v24, %v426_v26 }
 0x104   : > { %v429_v30 = vsel %vm425_vm1, %v423_v27, %v427_v28 }
 0x105   : > { %v560_v31 = vpack.c.bf16 %v429_v30, %v428_v29 }
 0x107   : > { %561 = vst [vmem:[%s214_s8] sm:$0xff] %v560_v31  }
 0x108 PF: > { %s13_s14 = sadd.s32 1, %s649_s14   ;;  %s763_s12 = smov %s645_s13 }
 0x109   : > { %p10_p5 = scmp.ge.s32.totalorder %s13_s14, 10   ;;  %s764_s13 = smov %s766_s15 }
 0x10b   :  { %12 = sbr.rel (!%p10_p5) target bundleno = 2 (0x2), region = 73 }

// kernel: tiny_flownet_s.34
= control target key start
LH: loop header
LB: loop body
LE: loop exit
PB: predicated region body
PF: predicated region fallthrough
CT: control target
= control target key end

     0   :  { %s710_s12 = smov 0   ;;  %s712_s13 = smov 0   ;;  %s799_s0 = inlined_call_operand.vmem [shape: bf16[272,256], index: 0, kind: input, shape index: {}]   ;;  %s800_s1 = inlined_call_operand.vmem [shape: bf16[2,256,128], index: 1, kind: input, shape index: {}]   ;;  %s801_s2 = inlined_call_operand.vmem [shape: f32[1,128], index: 2, kind: input, shape index: {}]   ;;  %s802_s3 = inlined_call_operand.vmem [shape: bf16[256,128], index: 3, kind: output, shape index: {}]  }
   0x1   :  { %s714_s14 = smov 0   ;;  %s716_s15 = smov 0  }
   0x2   :  { %s718_s16 = smov 0  }
   0x3 LB: > { %s22_s17 = sadd.s32 1, %s679_s14  ;;  %s25_s18 = sadd.s32 1, %s683_s15  ;;  %s687_s16 = sphi %s718_s16, %s13_s16   ;;  %s683_s15 = sphi %s716_s15, %s806_s15   ;;  %s679_s14 = sphi %s714_s14, %s805_s14   ;;  %s675_s13 = sphi %s712_s13, %s804_s13   ;;  %s671_s12 = sphi %s710_s12, %s803_s12  }
   0x4   : > { %p23_p0 = scmp.ge.s32.totalorder %s22_s17, 2  ;;  %p525_p1 = scmp.ge.s32.totalorder %s687_s16, 1 }
   0x5   : > { %p165_p2 = scmp.lt.s32.totalorder %s687_s16, 33 }
   0x6   : > { %s808_s17 = smov (%p23_p0, %s22_s17), 0  ;;  %s810_s18 = smov (!%p23_p0, %s25_s18), %s683_s15 }
   0x7   : > { %p166_p3 = pnand %p525_p1, %p165_p2  ;;  %p27_p4 = scmp.ge.s32.totalorder %s810_s18, 16 }
   0x8   : > { %s196_s19 = sadd.s32 (!%p166_p3), %s671_s12, %s675_s13  ;;  %p205_p5 = scmp.lt.s32.totalorder (!%p166_p3), %s671_s12, 1 }
   0x9   : > { %s812_s18 = smov (%p27_p4, %s810_s18), 0  ;;  %169 = sbr.rel (%p166_p3) target bundleno = 295 (0x127), region = 32 }
   0xa   : > { %s526_s20 = sshll.u32 (!%p166_p3), %s196_s19, 1  ;;  %s531_s21 = sshll.u32 (!%p166_p3), %s675_s13, 1 }
   0xb   : > { %p198_p6 = scmp.lt.s32.totalorder (!%p166_p3), %s526_s20, 33  ;;  %p211_p7 = scmp.lt.s32.totalorder (!%p166_p3), %s531_s21, 31 }
   0xc   : > { %p533_p8 = scmp.ne.s32.totalorder (!%p166_p3), %s671_s12, 0 }
  0x10   : > { %s206_s22 = scalar_select %p205_p5, %s671_s12, 1 }
  0x11   : > { %s814_s20 = smov (!%p198_p6, %s526_s20), 33  ;;  %s816_s21 = smov (!%p211_p7, %s531_s21), 31 }
  0x12   : > { %s559_s23 = sshll.u32 %s206_s22, 7  ;;  %s558_s24 = sshll.u32 %s814_s20, 3  ;;  %v689_v0 = vmov (!%p533_p8), 0.0  }
  0x13   : > { %s748_s27 = scalar_lea.vmem %s800_s1, %s559_s23  ;;  %s753_s30 = scalar_lea.vmem %s799_s0, %s558_s24  ;;  %221 = vst [vmem:[#allocation2] sm:$0xff] (!%p533_p8), %v689_v0  ;;  %222 = vst [vmem:[#allocation2 + $0x8] sm:$0xff] (!%p533_p8), %v689_v0 }
  0x14   : > { %s532_s4 = sshll.u32 %s816_s21, 2  ;;  %220 = sbr.rel (%p533_p8) target bundleno = 27 (0x1b), region = 36 }
  0x15   : > { %s758_s7 = scalar_lea.vmem %s802_s3, %s532_s4 }
  0x1b PF: > { %v630_v1 = vld [vmem:[%s748_s27 + $0x40] sm:$0xff]   ;;  %v632_v3 = vld [vmem:[%s748_s27 + $0x48] sm:$0xff]   ;;  %v634_v5 = vld [vmem:[%s748_s27 + $0x50] sm:$0xff]   ;;  %p552_p9 = scmp.ne.s32.totalorder %s671_s12, 1 }
  0x1c   : > { %v631_v2 = vld [vmem:[%s748_s27] sm:$0xff]   ;;  %567 = vmatprep.subr.bf16.mxu0 %v630_v1  ;;  %v633_v4 = vld [vmem:[%s748_s27 + $0x8] sm:$0xff]   ;;  %v635_v6 = vld [vmem:[%s748_s27 + $0x10] sm:$0xff]  }
  0x1d   : > { %568 = vmatpush3.bf16.msra.mxu0 %v631_v2  ;;  %v636_v7 = vld [vmem:[%s748_s27 + $0x58] sm:$0xff]   ;;  %v638_v9 = vld [vmem:[%s748_s27 + $0x60] sm:$0xff]   ;;  %v640_v11 = vld [vmem:[%s748_s27 + $0x68] sm:$0xff]  }
  0x1e   : > { %569 = vmatprep.subr.bf16.mxu0 %v632_v3  ;;  %v637_v8 = vld [vmem:[%s748_s27 + $0x18] sm:$0xff]   ;;  %v639_v10 = vld [vmem:[%s748_s27 + $0x20] sm:$0xff]   ;;  %v641_v13 = vld [vmem:[%s748_s27 + $0x28] sm:$0xff]  }
  0x1f   : > { %v648_v12 = vld [vmem:[%s753_s30 + $0x4] ss:$8 sps:$4 sm:$0xff]   ;;  %v642_v14 = vld [vmem:[%s748_s27 + $0x70] sm:$0xff]   ;;  %v644_v16 = vld [vmem:[%s748_s27 + $0x78] sm:$0xff]  }
  0x20   : > { %397 = vmatprep.mubr.bf16.mxu0 %v648_v12  ;;  %v643_v15 = vld [vmem:[%s748_s27 + $0x30] sm:$0xff]   ;;  %v645_v17 = vld [vmem:[%s748_s27 + $0x38] sm:$0xff]   ;;  %v646_v18 = vld [vmem:[%s753_s30] ss:$8 sps:$4 sm:$0xff]  }
  0x21   : > { %570 = vmatpush3.bf16.msra.mxu0 %v633_v4  ;;  %v223_v20 = vld [vmem:[#allocation2] sm:$0xff]  ;;  %v224_v24 = vld [vmem:[#allocation2 + $0x8] sm:$0xff] }
  0x22   : > { %571 = vmatprep.subr.bf16.mxu0 %v634_v5  ;;  %v553_v31 = vld [vmem:[%s801_s2] ss:$0 sm:$0xff] (!%p552_p9) }
  0x25   : > { %572 = vmatpush3.bf16.msra.mxu0 %v635_v6 }
  0x26   : > { %573 = vmatprep.subr.bf16.mxu0 %v636_v7 }
  0x29   : > { %574 = vmatpush3.bf16.msra.mxu0 %v637_v8 }
  0x2a   : > { %575 = vmatprep.subr.bf16.mxu0 %v638_v9 }
  0x2d   : > { %576 = vmatpush3.bf16.msra.mxu0 %v639_v10 }
  0x2e   : > { %577 = vmatprep.subr.bf16.mxu0 %v640_v11 }
  0x31   : > { %578 = vmatpush3.bf16.msra.mxu0 %v641_v13 }
  0x32   : > { %579 = vmatprep.subr.bf16.mxu0 %v642_v14 }
  0x35   : > { %580 = vmatpush3.bf16.msra.mxu0 %v643_v15 }
  0x36   : > { %581 = vmatprep.subr.bf16.mxu0 %v644_v16 }
  0x39   : > { %582 = vmatpush3.bf16.msra.mxu0 %v645_v17 }
  0x3c   : > { %398 = vmatmul.mubr.bf16.vlgmr.msra.gmra.mrb[0].mxu0 %v646_v18 }
 0x10f   : > { %v583_v19 = vpop.f32.mrb[0].mxu0 }
 0x110   : > { %v584_v21 = vpop.f32.mrb[1].mxu0 }
 0x111   : > { %v585_v22 = vadd.f32 %v584_v21, %v583_v19  ;;  %v586_v23 = vpop.f32.mrb[2].mxu0  ;;  %413 = sbr.rel (%p552_p9) target bundleno = 295 (0x127), region = 40 }
 0x112   : > { %v587_v25 = vpop.f32.mrb[3].mxu0 }
 0x113   : > { %v406_v26 = vadd.f32 %v585_v22, %v223_v20  ;;  %v588_v27 = vadd.f32 %v587_v25, %v586_v23 }
 0x115   : > { %408 = vst [vmem:[#allocation2] sm:$0xff] %v406_v26  ;;  %v407_v28 = vadd.f32 %v588_v27, %v224_v24 }
 0x117   : > { %409 = vst [vmem:[#allocation2 + $0x8] sm:$0xff] %v407_v28 }
 0x11c   : > { %v414_v29 = vld [vmem:[#allocation2] sm:$0xff] }
 0x11d   : > { %v423_v32 = vadd.f32 %v553_v31, %v414_v29 }
 0x11e   : > { %v415_v30 = vld [vmem:[#allocation2 + $0x8] sm:$0xff] }
 0x11f   : > { %v424_v33 = vadd.f32 %v553_v31, %v415_v30  ;;  %vm425_vm0 = vcmp.ge.f32.partialorder %v423_v32, 0.0  ;;  %v427_v34 = vmul.f32 0.1, %v423_v32 }
 0x121   : > { %vm426_vm1 = vcmp.ge.f32.partialorder %v424_v33, 0.0  ;;  %v428_v35 = vmul.f32 0.1, %v424_v33  ;;  %v429_v36 = vsel %vm425_vm0, %v423_v32, %v427_v34 }
 0x123   : > { %v430_v37 = vsel %vm426_vm1, %v424_v33, %v428_v35 }
 0x124   : > { %v565_v38 = vpack.c.bf16 %v430_v37, %v429_v36 }
 0x126   : > { %566 = vst [vmem:[%s758_s7] sm:$0xff] %v565_v38  }
 0x127 PF: > { %s13_s16 = sadd.s32 1, %s687_s16   ;;  %s803_s12 = smov %s679_s14 }
 0x128   : > { %p10_p10 = scmp.ge.s32.totalorder %s13_s16, 34   ;;  %s804_s13 = smov %s683_s15 }
 0x129   : > { %s805_s14 = smov %s808_s17  ;;  %s806_s15 = smov %s812_s18 }
 0x12a   :  { %12 = sbr.rel (!%p10_p10) target bundleno = 3 (0x3), region = 73 }

// kernel: tiny_flownet_s.31
= control target key start
LH: loop header
LB: loop body
LE: loop exit
PB: predicated region body
PF: predicated region fallthrough
CT: control target
= control target key end

     0   :  { %s590_s12 = smov 0   ;;  %s592_s13 = smov 0   ;;  %s657_s0 = inlined_call_operand.vmem [shape: bf16[256,128], index: 0, kind: input, shape index: {}]   ;;  %s658_s1 = inlined_call_operand.vmem [shape: bf16[1,128,128], index: 1, kind: input, shape index: {}]   ;;  %s659_s2 = inlined_call_operand.vmem [shape: f32[1,128], index: 2, kind: input, shape index: {}]   ;;  %s660_s3 = inlined_call_operand.vmem [shape: bf16[256,128], index: 3, kind: output, shape index: {}]  }
   0x1   :  { %s594_s14 = smov 0  }
   0x2 LB: > { %s25_s15 = sadd.s32 1, %s562_s13  ;;  %p454_p0 = scmp.ge.s32.totalorder %s566_s14, 1  ;;  %s566_s14 = sphi %s594_s14, %s13_s14   ;;  %s562_s13 = sphi %s592_s13, %s662_s13   ;;  %s558_s12 = sphi %s590_s12, %s661_s12  }
   0x3   : > { %p27_p1 = scmp.ge.s32.totalorder %s25_s15, 16  ;;  %p164_p2 = scmp.lt.s32.totalorder %s566_s14, 17 }
   0x5   : > { %s664_s15 = smov (%p27_p1, %s25_s15), 0  ;;  %p165_p3 = pnand %p454_p0, %p164_p2 }
   0x6   : > { %v535_v0 = vld [vmem:[%s658_s1] sm:$0xff] (!%p165_p3)   ;;  %v568_v1 = vmov (!%p165_p3), 0.0   ;;  %v536_v2 = vld [vmem:[%s658_s1 + $0x8] sm:$0xff] (!%p165_p3)   ;;  %vm569_vm0 = vmmov (!%p165_p3), 0   ;;  %s455_s20 = sshll.u32 (!%p165_p3), %s558_s12, 1  ;;  %v537_v3 = vld [vmem:[%s658_s1 + $0x10] sm:$0xff] (!%p165_p3)  }
   0x7   : > { %168 = sbr.rel (%p165_p3) target bundleno = 261 (0x105), region = 32  ;;  %489 = vmatprep.subr.bf16.mxu0 (!%p165_p3), %v568_v1  ;;  %505 = vmatprep.mubr.msk.bf16.mxu0 (!%p165_p3), %vm569_vm0, %v568_v1  ;;  %p196_p4 = scmp.lt.s32.totalorder (!%p165_p3), %s455_s20, 31  ;;  %v538_v4 = vld [vmem:[%s658_s1 + $0x18] sm:$0xff] (!%p165_p3)   ;;  %v539_v5 = vld [vmem:[%s658_s1 + $0x20] sm:$0xff] (!%p165_p3)   ;;  %v540_v6 = vld [vmem:[%s658_s1 + $0x28] sm:$0xff] (!%p165_p3)  }
   0x8   : > { %490 = vmatpush3.bf16.msra.mxu0 (!%p165_p3), %v535_v0  ;;  %v541_v7 = vld [vmem:[%s658_s1 + $0x30] sm:$0xff] (!%p165_p3)   ;;  %v542_v8 = vld [vmem:[%s658_s1 + $0x38] sm:$0xff] (!%p165_p3)   ;;  %v468_v10 = vld [vmem:[%s659_s2] ss:$0 sm:$0xff] (!%p165_p3) }
   0x9   : > { %491 = vmatprep.subr.bf16.mxu0 (!%p165_p3), %v568_v1 }
   0xc   : > { %492 = vmatpush3.bf16.msra.mxu0 (!%p165_p3), %v536_v2 }
   0xd   : > { %493 = vmatprep.subr.bf16.mxu0 (!%p165_p3), %v568_v1 }
   0xe   : > { %s666_s20 = smov (!%p196_p4, %s455_s20), 31 }
   0xf   : > { %s456_s23 = sshll.u32 %s666_s20, 2 }
  0x10   : > { %s199_s26 = scalar_lea.vmem %s657_s0, %s456_s23  ;;  %494 = vmatpush3.bf16.msra.mxu0 %v537_v3  ;;  %s211_s17 = scalar_lea.vmem %s660_s3, %s456_s23 }
  0x11   : > { %495 = vmatprep.subr.bf16.mxu0 %v568_v1  ;;  %v543_v9 = vld [vmem:[%s199_s26] sm:$0xff]  }
  0x14   : > { %496 = vmatpush3.bf16.msra.mxu0 %v538_v4 }
  0x15   : > { %497 = vmatprep.subr.bf16.mxu0 %v568_v1 }
  0x18   : > { %498 = vmatpush3.bf16.msra.mxu0 %v539_v5 }
  0x19   : > { %499 = vmatprep.subr.bf16.mxu0 %v568_v1 }
  0x1c   : > { %500 = vmatpush3.bf16.msra.mxu0 %v540_v6 }
  0x1d   : > { %501 = vmatprep.subr.bf16.mxu0 %v568_v1 }
  0x20   : > { %502 = vmatpush3.bf16.msra.mxu0 %v541_v7 }
  0x21   : > { %503 = vmatprep.subr.bf16.mxu0 %v568_v1 }
  0x24   : > { %504 = vmatpush3.bf16.msra.mxu0 %v542_v8 }
  0x27   : > { %506 = vmatmul.mubr.bf16.vlgmr.msra.gmra.mrb[0].mxu0 %v543_v9 }
  0xfa   : > { %v328_v11 = vpop.f32.mrb[0].mxu0 }
  0xfb   : > { %v351_v12 = vadd.f32 %v468_v10, %v328_v11  ;;  %v507_v13 = vpop.f32.mrb[1].mxu0 }
  0xfc   : > { %v331_v14 = vpop.f32.mrb[2].mxu0 }
  0xfd   : > { %v355_v15 = vmul.f32 0.1, %v351_v12  ;;  %v352_v16 = vadd.f32 %v468_v10, %v331_v14  ;;  %v508_v17 = vpop.f32.mrb[3].mxu0  ;;  %vm353_vm1 = vcmp.ge.f32.partialorder %v351_v12, 0.0 }
  0xff   : > { %vm354_vm2 = vcmp.ge.f32.partialorder %v352_v16, 0.0  ;;  %v356_v18 = vmul.f32 0.1, %v352_v16  ;;  %v357_v19 = vsel %vm353_vm1, %v351_v12, %v355_v15 }
 0x101   : > { %v358_v20 = vsel %vm354_vm2, %v352_v16, %v356_v18 }
 0x102   : > { %v478_v21 = vpack.c.bf16 %v358_v20, %v357_v19 }
 0x104   : > { %479 = vst [vmem:[%s211_s17] sm:$0xff] %v478_v21  }
 0x105 PF: > { %s13_s14 = sadd.s32 1, %s566_s14   ;;  %s661_s12 = smov %s562_s13 }
 0x106   : > { %p10_p5 = scmp.ge.s32.totalorder %s13_s14, 18   ;;  %s662_s13 = smov %s664_s15 }
 0x108   :  { %12 = sbr.rel (!%p10_p5) target bundleno = 2 (0x2), region = 73 }

// kernel: tiny_flownet_s.32
= control target key start
LH: loop header
LB: loop body
LE: loop exit
PB: predicated region body
PF: predicated region fallthrough
CT: control target
= control target key end

     0   :  { %s671_s12 = smov 0   ;;  %s673_s13 = smov 0   ;;  %s759_s0 = inlined_call_operand.vmem [shape: bf16[256,256], index: 0, kind: input, shape index: {}]   ;;  %s760_s1 = inlined_call_operand.vmem [shape: bf16[1,256,128], index: 1, kind: input, shape index: {}]   ;;  %s761_s2 = inlined_call_operand.vmem [shape: f32[1,128], index: 2, kind: input, shape index: {}]   ;;  %s762_s3 = inlined_call_operand.vmem [shape: bf16[256,128], index: 3, kind: output, shape index: {}]  }
   0x1   :  { %s675_s14 = smov 0  }
   0x2 LB: > { %s25_s15 = sadd.s32 1, %s645_s13  ;;  %p525_p0 = scmp.ge.s32.totalorder %s649_s14, 1  ;;  %s649_s14 = sphi %s675_s14, %s13_s14   ;;  %s645_s13 = sphi %s673_s13, %s764_s13   ;;  %s641_s12 = sphi %s671_s12, %s763_s12  }
   0x3   : > { %p27_p1 = scmp.ge.s32.totalorder %s25_s15, 16  ;;  %p165_p2 = scmp.lt.s32.totalorder %s649_s14, 17 }
   0x5   : > { %s766_s15 = smov (%p27_p1, %s25_s15), 0  ;;  %p166_p3 = pnand %p525_p0, %p165_p2 }
   0x6   : > { %v608_v0 = vld [vmem:[%s760_s1 + $0x40] sm:$0xff] (!%p166_p3)   ;;  %s526_s18 = sshll.u32 (!%p166_p3), %s641_s12, 1  ;;  %v610_v2 = vld [vmem:[%s760_s1 + $0x48] sm:$0xff] (!%p166_p3)   ;;  %v612_v4 = vld [vmem:[%s760_s1 + $0x50] sm:$0xff] (!%p166_p3)  }
   0x7   : > { %169 = sbr.rel (%p166_p3) target bundleno = 264 (0x108), region = 32  ;;  %v609_v1 = vld [vmem:[%s760_s1] sm:$0xff] (!%p166_p3)   ;;  %562 = vmatprep.subr.bf16.mxu0 (!%p166_p3), %v608_v0  ;;  %v611_v3 = vld [vmem:[%s760_s1 + $0x8] sm:$0xff] (!%p166_p3)   ;;  %p198_p4 = scmp.lt.s32.totalorder (!%p166_p3), %s526_s18, 31  ;;  %v613_v5 = vld [vmem:[%s760_s1 + $0x10] sm:$0xff] (!%p166_p3)  }
   0x8   : > { %563 = vmatpush3.bf16.msra.mxu0 (!%p166_p3), %v609_v1  ;;  %v614_v6 = vld [vmem:[%s760_s1 + $0x58] sm:$0xff] (!%p166_p3)   ;;  %v616_v8 = vld [vmem:[%s760_s1 + $0x60] sm:$0xff] (!%p166_p3)   ;;  %v618_v10 = vld [vmem:[%s760_s1 + $0x68] sm:$0xff] (!%p166_p3)  }
   0x9   : > { %564 = vmatprep.subr.bf16.mxu0 (!%p166_p3), %v610_v2  ;;  %v615_v7 = vld [vmem:[%s760_s1 + $0x18] sm:$0xff] (!%p166_p3)   ;;  %v617_v9 = vld [vmem:[%s760_s1 + $0x20] sm:$0xff] (!%p166_p3)   ;;  %v619_v12 = vld [vmem:[%s760_s1 + $0x28] sm:$0xff] (!%p166_p3)  }
   0xa   : > { %v620_v13 = vld [vmem:[%s760_s1 + $0x70] sm:$0xff] (!%p166_p3)   ;;  %v622_v15 = vld [vmem:[%s760_s1 + $0x78] sm:$0xff] (!%p166_p3)   ;;  %v549_v20 = vld [vmem:[%s761_s2] ss:$0 sm:$0xff] (!%p166_p3) }
   0xb   : > { %v621_v14 = vld [vmem:[%s760_s1 + $0x30] sm:$0xff] (!%p166_p3)   ;;  %v623_v16 = vld [vmem:[%s760_s1 + $0x38] sm:$0xff] (!%p166_p3)  }
   0xc   : > { %565 = vmatpush3.bf16.msra.mxu0 (!%p166_p3), %v611_v3 }
   0xd   : > { %566 = vmatprep.subr.bf16.mxu0 (!%p166_p3), %v612_v4 }
   0xe   : > { %s768_s18 = smov (!%p198_p4, %s526_s18), 31 }
   0xf   : > { %s554_s6 = sshll.u32 %s768_s18, 3  ;;  %s530_s5 = sshll.u32 %s768_s18, 2 }
  0x10   : > { %567 = vmatpush3.bf16.msra.mxu0 %v613_v5  ;;  %s202_s11 = scalar_lea.vmem %s759_s0, %s554_s6  ;;  %s214_s8 = scalar_lea.vmem %s762_s3, %s530_s5 }
  0x11   : > { %568 = vmatprep.subr.bf16.mxu0 %v614_v6  ;;  %v626_v11 = vld [vmem:[%s202_s11 + $0x4] ss:$8 sps:$4 sm:$0xff]   ;;  %v624_v17 = vld [vmem:[%s202_s11] ss:$8 sps:$4 sm:$0xff]  }
  0x12   : > { %397 = vmatprep.mubr.bf16.mxu0 %v626_v11 }
  0x14   : > { %569 = vmatpush3.bf16.msra.mxu0 %v615_v7 }
  0x15   : > { %570 = vmatprep.subr.bf16.mxu0 %v616_v8 }
  0x18   : > { %571 = vmatpush3.bf16.msra.mxu0 %v617_v9 }
  0x19   : > { %572 = vmatprep.subr.bf16.mxu0 %v618_v10 }
  0x1c   : > { %573 = vmatpush3.bf16.msra.mxu0 %v619_v12 }
  0x1d   : > { %574 = vmatprep.subr.bf16.mxu0 %v620_v13 }
  0x20   : > { %575 = vmatpush3.bf16.msra.mxu0 %v621_v14 }
  0x21   : > { %576 = vmatprep.subr.bf16.mxu0 %v622_v15 }
  0x24   : > { %577 = vmatpush3.bf16.msra.mxu0 %v623_v16 }
  0x27   : > { %398 = vmatmul.mubr.bf16.vlgmr.msra.gmra.mrb[0].mxu0 %v624_v17 }
  0xfa   : > { %v578_v18 = vpop.f32.mrb[0].mxu0 }
  0xfb   : > { %v579_v19 = vpop.f32.mrb[1].mxu0 }
  0xfc   : > { %v580_v21 = vadd.f32 %v579_v19, %v578_v18  ;;  %v581_v22 = vpop.f32.mrb[2].mxu0 }
  0xfd   : > { %v582_v23 = vpop.f32.mrb[3].mxu0 }
  0xfe   : > { %v422_v24 = vadd.f32 %v580_v21, %v549_v20  ;;  %v583_v25 = vadd.f32 %v582_v23, %v581_v22 }
 0x100   : > { %v426_v26 = vmul.f32 0.1, %v422_v24  ;;  %v423_v27 = vadd.f32 %v583_v25, %v549_v20  ;;  %vm424_vm0 = vcmp.ge.f32.partialorder %v422_v24, 0.0 }
 0x102   : > { %vm425_vm1 = vcmp.ge.f32.partialorder %v423_v27, 0.0  ;;  %v427_v28 = vmul.f32 0.1, %v423_v27  ;;  %v428_v29 = vsel %vm424_vm0, %v422_v24, %v426_v26 }
 0x104   : > { %v429_v30 = vsel %vm425_vm1, %v423_v27, %v427_v28 }
 0x105   : > { %v560_v31 = vpack.c.bf16 %v429_v30, %v428_v29 }
 0x107   : > { %561 = vst [vmem:[%s214_s8] sm:$0xff] %v560_v31  }
 0x108 PF: > { %s13_s14 = sadd.s32 1, %s649_s14   ;;  %s763_s12 = smov %s645_s13 }
 0x109   : > { %p10_p5 = scmp.ge.s32.totalorder %s13_s14, 18   ;;  %s764_s13 = smov %s766_s15 }
 0x10b   :  { %12 = sbr.rel (!%p10_p5) target bundleno = 2 (0x2), region = 73 }

// kernel: tiny_flownet_s.33
= control target key start
LH: loop header
LB: loop body
LE: loop exit
PB: predicated region body
PF: predicated region fallthrough
CT: control target
= control target key end

     0   :  { %s629_s12 = smov 0   ;;  %s631_s13 = smov 0   ;;  %s709_s0 = inlined_call_operand.vmem [shape: bf16[272,128], index: 0, kind: input, shape index: {}]   ;;  %s710_s1 = inlined_call_operand.vmem [shape: bf16[2,128,128], index: 1, kind: input, shape index: {}]   ;;  %s711_s2 = inlined_call_operand.vmem [shape: f32[1,128], index: 2, kind: input, shape index: {}]   ;;  %s712_s3 = inlined_call_operand.vmem [shape: bf16[256,128], index: 3, kind: output, shape index: {}]  }
   0x1   :  { %s633_s14 = smov 0   ;;  %s635_s15 = smov 0  }
   0x2   :  { %s637_s16 = smov 0  }
   0x3 LB: > { %s22_s17 = sadd.s32 1, %s596_s14  ;;  %s25_s18 = sadd.s32 1, %s600_s15  ;;  %s604_s16 = sphi %s637_s16, %s13_s16   ;;  %s600_s15 = sphi %s635_s15, %s716_s15   ;;  %s596_s14 = sphi %s633_s14, %s715_s14   ;;  %s592_s13 = sphi %s631_s13, %s714_s13   ;;  %s588_s12 = sphi %s629_s12, %s713_s12  }
   0x4   : > { %p23_p0 = scmp.ge.s32.totalorder %s22_s17, 2  ;;  %p454_p1 = scmp.ge.s32.totalorder %s604_s16, 1 }
   0x5   : > { %p164_p2 = scmp.lt.s32.totalorder %s604_s16, 33 }
   0x6   : > { %s718_s17 = smov (%p23_p0, %s22_s17), 0  ;;  %s720_s18 = smov (!%p23_p0, %s25_s18), %s600_s15 }
   0x7   : > { %p165_p3 = pnand %p454_p1, %p164_p2  ;;  %p27_p4 = scmp.ge.s32.totalorder %s720_s18, 16 }
   0x8   : > { %s194_s19 = sadd.s32 (!%p165_p3), %s588_s12, %s592_s13  ;;  %p202_p5 = scmp.lt.s32.totalorder (!%p165_p3), %s588_s12, 1 }
   0x9   : > { %s722_s18 = smov (%p27_p4, %s720_s18), 0  ;;  %168 = sbr.rel (%p165_p3) target bundleno = 292 (0x124), region = 32 }
   0xa   : > { %s455_s20 = sshll.u32 (!%p165_p3), %s194_s19, 1  ;;  %s459_s21 = sshll.u32 (!%p165_p3), %s592_s13, 1 }
   0xb   : > { %p196_p6 = scmp.lt.s32.totalorder (!%p165_p3), %s455_s20, 33  ;;  %p208_p7 = scmp.lt.s32.totalorder (!%p165_p3), %s459_s21, 31 }
   0xc   : > { %p461_p8 = scmp.ne.s32.totalorder (!%p165_p3), %s588_s12, 0 }
  0x10   : > { %s203_s22 = scalar_select %p202_p5, %s588_s12, 1 }
  0x11   : > { %s724_s20 = smov (!%p196_p6, %s455_s20), 33  ;;  %s726_s21 = smov (!%p208_p7, %s459_s21), 31 }
  0x12   : > { %s477_s23 = sshll.u32 %s203_s22, 6  ;;  %s456_s24 = sshll.u32 %s724_s20, 2  ;;  %v606_v0 = vmov (!%p461_p8), 0.0  }
  0x13   : > { %s667_s27 = scalar_lea.vmem %s710_s1, %s477_s23  ;;  %s672_s30 = scalar_lea.vmem %s709_s0, %s456_s24  ;;  %218 = vst [vmem:[#allocation2] sm:$0xff] (!%p461_p8), %v606_v0  ;;  %219 = vst [vmem:[#allocation2 + $0x8] sm:$0xff] (!%p461_p8), %v606_v0 }
  0x14   : > { %s460_s4 = sshll.u32 %s726_s21, 2  ;;  %217 = sbr.rel (%p461_p8) target bundleno = 27 (0x1b), region = 36 }
  0x15   : > { %s677_s7 = scalar_lea.vmem %s712_s3, %s460_s4 }
  0x1b PF: > { %v557_v1 = vld [vmem:[%s667_s27] sm:$0xff]   ;;  %v607_v2 = vmov 0.0   ;;  %v558_v3 = vld [vmem:[%s667_s27 + $0x8] sm:$0xff]   ;;  %vm608_vm0 = vmmov 0   ;;  %v559_v4 = vld [vmem:[%s667_s27 + $0x10] sm:$0xff]   ;;  %p471_p9 = scmp.ne.s32.totalorder %s588_s12, 1 }
  0x1c   : > { %494 = vmatprep.subr.bf16.mxu0 %v607_v2  ;;  %510 = vmatprep.mubr.msk.bf16.mxu0 %vm608_vm0, %v607_v2  ;;  %v560_v5 = vld [vmem:[%s667_s27 + $0x18] sm:$0xff]   ;;  %v561_v6 = vld [vmem:[%s667_s27 + $0x20] sm:$0xff]   ;;  %v562_v7 = vld [vmem:[%s667_s27 + $0x28] sm:$0xff]  }
  0x1d   : > { %495 = vmatpush3.bf16.msra.mxu0 %v557_v1  ;;  %v563_v8 = vld [vmem:[%s667_s27 + $0x30] sm:$0xff]   ;;  %v564_v9 = vld [vmem:[%s667_s27 + $0x38] sm:$0xff]   ;;  %v565_v10 = vld [vmem:[%s672_s30] sm:$0xff]  }
  0x1e   : > { %496 = vmatprep.subr.bf16.mxu0 %v607_v2  ;;  %v220_v11 = vld [vmem:[#allocation2] sm:$0xff]  ;;  %v221_v13 = vld [vmem:[#allocation2 + $0x8] sm:$0xff] }
  0x1f   : > { %v472_v21 = vld [vmem:[%s711_s2] ss:$0 sm:$0xff] (!%p471_p9) }
  0x21   : > { %497 = vmatpush3.bf16.msra.mxu0 %v558_v3 }
  0x22   : > { %498 = vmatprep.subr.bf16.mxu0 %v607_v2 }
  0x25   : > { %499 = vmatpush3.bf16.msra.mxu0 %v559_v4 }
  0x26   : > { %500 = vmatprep.subr.bf16.mxu0 %v607_v2 }
  0x29   : > { %501 = vmatpush3.bf16.msra.mxu0 %v560_v5 }
  0x2a   : > { %502 = vmatprep.subr.bf16.mxu0 %v607_v2 }
  0x2d   : > { %503 = vmatpush3.bf16.msra.mxu0 %v561_v6 }
  0x2e   : > { %504 = vmatprep.subr.bf16.mxu0 %v607_v2 }
  0x31   : > { %505 = vmatpush3.bf16.msra.mxu0 %v562_v7 }
  0x32   : > { %506 = vmatprep.subr.bf16.mxu0 %v607_v2 }
  0x35   : > { %507 = vmatpush3.bf16.msra.mxu0 %v563_v8 }
  0x36   : > { %508 = vmatprep.subr.bf16.mxu0 %v607_v2 }
  0x39   : > { %509 = vmatpush3.bf16.msra.mxu0 %v564_v9 }
  0x3c   : > { %511 = vmatmul.mubr.bf16.vlgmr.msra.gmra.mrb[0].mxu0 %v565_v10 }
 0x10e   : > { %342 = sbr.rel (%p471_p9) target bundleno = 292 (0x124), region = 40 }
 0x10f   : > { %v328_v12 = vpop.f32.mrb[0].mxu0 }
 0x110   : > { %v335_v14 = vadd.f32 %v328_v12, %v220_v11  ;;  %v512_v15 = vpop.f32.mrb[1].mxu0 }
 0x111   : > { %v331_v16 = vpop.f32.mrb[2].mxu0 }
 0x112   : > { %337 = vst [vmem:[#allocation2] sm:$0xff] %v335_v14  ;;  %v336_v17 = vadd.f32 %v331_v16, %v221_v13  ;;  %v513_v18 = vpop.f32.mrb[3].mxu0 }
 0x114   : > { %338 = vst [vmem:[#allocation2 + $0x8] sm:$0xff] %v336_v17 }
 0x119   : > { %v343_v19 = vld [vmem:[#allocation2] sm:$0xff] }
 0x11a   : > { %v352_v22 = vadd.f32 %v472_v21, %v343_v19 }
 0x11b   : > { %v344_v20 = vld [vmem:[#allocation2 + $0x8] sm:$0xff] }
 0x11c   : > { %v353_v23 = vadd.f32 %v472_v21, %v344_v20  ;;  %vm354_vm1 = vcmp.ge.f32.partialorder %v352_v22, 0.0  ;;  %v356_v24 = vmul.f32 0.1, %v352_v22 }
 0x11e   : > { %vm355_vm2 = vcmp.ge.f32.partialorder %v353_v23, 0.0  ;;  %v357_v25 = vmul.f32 0.1, %v353_v23  ;;  %v358_v26 = vsel %vm354_vm1, %v352_v22, %v356_v24 }
 0x120   : > { %v359_v27 = vsel %vm355_vm2, %v353_v23, %v357_v25 }
 0x121   : > { %v483_v28 = vpack.c.bf16 %v359_v27, %v358_v26 }
 0x123   : > { %484 = vst [vmem:[%s677_s7] sm:$0xff] %v483_v28  }
 0x124 PF: > { %s13_s16 = sadd.s32 1, %s604_s16   ;;  %s713_s12 = smov %s596_s14 }
 0x125   : > { %p10_p10 = scmp.ge.s32.totalorder %s13_s16, 34   ;;  %s714_s13 = smov %s600_s15 }
 0x126   : > { %s715_s14 = smov %s718_s17  ;;  %s716_s15 = smov %s722_s18 }
 0x127   :  { %12 = sbr.rel (!%p10_p10) target bundleno = 3 (0x3), region = 73 }

// kernel: tiny_flownet_s.35
= control target key start
LH: loop header
LB: loop body
LE: loop exit
PB: predicated region body
PF: predicated region fallthrough
CT: control target
= control target key end

     0   :  { %s606_s12 = smov 0   ;;  %s608_s13 = smov 0   ;;  %s687_s0 = inlined_call_operand.vmem [shape: bf16[576,128], index: 0, kind: input, shape index: {}]   ;;  %s688_s1 = inlined_call_operand.vmem [shape: bf16[3,128,128], index: 1, kind: input, shape index: {}]   ;;  %s689_s2 = inlined_call_operand.vmem [shape: f32[1,128], index: 2, kind: input, shape index: {}]   ;;  %s690_s3 = inlined_call_operand.vmem [shape: f32[544,128], index: 3, kind: output, shape index: {}]  }
   0x1   :  { %s610_s14 = smov 0   ;;  %s612_s15 = smov 0  }
   0x2   :  { %s614_s16 = smov 0  }
   0x3 LB: > { %s22_s17 = sadd.s32 1, %s573_s14  ;;  %s25_s18 = sadd.s32 1, %s577_s15  ;;  %s581_s16 = sphi %s614_s16, %s13_s16   ;;  %s577_s15 = sphi %s612_s15, %s694_s15   ;;  %s573_s14 = sphi %s610_s14, %s693_s14   ;;  %s569_s13 = sphi %s608_s13, %s692_s13   ;;  %s565_s12 = sphi %s606_s12, %s691_s12  }
   0x4   : > { %p23_p0 = scmp.ge.s32.totalorder %s22_s17, 3  ;;  %p440_p1 = scmp.ge.s32.totalorder %s581_s16, 1 }
   0x5   : > { %p164_p2 = scmp.lt.s32.totalorder %s581_s16, 103 }
   0x6   : > { %s696_s17 = smov (%p23_p0, %s22_s17), 0  ;;  %s698_s18 = smov (!%p23_p0, %s25_s18), %s577_s15 }
   0x7   : > { %p165_p3 = pnand %p440_p1, %p164_p2  ;;  %p27_p4 = scmp.ge.s32.totalorder %s698_s18, 34 }
   0x8   : > { %s194_s19 = sadd.s32 (!%p165_p3), %s565_s12, %s569_s13  ;;  %p202_p5 = scmp.lt.s32.totalorder (!%p165_p3), %s565_s12, 2 }
   0x9   : > { %s700_s18 = smov (%p27_p4, %s698_s18), 0  ;;  %168 = sbr.rel (%p165_p3) target bundleno = 287 (0x11f), region = 32 }
   0xa   : > { %s441_s20 = sshll.u32 (!%p165_p3), %s194_s19, 1  ;;  %s445_s21 = sshll.u32 (!%p165_p3), %s569_s13, 1 }
   0xb   : > { %p196_p6 = scmp.lt.s32.totalorder (!%p165_p3), %s441_s20, 71  ;;  %p208_p7 = scmp.lt.s32.totalorder (!%p165_p3), %s445_s21, 67 }
   0xc   : > { %p447_p8 = scmp.ne.s32.totalorder (!%p165_p3), %s565_s12, 0 }
  0x10   : > { %s203_s22 = scalar_select %p202_p5, %s565_s12, 2 }
  0x11   : > { %s702_s20 = smov (!%p196_p6, %s441_s20), 71  ;;  %s704_s21 = smov (!%p208_p7, %s445_s21), 67 }
  0x12   : > { %s461_s23 = sshll.u32 %s203_s22, 6  ;;  %s442_s24 = sshll.u32 %s702_s20, 2  ;;  %v583_v0 = vmov (!%p447_p8), 0.0  }
  0x13   : > { %s644_s27 = scalar_lea.vmem %s688_s1, %s461_s23  ;;  %s649_s30 = scalar_lea.vmem %s687_s0, %s442_s24  ;;  %218 = vst [vmem:[#allocation2] sm:$0xff] (!%p447_p8), %v583_v0  ;;  %219 = vst [vmem:[#allocation2 + $0x8] sm:$0xff] (!%p447_p8), %v583_v0 }
  0x14   : > { %s446_s4 = sshll.u32 %s704_s21, 3  ;;  %217 = sbr.rel (%p447_p8) target bundleno = 27 (0x1b), region = 36 }
  0x15   : > { %s654_s7 = scalar_lea.vmem %s690_s3, %s446_s4 }
  0x1b PF: > { %v534_v1 = vld [vmem:[%s644_s27] sm:$0xff]   ;;  %v584_v2 = vmov 0.0   ;;  %v535_v3 = vld [vmem:[%s644_s27 + $0x8] sm:$0xff]   ;;  %vm585_vm0 = vmmov 0   ;;  %v536_v4 = vld [vmem:[%s644_s27 + $0x10] sm:$0xff]   ;;  %p457_p9 = scmp.ne.s32.totalorder %s565_s12, 2 }
  0x1c   : > { %471 = vmatprep.subr.bf16.mxu0 %v584_v2  ;;  %487 = vmatprep.mubr.msk.bf16.mxu0 %vm585_vm0, %v584_v2  ;;  %v537_v5 = vld [vmem:[%s644_s27 + $0x18] sm:$0xff]   ;;  %v538_v6 = vld [vmem:[%s644_s27 + $0x20] sm:$0xff]   ;;  %v539_v7 = vld [vmem:[%s644_s27 + $0x28] sm:$0xff]  }
  0x1d   : > { %472 = vmatpush3.bf16.msra.mxu0 %v534_v1  ;;  %v540_v8 = vld [vmem:[%s644_s27 + $0x30] sm:$0xff]   ;;  %v541_v9 = vld [vmem:[%s644_s27 + $0x38] sm:$0xff]   ;;  %v542_v10 = vld [vmem:[%s649_s30] sm:$0xff]  }
  0x1e   : > { %473 = vmatprep.subr.bf16.mxu0 %v584_v2  ;;  %v220_v11 = vld [vmem:[#allocation2] sm:$0xff]  ;;  %v221_v13 = vld [vmem:[#allocation2 + $0x8] sm:$0xff] }
  0x1f   : > { %v458_v20 = vld [vmem:[%s689_s2] ss:$0 sm:$0xff] (!%p457_p9) }
  0x21   : > { %474 = vmatpush3.bf16.msra.mxu0 %v535_v3 }
  0x22   : > { %475 = vmatprep.subr.bf16.mxu0 %v584_v2 }
  0x25   : > { %476 = vmatpush3.bf16.msra.mxu0 %v536_v4 }
  0x26   : > { %477 = vmatprep.subr.bf16.mxu0 %v584_v2 }
  0x29   : > { %478 = vmatpush3.bf16.msra.mxu0 %v537_v5 }
  0x2a   : > { %479 = vmatprep.subr.bf16.mxu0 %v584_v2 }
  0x2d   : > { %480 = vmatpush3.bf16.msra.mxu0 %v538_v6 }
  0x2e   : > { %481 = vmatprep.subr.bf16.mxu0 %v584_v2 }
  0x31   : > { %482 = vmatpush3.bf16.msra.mxu0 %v539_v7 }
  0x32   : > { %483 = vmatprep.subr.bf16.mxu0 %v584_v2 }
  0x35   : > { %484 = vmatpush3.bf16.msra.mxu0 %v540_v8 }
  0x36   : > { %485 = vmatprep.subr.bf16.mxu0 %v584_v2 }
  0x39   : > { %486 = vmatpush3.bf16.msra.mxu0 %v541_v9 }
  0x3c   : > { %488 = vmatmul.mubr.bf16.vlgmr.msra.gmra.mrb[0].mxu0 %v542_v10 }
 0x10e   : > { %342 = sbr.rel (%p457_p9) target bundleno = 287 (0x11f), region = 40 }
 0x10f   : > { %v328_v12 = vpop.f32.mrb[0].mxu0 }
 0x110   : > { %v335_v14 = vadd.f32 %v328_v12, %v220_v11  ;;  %v489_v15 = vpop.f32.mrb[1].mxu0 }
 0x111   : > { %v331_v16 = vpop.f32.mrb[2].mxu0 }
 0x112   : > { %337 = vst [vmem:[#allocation2] sm:$0xff] %v335_v14  ;;  %v336_v17 = vadd.f32 %v331_v16, %v221_v13  ;;  %v490_v18 = vpop.f32.mrb[3].mxu0 }
 0x114   : > { %338 = vst [vmem:[#allocation2 + $0x8] sm:$0xff] %v336_v17 }
 0x119   : > { %v343_v19 = vld [vmem:[#allocation2] sm:$0xff] }
 0x11a   : > { %v352_v22 = vadd.f32 %v458_v20, %v343_v19 }
 0x11b   : > { %v344_v21 = vld [vmem:[#allocation2 + $0x8] sm:$0xff] }
 0x11c   : > { %v353_v23 = vadd.f32 %v458_v20, %v344_v21  ;;  %354 = vst [vmem:[%s654_s7] sm:$0xff] %v352_v22 }
 0x11e   : > { %355 = vst [vmem:[%s654_s7 + $0x8] sm:$0xff] %v353_v23 }
 0x11f PF: > { %s13_s16 = sadd.s32 1, %s581_s16   ;;  %s691_s12 = smov %s573_s14 }
 0x120   : > { %p10_p10 = scmp.ge.s32.totalorder %s13_s16, 104   ;;  %s692_s13 = smov %s577_s15 }
 0x121   : > { %s693_s14 = smov %s696_s17  ;;  %s694_s15 = smov %s700_s18 }
 0x122   :  { %12 = sbr.rel (!%p10_p10) target bundleno = 3 (0x3), region = 73 }

</bundles_post_ra>
